<compile_context>
chip_gen: v5e
topology: v5e:2x2
jax: 0.10.0
libtpu: 0.0.40
codegen_flags: <defaults>
</compile_context>

<pallas_src>
import functools

import jax
import jax.numpy as jnp
from jax.experimental import pallas as pl
from jax.experimental.pallas import tpu as pltpu


def _round_up(x, m):
    return (x + m - 1) // m * m


def _cdiv(a, b):
    return -(-a // b)


def discriminator_kernel(x_ref,
                         w1_ref, b1_ref,
                         w2_ref, b2_ref,
                         w3_ref, b3_ref,
                         w4_ref, b4_ref,
                         out_ref, *, neg_slope):
    """One batch tile: 3 MXU matmuls (bf16 x bf16 -> f32 acc), VPU/XLU final layer."""

    def lrelu(v):
        # Single VPU max instead of compare+select.  Equivalent to LeakyReLU
        # only for 0 <= neg_slope <= 1 (asserted in the wrapper).
        return jnp.maximum(v, neg_slope * v)

    x = x_ref[...].astype(jnp.bfloat16)

    h = jnp.dot(x, w1_ref[...], preferred_element_type=jnp.float32) + b1_ref[...]
    h = lrelu(h).astype(jnp.bfloat16)

    h = jnp.dot(h, w2_ref[...], preferred_element_type=jnp.float32) + b2_ref[...]
    h = lrelu(h).astype(jnp.bfloat16)

    h = jnp.dot(h, w3_ref[...], preferred_element_type=jnp.float32) + b3_ref[...]
    h = lrelu(h)  # (TB, 256) f32

    # Final (256 -> 1) layer on the VPU/XLU: broadcast-multiply by the w4 row
    # and reduce across lanes (keeps the badly shaped N=1 matmul off the MXU;
    # the reduce rides the otherwise-idle XLU slot).
    logit = jnp.sum(h * w4_ref[...], axis=-1, keepdims=True) + b4_ref[...]

    # Clamp so exp(-logit) never overflows to inf (sigmoid is fully saturated
    # well before |30|), then use the approx EUP reciprocal.  bf16 weights +
    # approx vrcp => ~5e-3 absolute accuracy vs an f32 reference (intentional
    # for a GAN discriminator).
    logit = jnp.clip(logit, -30.0, 30.0)
    out_ref[...] = pl.reciprocal(1.0 + jnp.exp(-logit), approx=True).astype(out_ref.dtype)


def make_params(key, inp_dim):
    """Init matching the PyTorch module: weight ~ N(0, 0.01), bias = 0.

    Big matmul weights are stored (in, out) in bf16; the last layer's weight
    is stored as a (1, 256) f32 row (used on the VPU); biases stay f32.
    """
    dims = [inp_dim, 1024, 512, 256, 1]
    raw = []
    for i in range(4):
        key, wkey = jax.random.split(key)
        w = 0.01 * jax.random.normal(wkey, (dims[i], dims[i + 1]), dtype=jnp.float32)
        b = jnp.zeros((1, dims[i + 1]), dtype=jnp.float32)
        raw.extend([w, b])
    w1, b1, w2, b2, w3, b3, w4, b4 = raw
    return (w1.astype(jnp.bfloat16), b1,
            w2.astype(jnp.bfloat16), b2,
            w3.astype(jnp.bfloat16), b3,
            w4.T, b4)  # w4 as a (1, 256) f32 row


def _vmem_bytes_estimate(tb, inp_dim, weight_buffers):
    """Rough upper bound on the kernel's VMEM footprint (bytes)."""
    lane = lambda n: _round_up(n, 128)
    # Resident weights / biases (bf16 matmul weights, f32 w4 row + biases),
    # times the pipeline buffer count on the resident specs.
    weights = 2 * (_round_up(inp_dim, 16) * 1024 + 1024 * 512 + 512 * 256)  # bf16
    weights += 4 * 8 * lane(256)                                            # w4 row
    weights += 4 * 8 * (lane(1024) + lane(512) + lane(256) + 128)           # biases
    weights *= weight_buffers
    # Double-buffered pipelined activation tiles.
    x_tile = 2 * tb * lane(inp_dim) * 4
    out_tile = 2 * tb * 128 * 4
    # In-kernel intermediates (f32 accumulators + bf16 copies), generous bound.
    inter = tb * (1024 + 512 + 256) * 4 + tb * (lane(inp_dim) + 1024 + 512) * 2
    return weights + x_tile + out_tile + inter


def _choose_tiling(batch, block_batch, inp_dim, vmem_budget):
    """Balanced batch tiling: >=2 (even) grid steps, tile shrunk to VMEM budget."""
    n = max(_cdiv(batch, block_batch), 1)
    if batch >= 16:
        n = max(n, 2)   # give v7x's second TensorCore a tile even for small batch
        n += n % 2      # even step count -> balanced megacore split
    tb = _round_up(_cdiv(batch, n), 8)
    # Shrink the tile (more steps) if the estimated footprint exceeds the budget.
    while tb > 8 and _vmem_bytes_estimate(tb, inp_dim, 2) > vmem_budget:
        n += 1
        tb = _round_up(_cdiv(batch, n), 8)
    return tb, n


@functools.partial(
    jax.jit,
    static_argnames=("tb", "grid_n", "neg_slope", "single_buffer_weights",
                     "vmem_limit_bytes"))
def _forward_impl(x, w1, b1, w2, b2, w3, b3, w4, b4, *, tb, grid_n, neg_slope,
                  single_buffer_weights, vmem_limit_bytes):
    batch_p, inp_dim = x.shape
    assert batch_p == grid_n * tb

    def resident(arr):
        # Full-array block with a constant index map: fetched once, stays
        # resident in VMEM across every grid step.  Single-buffered when
        # supported (a constant index map never needs the second buffer).
        nd = arr.ndim
        idx = lambda i, _n=nd: (0,) * _n
        if single_buffer_weights:
            return pl.BlockSpec(arr.shape, idx, pipeline_mode=pl.Buffered(1))
        return pl.BlockSpec(arr.shape, idx)

    kernel = functools.partial(discriminator_kernel, neg_slope=neg_slope)
    return pl.pallas_call(
        kernel,
        out_shape=jax.ShapeDtypeStruct((batch_p, 1), jnp.float32),
        grid_spec=pltpu.PrefetchScalarGridSpec(
            num_scalar_prefetch=0,
            grid=(grid_n,),
            in_specs=[
                pl.BlockSpec((tb, inp_dim), lambda i: (i, 0)),
                resident(w1), resident(b1),
                resident(w2), resident(b2),
                resident(w3), resident(b3),
                resident(w4), resident(b4),
            ],
            out_specs=pl.BlockSpec((tb, 1), lambda i: (i, 0)),
        ),
        compiler_params=pltpu.CompilerParams(
            # Megacore-shard the batch tiles across TensorCores.
            # TODO(synk): if "parallel" does not shard across v7x's two TCs,
            # switch to pltpu.CORE_PARALLEL / pl.core_map.
            dimension_semantics=("parallel",),
            vmem_limit_bytes=vmem_limit_bytes,
        ),
    )(x, w1, b1, w2, b2, w3, b3, w4, b4)


def discriminator_forward(x, params, neg_slope=0.2, block_batch=512):
    """Fused discriminator forward.

    block_batch=512 amortizes the ~0.35 us per-grid-step overhead on v6e/v7x
    while staying friendly to v5e (pass block_batch=256 there if preferred).
    """
    assert 0.0 <= neg_slope <= 1.0, "LeakyReLU-as-maximum needs 0 <= slope <= 1"
    w1, b1, w2, b2, w3, b3, w4, b4 = params
    batch, inp_dim = x.shape

    # VMEM budget for tile selection: 75% of the per-core capacity (v7x is the
    # tightest at 64 MiB per TensorCore); fall back to that if the query fails.
    try:
        vmem_cap = int(pltpu.get_tpu_info().vmem_capacity_bytes)
    except Exception:
        vmem_cap = 64 * 1024 * 1024
    vmem_budget = int(vmem_cap * 0.75)

    tb, grid_n = _choose_tiling(batch, block_batch, inp_dim, vmem_budget)
    batch_p = tb * grid_n
    if batch_p != batch:
        x = jnp.pad(x, ((0, batch_p - batch), (0, 0)))

    # Scoped-VMEM limit derived from the actual footprint, not hard-coded.
    est = _vmem_bytes_estimate(tb, inp_dim, 2)
    vmem_limit = int(min(vmem_cap, max(32 * 1024 * 1024, int(est * 1.5))))

    common = dict(tb=tb, grid_n=grid_n, neg_slope=neg_slope,
                  vmem_limit_bytes=vmem_limit)
    single = hasattr(pl, "Buffered")
    try:
        out_p = _forward_impl(x, w1, b1, w2, b2, w3, b3, w4, b4,
                              single_buffer_weights=single, **common)
    except Exception:
        if not single:
            raise
        # Stricter/older Pallas versions may reject pipeline_mode=Buffered(1);
        # fall back to the default double-buffered resident weights.
        out_p = _forward_impl(x, w1, b1, w2, b2, w3, b3, w4, b4,
                              single_buffer_weights=False, **common)
    return out_p[:batch]


def reference_forward(x, params, neg_slope=0.2):
    """Plain-JAX (f32) reference used for a sanity check."""
    w1, b1, w2, b2, w3, b3, w4, b4 = params

    def lrelu(v):
        return jnp.where(v >= 0, v, neg_slope * v)

    h = lrelu(x @ w1.astype(jnp.float32) + b1)
    h = lrelu(h @ w2.astype(jnp.float32) + b2)
    h = lrelu(h @ w3.astype(jnp.float32) + b3)
    logit = h @ w4.astype(jnp.float32).T + b4
    return jax.nn.sigmoid(logit)


if __name__ == "__main__":
    key = jax.random.PRNGKey(0)
    inp_dim = 128
    batch = 80            # exercises balanced tiling (2 tiles of 40, no padding)
    neg_slope = 0.2

    key, pkey, xkey = jax.random.split(key, 3)
    params = make_params(pkey, inp_dim)
    x = jax.random.normal(xkey, (batch, inp_dim), dtype=jnp.float32)

    ref = reference_forward(x, params, neg_slope=neg_slope)

    # Default path: even with batch <= block_batch the grid has 2 steps so
    # both v7x TensorCores get a tile.
    out = jax.block_until_ready(
        discriminator_forward(x, params, neg_slope=neg_slope))
    assert out.shape == (batch, 1), out.shape
    # bf16 matmul operands + approx reciprocal => loosened tolerance vs f32 ref.
    assert jnp.allclose(out, ref, atol=5e-3, rtol=0), (
        float(jnp.max(jnp.abs(out - ref))))

    # Small block_batch: exercises a multi-step grid with a padded final tile.
    out2 = jax.block_until_ready(
        discriminator_forward(x, params, neg_slope=neg_slope, block_batch=32))
    assert out2.shape == (batch, 1), out2.shape
    assert jnp.allclose(out2, ref, atol=5e-3, rtol=0), (
        float(jnp.max(jnp.abs(out2 - ref))))

    print("KERNEL_OK")
</pallas_src>

<mosaic_0001>
module attributes {stable_mosaic.version = 11 : i64} {
  func.func @discriminator_kernel(%arg0: i32, %arg1: memref<40x128xf32, #tpu.memory_space<vmem>>, %arg2: memref<128x1024xbf16, #tpu.memory_space<vmem>>, %arg3: memref<1x1024xf32, #tpu.memory_space<vmem>>, %arg4: memref<1024x512xbf16, #tpu.memory_space<vmem>>, %arg5: memref<1x512xf32, #tpu.memory_space<vmem>>, %arg6: memref<512x256xbf16, #tpu.memory_space<vmem>>, %arg7: memref<1x256xf32, #tpu.memory_space<vmem>>, %arg8: memref<1x256xf32, #tpu.memory_space<vmem>>, %arg9: memref<1x1xf32, #tpu.memory_space<vmem>>, %arg10: memref<40x1xf32, #tpu.memory_space<vmem>>) attributes {dimension_semantics = [#tpu.dimension_semantics<parallel>], iteration_bounds = array<i64: 2>, scalar_prefetch = 0 : i64, scratch_operands = 0 : i64, tpu.core_type = #tpu.core_type<tc>, window_params = [{transform_indices = @transform_0, window_bounds = array<i64: 40, 128>}, {pipeline_mode = #tpu.pipeline_mode<synchronous>, transform_indices = @transform_1, window_bounds = array<i64: 128, 1024>}, {pipeline_mode = #tpu.pipeline_mode<synchronous>, transform_indices = @transform_2, window_bounds = array<i64: 1, 1024>}, {pipeline_mode = #tpu.pipeline_mode<synchronous>, transform_indices = @transform_3, window_bounds = array<i64: 1024, 512>}, {pipeline_mode = #tpu.pipeline_mode<synchronous>, transform_indices = @transform_4, window_bounds = array<i64: 1, 512>}, {pipeline_mode = #tpu.pipeline_mode<synchronous>, transform_indices = @transform_5, window_bounds = array<i64: 512, 256>}, {pipeline_mode = #tpu.pipeline_mode<synchronous>, transform_indices = @transform_6, window_bounds = array<i64: 1, 256>}, {pipeline_mode = #tpu.pipeline_mode<synchronous>, transform_indices = @transform_7, window_bounds = array<i64: 1, 256>}, {pipeline_mode = #tpu.pipeline_mode<synchronous>, transform_indices = @transform_8, window_bounds = array<i64: 1, 1>}, {transform_indices = @transform_9, window_bounds = array<i64: 40, 1>}]} {
    %c0 = arith.constant 0 : index
    %c0_0 = arith.constant 0 : index
    %0 = vector.load %arg1[%c0, %c0_0] : memref<40x128xf32, #tpu.memory_space<vmem>>, vector<40x128xf32>
    %1 = arith.truncf %0 : vector<40x128xf32> to vector<40x128xbf16>
    %c0_1 = arith.constant 0 : index
    %c0_2 = arith.constant 0 : index
    %2 = vector.load %arg2[%c0_1, %c0_2] : memref<128x1024xbf16, #tpu.memory_space<vmem>>, vector<128x1024xbf16>
    %cst = arith.constant dense<0.000000e+00> : vector<40x1024xf32>
    %3 = tpu.matmul %1, %2, %cst {dimension_numbers = #tpu.dot_dimension_numbers<[1], [0], [0], [1], [0, 0, 1, 1], [], []>} : vector<40x128xbf16>, vector<128x1024xbf16>, vector<40x1024xf32> -> vector<40x1024xf32>
    %c0_3 = arith.constant 0 : index
    %c0_4 = arith.constant 0 : index
    %4 = vector.load %arg3[%c0_3, %c0_4] : memref<1x1024xf32, #tpu.memory_space<vmem>>, vector<1x1024xf32>
    %5 = vector.broadcast %4 : vector<1x1024xf32> to vector<40x1024xf32>
    %6 = arith.addf %3, %5 : vector<40x1024xf32>
    %cst_5 = arith.constant 2.000000e-01 : f32
    %7 = vector.broadcast %cst_5 : f32 to vector<40x1024xf32>
    %8 = arith.mulf %7, %6 : vector<40x1024xf32>
    %9 = arith.maximumf %6, %8 : vector<40x1024xf32>
    %10 = arith.truncf %9 : vector<40x1024xf32> to vector<40x1024xbf16>
    %c0_6 = arith.constant 0 : index
    %c0_7 = arith.constant 0 : index
    %11 = vector.load %arg4[%c0_6, %c0_7] : memref<1024x512xbf16, #tpu.memory_space<vmem>>, vector<1024x512xbf16>
    %cst_8 = arith.constant dense<0.000000e+00> : vector<40x512xf32>
    %12 = tpu.matmul %10, %11, %cst_8 {dimension_numbers = #tpu.dot_dimension_numbers<[1], [0], [0], [1], [0, 0, 1, 1], [], []>} : vector<40x1024xbf16>, vector<1024x512xbf16>, vector<40x512xf32> -> vector<40x512xf32>
    %c0_9 = arith.constant 0 : index
    %c0_10 = arith.constant 0 : index
    %13 = vector.load %arg5[%c0_9, %c0_10] : memref<1x512xf32, #tpu.memory_space<vmem>>, vector<1x512xf32>
    %14 = vector.broadcast %13 : vector<1x512xf32> to vector<40x512xf32>
    %15 = arith.addf %12, %14 : vector<40x512xf32>
    %cst_11 = arith.constant 2.000000e-01 : f32
    %16 = vector.broadcast %cst_11 : f32 to vector<40x512xf32>
    %17 = arith.mulf %16, %15 : vector<40x512xf32>
    %18 = arith.maximumf %15, %17 : vector<40x512xf32>
    %19 = arith.truncf %18 : vector<40x512xf32> to vector<40x512xbf16>
    %c0_12 = arith.constant 0 : index
    %c0_13 = arith.constant 0 : index
    %20 = vector.load %arg6[%c0_12, %c0_13] : memref<512x256xbf16, #tpu.memory_space<vmem>>, vector<512x256xbf16>
    %cst_14 = arith.constant dense<0.000000e+00> : vector<40x256xf32>
    %21 = tpu.matmul %19, %20, %cst_14 {dimension_numbers = #tpu.dot_dimension_numbers<[1], [0], [0], [1], [0, 0, 1, 1], [], []>} : vector<40x512xbf16>, vector<512x256xbf16>, vector<40x256xf32> -> vector<40x256xf32>
    %c0_15 = arith.constant 0 : index
    %c0_16 = arith.constant 0 : index
    %22 = vector.load %arg7[%c0_15, %c0_16] : memref<1x256xf32, #tpu.memory_space<vmem>>, vector<1x256xf32>
    %23 = vector.broadcast %22 : vector<1x256xf32> to vector<40x256xf32>
    %24 = arith.addf %21, %23 : vector<40x256xf32>
    %cst_17 = arith.constant 2.000000e-01 : f32
    %25 = vector.broadcast %cst_17 : f32 to vector<40x256xf32>
    %26 = arith.mulf %25, %24 : vector<40x256xf32>
    %27 = arith.maximumf %24, %26 : vector<40x256xf32>
    %c0_18 = arith.constant 0 : index
    %c0_19 = arith.constant 0 : index
    %28 = vector.load %arg8[%c0_18, %c0_19] : memref<1x256xf32, #tpu.memory_space<vmem>>, vector<1x256xf32>
    %29 = vector.broadcast %28 : vector<1x256xf32> to vector<40x256xf32>
    %30 = arith.mulf %27, %29 : vector<40x256xf32>
    %cst_20 = arith.constant dense<0.000000e+00> : vector<40xf32>
    %31 = vector.multi_reduction <add>, %30, %cst_20 [1] : vector<40x256xf32> to vector<40xf32>
    %32 = vector.shape_cast %31 : vector<40xf32> to vector<40x1xf32>
    %c0_21 = arith.constant 0 : index
    %c0_22 = arith.constant 0 : index
    %33 = vector.load %arg9[%c0_21, %c0_22] : memref<1x1xf32, #tpu.memory_space<vmem>>, vector<1x1xf32>
    %34 = vector.broadcast %33 : vector<1x1xf32> to vector<40x1xf32>
    %35 = arith.addf %32, %34 : vector<40x1xf32>
    %cst_23 = arith.constant -3.000000e+01 : f32
    %cst_24 = arith.constant 3.000000e+01 : f32
    %36 = vector.broadcast %cst_23 : f32 to vector<40x1xf32>
    %37 = arith.maximumf %36, %35 : vector<40x1xf32>
    %38 = vector.broadcast %cst_24 : f32 to vector<40x1xf32>
    %39 = arith.minimumf %38, %37 : vector<40x1xf32>
    %cst_25 = arith.constant 0.000000e+00 : f32
    %40 = vector.broadcast %cst_25 : f32 to vector<40x1xf32>
    %41 = arith.subf %40, %39 : vector<40x1xf32>
    %42 = math.exp %41 : vector<40x1xf32>
    %cst_26 = arith.constant 1.000000e+00 : f32
    %43 = vector.broadcast %cst_26 : f32 to vector<40x1xf32>
    %44 = arith.addf %43, %42 : vector<40x1xf32>
    %45 = tpu.reciprocal %44 {approx = true} : vector<40x1xf32> -> vector<40x1xf32>
    %c0_27 = arith.constant 0 : index
    %c0_28 = arith.constant 0 : index
    %46 = vector.load %arg10[%c0_27, %c0_28] : memref<40x1xf32, #tpu.memory_space<vmem>>, vector<40x1xf32>
    tpu.vector_store %arg10[%c0_27, %c0_28], %45 {strides = array<i32>} : memref<40x1xf32, #tpu.memory_space<vmem>>, vector<40x1xf32>,
    return
  }
  func.func @transform_0(%arg0: i32) -> (i32, i32) {
    %c0_i32 = arith.constant 0 : i32
    %c0_i32_0 = arith.constant 0 : i32
    return %arg0, %c0_i32 : i32, i32
  }
  func.func @transform_1(%arg0: i32) -> (i32, i32) {
    %c0_i32 = arith.constant 0 : i32
    %c0_i32_0 = arith.constant 0 : i32
    %c0_i32_1 = arith.constant 0 : i32
    return %c0_i32, %c0_i32_0 : i32, i32
  }
  func.func @transform_2(%arg0: i32) -> (i32, i32) {
    %c0_i32 = arith.constant 0 : i32
    %c0_i32_0 = arith.constant 0 : i32
    %c0_i32_1 = arith.constant 0 : i32
    return %c0_i32, %c0_i32_0 : i32, i32
  }
  func.func @transform_3(%arg0: i32) -> (i32, i32) {
    %c0_i32 = arith.constant 0 : i32
    %c0_i32_0 = arith.constant 0 : i32
    %c0_i32_1 = arith.constant 0 : i32
    return %c0_i32, %c0_i32_0 : i32, i32
  }
  func.func @transform_4(%arg0: i32) -> (i32, i32) {
    %c0_i32 = arith.constant 0 : i32
    %c0_i32_0 = arith.constant 0 : i32
    %c0_i32_1 = arith.constant 0 : i32
    return %c0_i32, %c0_i32_0 : i32, i32
  }
  func.func @transform_5(%arg0: i32) -> (i32, i32) {
    %c0_i32 = arith.constant 0 : i32
    %c0_i32_0 = arith.constant 0 : i32
    %c0_i32_1 = arith.constant 0 : i32
    return %c0_i32, %c0_i32_0 : i32, i32
  }
  func.func @transform_6(%arg0: i32) -> (i32, i32) {
    %c0_i32 = arith.constant 0 : i32
    %c0_i32_0 = arith.constant 0 : i32
    %c0_i32_1 = arith.constant 0 : i32
    return %c0_i32, %c0_i32_0 : i32, i32
  }
  func.func @transform_7(%arg0: i32) -> (i32, i32) {
    %c0_i32 = arith.constant 0 : i32
    %c0_i32_0 = arith.constant 0 : i32
    %c0_i32_1 = arith.constant 0 : i32
    return %c0_i32, %c0_i32_0 : i32, i32
  }
  func.func @transform_8(%arg0: i32) -> (i32, i32) {
    %c0_i32 = arith.constant 0 : i32
    %c0_i32_0 = arith.constant 0 : i32
    %c0_i32_1 = arith.constant 0 : i32
    return %c0_i32, %c0_i32_0 : i32, i32
  }
  func.func @transform_9(%arg0: i32) -> (i32, i32) {
    %c0_i32 = arith.constant 0 : i32
    %c0_i32_0 = arith.constant 0 : i32
    return %arg0, %c0_i32 : i32, i32
  }
}

module attributes {stable_mosaic.version = 11 : i64} {
  func.func @discriminator_kernel(%arg0: i32, %arg1: memref<40x128xf32, #tpu.memory_space<vmem>>, %arg2: memref<128x1024xbf16, #tpu.memory_space<vmem>>, %arg3: memref<1x1024xf32, #tpu.memory_space<vmem>>, %arg4: memref<1024x512xbf16, #tpu.memory_space<vmem>>, %arg5: memref<1x512xf32, #tpu.memory_space<vmem>>, %arg6: memref<512x256xbf16, #tpu.memory_space<vmem>>, %arg7: memref<1x256xf32, #tpu.memory_space<vmem>>, %arg8: memref<1x256xf32, #tpu.memory_space<vmem>>, %arg9: memref<1x1xf32, #tpu.memory_space<vmem>>, %arg10: memref<40x1xf32, #tpu.memory_space<vmem>>) attributes {dimension_semantics = [#tpu.dimension_semantics<parallel>], iteration_bounds = array<i64: 2>, scalar_prefetch = 0 : i64, scratch_operands = 0 : i64, tpu.core_type = #tpu.core_type<tc>, window_params = [{transform_indices = @transform_0, window_bounds = array<i64: 40, 128>}, {pipeline_mode = #tpu.pipeline_mode<synchronous>, transform_indices = @transform_1, window_bounds = array<i64: 128, 1024>}, {pipeline_mode = #tpu.pipeline_mode<synchronous>, transform_indices = @transform_2, window_bounds = array<i64: 1, 1024>}, {pipeline_mode = #tpu.pipeline_mode<synchronous>, transform_indices = @transform_3, window_bounds = array<i64: 1024, 512>}, {pipeline_mode = #tpu.pipeline_mode<synchronous>, transform_indices = @transform_4, window_bounds = array<i64: 1, 512>}, {pipeline_mode = #tpu.pipeline_mode<synchronous>, transform_indices = @transform_5, window_bounds = array<i64: 512, 256>}, {pipeline_mode = #tpu.pipeline_mode<synchronous>, transform_indices = @transform_6, window_bounds = array<i64: 1, 256>}, {pipeline_mode = #tpu.pipeline_mode<synchronous>, transform_indices = @transform_7, window_bounds = array<i64: 1, 256>}, {pipeline_mode = #tpu.pipeline_mode<synchronous>, transform_indices = @transform_8, window_bounds = array<i64: 1, 1>}, {transform_indices = @transform_9, window_bounds = array<i64: 40, 1>}]} {
    %c0 = arith.constant 0 : index
    %c0_0 = arith.constant 0 : index
    %0 = vector.load %arg1[%c0, %c0_0] : memref<40x128xf32, #tpu.memory_space<vmem>>, vector<40x128xf32>
    %1 = arith.truncf %0 : vector<40x128xf32> to vector<40x128xbf16>
    %c0_1 = arith.constant 0 : index
    %c0_2 = arith.constant 0 : index
    %2 = vector.load %arg2[%c0_1, %c0_2] : memref<128x1024xbf16, #tpu.memory_space<vmem>>, vector<128x1024xbf16>
    %cst = arith.constant dense<0.000000e+00> : vector<40x1024xf32>
    %3 = tpu.matmul %1, %2, %cst {dimension_numbers = #tpu.dot_dimension_numbers<[1], [0], [0], [1], [0, 0, 1, 1], [], []>} : vector<40x128xbf16>, vector<128x1024xbf16>, vector<40x1024xf32> -> vector<40x1024xf32>
    %c0_3 = arith.constant 0 : index
    %c0_4 = arith.constant 0 : index
    %4 = vector.load %arg3[%c0_3, %c0_4] : memref<1x1024xf32, #tpu.memory_space<vmem>>, vector<1x1024xf32>
    %5 = vector.broadcast %4 : vector<1x1024xf32> to vector<40x1024xf32>
    %6 = arith.addf %3, %5 : vector<40x1024xf32>
    %cst_5 = arith.constant 2.000000e-01 : f32
    %7 = vector.broadcast %cst_5 : f32 to vector<40x1024xf32>
    %8 = arith.mulf %7, %6 : vector<40x1024xf32>
    %9 = arith.maximumf %6, %8 : vector<40x1024xf32>
    %10 = arith.truncf %9 : vector<40x1024xf32> to vector<40x1024xbf16>
    %c0_6 = arith.constant 0 : index
    %c0_7 = arith.constant 0 : index
    %11 = vector.load %arg4[%c0_6, %c0_7] : memref<1024x512xbf16, #tpu.memory_space<vmem>>, vector<1024x512xbf16>
    %cst_8 = arith.constant dense<0.000000e+00> : vector<40x512xf32>
    %12 = tpu.matmul %10, %11, %cst_8 {dimension_numbers = #tpu.dot_dimension_numbers<[1], [0], [0], [1], [0, 0, 1, 1], [], []>} : vector<40x1024xbf16>, vector<1024x512xbf16>, vector<40x512xf32> -> vector<40x512xf32>
    %c0_9 = arith.constant 0 : index
    %c0_10 = arith.constant 0 : index
    %13 = vector.load %arg5[%c0_9, %c0_10] : memref<1x512xf32, #tpu.memory_space<vmem>>, vector<1x512xf32>
    %14 = vector.broadcast %13 : vector<1x512xf32> to vector<40x512xf32>
    %15 = arith.addf %12, %14 : vector<40x512xf32>
    %cst_11 = arith.constant 2.000000e-01 : f32
    %16 = vector.broadcast %cst_11 : f32 to vector<40x512xf32>
    %17 = arith.mulf %16, %15 : vector<40x512xf32>
    %18 = arith.maximumf %15, %17 : vector<40x512xf32>
    %19 = arith.truncf %18 : vector<40x512xf32> to vector<40x512xbf16>
    %c0_12 = arith.constant 0 : index
    %c0_13 = arith.constant 0 : index
    %20 = vector.load %arg6[%c0_12, %c0_13] : memref<512x256xbf16, #tpu.memory_space<vmem>>, vector<512x256xbf16>
    %cst_14 = arith.constant dense<0.000000e+00> : vector<40x256xf32>
    %21 = tpu.matmul %19, %20, %cst_14 {dimension_numbers = #tpu.dot_dimension_numbers<[1], [0], [0], [1], [0, 0, 1, 1], [], []>} : vector<40x512xbf16>, vector<512x256xbf16>, vector<40x256xf32> -> vector<40x256xf32>
    %c0_15 = arith.constant 0 : index
    %c0_16 = arith.constant 0 : index
    %22 = vector.load %arg7[%c0_15, %c0_16] : memref<1x256xf32, #tpu.memory_space<vmem>>, vector<1x256xf32>
    %23 = vector.broadcast %22 : vector<1x256xf32> to vector<40x256xf32>
    %24 = arith.addf %21, %23 : vector<40x256xf32>
    %cst_17 = arith.constant 2.000000e-01 : f32
    %25 = vector.broadcast %cst_17 : f32 to vector<40x256xf32>
    %26 = arith.mulf %25, %24 : vector<40x256xf32>
    %27 = arith.maximumf %24, %26 : vector<40x256xf32>
    %c0_18 = arith.constant 0 : index
    %c0_19 = arith.constant 0 : index
    %28 = vector.load %arg8[%c0_18, %c0_19] : memref<1x256xf32, #tpu.memory_space<vmem>>, vector<1x256xf32>
    %29 = vector.broadcast %28 : vector<1x256xf32> to vector<40x256xf32>
    %30 = arith.mulf %27, %29 : vector<40x256xf32>
    %cst_20 = arith.constant dense<0.000000e+00> : vector<40xf32>
    %31 = vector.multi_reduction <add>, %30, %cst_20 [1] : vector<40x256xf32> to vector<40xf32>
    %32 = vector.shape_cast %31 : vector<40xf32> to vector<40x1xf32>
    %c0_21 = arith.constant 0 : index
    %c0_22 = arith.constant 0 : index
    %33 = vector.load %arg9[%c0_21, %c0_22] : memref<1x1xf32, #tpu.memory_space<vmem>>, vector<1x1xf32>
    %34 = vector.broadcast %33 : vector<1x1xf32> to vector<40x1xf32>
    %35 = arith.addf %32, %34 : vector<40x1xf32>
    %cst_23 = arith.constant -3.000000e+01 : f32
    %cst_24 = arith.constant 3.000000e+01 : f32
    %36 = vector.broadcast %cst_23 : f32 to vector<40x1xf32>
    %37 = arith.maximumf %36, %35 : vector<40x1xf32>
    %38 = vector.broadcast %cst_24 : f32 to vector<40x1xf32>
    %39 = arith.minimumf %38, %37 : vector<40x1xf32>
    %cst_25 = arith.constant 0.000000e+00 : f32
    %40 = vector.broadcast %cst_25 : f32 to vector<40x1xf32>
    %41 = arith.subf %40, %39 : vector<40x1xf32>
    %42 = math.exp %41 : vector<40x1xf32>
    %cst_26 = arith.constant 1.000000e+00 : f32
    %43 = vector.broadcast %cst_26 : f32 to vector<40x1xf32>
    %44 = arith.addf %43, %42 : vector<40x1xf32>
    %45 = tpu.reciprocal %44 {approx = true} : vector<40x1xf32> -> vector<40x1xf32>
    %c0_27 = arith.constant 0 : index
    %c0_28 = arith.constant 0 : index
    %46 = vector.load %arg10[%c0_27, %c0_28] : memref<40x1xf32, #tpu.memory_space<vmem>>, vector<40x1xf32>
    tpu.vector_store %arg10[%c0_27, %c0_28], %45 {strides = array<i32>} : memref<40x1xf32, #tpu.memory_space<vmem>>, vector<40x1xf32>,
    return
  }
  func.func @transform_0(%arg0: i32) -> (i32, i32) {
    %c0_i32 = arith.constant 0 : i32
    %c0_i32_0 = arith.constant 0 : i32
    return %arg0, %c0_i32 : i32, i32
  }
  func.func @transform_1(%arg0: i32) -> (i32, i32) {
    %c0_i32 = arith.constant 0 : i32
    %c0_i32_0 = arith.constant 0 : i32
    %c0_i32_1 = arith.constant 0 : i32
    return %c0_i32, %c0_i32_0 : i32, i32
  }
  func.func @transform_2(%arg0: i32) -> (i32, i32) {
    %c0_i32 = arith.constant 0 : i32
    %c0_i32_0 = arith.constant 0 : i32
    %c0_i32_1 = arith.constant 0 : i32
    return %c0_i32, %c0_i32_0 : i32, i32
  }
  func.func @transform_3(%arg0: i32) -> (i32, i32) {
    %c0_i32 = arith.constant 0 : i32
    %c0_i32_0 = arith.constant 0 : i32
    %c0_i32_1 = arith.constant 0 : i32
    return %c0_i32, %c0_i32_0 : i32, i32
  }
  func.func @transform_4(%arg0: i32) -> (i32, i32) {
    %c0_i32 = arith.constant 0 : i32
    %c0_i32_0 = arith.constant 0 : i32
    %c0_i32_1 = arith.constant 0 : i32
    return %c0_i32, %c0_i32_0 : i32, i32
  }
  func.func @transform_5(%arg0: i32) -> (i32, i32) {
    %c0_i32 = arith.constant 0 : i32
    %c0_i32_0 = arith.constant 0 : i32
    %c0_i32_1 = arith.constant 0 : i32
    return %c0_i32, %c0_i32_0 : i32, i32
  }
  func.func @transform_6(%arg0: i32) -> (i32, i32) {
    %c0_i32 = arith.constant 0 : i32
    %c0_i32_0 = arith.constant 0 : i32
    %c0_i32_1 = arith.constant 0 : i32
    return %c0_i32, %c0_i32_0 : i32, i32
  }
  func.func @transform_7(%arg0: i32) -> (i32, i32) {
    %c0_i32 = arith.constant 0 : i32
    %c0_i32_0 = arith.constant 0 : i32
    %c0_i32_1 = arith.constant 0 : i32
    return %c0_i32, %c0_i32_0 : i32, i32
  }
  func.func @transform_8(%arg0: i32) -> (i32, i32) {
    %c0_i32 = arith.constant 0 : i32
    %c0_i32_0 = arith.constant 0 : i32
    %c0_i32_1 = arith.constant 0 : i32
    return %c0_i32, %c0_i32_0 : i32, i32
  }
  func.func @transform_9(%arg0: i32) -> (i32, i32) {
    %c0_i32 = arith.constant 0 : i32
    %c0_i32_0 = arith.constant 0 : i32
    return %arg0, %c0_i32 : i32, i32
  }
}

</mosaic_0001>

<bundles_post_ra>
// kernel: _forward_impl.1
= control target key start
LH: loop header
LB: loop body
LE: loop exit
PB: predicated region body
PF: predicated region fallthrough
CT: control target
= control target key end

     0   :  { %s7241_s0 = inlined_call_operand.hbm [shape: f32[80,128], index: 0, kind: input, shape index: {}]   ;;  %s7242_s1 = inlined_call_operand.hbm [shape: bf16[128,1024], index: 1, kind: input, shape index: {}]   ;;  %s7243_s2 = inlined_call_operand.hbm [shape: f32[1,1024], index: 2, kind: input, shape index: {}]   ;;  %s7244_s3 = inlined_call_operand.hbm [shape: bf16[1024,512], index: 3, kind: input, shape index: {}]   ;;  %s7245_s4 = inlined_call_operand.vmem [shape: f32[1,512], index: 4, kind: input, shape index: {}]   ;;  %s7246_s5 = inlined_call_operand.hbm [shape: bf16[512,256], index: 5, kind: input, shape index: {}]   ;;  %s7247_s6 = inlined_call_operand.vmem [shape: f32[1,256], index: 6, kind: input, shape index: {}]   ;;  %s7248_s7 = inlined_call_operand.vmem [shape: f32[1,256], index: 7, kind: input, shape index: {}]   ;;  %s7249_s8 = inlined_call_operand.<no memory space> [shape: f32[1,1], index: 8, kind: input, shape index: {}]   ;;  %s7250_s9 = inlined_call_operand.vmem [shape: f32[80,1], index: 9, kind: output, shape index: {}]  }
   0x1   :  { %7254 = sst [smem:[#allocation14_spill]] %s7242_s1  ;;  %v14_v0 = vstv %s7249_s8 }
   0x2   :  { %15 = vst [vmem:[#allocation2] sm:$0x1] %v14_v0 }
   0x3   :  { %16 = vsyncpa [#allocation4], 0 }
   0x4   :  { %18 = vsyncpa [#allocation4 + $0x1], 0 }
   0x5   :  { %19 = vsyncpa [#allocation6], 0 }
   0x6   :  { %20 = vsyncpa [#allocation9], 0  ;;  %s6545_s11 = smov 0   ;;  %s6547_s12 = smov 0  }
   0x7   :  { %s6549_s13 = smov 0   ;;  %s6551_s14 = smov 0  }
   0x8 LB: > { %s7251_s8 = sadd.s32 4294967295, %s6480_s14   ;;  %p46_p0 = scmp.ne.s32.totalorder %s6472_s12, %s6468_s11  ;;  %s6480_s14 = sphi %s6551_s14, %s7267_s14   ;;  %s6476_s13 = sphi %s6549_s13, %s7266_s13   ;;  %s6472_s12 = sphi %s6547_s12, %s7265_s12   ;;  %s6468_s11 = sphi %s6545_s11, %s7264_s11  }
   0x9   : > { %p6567_p1 = scmp.eq.s32.totalorder %s7251_s8, 0  ;;  %p4237_p2 = scmp.ge.s32.totalorder %s6480_s14, 1 }
   0xa   : > { %p251_p3 = scmp.lt.s32.totalorder %s6480_s14, 3  ;;  %s7257_s1 = sld [smem:[#allocation14_spill]] }
   0xb   : > { %p6575_p4 = por %p6567_p1, %p46_p0  ;;  %s6482_s21 = smov [#allocation5]  }
   0xc   : > { %p6582_p5 = pnand %p4237_p2, %p251_p3  ;;  %s264_s22 = sshll.u32 %s6482_s21, 4  ;;  %s265_s22 = int_to_ptr.vmem [resolvable:$true] %s264_s22 }
   0xd   : > { %s288_s26 = sshll.u32 %s7244_s3, 4  ;;  %s6483_s27 = smov 512   ;;  %s289_s26 = int_to_ptr.hbm [resolvable:$true] %s288_s26 }
   0xe   : > { %p6198_p6 = pneg %p6582_p5  ;;  %s6484_s28 = smov 32  }
   0xf   : > { %s6485_s29 = smov [#allocation8]   ;;  %s6486_s10 = smov 256  }
  0x10   : > { %s262_s19 = sshll.u32 %s7257_s1, 4  ;;  %p6590_p7 = pnand %p6198_p6, %p6567_p1  ;;  %s263_s19 = int_to_ptr.hbm [resolvable:$true] %s262_s19 }
  0x11   : > { %s290_s30 = sshll.u32 %s6485_s29, 4  ;;  %s6487_s11 = smov 16   ;;  %s291_s30 = int_to_ptr.vmem [resolvable:$true] %s290_s30 }
  0x12   : > { %6201 = dma.hbm_to_vmem [thread:$0]  (!%p6590_p7), %s263_s19, 8192, %s265_s22, [#allocation6], %s6483_s27, %s6483_s27, %s6484_s28  }
  0x13   : > { %6207 = dma.hbm_to_vmem [thread:$0]  (!%p6590_p7), %s289_s26, 32768, %s291_s30, [#allocation9], %s6486_s10, %s6486_s10, %s6487_s11  }
  0x14   : > { %s277_s21 = sshll.u32 %s7243_s2, 4  ;;  %s6488_s24 = smov [#allocation7]   ;;  %s278_s21 = int_to_ptr.hbm [resolvable:$true] %s277_s21 }
  0x15   : > { %s279_s19 = sshll.u32 %s6488_s24, 4  ;;  %s305_s27 = sshll.u32 %s7246_s5, 4  ;;  %s280_s19 = int_to_ptr.vmem [resolvable:$true] %s279_s19  ;;  %s306_s27 = int_to_ptr.hbm [resolvable:$true] %s305_s27 }
  0x16   : > { %6204 = dma.hbm_to_vmem [thread:$0]  (!%p6590_p7), %s278_s21, 128, %s280_s19, [#allocation6]  }
  0x17   : > { %s6489_s26 = smov [#allocation10]   ;;  %s7252_s29 = smov 128  }
  0x18   : > { %s307_s28 = sshll.u32 %s6489_s26, 4  ;;  %s7253_s30 = smov 8   ;;  %s308_s28 = int_to_ptr.vmem [resolvable:$true] %s307_s28 }
  0x19   : > { %6210 = dma.hbm_to_vmem [thread:$0]  (!%p6590_p7), %s306_s27, 8192, %s308_s28, [#allocation9], %s7252_s29, %s7252_s29, %s7253_s30  }
  0x1a   : > { %s6615_s10 = sadd.s32 1, %s6480_s14   ;;  %s33_s17 = sadd.s32 1, %s6476_s13 }
  0x1b   : > { %s30_s11 = ssub.s32 %s6480_s14, %s6615_s10  ;;  %p40_p9 = scmp.ne.s32.totalorder %s6476_s13, %s6472_s12 }
  0x1c   : > { %p31_p8 = scmp.eq.s32.totalorder %s30_s11, 0  ;;  %p41_p10 = scmp.eq.s32.totalorder %s6480_s14, 0 }
  0x1d   : > { %p6219_p12 = scmp.lt.s32.totalorder %s6480_s14, 2  ;;  %s330_s21 = sand.u32 1, %s6476_s13  }
  0x1e   : > { %s6624_s18 = scalar_select %p31_p8, %s6476_s13, %s33_s17  }
  0x1f   : > { %p42_p11 = por %p41_p10, %p40_p9  ;;  %s5793_s24 = smul.u32 40, %s6480_s14 }
  0x20   : > { %s6178_s19 = smul.u32 40, %s330_s21  ;;  %s331_s17 = scalar_lea.sflag [#allocation4], %s330_s21 }
  0x21   : > { %s339_s25 = scalar_lea.hbm %s7241_s0, %s5793_s24  ;;  %p6632_p13 = pnand %p6219_p12, %p42_p11 }
  0x22   : > { %s340_s26 = sshll.u32 %s339_s25, 4  ;;  %s334_s28 = scalar_lea.vmem [#allocation3], %s6178_s19  ;;  %s341_s26 = int_to_ptr.hbm [resolvable:$true] %s340_s26 }
  0x23   : > { %s342_s11 = sshll.u32 %s334_s28, 4  ;;  %s6408_s8 = sshra.s32 %s341_s26, 4  ;;  %s343_s11 = int_to_ptr.vmem [resolvable:$true] %s342_s11  ;;  %s6409_s8 = int_to_ptr.hbm [resolvable:$true] %s6408_s8 }
  0x24   : > { %s6410_s29 = scalar_lea.hbm %s6409_s8, 40  ;;  %p6412_p2 = pneg %p6632_p13 }
  0x25   : > { %p6411_p0 = scmp.ne.s32.totalorder %s6409_s8, %s6410_s29  ;;  %s6415_s22 = scalar_lea.hbm %s7241_s0, 80 }
  0x26   : > { %p6416_p7 = scmp.lt.s32.totalorder %s6409_s8, %s7241_s0  ;;  %p6417_p8 = scmp.lt.s32.totalorder %s6415_s22, %s6410_s29 }
  0x27   : > { %p6413_p3 = pnand %p6412_p2, %p6411_p0 }
  0x28   : > { %p6418_p9 = por %p6417_p8, %p6416_p7 }
  0x29   : > { %p6414_p6 = pneg %p6413_p3 }
  0x2b   : > { %p6419_p10 = pnand %p6418_p9, %p6414_p6 }
  0x2d   : > { %6422 = shalt.err (!%p6419_p10)
}
  0x2e   : > { %s7261_s21 = smov 8   ;;  %s7262_s19 = smov 128  }
  0x2f   : > { %6214 = dma.hbm_to_vmem [thread:$0]  (!%p6632_p13), %s341_s26, 640, %s343_s11, %s331_s17, %s7262_s19, %s7262_s19, %s7261_s21  }
  0x30   : > { %354 = sbr.rel (%p6582_p5) target bundleno = 1091 (0x443), region = 56  ;;  %s356_s25 = sand.u32 (!%p6582_p5), 1, %s6472_s12  }
  0x31   : > { %s6179_s28 = smul.u32 (!%p6582_p5), 40, %s356_s25  ;;  %s357_s24 = scalar_lea.sflag (!%p6582_p5), [#allocation4], %s356_s25 }
  0x33   : > { %s6652_s1 = scalar_lea.vmem (!%p6582_p5), [#allocation3], %s6179_s28 }
  0x35   : > { %6455 = dma.done.wait (%p6575_p4), %s357_s24, 640  }
  0x36   : > { %6457 = vsyncadd (%p6575_p4), %s357_s24, 4294966656 }
  0x37   : > { %6459 = dma.done.wait (%p6567_p1), [#allocation6], 8320  }
  0x38   : > { %6461 = vsyncadd (%p6567_p1), [#allocation6], 4294958976 }
  0x39   : > { %6463 = dma.done.wait (%p6567_p1), [#allocation9], 40960  }
  0x3a   : > { %6465 = vsyncadd (%p6567_p1), [#allocation9], 4294926336  ;;  %v4476_v1 = vld [vmem:[#allocation5 + $0x1c0] sm:$0xf]  ;;  %v5850_v3 = vld [vmem:[#allocation5 + $0x1c4] sm:$0xf] }
  0x3b   : > { %v5854_v2 = vld [vmem:[#allocation5 + $0x1dc] sm:$0xf0]  ;;  %v4478_v5 = vld [vmem:[#allocation5 + $0x1e0] sm:$0xf0]  ;;  %v4484_v6 = vld [vmem:[#allocation5 + $0x1c8] sm:$0xf] }
  0x3c   : > { %v4477_v4 = vor.u32 %v5854_v2, %v4476_v1  ;;  %v5855_v7 = vld [vmem:[#allocation5 + $0x1e4] sm:$0xf0]  ;;  %v4481_v8 = vor.u32 %v5850_v3, %v4478_v5  ;;  %v5851_v10 = vld [vmem:[#allocation5 + $0x1cc] sm:$0xf]  ;;  %v4444_v12 = vld [vmem:[#allocation5 + $0x180] sm:$0xf] }
  0x3d   : > { %v4485_v9 = vor.u32 %v5855_v7, %v4484_v6  ;;  %v4486_v11 = vld [vmem:[#allocation5 + $0x1e8] sm:$0xf0]  ;;  %v5846_v14 = vld [vmem:[#allocation5 + $0x19c] sm:$0xf0]  ;;  %v5842_v15 = vld [vmem:[#allocation5 + $0x184] sm:$0xf] }
  0x3e   : > { %833 = vmatpush.bf16.msra.mxu0 %v4477_v4  ;;  %v4489_v13 = vor.u32 %v5851_v10, %v4486_v11  ;;  %v4446_v16 = vld [vmem:[#allocation5 + $0x1a0] sm:$0xf0]  ;;  %856 = vmatpush.bf16.msra.mxu1 %v4481_v8  ;;  %v4445_v17 = vor.u32 %v5846_v14, %v4444_v12  ;;  %v4452_v19 = vld [vmem:[#allocation5 + $0x188] sm:$0xf]  ;;  %v5843_v21 = vld [vmem:[#allocation5 + $0x18c] sm:$0xf] }
  0x3f   : > { %879 = vmatpush.bf16.msra.mxu2 %v4485_v9  ;;  %v4449_v18 = vor.u32 %v5842_v15, %v4446_v16  ;;  %v5847_v20 = vld [vmem:[#allocation5 + $0x1a4] sm:$0xf0]  ;;  %v4454_v23 = vld [vmem:[#allocation5 + $0x1a8] sm:$0xf0]  ;;  %v4412_v24 = vld [vmem:[#allocation5 + $0x140] sm:$0xf] }
  0x40   : > { %902 = vmatpush.bf16.msra.mxu3 %v4489_v13  ;;  %v4453_v22 = vor.u32 %v5847_v20, %v4452_v19  ;;  %v5838_v25 = vld [vmem:[#allocation5 + $0x15c] sm:$0xf0]  ;;  %v4457_v26 = vor.u32 %v5843_v21, %v4454_v23  ;;  %v5834_v27 = vld [vmem:[#allocation5 + $0x144] sm:$0xf]  ;;  %v4420_v29 = vld [vmem:[#allocation5 + $0x148] sm:$0xf] }
  0x41   : > { %v4414_v28 = vld [vmem:[#allocation5 + $0x160] sm:$0xf0]  ;;  %v4413_v30 = vor.u32 %v5838_v25, %v4412_v24  ;;  %v5839_v31 = vld [vmem:[#allocation5 + $0x164] sm:$0xf0]  ;;  %v5835_v32 = vld [vmem:[#allocation5 + $0x14c] sm:$0xf] }
  0x42   : > { %834 = vmatpush.bf16.msra.mxu0 %v4445_v17  ;;  %v4422_v33 = vld [vmem:[#allocation5 + $0x168] sm:$0xf0]  ;;  %857 = vmatpush.bf16.msra.mxu1 %v4449_v18  ;;  %v4417_v34 = vor.u32 %v5834_v27, %v4414_v28  ;;  %v4421_v35 = vor.u32 %v5839_v31, %v4420_v29  ;;  %v4380_v36 = vld [vmem:[#allocation5 + $0x100] sm:$0xf]  ;;  %v5826_v38 = vld [vmem:[#allocation5 + $0x104] sm:$0xf] }
  0x43   : > { %880 = vmatpush.bf16.msra.mxu2 %v4453_v22  ;;  %v5830_v37 = vld [vmem:[#allocation5 + $0x11c] sm:$0xf0]  ;;  %v4425_v39 = vor.u32 %v5835_v32, %v4422_v33  ;;  %v4382_v40 = vld [vmem:[#allocation5 + $0x120] sm:$0xf0]  ;;  %v4388_v41 = vld [vmem:[#allocation5 + $0x108] sm:$0xf] }
  0x44   : > { %903 = vmatpush.bf16.msra.mxu3 %v4457_v26  ;;  %v5831_v42 = vld [vmem:[#allocation5 + $0x124] sm:$0xf0]  ;;  %v5827_v43 = vld [vmem:[#allocation5 + $0x10c] sm:$0xf]  ;;  %v4381_v45 = vor.u32 %v5830_v37, %v4380_v36  ;;  %v4385_v46 = vor.u32 %v5826_v38, %v4382_v40  ;;  %v4348_v48 = vld [vmem:[#allocation5 + $0xc0] sm:$0xf] }
  0x45   : > { %v4390_v44 = vld [vmem:[#allocation5 + $0x128] sm:$0xf0]  ;;  %v4389_v47 = vor.u32 %v5831_v42, %v4388_v41  ;;  %v5822_v49 = vld [vmem:[#allocation5 + $0xdc] sm:$0xf0]  ;;  %v5818_v50 = vld [vmem:[#allocation5 + $0xc4] sm:$0xf] }
  0x46   : > { %835 = vmatpush.bf16.msra.mxu0 %v4413_v30  ;;  %858 = vmatpush.bf16.msra.mxu1 %v4417_v34  ;;  %v4393_v51 = vor.u32 %v5827_v43, %v4390_v44  ;;  %v4350_v52 = vld [vmem:[#allocation5 + $0xe0] sm:$0xf0]  ;;  %v4356_v53 = vld [vmem:[#allocation5 + $0xc8] sm:$0xf]  ;;  %v5819_v55 = vld [vmem:[#allocation5 + $0xcc] sm:$0xf]  ;;  %v4349_v57 = vor.u32 %v5822_v49, %v4348_v48 }
  0x47   : > { %881 = vmatpush.bf16.msra.mxu2 %v4421_v35  ;;  %v5823_v54 = vld [vmem:[#allocation5 + $0xe4] sm:$0xf0]  ;;  %v4358_v56 = vld [vmem:[#allocation5 + $0xe8] sm:$0xf0]  ;;  %v4353_v58 = vor.u32 %v5818_v50, %v4350_v52  ;;  %v4316_v60 = vld [vmem:[#allocation5 + $0x80] sm:$0xf] }
  0x48   : > { %904 = vmatpush.bf16.msra.mxu3 %v4425_v39  ;;  %v4357_v59 = vor.u32 %v5823_v54, %v4356_v53  ;;  %v5814_v61 = vld [vmem:[#allocation5 + $0x9c] sm:$0xf0]  ;;  %v5810_v62 = vld [vmem:[#allocation5 + $0x84] sm:$0xf]  ;;  %v4361_v63 = vor.u32 %v5819_v55, %v4358_v56  ;;  %v4324_v1 = vld [vmem:[#allocation5 + $0x88] sm:$0xf] }
  0x49   : > { %v4318_v0 = vld [vmem:[#allocation5 + $0xa0] sm:$0xf0]  ;;  %v5815_v2 = vld [vmem:[#allocation5 + $0xa4] sm:$0xf0]  ;;  %v5811_v3 = vld [vmem:[#allocation5 + $0x8c] sm:$0xf]  ;;  %v4317_v5 = vor.u32 %v5814_v61, %v4316_v60 }
  0x4a   : > { %836 = vmatpush.bf16.msra.mxu0 %v4381_v45  ;;  %859 = vmatpush.bf16.msra.mxu1 %v4385_v46  ;;  %v4326_v4 = vld [vmem:[#allocation5 + $0xa8] sm:$0xf0]  ;;  %v4321_v6 = vor.u32 %v5810_v62, %v4318_v0  ;;  %v4325_v7 = vor.u32 %v5815_v2, %v4324_v1  ;;  %v4284_v8 = vld [vmem:[#allocation5 + $0x40] sm:$0xf]  ;;  %v5802_v10 = vld [vmem:[#allocation5 + $0x44] sm:$0xf] }
  0x4b   : > { %882 = vmatpush.bf16.msra.mxu2 %v4389_v47  ;;  %v5806_v9 = vld [vmem:[#allocation5 + $0x5c] sm:$0xf0]  ;;  %v4329_v11 = vor.u32 %v5811_v3, %v4326_v4  ;;  %v4286_v12 = vld [vmem:[#allocation5 + $0x60] sm:$0xf0]  ;;  %v4292_v13 = vld [vmem:[#allocation5 + $0x48] sm:$0xf] }
  0x4c   : > { %905 = vmatpush.bf16.msra.mxu3 %v4393_v51  ;;  %v5807_v14 = vld [vmem:[#allocation5 + $0x64] sm:$0xf0]  ;;  %v5803_v15 = vld [vmem:[#allocation5 + $0x4c] sm:$0xf]  ;;  %v4285_v17 = vor.u32 %v5806_v9, %v4284_v8  ;;  %v4252_v18 = vld [vmem:[#allocation5] sm:$0xf]  ;;  %v4289_v20 = vor.u32 %v5802_v10, %v4286_v12 }
  0x4d   : > { %v4294_v16 = vld [vmem:[#allocation5 + $0x68] sm:$0xf0]  ;;  %v5798_v19 = vld [vmem:[#allocation5 + $0x1c] sm:$0xf0]  ;;  %v4293_v21 = vor.u32 %v5807_v14, %v4292_v13  ;;  %v5794_v22 = vld [vmem:[#allocation5 + $0x4] sm:$0xf] }
  0x4e   : > { %837 = vmatpush.bf16.msra.mxu0 %v4349_v57  ;;  %860 = vmatpush.bf16.msra.mxu1 %v4353_v58  ;;  %v4254_v23 = vld [vmem:[#allocation5 + $0x20] sm:$0xf0]  ;;  %v4260_v24 = vld [vmem:[#allocation5 + $0x8] sm:$0xf]  ;;  %v4297_v25 = vor.u32 %v5803_v15, %v4294_v16  ;;  %v5795_v27 = vld [vmem:[#allocation5 + $0xc] sm:$0xf]  ;;  %v4253_v32 = vor.u32 %v5798_v19, %v4252_v18 }
  0x4f   : > { %883 = vmatpush.bf16.msra.mxu2 %v4357_v59  ;;  %v5799_v26 = vld [vmem:[#allocation5 + $0x24] sm:$0xf0]  ;;  %v4262_v28 = vld [vmem:[#allocation5 + $0x28] sm:$0xf0]  ;;  %v423_v29 = vld [vmem:[%s6652_s1] sm:$0xff]  ;;  %v4257_v36 = vor.u32 %v5794_v22, %v4254_v23  ;;  %s7263_s11 = sadd.s32 4294967295, %s6480_s14  }
  0x50   : > { %906 = vmatpush.bf16.msra.mxu3 %v4361_v63  ;;  %v4500_v30 = vld [vmem:[#allocation5 + $0x1d8] sm:$0xf]  ;;  %v5853_v34 = vld [vmem:[#allocation5 + $0x1dc] sm:$0xf]  ;;  %v4261_v37 = vor.u32 %v5799_v26, %v4260_v24  ;;  %v4265_v38 = vor.u32 %v5795_v27, %v4262_v28  ;;  %v4492_v41 = vld [vmem:[#allocation5 + $0x1d0] sm:$0xf] }
  0x51   : > { %v5857_v31 = vld [vmem:[#allocation5 + $0x1f4] sm:$0xf0]  ;;  %v4502_v35 = vld [vmem:[#allocation5 + $0x1f8] sm:$0xf0]  ;;  %v5856_v42 = vld [vmem:[#allocation5 + $0x1ec] sm:$0xf0] }
  0x52   : > { %838 = vmatpush.bf16.msra.mxu0 %v4317_v5  ;;  %861 = vmatpush.bf16.msra.mxu1 %v4321_v6  ;;  %v424_v33 = vld [vmem:[%s6652_s1 + $0x8] sm:$0xff]  ;;  %v4501_v39 = vor.u32 %v5857_v31, %v4500_v30  ;;  %v4505_v44 = vor.u32 %v5853_v34, %v4502_v35  ;;  %v5852_v46 = vld [vmem:[#allocation5 + $0x1d4] sm:$0xf]  ;;  %v4493_v50 = vor.u32 %v5856_v42, %v4492_v41  ;;  %v4460_v54 = vld [vmem:[#allocation5 + $0x190] sm:$0xf]  ;;  %s417_s17 = smul.u32 5, %s7263_s11 }
  0x53   : > { %884 = vmatpush.bf16.msra.mxu2 %v4325_v7  ;;  %v4468_v40 = vld [vmem:[#allocation5 + $0x198] sm:$0xf]  ;;  %v6668_v43 = vpack.c.bf16 %v424_v33, %v423_v29  ;;  %v4494_v47 = vld [vmem:[#allocation5 + $0x1f0] sm:$0xf0]  ;;  %v5845_v48 = vld [vmem:[#allocation5 + $0x19c] sm:$0xf] }
  0x54   : > { %907 = vmatpush.bf16.msra.mxu3 %v4329_v11  ;;  %v5849_v45 = vld [vmem:[#allocation5 + $0x1b4] sm:$0xf0]  ;;  %v4470_v49 = vld [vmem:[#allocation5 + $0x1b8] sm:$0xf0]  ;;  %v4497_v52 = vor.u32 %v5852_v46, %v4494_v47  ;;  %v5848_v55 = vld [vmem:[#allocation5 + $0x1ac] sm:$0xf0] }
  0x55   : > { %v4469_v51 = vor.u32 %v5849_v45, %v4468_v40  ;;  %v4436_v53 = vld [vmem:[#allocation5 + $0x158] sm:$0xf]  ;;  %v4473_v56 = vor.u32 %v5845_v48, %v4470_v49  ;;  %v5844_v58 = vld [vmem:[#allocation5 + $0x194] sm:$0xf]  ;;  %v5837_v60 = vld [vmem:[#allocation5 + $0x15c] sm:$0xf]  ;;  %v4461_v62 = vor.u32 %v5848_v55, %v4460_v54 }
  0x56   : > { %839 = vmatpush.bf16.msra.mxu0 %v4285_v17  ;;  %862 = vmatpush.bf16.msra.mxu1 %v4289_v20  ;;  %v5841_v57 = vld [vmem:[#allocation5 + $0x174] sm:$0xf0]  ;;  %v4462_v59 = vld [vmem:[#allocation5 + $0x1b0] sm:$0xf0]  ;;  %v4438_v61 = vld [vmem:[#allocation5 + $0x178] sm:$0xf0] }
  0x57   : > { %885 = vmatpush.bf16.msra.mxu2 %v4293_v21  ;;  %v4437_v63 = vor.u32 %v5841_v57, %v4436_v53  ;;  %v4465_v0 = vor.u32 %v5844_v58, %v4462_v59  ;;  %v4404_v1 = vld [vmem:[#allocation5 + $0x118] sm:$0xf]  ;;  %v4428_v2 = vld [vmem:[#allocation5 + $0x150] sm:$0xf]  ;;  %v4441_v4 = vor.u32 %v5837_v60, %v4438_v61  ;;  %v5836_v6 = vld [vmem:[#allocation5 + $0x154] sm:$0xf] }
  0x58   : > { %908 = vmatpush.bf16.msra.mxu3 %v4297_v25  ;;  %v5840_v3 = vld [vmem:[#allocation5 + $0x16c] sm:$0xf0]  ;;  %v5833_v5 = vld [vmem:[#allocation5 + $0x134] sm:$0xf0]  ;;  %v4430_v7 = vld [vmem:[#allocation5 + $0x170] sm:$0xf0] }
  0x59   : > { %v5829_v8 = vld [vmem:[#allocation5 + $0x11c] sm:$0xf]  ;;  %v4429_v10 = vor.u32 %v5840_v3, %v4428_v2  ;;  %v425_v11 = vld [vmem:[%s6652_s1 + $0x10] sm:$0xff]  ;;  %v4405_v12 = vor.u32 %v5833_v5, %v4404_v1  ;;  %v4433_v13 = vor.u32 %v5836_v6, %v4430_v7  ;;  %v4372_v14 = vld [vmem:[#allocation5 + $0xd8] sm:$0xf]  ;;  %p418_p1 = scmp.lt.s32.totalorder %s417_s17, 9 }
  0x5a   : > { %840 = vmatpush.bf16.msra.mxu0 %v4253_v32  ;;  %863 = vmatpush.bf16.msra.mxu1 %v4257_v36  ;;  %v4406_v9 = vld [vmem:[#allocation5 + $0x138] sm:$0xf0]  ;;  %v4396_v15 = vld [vmem:[#allocation5 + $0x110] sm:$0xf]  ;;  %v5825_v18 = vld [vmem:[#allocation5 + $0xf4] sm:$0xf0] }
  0x5b   : > { %886 = vmatpush.bf16.msra.mxu2 %v4261_v37  ;;  %v5832_v16 = vld [vmem:[#allocation5 + $0x12c] sm:$0xf0]  ;;  %v4409_v17 = vor.u32 %v5829_v8, %v4406_v9  ;;  %v5828_v19 = vld [vmem:[#allocation5 + $0x114] sm:$0xf]  ;;  %v5821_v22 = vld [vmem:[#allocation5 + $0xdc] sm:$0xf]  ;;  %v4373_v25 = vor.u32 %v5825_v18, %v4372_v14 }
  0x5c   : > { %909 = vmatpush.bf16.msra.mxu3 %v4265_v38  ;;  %v4398_v20 = vld [vmem:[#allocation5 + $0x130] sm:$0xf0]  ;;  %v4374_v23 = vld [vmem:[#allocation5 + $0xf8] sm:$0xf0]  ;;  %v4397_v24 = vor.u32 %v5832_v16, %v4396_v15  ;;  %v4340_v27 = vld [vmem:[#allocation5 + $0x98] sm:$0xf] }
  0x5d   : > { %841 = vmatmul.bf16.vlgmr.msra.gmra.mxu0 %v6668_v43  ;;  %864 = vmatmul.bf16.vlgmr.msra.gmra.mxu1 %v6668_v43  ;;  %v426_v21 = vld [vmem:[%s6652_s1 + $0x18] sm:$0xff]  ;;  %v4401_v26 = vor.u32 %v5828_v19, %v4398_v20  ;;  %v4377_v31 = vor.u32 %v5821_v22, %v4374_v23  ;;  %v5817_v32 = vld [vmem:[#allocation5 + $0xb4] sm:$0xf0]  ;;  %v5813_v35 = vld [vmem:[#allocation5 + $0x9c] sm:$0xf]  ;;  %s7269_s17 = smov (!%p418_p1, %s417_s17), 9 }
  0x5e   : > { %887 = vmatmul.bf16.vlgmr.msra.gmra.mxu2 %v6668_v43  ;;  %925 = vmatpush.bf16.msrb.mxu0 %v4493_v50  ;;  %v4364_v28 = vld [vmem:[#allocation5 + $0xd0] sm:$0xf]  ;;  %v6676_v30 = vpack.c.bf16 %v426_v21, %v425_v11  ;;  %v5820_v33 = vld [vmem:[#allocation5 + $0xd4] sm:$0xf]  ;;  %v4342_v36 = vld [vmem:[#allocation5 + $0xb8] sm:$0xf0]  ;;  %v4341_v38 = vor.u32 %v5817_v32, %v4340_v27 }
  0x5f   : > { %971 = vmatpush.bf16.msrb.mxu2 %v4501_v39  ;;  %910 = vmatmul.bf16.vlgmr.msra.gmra.mxu3 %v6668_v43  ;;  %v5824_v29 = vld [vmem:[#allocation5 + $0xec] sm:$0xf0]  ;;  %v4366_v34 = vld [vmem:[#allocation5 + $0xf0] sm:$0xf0]  ;;  %v4308_v40 = vld [vmem:[#allocation5 + $0x58] sm:$0xf] }
  0x60   : > { %994 = vmatpush.bf16.msrb.mxu3 %v4505_v44  ;;  %948 = vmatpush.bf16.msrb.mxu1 %v4497_v52  ;;  %v4365_v37 = vor.u32 %v5824_v29, %v4364_v28  ;;  %v4369_v39 = vor.u32 %v5820_v33, %v4366_v34  ;;  %v4332_v41 = vld [vmem:[#allocation5 + $0x90] sm:$0xf]  ;;  %v4345_v44 = vor.u32 %v5813_v35, %v4342_v36  ;;  %v5809_v45 = vld [vmem:[#allocation5 + $0x74] sm:$0xf0]  ;;  %v5812_v46 = vld [vmem:[#allocation5 + $0x94] sm:$0xf] }
  0x61   : > { %v5816_v42 = vld [vmem:[#allocation5 + $0xac] sm:$0xf0]  ;;  %v4334_v47 = vld [vmem:[#allocation5 + $0xb0] sm:$0xf0]  ;;  %v5805_v48 = vld [vmem:[#allocation5 + $0x5c] sm:$0xf] }
  0x62   : > { %926 = vmatpush.bf16.msrb.mxu0 %v4461_v62  ;;  %v4310_v49 = vld [vmem:[#allocation5 + $0x78] sm:$0xf0]  ;;  %v4333_v50 = vor.u32 %v5816_v42, %v4332_v41  ;;  %v4337_v52 = vor.u32 %v5812_v46, %v4334_v47  ;;  %v4300_v53 = vld [vmem:[#allocation5 + $0x50] sm:$0xf]  ;;  %v5804_v55 = vld [vmem:[#allocation5 + $0x54] sm:$0xf] }
  0x63   : > { %972 = vmatpush.bf16.msrb.mxu2 %v4469_v51  ;;  %v4309_v51 = vor.u32 %v5809_v45, %v4308_v40  ;;  %v5808_v54 = vld [vmem:[#allocation5 + $0x6c] sm:$0xf0]  ;;  %v4302_v57 = vld [vmem:[#allocation5 + $0x70] sm:$0xf0]  ;;  %v4276_v58 = vld [vmem:[#allocation5 + $0x18] sm:$0xf] }
  0x64   : > { %995 = vmatpush.bf16.msrb.mxu3 %v4473_v56  ;;  %949 = vmatpush.bf16.msrb.mxu1 %v4465_v0  ;;  %v4313_v56 = vor.u32 %v5805_v48, %v4310_v49  ;;  %v5801_v59 = vld [vmem:[#allocation5 + $0x34] sm:$0xf0]  ;;  %v5797_v60 = vld [vmem:[#allocation5 + $0x1c] sm:$0xf]  ;;  %v4301_v62 = vor.u32 %v5808_v54, %v4300_v53  ;;  %v4268_v1 = vld [vmem:[#allocation5 + $0x10] sm:$0xf] }
  0x65   : > { %v4278_v61 = vld [vmem:[#allocation5 + $0x38] sm:$0xf0]  ;;  %v4277_v0 = vor.u32 %v5801_v59, %v4276_v58  ;;  %v5800_v2 = vld [vmem:[#allocation5 + $0x2c] sm:$0xf0]  ;;  %v4270_v5 = vld [vmem:[#allocation5 + $0x30] sm:$0xf0] }
  0x66   : > { %927 = vmatpush.bf16.msrb.mxu0 %v4429_v10  ;;  %v4281_v3 = vor.u32 %v5797_v60, %v4278_v61  ;;  %v427_v6 = vld [vmem:[%s6652_s1 + $0x20] sm:$0xff]  ;;  %v4269_v7 = vor.u32 %v5800_v2, %v4268_v1  ;;  %v4876_v10 = vld [vmem:[#allocation8 + $0x2e0] sm:$0xf]  ;;  %s4249_s23 = sshll.u32 %s7269_s17, 3  ;;  %vm4124_vm0 = vcmask 7168  }
  0x67   : > { %973 = vmatpush.bf16.msrb.mxu2 %v4437_v63  ;;  %v4305_v63 = vor.u32 %v5804_v55, %v4302_v57  ;;  %v6683_v9 = vpack.c.bf16 %v427_v6, %v427_v6  ;;  %v5952_v11 = vld [vmem:[#allocation8 + $0x2ec] sm:$0xf0]  ;;  %v5004_v15 = vld [vmem:[#allocation8 + $0x3e0] sm:$0xf]  ;;  %s7216_s21 = scalar_lea.vmem %s7250_s9, %s4249_s23 }
  0x68   : > { %996 = vmatpush.bf16.msrb.mxu3 %v4441_v4  ;;  %950 = vmatpush.bf16.msrb.mxu1 %v4433_v13  ;;  %v5796_v4 = vld [vmem:[#allocation5 + $0x14] sm:$0xf]  ;;  %v4877_v13 = vor.u32 %v5952_v11, %v4876_v10  ;;  %v5888_v14 = vld [vmem:[#allocation8 + $0xec] sm:$0xf0]  ;;  %v4748_v19 = vld [vmem:[#allocation8 + $0x1e0] sm:$0xf] }
  0x69   : > { %v4273_v8 = vor.u32 %v5796_v4, %v4270_v5  ;;  %v5984_v16 = vld [vmem:[#allocation8 + $0x3ec] sm:$0xf0]  ;;  %v4860_v21 = vld [vmem:[#allocation8 + $0x2c0] sm:$0xf] }
  0x6a   : > { %928 = vmatpush.bf16.msrb.mxu0 %v4397_v24  ;;  %v5005_v18 = vor.u32 %v5984_v16, %v5004_v15  ;;  %v5920_v20 = vld [vmem:[#allocation8 + $0x1ec] sm:$0xf0]  ;;  %v4604_v24 = vld [vmem:[#allocation8 + $0xc0] sm:$0xf] }
  0x6b   : > { %974 = vmatpush.bf16.msrb.mxu2 %v4405_v12  ;;  %v4620_v12 = vld [vmem:[#allocation8 + $0xe0] sm:$0xf]  ;;  %v4749_v22 = vor.u32 %v5920_v20, %v4748_v19  ;;  %v5948_v23 = vld [vmem:[#allocation8 + $0x2cc] sm:$0xf0] }
  0x6c   : > { %997 = vmatpush.bf16.msrb.mxu3 %v4409_v17  ;;  %951 = vmatpush.bf16.msrb.mxu1 %v4401_v26  ;;  %v4621_v17 = vor.u32 %v5888_v14, %v4620_v12  ;;  %v4988_v27 = vld [vmem:[#allocation8 + $0x3c0] sm:$0xf]  ;;  %v5980_v28 = vld [vmem:[#allocation8 + $0x3cc] sm:$0xf0] }
  0x6d   : > { %846 = vmatmul.bf16.gmra.mxu0 %v6676_v30  ;;  %869 = vmatmul.bf16.gmra.mxu1 %v6676_v30  ;;  %v4732_v29 = vld [vmem:[#allocation8 + $0x1c0] sm:$0xf]  ;;  %v5916_v32 = vld [vmem:[#allocation8 + $0x1cc] sm:$0xf0] }
  0x6e   : > { %892 = vmatmul.bf16.gmra.mxu2 %v6676_v30  ;;  %929 = vmatpush.bf16.msrb.mxu0 %v4365_v37  ;;  %v4844_v33 = vld [vmem:[#allocation8 + $0x2a0] sm:$0xf]  ;;  %v5944_v34 = vld [vmem:[#allocation8 + $0x2ac] sm:$0xf0]  ;;  %v4733_v35 = vor.u32 %v5916_v32, %v4732_v29 }
  0x6f   : > { %975 = vmatpush.bf16.msrb.mxu2 %v4373_v25  ;;  %915 = vmatmul.bf16.gmra.mxu3 %v6676_v30  ;;  %v5884_v25 = vld [vmem:[#allocation8 + $0xcc] sm:$0xf0]  ;;  %v4588_v36 = vld [vmem:[#allocation8 + $0xa0] sm:$0xf] }
  0x70   : > { %998 = vmatpush.bf16.msrb.mxu3 %v4377_v31  ;;  %952 = vmatpush.bf16.msrb.mxu1 %v4369_v39  ;;  %v4605_v26 = vor.u32 %v5884_v25, %v4604_v24  ;;  %v4989_v31 = vor.u32 %v5980_v28, %v4988_v27  ;;  %v5880_v37 = vld [vmem:[#allocation8 + $0xac] sm:$0xf0]  ;;  %v4845_v39 = vor.u32 %v5944_v34, %v4844_v33  ;;  %v4716_v41 = vld [vmem:[#allocation8 + $0x1a0] sm:$0xf] }
  0x71   : > { %v5976_v40 = vld [vmem:[#allocation8 + $0x3ac] sm:$0xf0]  ;;  %v4828_v47 = vld [vmem:[#allocation8 + $0x280] sm:$0xf] }
  0x72   : > { %930 = vmatpush.bf16.msrb.mxu0 %v4333_v50  ;;  %v5912_v42 = vld [vmem:[#allocation8 + $0x1ac] sm:$0xf0]  ;;  %v4572_v49 = vld [vmem:[#allocation8 + $0x80] sm:$0xf] }
  0x73   : > { %976 = vmatpush.bf16.msrb.mxu2 %v4341_v38  ;;  %v4972_v38 = vld [vmem:[#allocation8 + $0x3a0] sm:$0xf]  ;;  %v4717_v46 = vor.u32 %v5912_v42, %v4716_v41  ;;  %v5940_v48 = vld [vmem:[#allocation8 + $0x28c] sm:$0xf0]  ;;  %v6701_v42 = vld [vmem:[#allocation7] sm:$0xff] }
  0x74   : > { %999 = vmatpush.bf16.msrb.mxu3 %v4345_v44  ;;  %953 = vmatpush.bf16.msrb.mxu1 %v4337_v52  ;;  %v4589_v44 = vor.u32 %v5880_v37, %v4588_v36  ;;  %v4973_v45 = vor.u32 %v5976_v40, %v4972_v38  ;;  %v5876_v50 = vld [vmem:[#allocation8 + $0x8c] sm:$0xf0]  ;;  %v4700_v53 = vld [vmem:[#allocation8 + $0x180] sm:$0xf]  ;;  %v4829_v55 = vor.u32 %v5940_v48, %v4828_v47  ;;  %v6707_v48 = vperm.slane %v6701_v42, 1 }
  0x75   : > { %v5972_v52 = vld [vmem:[#allocation8 + $0x38c] sm:$0xf0]  ;;  %v4812_v58 = vld [vmem:[#allocation8 + $0x260] sm:$0xf] }
  0x76   : > { %931 = vmatpush.bf16.msrb.mxu0 %v4301_v62  ;;  %v5908_v54 = vld [vmem:[#allocation8 + $0x18c] sm:$0xf0]  ;;  %v4556_v62 = vld [vmem:[#allocation8 + $0x60] sm:$0xf] }
  0x77   : > { %977 = vmatpush.bf16.msrb.mxu2 %v4309_v51  ;;  %v4956_v51 = vld [vmem:[#allocation8 + $0x380] sm:$0xf]  ;;  %v5936_v59 = vld [vmem:[#allocation8 + $0x26c] sm:$0xf0]  ;;  %v4701_v60 = vor.u32 %v5908_v54, %v4700_v53 }
  0x78   : > { %1000 = vmatpush.bf16.msrb.mxu3 %v4313_v56  ;;  %954 = vmatpush.bf16.msrb.mxu1 %v4305_v63  ;;  %v4573_v56 = vor.u32 %v5876_v50, %v4572_v49  ;;  %v4957_v57 = vor.u32 %v5972_v52, %v4956_v51  ;;  %v4813_v61 = vor.u32 %v5936_v59, %v4812_v58  ;;  %v5872_v63 = vld [vmem:[#allocation8 + $0x6c] sm:$0xf0]  ;;  %v4940_v5 = vld [vmem:[#allocation8 + $0x360] sm:$0xf] }
  0x79   : > { %v4557_v1 = vor.u32 %v5872_v63, %v4556_v62  ;;  %v5904_v2 = vld [vmem:[#allocation8 + $0x16c] sm:$0xf0]  ;;  %v4668_v12 = vld [vmem:[#allocation8 + $0x140] sm:$0xf] }
  0x7a   : > { %932 = vmatpush.bf16.msrb.mxu0 %v4269_v7  ;;  %v5868_v4 = vld [vmem:[#allocation8 + $0x4c] sm:$0xf0]  ;;  %v4796_v7 = vld [vmem:[#allocation8 + $0x240] sm:$0xf] }
  0x7b   : > { %978 = vmatpush.bf16.msrb.mxu2 %v4277_v0  ;;  %v4684_v0 = vld [vmem:[#allocation8 + $0x160] sm:$0xf]  ;;  %v5968_v6 = vld [vmem:[#allocation8 + $0x36c] sm:$0xf0] }
  0x7c   : > { %1001 = vmatpush.bf16.msrb.mxu3 %v4281_v3  ;;  %955 = vmatpush.bf16.msrb.mxu1 %v4273_v8  ;;  %v4540_v3 = vld [vmem:[#allocation8 + $0x40] sm:$0xf]  ;;  %v4941_v10 = vor.u32 %v5968_v6, %v4940_v5  ;;  %v5932_v11 = vld [vmem:[#allocation8 + $0x24c] sm:$0xf0]  ;;  %v6720_v5 = vperm.slane %v6701_v42, 3 }
  0x7d   : > { %851 = vmatmul.bf16.gmra.mxu0 %v6683_v9  ;;  %874 = vmatmul.bf16.gmra.mxu1 %v6683_v9  ;;  %v4541_v8 = vor.u32 %v5868_v4, %v4540_v3  ;;  %v4524_v15 = vld [vmem:[#allocation8 + $0x20] sm:$0xf]  ;;  %v5864_v16 = vld [vmem:[#allocation8 + $0x2c] sm:$0xf0]  ;;  %v6717_v4 = vperm.slane %v6701_v42, 2 }
  0x7e   : > { %897 = vmatmul.bf16.gmra.mxu2 %v6683_v9  ;;  %2667 = vmatpush.bf16.msra.mxu0 %v4621_v17  ;;  %v4652_v17 = vld [vmem:[#allocation8 + $0x120] sm:$0xf]  ;;  %v5896_v19 = vld [vmem:[#allocation8 + $0x12c] sm:$0xf0] }
  0x7f   : > { %920 = vmatmul.bf16.gmra.mxu3 %v6683_v9  ;;  %2713 = vmatpush.bf16.msra.mxu2 %v4877_v13  ;;  %v4797_v13 = vor.u32 %v5932_v11, %v4796_v7  ;;  %v4924_v20 = vld [vmem:[#allocation8 + $0x340] sm:$0xf]  ;;  %v5860_v25 = vld [vmem:[#allocation8 + $0xc] sm:$0xf0] }
  0x80   : > { %2736 = vmatpush.bf16.msra.mxu3 %v5005_v18  ;;  %2690 = vmatpush.bf16.msra.mxu1 %v4749_v22  ;;  %v4525_v18 = vor.u32 %v5864_v16, %v4524_v15  ;;  %v4653_v22 = vor.u32 %v5896_v19, %v4652_v17  ;;  %v4508_v24 = vld [vmem:[#allocation8] sm:$0xf]  ;;  %v5892_v27 = vld [vmem:[#allocation8 + $0x10c] sm:$0xf0] }
  0x81   : > { %v4780_v28 = vld [vmem:[#allocation8 + $0x220] sm:$0xf]  ;;  %v5928_v29 = vld [vmem:[#allocation8 + $0x22c] sm:$0xf0] }
  0x82   : > { %2668 = vmatpush.bf16.msra.mxu0 %v4605_v26  ;;  %v4509_v26 = vor.u32 %v5860_v25, %v4508_v24  ;;  %v4781_v33 = vor.u32 %v5928_v29, %v4780_v28  ;;  %v5960_v34 = vld [vmem:[#allocation8 + $0x32c] sm:$0xf0]  ;;  %v4764_v36 = vld [vmem:[#allocation8 + $0x200] sm:$0xf] }
  0x83   : > { %v5924_v37 = vld [vmem:[#allocation8 + $0x20c] sm:$0xf0]  ;;  %v4892_v38 = vld [vmem:[#allocation8 + $0x300] sm:$0xf] }
  0x84   : > { %2737 = vmatpush.bf16.msra.mxu3 %v4989_v31  ;;  %2691 = vmatpush.bf16.msra.mxu1 %v4733_v35  ;;  %v4908_v31 = vld [vmem:[#allocation8 + $0x320] sm:$0xf]  ;;  %v5956_v40 = vld [vmem:[#allocation8 + $0x30c] sm:$0xf0] }
  0x85   : > { %v4909_v35 = vor.u32 %v5960_v34, %v4908_v31  ;;  %v4893_v41 = vor.u32 %v5956_v40, %v4892_v38  ;;  %v5132_v50 = vld [vmem:[#allocation8 + $0x4e0] sm:$0xf]  ;;  %v6016_v51 = vld [vmem:[#allocation8 + $0x4ec] sm:$0xf0] }
  0x86   : > { %2669 = vmatpush.bf16.msra.mxu0 %v4589_v44  ;;  %v5388_v44 = vld [vmem:[#allocation8 + $0x6e0] sm:$0xf]  ;;  %v5133_v54 = vor.u32 %v6016_v51, %v5132_v50  ;;  %v6076_v62 = vld [vmem:[#allocation8 + $0x6cc] sm:$0xf0] }
  0x87   : > { %v5516_v52 = vld [vmem:[#allocation8 + $0x7e0] sm:$0xf]  ;;  %v6044_v7 = vld [vmem:[#allocation8 + $0x5cc] sm:$0xf0] }
  0x88   : > { %2738 = vmatpush.bf16.msra.mxu3 %v4973_v45  ;;  %2692 = vmatpush.bf16.msra.mxu1 %v4717_v46  ;;  %v6080_v45 = vld [vmem:[#allocation8 + $0x6ec] sm:$0xf0]  ;;  %v6704_v46 = vperm.slane %v6701_v42, 0  ;;  %v5500_v11 = vld [vmem:[#allocation8 + $0x7c0] sm:$0xf] }
  0x89   : > { %v5389_v47 = vor.u32 %v6080_v45, %v5388_v44  ;;  %v5356_v16 = vld [vmem:[#allocation8 + $0x6a0] sm:$0xf]  ;;  %v6072_v17 = vld [vmem:[#allocation8 + $0x6ac] sm:$0xf0] }
  0x8a   : > { %2670 = vmatpush.bf16.msra.mxu0 %v4573_v56  ;;  %v5260_v56 = vld [vmem:[#allocation8 + $0x5e0] sm:$0xf]  ;;  %v6104_v24 = vld [vmem:[#allocation8 + $0x7ac] sm:$0xf0] }
  0x8b   : > { %v5228_v28 = vld [vmem:[#allocation8 + $0x5a0] sm:$0xf]  ;;  %v6040_v29 = vld [vmem:[#allocation8 + $0x5ac] sm:$0xf0] }
  0x8c   : > { %2739 = vmatpush.bf16.msra.mxu3 %v4957_v57  ;;  %2693 = vmatpush.bf16.msra.mxu1 %v4701_v60  ;;  %v6048_v57 = vld [vmem:[#allocation8 + $0x5ec] sm:$0xf0]  ;;  %v5084_v38 = vld [vmem:[#allocation8 + $0x480] sm:$0xf] }
  0x8d   : > { %933 = vmatmul.bf16.vlgmr.msrb.gmra.mxu0 %v6668_v43  ;;  %956 = vmatmul.bf16.vlgmr.msrb.gmra.mxu1 %v6668_v43  ;;  %v5261_v60 = vor.u32 %v6048_v57, %v5260_v56  ;;  %v5212_v40 = vld [vmem:[#allocation8 + $0x580] sm:$0xf] }
  0x8e   : > { %979 = vmatmul.bf16.vlgmr.msrb.gmra.mxu2 %v6668_v43  ;;  %2671 = vmatpush.bf16.msra.mxu0 %v4557_v1  ;;  %v5116_v1 = vld [vmem:[#allocation8 + $0x4c0] sm:$0xf] }
  0x8f   : > { %1002 = vmatmul.bf16.vlgmr.msrb.gmra.mxu3 %v6668_v43  ;;  %v4861_v43 = vor.u32 %v5948_v23, %v4860_v21  ;;  %v5964_v21 = vld [vmem:[#allocation8 + $0x34c] sm:$0xf0]  ;;  %v5340_v51 = vld [vmem:[#allocation8 + $0x680] sm:$0xf] }
  0x90   : > { %2740 = vmatpush.bf16.msra.mxu3 %v4941_v10  ;;  %v4925_v23 = vor.u32 %v5964_v21, %v4924_v20  ;;  %v5357_v21 = vor.u32 %v6072_v17, %v5356_v16 }
  0x91   : > { %2714 = vmatpush.bf16.msra.mxu2 %v4861_v43  ;;  %v4636_v43 = vld [vmem:[#allocation8 + $0x100] sm:$0xf] }
  0x92   : > { %2672 = vmatpush.bf16.msra.mxu0 %v4541_v8  ;;  %v4637_v32 = vor.u32 %v5892_v27, %v4636_v43 }
  0x94   : > { %2741 = vmatpush.bf16.msra.mxu3 %v4925_v23  ;;  %v5484_v23 = vld [vmem:[#allocation8 + $0x7a0] sm:$0xf] }
  0x95   : > { %2715 = vmatpush.bf16.msra.mxu2 %v4845_v39  ;;  %v4765_v39 = vor.u32 %v5924_v37, %v4764_v36  ;;  %v5485_v27 = vor.u32 %v6104_v24, %v5484_v23  ;;  %v6096_v23 = vld [vmem:[#allocation8 + $0x76c] sm:$0xf0]  ;;  %v5308_v24 = vld [vmem:[#allocation8 + $0x640] sm:$0xf] }
  0x96   : > { %2673 = vmatpush.bf16.msra.mxu0 %v4525_v18  ;;  %v5100_v18 = vld [vmem:[#allocation8 + $0x4a0] sm:$0xf] }
  0x98   : > { %2742 = vmatpush.bf16.msra.mxu3 %v4909_v35 }
  0x99   : > { %2716 = vmatpush.bf16.msra.mxu2 %v4829_v55  ;;  %v6112_v55 = vld [vmem:[#allocation8 + $0x7ec] sm:$0xf0] }
  0x9a   : > { %2674 = vmatpush.bf16.msra.mxu0 %v4509_v26  ;;  %v5517_v59 = vor.u32 %v6112_v55, %v5516_v52  ;;  %v6068_v52 = vld [vmem:[#allocation8 + $0x68c] sm:$0xf0] }
  0x9c   : > { %2743 = vmatpush.bf16.msra.mxu3 %v4893_v41 }
  0x9d   : > { %938 = vmatmul.bf16.gmra.mxu0 %v6676_v30  ;;  %961 = vmatmul.bf16.gmra.mxu1 %v6676_v30 }
  0x9e   : > { %984 = vmatmul.bf16.gmra.mxu2 %v6676_v30  ;;  %2759 = vmatpush.bf16.msrb.mxu0 %v5133_v54 }
  0x9f   : > { %1007 = vmatmul.bf16.gmra.mxu3 %v6676_v30  ;;  %2717 = vmatpush.bf16.msra.mxu2 %v4813_v61  ;;  %v4685_v30 = vor.u32 %v5904_v2, %v4684_v0  ;;  %v5372_v61 = vld [vmem:[#allocation8 + $0x6c0] sm:$0xf]  ;;  %v6012_v2 = vld [vmem:[#allocation8 + $0x4cc] sm:$0xf0] }
  0xa0   : > { %v5373_v0 = vor.u32 %v6076_v62, %v5372_v61  ;;  %2828 = vmatpush.bf16.msrb.mxu3 %v5517_v59  ;;  %v5117_v6 = vor.u32 %v6012_v2, %v5116_v1  ;;  %v5341_v59 = vor.u32 %v6068_v52, %v5340_v51  ;;  %v5324_v61 = vld [vmem:[#allocation8 + $0x660] sm:$0xf]  ;;  %v6064_v62 = vld [vmem:[#allocation8 + $0x66c] sm:$0xf0] }
  0xa1   : > { %2694 = vmatpush.bf16.msra.mxu1 %v4685_v30  ;;  %v5244_v30 = vld [vmem:[#allocation8 + $0x5c0] sm:$0xf] }
  0xa2   : > { %2760 = vmatpush.bf16.msrb.mxu0 %v5117_v6  ;;  %v5436_v52 = vld [vmem:[#allocation8 + $0x740] sm:$0xf] }
  0xa3   : > { %2718 = vmatpush.bf16.msra.mxu2 %v4797_v13  ;;  %v5245_v13 = vor.u32 %v6044_v7, %v5244_v30  ;;  %v5068_v30 = vld [vmem:[#allocation8 + $0x460] sm:$0xf]  ;;  %v5325_v7 = vor.u32 %v6064_v62, %v5324_v61 }
  0xa7   : > { %2719 = vmatpush.bf16.msra.mxu2 %v4781_v33 }
  0xab   : > { %2720 = vmatpush.bf16.msra.mxu2 %v4765_v39  ;;  %v6004_v39 = vld [vmem:[#allocation8 + $0x48c] sm:$0xf0] }
  0xac   : > { %v5085_v45 = vor.u32 %v6004_v39, %v5084_v38 }
  0xad   : > { %943 = vmatmul.bf16.gmra.mxu0 %v6683_v9  ;;  %966 = vmatmul.bf16.gmra.mxu1 %v6683_v9 }
  0xae   : > { %989 = vmatmul.bf16.gmra.mxu2 %v6683_v9 }
  0xaf   : > { %1012 = vmatmul.bf16.gmra.mxu3 %v6683_v9  ;;  %v5900_v9 = vld [vmem:[#allocation8 + $0x14c] sm:$0xf0]  ;;  %2805 = vmatpush.bf16.msrb.mxu2 %v5389_v47 }
  0xb0   : > { %v4669_v14 = vor.u32 %v5900_v9, %v4668_v12  ;;  %v6108_v12 = vld [vmem:[#allocation8 + $0x7cc] sm:$0xf0] }
  0xb1   : > { %v5501_v15 = vor.u32 %v6108_v12, %v5500_v11  ;;  %v6036_v47 = vld [vmem:[#allocation8 + $0x58c] sm:$0xf0] }
  0xb2   : > { %2695 = vmatpush.bf16.msra.mxu1 %v4669_v14  ;;  %v5213_v54 = vor.u32 %v6036_v47, %v5212_v40  ;;  %v6032_v11 = vld [vmem:[#allocation8 + $0x56c] sm:$0xf0]  ;;  %v5036_v40 = vld [vmem:[#allocation8 + $0x420] sm:$0xf] }
  0xb3   : > { %2806 = vmatpush.bf16.msrb.mxu2 %v5373_v0  ;;  %2829 = vmatpush.bf16.msrb.mxu3 %v5501_v15 }
  0xb6   : > { %2696 = vmatpush.bf16.msra.mxu1 %v4653_v22  ;;  %v6008_v22 = vld [vmem:[#allocation8 + $0x4ac] sm:$0xf0] }
  0xb7   : > { %v5101_v26 = vor.u32 %v6008_v22, %v5100_v18  ;;  %2807 = vmatpush.bf16.msrb.mxu2 %v5357_v21  ;;  %2830 = vmatpush.bf16.msrb.mxu3 %v5485_v27  ;;  %v5452_v22 = vld [vmem:[#allocation8 + $0x760] sm:$0xf] }
  0xb8   : > { %v5453_v27 = vor.u32 %v6096_v23, %v5452_v22 }
  0xb9   : > { %2761 = vmatpush.bf16.msrb.mxu0 %v5101_v26 }
  0xba   : > { %2697 = vmatpush.bf16.msra.mxu1 %v4637_v32  ;;  %v5229_v32 = vor.u32 %v6040_v29, %v5228_v28  ;;  %v6060_v28 = vld [vmem:[#allocation8 + $0x64c] sm:$0xf0]  ;;  %v5180_v29 = vld [vmem:[#allocation8 + $0x540] sm:$0xf] }
  0xbb   : > { %2808 = vmatpush.bf16.msrb.mxu2 %v5341_v59 }
  0xbd   : > { %2762 = vmatpush.bf16.msrb.mxu0 %v5085_v45 }
  0xbe   : > { %2782 = vmatpush.bf16.msrb.mxu1 %v5261_v60  ;;  %v6100_v60 = vld [vmem:[#allocation8 + $0x78c] sm:$0xf0] }
  0xbf   : > { %2809 = vmatpush.bf16.msrb.mxu2 %v5325_v7 }
  0xc2   : > { %2783 = vmatpush.bf16.msrb.mxu1 %v5245_v13 }
  0xc6   : > { %2784 = vmatpush.bf16.msrb.mxu1 %v5229_v32 }
  0xca   : > { %2785 = vmatpush.bf16.msrb.mxu1 %v5213_v54 }
  0xda   : > { %v842_v49 = vpop.f32.mrf.mxu0  ;;  %v865_v53 = vpop.f32.mrf.mxu1 }
  0xdb   : > { %v6710_v58 = vadd.f32 %v842_v49, %v6704_v46  ;;  %v6713_v63 = vadd.f32 %v865_v53, %v6707_v48  ;;  %v5468_v53 = vld [vmem:[#allocation8 + $0x780] sm:$0xf] }
  0xdc   : > { %v5469_v2 = vor.u32 %v6100_v60, %v5468_v53 }
  0xdd   : > { %v1017_v3 = vmul.f32 0.2, %v6710_v58  ;;  %v1018_v8 = vmul.f32 0.2, %v6713_v63 }
  0xde   : > { %2831 = vmatpush.bf16.msrb.mxu3 %v5469_v2 }
  0xdf   : > { %v1058_v33 = vmax.f32 %v6713_v63, %v1018_v8  ;;  %v1057_v35 = vmax.f32 %v6710_v58, %v1017_v3  ;;  %v6000_v3 = vld [vmem:[#allocation8 + $0x46c] sm:$0xf0] }
  0xe0   : > { %v5069_v8 = vor.u32 %v6000_v3, %v5068_v30  ;;  %v6020_v3 = vld [vmem:[#allocation8 + $0x50c] sm:$0xf0] }
  0xe1   : > { %v888_v10 = vpop.f32.mrf.mxu2 }
  0xe2   : > { %v911_v9 = vpop.f32.mrf.mxu3  ;;  %v844_v14 = vpop.f32.mrf.mxu0  ;;  %v6725_v25 = vadd.f32 %v888_v10, %v6717_v4  ;;  %v5196_v10 = vld [vmem:[#allocation8 + $0x560] sm:$0xf]  ;;  %2763 = vmatpush.bf16.msrb.mxu0 %v5069_v8  ;;  %2832 = vmatpush.bf16.msrb.mxu3 %v5453_v27 }
  0xe3   : > { %v845_v19 = vadd.f32 %v844_v14, %v6704_v46  ;;  %v867_v20 = vpop.f32.mrf.mxu1  ;;  %v912_v36 = vadd.f32 %v911_v9, %v6720_v5  ;;  %v5197_v13 = vor.u32 %v6032_v11, %v5196_v10  ;;  %v5292_v8 = vld [vmem:[#allocation8 + $0x620] sm:$0xf]  ;;  %v6056_v10 = vld [vmem:[#allocation8 + $0x62c] sm:$0xf0] }
  0xe4   : > { %v868_v43 = vadd.f32 %v867_v20, %v6707_v48  ;;  %v1019_v41 = vmul.f32 0.2, %v6725_v25  ;;  %v5996_v20 = vld [vmem:[#allocation8 + $0x44c] sm:$0xf0]  ;;  %v5420_v11 = vld [vmem:[#allocation8 + $0x720] sm:$0xf] }
  0xe5   : > { %v1025_v31 = vmul.f32 0.2, %v845_v19  ;;  %v1020_v63 = vmul.f32 0.2, %v912_v36  ;;  %2786 = vmatpush.bf16.msrb.mxu1 %v5197_v13 }
  0xe6   : > { %v1026_v34 = vmul.f32 0.2, %v868_v43  ;;  %v1059_v9 = vmax.f32 %v6725_v25, %v1019_v41  ;;  %v5992_v41 = vld [vmem:[#allocation8 + $0x42c] sm:$0xf0] }
  0xe7   : > { %v1065_v37 = vmax.f32 %v845_v19, %v1025_v31  ;;  %v1060_v17 = vmax.f32 %v912_v36, %v1020_v63  ;;  %v5052_v19 = vld [vmem:[#allocation8 + $0x440] sm:$0xf]  ;;  %v6028_v36 = vld [vmem:[#allocation8 + $0x54c] sm:$0xf0]  ;;  %v5037_v47 = vor.u32 %v5992_v41, %v5036_v40 }
  0xe8   : > { %v1066_v44 = vmax.f32 %v868_v43, %v1026_v34  ;;  %v5053_v43 = vor.u32 %v5996_v20, %v5052_v19  ;;  %v5181_v39 = vor.u32 %v6028_v36, %v5180_v29  ;;  %v5020_v63 = vld [vmem:[#allocation8 + $0x400] sm:$0xf] }
  0xe9   : > { %v6732_v49 = vpack.c.bf16 %v1065_v37, %v1057_v35  ;;  %v890_v50 = vpop.f32.mrf.mxu2  ;;  %v5309_v35 = vor.u32 %v6060_v28, %v5308_v24  ;;  %v5276_v28 = vld [vmem:[#allocation8 + $0x600] sm:$0xf] }
  0xea   : > { %v6734_v55 = vpack.c.bf16 %v1066_v44, %v1058_v33  ;;  %v891_v56 = vadd.f32 %v890_v50, %v6717_v4  ;;  %v913_v57 = vpop.f32.mrf.mxu3  ;;  %v847_v58 = vpop.f32.mrf.mxu0  ;;  %2764 = vmatpush.bf16.msrb.mxu0 %v5053_v43  ;;  %v5164_v44 = vld [vmem:[#allocation8 + $0x520] sm:$0xf]  ;;  %v6024_v50 = vld [vmem:[#allocation8 + $0x52c] sm:$0xf0]  ;;  %2787 = vmatpush.bf16.msrb.mxu1 %v5181_v39 }
  0xeb   : > { %v914_v0 = vadd.f32 %v913_v57, %v6720_v5  ;;  %v870_v1 = vpop.f32.mrf.mxu1  ;;  %2675 = vmatmul.bf16.vlgmr.msra.gmra.mxu0 %v6732_v49  ;;  %v848_v15 = vadd.f32 %v847_v58, %v6704_v46  ;;  %2810 = vmatpush.bf16.msrb.mxu2 %v5309_v35  ;;  %v5165_v53 = vor.u32 %v6024_v50, %v5164_v44  ;;  %v6092_v58 = vld [vmem:[#allocation8 + $0x74c] sm:$0xf0] }
  0xec   : > { %v1027_v6 = vmul.f32 0.2, %v891_v56  ;;  %2698 = vmatmul.bf16.vlgmr.msra.gmra.mxu1 %v6734_v55  ;;  %v6743_v16 = vadd.f32 %v870_v1, %v6707_v48  ;;  %v5437_v62 = vor.u32 %v6092_v58, %v5436_v52  ;;  %v5148_v1 = vld [vmem:[#allocation8 + $0x500] sm:$0xf] }
  0xed   : > { %v1028_v12 = vmul.f32 0.2, %v914_v0  ;;  %v1033_v31 = vmul.f32 0.2, %v848_v15 }
  0xee   : > { %v1067_v14 = vmax.f32 %v891_v56, %v1027_v6  ;;  %v1034_v32 = vmul.f32 0.2, %v6743_v16  ;;  %2765 = vmatpush.bf16.msrb.mxu0 %v5037_v47  ;;  %2833 = vmatpush.bf16.msrb.mxu3 %v5437_v62 }
  0xef   : > { %v1068_v18 = vmax.f32 %v914_v0, %v1028_v12  ;;  %v1073_v59 = vmax.f32 %v848_v15, %v1033_v31  ;;  %v5988_v0 = vld [vmem:[#allocation8 + $0x40c] sm:$0xf0]  ;;  %2788 = vmatpush.bf16.msrb.mxu1 %v5165_v53  ;;  %v5149_v12 = vor.u32 %v6020_v3, %v5148_v1 }
  0xf0   : > { %v6745_v21 = vpack.c.bf16 %v1067_v14, %v1059_v9  ;;  %v1074_v54 = vmax.f32 %v6743_v16, %v1034_v32  ;;  %v5021_v30 = vor.u32 %v5988_v0, %v5020_v63  ;;  %v6052_v32 = vld [vmem:[#allocation8 + $0x60c] sm:$0xf0] }
  0xf1   : > { %v6747_v25 = vpack.c.bf16 %v1068_v18, %v1060_v17  ;;  %v893_v26 = vpop.f32.mrf.mxu2  ;;  %v5293_v17 = vor.u32 %v6056_v10, %v5292_v8  ;;  %v6088_v18 = vld [vmem:[#allocation8 + $0x72c] sm:$0xf0]  ;;  %v5277_v36 = vor.u32 %v6052_v32, %v5276_v28  ;;  %v5006_v10 = vld [vmem:[#allocation8 + $0x3f0] sm:$0xf0] }
  0xf2   : > { %v916_v33 = vpop.f32.mrf.mxu3  ;;  %2721 = vmatmul.bf16.vlgmr.msra.gmra.mxu2 %v6745_v21  ;;  %v849_v34 = vpop.f32.mrf.mxu0  ;;  %v894_v56 = vadd.f32 %v893_v26, %v6717_v4  ;;  %2766 = vmatpush.bf16.msrb.mxu0 %v5021_v30  ;;  %v5421_v23 = vor.u32 %v6088_v18, %v5420_v11  ;;  %v5982_v30 = vld [vmem:[#allocation8 + $0x3e4] sm:$0xf]  ;;  %v4862_v18 = vld [vmem:[#allocation8 + $0x2d0] sm:$0xf0] }
  0xf3   : > { %2744 = vmatmul.bf16.vlgmr.msra.gmra.mxu3 %v6747_v25  ;;  %v850_v37 = vadd.f32 %v849_v34, %v6704_v46  ;;  %v872_v38 = vpop.f32.mrf.mxu1  ;;  %v917_v60 = vadd.f32 %v916_v33, %v6720_v5  ;;  %2811 = vmatpush.bf16.msrb.mxu2 %v5293_v17  ;;  %v5404_v33 = vld [vmem:[#allocation8 + $0x700] sm:$0xf]  ;;  %v5918_v11 = vld [vmem:[#allocation8 + $0x1e4] sm:$0xf]  ;;  %v4734_v32 = vld [vmem:[#allocation8 + $0x1d0] sm:$0xf0] }
  0xf4   : > { %v873_v45 = vadd.f32 %v872_v38, %v6707_v48  ;;  %v1035_v13 = vmul.f32 0.2, %v894_v56  ;;  %2834 = vmatpush.bf16.msrb.mxu3 %v5421_v23  ;;  %2789 = vmatpush.bf16.msrb.mxu1 %v5149_v12  ;;  %v4750_v12 = vld [vmem:[#allocation8 + $0x1f0] sm:$0xf0]  ;;  %v5946_v17 = vld [vmem:[#allocation8 + $0x2c4] sm:$0xf] }
  0xf5   : > { %v1041_v51 = vmul.f32 0.2, %v850_v37  ;;  %v1036_v19 = vmul.f32 0.2, %v917_v60  ;;  %v6797_v23 = vperm.slane %v6701_v42, 7 }
  0xf6   : > { %v1042_v57 = vmul.f32 0.2, %v873_v45  ;;  %v1075_v29 = vmax.f32 %v894_v56, %v1035_v13  ;;  %v5950_v56 = vld [vmem:[#allocation8 + $0x2e4] sm:$0xf] }
  0xf7   : > { %v1081_v61 = vmax.f32 %v850_v37, %v1041_v51  ;;  %v1076_v34 = vmax.f32 %v917_v60, %v1036_v19  ;;  %v6084_v37 = vld [vmem:[#allocation8 + $0x70c] sm:$0xf0]  ;;  %2812 = vmatpush.bf16.msrb.mxu2 %v5277_v36  ;;  %v6781_v60 = vperm.slane %v6701_v42, 5 }
  0xf8   : > { %v1082_v2 = vmax.f32 %v873_v45, %v1042_v57  ;;  %v5405_v39 = vor.u32 %v6084_v37, %v5404_v33  ;;  %v4878_v57 = vld [vmem:[#allocation8 + $0x2f0] sm:$0xf0]  ;;  %v5942_v37 = vld [vmem:[#allocation8 + $0x2a4] sm:$0xf] }
  0xf9   : > { %v6757_v6 = vpack.c.bf16 %v1081_v61, %v1073_v59  ;;  %v895_v7 = vpop.f32.mrf.mxu2  ;;  %v6778_v59 = vperm.slane %v6701_v42, 4  ;;  %v4881_v61 = vor.u32 %v5950_v56, %v4878_v57  ;;  %v5910_v56 = vld [vmem:[#allocation8 + $0x1a4] sm:$0xf] }
  0xfa   : > { %v6759_v9 = vpack.c.bf16 %v1082_v2, %v1074_v54  ;;  %v896_v14 = vadd.f32 %v895_v7, %v6717_v4  ;;  %v918_v15 = vpop.f32.mrf.mxu3  ;;  %v852_v16 = vpop.f32.mrf.mxu0  ;;  %2835 = vmatpush.bf16.msrb.mxu3 %v5405_v39  ;;  %v4622_v2 = vld [vmem:[#allocation8 + $0xf0] sm:$0xf0] }
  0xfb   : > { %v919_v20 = vadd.f32 %v918_v15, %v6720_v5  ;;  %v875_v22 = vpop.f32.mrf.mxu1  ;;  %2680 = vmatmul.bf16.gmra.mxu0 %v6757_v6  ;;  %v853_v27 = vadd.f32 %v852_v16, %v6704_v46  ;;  %2897 = vmatpush.bf16.msra.mxu2 %v4881_v61  ;;  %v5009_v15 = vor.u32 %v5982_v30, %v5006_v10  ;;  %v4574_v10 = vld [vmem:[#allocation8 + $0x90] sm:$0xf0] }
  0xfc   : > { %v1043_v24 = vmul.f32 0.2, %v896_v14  ;;  %v876_v43 = vadd.f32 %v875_v22, %v6707_v48  ;;  %2703 = vmatmul.bf16.gmra.mxu1 %v6759_v9  ;;  %v4753_v16 = vor.u32 %v5918_v11, %v4750_v12  ;;  %v6794_v22 = vperm.slane %v6701_v42, 6  ;;  %v4990_v42 = vld [vmem:[#allocation8 + $0x3d0] sm:$0xf0] }
  0xfd   : > { %v1044_v26 = vmul.f32 0.2, %v919_v20  ;;  %v1049_v41 = vmul.f32 0.2, %v853_v27  ;;  %v5906_v11 = vld [vmem:[#allocation8 + $0x184] sm:$0xf] }
  0xfe   : > { %v1083_v31 = vmax.f32 %v896_v14, %v1043_v24  ;;  %v1050_v48 = vmul.f32 0.2, %v876_v43  ;;  %2920 = vmatpush.bf16.msra.mxu3 %v5009_v15  ;;  %2874 = vmatpush.bf16.msra.mxu1 %v4753_v16  ;;  %v5882_v24 = vld [vmem:[#allocation8 + $0xc4] sm:$0xf] }
  0xff   : > { %v1084_v35 = vmax.f32 %v919_v20, %v1044_v26  ;;  %v1089_v52 = vmax.f32 %v853_v27, %v1049_v41  ;;  %v4865_v20 = vor.u32 %v5946_v17, %v4862_v18  ;;  %v5914_v26 = vld [vmem:[#allocation8 + $0x1c4] sm:$0xf]  ;;  %v4702_v18 = vld [vmem:[#allocation8 + $0x190] sm:$0xf0] }
 0x100   : > { %v6767_v38 = vpack.c.bf16 %v1083_v31, %v1075_v29  ;;  %v1090_v51 = vmax.f32 %v876_v43, %v1050_v48  ;;  %v4606_v43 = vld [vmem:[#allocation8 + $0xd0] sm:$0xf0]  ;;  %v4737_v36 = vor.u32 %v5914_v26, %v4734_v32 }
 0x101   : > { %v6769_v40 = vpack.c.bf16 %v1084_v35, %v1076_v34  ;;  %v898_v44 = vpop.f32.mrf.mxu2  ;;  %2898 = vmatpush.bf16.msra.mxu2 %v4865_v20  ;;  %v4609_v31 = vor.u32 %v5882_v24, %v4606_v43  ;;  %v5978_v35 = vld [vmem:[#allocation8 + $0x3c4] sm:$0xf]  ;;  %v4830_v24 = vld [vmem:[#allocation8 + $0x290] sm:$0xf0] }
 0x102   : > { %v921_v46 = vpop.f32.mrf.mxu3  ;;  %2726 = vmatmul.bf16.gmra.mxu2 %v6767_v38  ;;  %v854_v45 = vpop.f32.mrf.mxu0  ;;  %v899_v47 = vadd.f32 %v898_v44, %v6717_v4  ;;  %v6775_v58 = vpack.c.bf16 %v1090_v51, %v1090_v51  ;;  %v6783_v4 = vpack.c.bf16 %v1089_v52, %v1089_v52  ;;  %v4993_v41 = vor.u32 %v5978_v35, %v4990_v42  ;;  %v4846_v44 = vld [vmem:[#allocation8 + $0x2b0] sm:$0xf0]  ;;  %v5938_v20 = vld [vmem:[#allocation8 + $0x284] sm:$0xf] }
 0x103   : > { %2749 = vmatmul.bf16.gmra.mxu3 %v6769_v40  ;;  %v877_v50 = vpop.f32.mrf.mxu1  ;;  %v922_v53 = vadd.f32 %v921_v46, %v6720_v5  ;;  %v5886_v5 = vld [vmem:[#allocation8 + $0xe4] sm:$0xf]  ;;  %v4590_v45 = vld [vmem:[#allocation8 + $0xb0] sm:$0xf0]  ;;  %2875 = vmatpush.bf16.msra.mxu1 %v4737_v36  ;;  %v4849_v52 = vor.u32 %v5942_v37, %v4846_v44  ;;  %v4833_v32 = vor.u32 %v5938_v20, %v4830_v24 }
 0x104   : > { %v1051_v54 = vmul.f32 0.2, %v899_v47  ;;  %v4625_v8 = vor.u32 %v5886_v5, %v4622_v2  ;;  %v5878_v46 = vld [vmem:[#allocation8 + $0xa4] sm:$0xf]  ;;  %2921 = vmatpush.bf16.msra.mxu3 %v4993_v41  ;;  %v4814_v42 = vld [vmem:[#allocation8 + $0x270] sm:$0xf0] }
 0x105   : > { %v1052_v62 = vmul.f32 0.2, %v922_v53  ;;  %2899 = vmatpush.bf16.msra.mxu2 %v4849_v52  ;;  %v5970_v43 = vld [vmem:[#allocation8 + $0x384] sm:$0xf]  ;;  %v4558_v41 = vld [vmem:[#allocation8 + $0x70] sm:$0xf0] }
 0x106   : > { %v1091_v3 = vmax.f32 %v899_v47, %v1051_v54  ;;  %2851 = vmatpush.bf16.msra.mxu0 %v4625_v8  ;;  %v4974_v54 = vld [vmem:[#allocation8 + $0x3b0] sm:$0xf0]  ;;  %v5874_v8 = vld [vmem:[#allocation8 + $0x84] sm:$0xf] }
 0x107   : > { %v1092_v19 = vmax.f32 %v922_v53, %v1052_v62  ;;  %v5974_v53 = vld [vmem:[#allocation8 + $0x3a4] sm:$0xf]  ;;  %v4593_v62 = vor.u32 %v5878_v46, %v4590_v45  ;;  %v4577_v17 = vor.u32 %v5874_v8, %v4574_v10  ;;  %v4942_v52 = vld [vmem:[#allocation8 + $0x370] sm:$0xf0] }
 0x108   : > { %v6799_v27 = vpack.c.bf16 %v1091_v3, %v1091_v3  ;;  %v5934_v35 = vld [vmem:[#allocation8 + $0x264] sm:$0xf] }
 0x109   : > { %v900_v63 = vpop.f32.mrf.mxu2  ;;  %v6803_v33 = vpack.c.bf16 %v1092_v19, %v1092_v19  ;;  %v5902_v44 = vld [vmem:[#allocation8 + $0x164] sm:$0xf]  ;;  %2900 = vmatpush.bf16.msra.mxu2 %v4833_v32  ;;  %v4817_v45 = vor.u32 %v5934_v35, %v4814_v42  ;;  %v4526_v35 = vld [vmem:[#allocation8 + $0x30] sm:$0xf0] }
 0x10a   : > { %v923_v0 = vpop.f32.mrf.mxu3  ;;  %v934_v1 = vpop.f32.mrf.mxu0  ;;  %2852 = vmatpush.bf16.msra.mxu0 %v4609_v31  ;;  %v4977_v63 = vor.u32 %v5974_v53, %v4974_v54  ;;  %v5898_v8 = vld [vmem:[#allocation8 + $0x144] sm:$0xf] }
 0x10b   : > { %v957_v7 = vpop.f32.mrf.mxu1  ;;  %2685 = vmatmul.bf16.gmra.mxu0 %v6783_v4  ;;  %v6787_v13 = vadd.f32 %v934_v1, %v6778_v59  ;;  %v4718_v0 = vld [vmem:[#allocation8 + $0x1b0] sm:$0xf0]  ;;  %v5894_v42 = vld [vmem:[#allocation8 + $0x124] sm:$0xf] }
 0x10c   : > { %v6790_v14 = vadd.f32 %v957_v7, %v6781_v60  ;;  %2708 = vmatmul.bf16.gmra.mxu1 %v6775_v58  ;;  %v4721_v5 = vor.u32 %v5910_v56, %v4718_v0  ;;  %2922 = vmatpush.bf16.msra.mxu3 %v4977_v63 }
 0x10d   : > { %v1021_v28 = vmul.f32 0.2, %v6787_v13  ;;  %2901 = vmatpush.bf16.msra.mxu2 %v4817_v45  ;;  %v5926_v45 = vld [vmem:[#allocation8 + $0x224] sm:$0xf] }
 0x10e   : > { %v1022_v29 = vmul.f32 0.2, %v6790_v14  ;;  %2853 = vmatpush.bf16.msra.mxu0 %v4593_v62  ;;  %2876 = vmatpush.bf16.msra.mxu1 %v4721_v5  ;;  %v5930_v5 = vld [vmem:[#allocation8 + $0x244] sm:$0xf] }
 0x10f   : > { %v1061_v3 = vmax.f32 %v6787_v13, %v1021_v28  ;;  %v4705_v13 = vor.u32 %v5906_v11, %v4702_v18 }
 0x110   : > { %v1062_v2 = vmax.f32 %v6790_v14, %v1022_v29 }
 0x111   : > { %v980_v34 = vpop.f32.mrf.mxu2 }
 0x112   : > { %v1003_v48 = vpop.f32.mrf.mxu3  ;;  %2731 = vmatmul.bf16.gmra.mxu2 %v6799_v27  ;;  %v936_v39 = vpop.f32.mrf.mxu0  ;;  %v6807_v47 = vadd.f32 %v980_v34, %v6794_v22  ;;  %2854 = vmatpush.bf16.msra.mxu0 %v4577_v17  ;;  %v4958_v34 = vld [vmem:[#allocation8 + $0x390] sm:$0xf0] }
 0x113   : > { %2754 = vmatmul.bf16.gmra.mxu3 %v6803_v33  ;;  %v937_v50 = vadd.f32 %v936_v39, %v6778_v59  ;;  %v959_v51 = vpop.f32.mrf.mxu1  ;;  %v6812_v57 = vadd.f32 %v1003_v48, %v6797_v23  ;;  %v4961_v48 = vor.u32 %v5970_v43, %v4958_v34  ;;  %2877 = vmatpush.bf16.msra.mxu1 %v4705_v13  ;;  %v5870_v39 = vld [vmem:[#allocation8 + $0x64] sm:$0xf] }
 0x114   : > { %v960_v61 = vadd.f32 %v959_v51, %v6781_v60  ;;  %v1023_v12 = vmul.f32 0.2, %v6807_v47  ;;  %v5966_v51 = vld [vmem:[#allocation8 + $0x364] sm:$0xf] }
 0x115   : > { %v1029_v1 = vmul.f32 0.2, %v937_v50  ;;  %v1024_v15 = vmul.f32 0.2, %v6812_v57  ;;  %2923 = vmatpush.bf16.msra.mxu3 %v4961_v48  ;;  %v4945_v56 = vor.u32 %v5966_v51, %v4942_v52  ;;  %v4654_v48 = vld [vmem:[#allocation8 + $0x130] sm:$0xf0] }
 0x116   : > { %v1030_v30 = vmul.f32 0.2, %v960_v61  ;;  %v1063_v53 = vmax.f32 %v6807_v47, %v1023_v12  ;;  %v4542_v47 = vld [vmem:[#allocation8 + $0x50] sm:$0xf0] }
 0x117   : > { %v1069_v7 = vmax.f32 %v937_v50, %v1029_v1  ;;  %v4561_v50 = vor.u32 %v5870_v39, %v4558_v41 }
 0x118   : > { %v1070_v16 = vmax.f32 %v960_v61, %v1030_v30  ;;  %v4686_v61 = vld [vmem:[#allocation8 + $0x170] sm:$0xf0]  ;;  %v1064_v30 = vmax.f32 %v6812_v57, %v1024_v15 }
 0x119   : > { %v6819_v19 = vpack.c.bf16 %v1069_v7, %v1061_v3  ;;  %v982_v14 = vpop.f32.mrf.mxu2  ;;  %2855 = vmatpush.bf16.msra.mxu0 %v4561_v50  ;;  %v4689_v1 = vor.u32 %v5902_v44, %v4686_v61  ;;  %v5866_v7 = vld [vmem:[#allocation8 + $0x44] sm:$0xf]  ;;  %2924 = vmatpush.bf16.msra.mxu3 %v4945_v56  ;;  %v4782_v50 = vld [vmem:[#allocation8 + $0x230] sm:$0xf0] }
 0x11a   : > { %v6821_v26 = vpack.c.bf16 %v1070_v16, %v1062_v2  ;;  %v983_v28 = vadd.f32 %v982_v14, %v6794_v22  ;;  %v1005_v29 = vpop.f32.mrf.mxu3  ;;  %v939_v31 = vpop.f32.mrf.mxu0  ;;  %v4798_v2 = vld [vmem:[#allocation8 + $0x250] sm:$0xf0]  ;;  %v4545_v12 = vor.u32 %v5866_v7, %v4542_v47  ;;  %v5958_v56 = vld [vmem:[#allocation8 + $0x324] sm:$0xf] }
 0x11b   : > { %v1006_v36 = vadd.f32 %v1005_v29, %v6797_v23  ;;  %v962_v37 = vpop.f32.mrf.mxu1  ;;  %2767 = vmatmul.bf16.vlgmr.msrb.gmra.mxu0 %v6819_v19  ;;  %v6829_v63 = vadd.f32 %v939_v31, %v6778_v59  ;;  %2878 = vmatpush.bf16.msra.mxu1 %v4689_v1  ;;  %v4801_v11 = vor.u32 %v5930_v5, %v4798_v2  ;;  %v4670_v16 = vld [vmem:[#allocation8 + $0x150] sm:$0xf0]  ;;  %v5862_v31 = vld [vmem:[#allocation8 + $0x24] sm:$0xf] }
 0x11c   : > { %v1031_v46 = vmul.f32 0.2, %v983_v28  ;;  %2790 = vmatmul.bf16.vlgmr.msrb.gmra.mxu1 %v6821_v26  ;;  %v6832_v0 = vadd.f32 %v962_v37, %v6781_v60  ;;  %v4673_v14 = vor.u32 %v5898_v8, %v4670_v16  ;;  %v4926_v29 = vld [vmem:[#allocation8 + $0x350] sm:$0xf0]  ;;  %v4529_v37 = vor.u32 %v5862_v31, %v4526_v35  ;;  %v5890_v2 = vld [vmem:[#allocation8 + $0x104] sm:$0xf] }
 0x11d   : > { %v1032_v54 = vmul.f32 0.2, %v1006_v36  ;;  %v1037_v20 = vmul.f32 0.2, %v6829_v63  ;;  %2856 = vmatpush.bf16.msra.mxu0 %v4545_v12  ;;  %2902 = vmatpush.bf16.msra.mxu2 %v4801_v11  ;;  %v4910_v61 = vld [vmem:[#allocation8 + $0x330] sm:$0xf0] }
 0x11e   : > { %v1071_v62 = vmax.f32 %v983_v28, %v1031_v46  ;;  %v1038_v57 = vmul.f32 0.2, %v6832_v0  ;;  %v5962_v28 = vld [vmem:[#allocation8 + $0x344] sm:$0xf]  ;;  %v4657_v46 = vor.u32 %v5894_v42, %v4654_v48  ;;  %v4510_v5 = vld [vmem:[#allocation8 + $0x10] sm:$0xf0] }
 0x11f   : > { %v1072_v3 = vmax.f32 %v1006_v36, %v1032_v54  ;;  %2879 = vmatpush.bf16.msra.mxu1 %v4673_v14  ;;  %v4929_v34 = vor.u32 %v5962_v28, %v4926_v29  ;;  %v1077_v51 = vmax.f32 %v6829_v63, %v1037_v20  ;;  %v4785_v54 = vor.u32 %v5926_v45, %v4782_v50  ;;  %v4766_v28 = vld [vmem:[#allocation8 + $0x210] sm:$0xf0] }
 0x120   : > { %v6835_v10 = vpack.c.bf16 %v1071_v62, %v1063_v53  ;;  %v1078_v39 = vmax.f32 %v6832_v0, %v1038_v57  ;;  %v5858_v62 = vld [vmem:[#allocation8 + $0x4] sm:$0xf]  ;;  %v4913_v0 = vor.u32 %v5958_v56, %v4910_v61  ;;  %v4894_v42 = vld [vmem:[#allocation8 + $0x310] sm:$0xf0] }
 0x121   : > { %v6837_v17 = vpack.c.bf16 %v1072_v3, %v1064_v30  ;;  %v985_v18 = vpop.f32.mrf.mxu2  ;;  %2925 = vmatpush.bf16.msra.mxu3 %v4929_v34  ;;  %2857 = vmatpush.bf16.msra.mxu0 %v4529_v37  ;;  %v4638_v30 = vld [vmem:[#allocation8 + $0x110] sm:$0xf0]  ;;  %v4513_v47 = vor.u32 %v5858_v62, %v4510_v5  ;;  %v6014_v56 = vld [vmem:[#allocation8 + $0x4e4] sm:$0xf] }
 0x122   : > { %v1008_v15 = vpop.f32.mrf.mxu3  ;;  %2813 = vmatmul.bf16.vlgmr.msrb.gmra.mxu2 %v6835_v10  ;;  %v941_v24 = vpop.f32.mrf.mxu0  ;;  %v986_v41 = vadd.f32 %v985_v18, %v6794_v22  ;;  %v4641_v63 = vor.u32 %v5890_v2, %v4638_v30  ;;  %v6110_v5 = vld [vmem:[#allocation8 + $0x7e4] sm:$0xf] }
 0x123   : > { %2836 = vmatmul.bf16.vlgmr.msrb.gmra.mxu3 %v6837_v17  ;;  %v942_v43 = vadd.f32 %v941_v24, %v6778_v59  ;;  %v964_v13 = vpop.f32.mrf.mxu1  ;;  %v1009_v52 = vadd.f32 %v1008_v15, %v6797_v23  ;;  %2880 = vmatpush.bf16.msra.mxu1 %v4657_v46 }
 0x124   : > { %v965_v32 = vadd.f32 %v964_v13, %v6781_v60  ;;  %2903 = vmatpush.bf16.msra.mxu2 %v4785_v54  ;;  %v1039_v8 = vmul.f32 0.2, %v986_v41  ;;  %v5922_v13 = vld [vmem:[#allocation8 + $0x204] sm:$0xf]  ;;  %v5390_v54 = vld [vmem:[#allocation8 + $0x6f0] sm:$0xf0] }
 0x125   : > { %v1045_v36 = vmul.f32 0.2, %v942_v43  ;;  %2926 = vmatpush.bf16.msra.mxu3 %v4913_v0  ;;  %v1040_v14 = vmul.f32 0.2, %v1009_v52  ;;  %2858 = vmatpush.bf16.msra.mxu0 %v4513_v47  ;;  %v4769_v31 = vor.u32 %v5922_v13, %v4766_v28  ;;  %v5134_v0 = vld [vmem:[#allocation8 + $0x4f0] sm:$0xf0] }
 0x126   : > { %v1046_v44 = vmul.f32 0.2, %v965_v32  ;;  %v1079_v34 = vmax.f32 %v986_v41, %v1039_v8  ;;  %v5137_v30 = vor.u32 %v6014_v56, %v5134_v0  ;;  %v6046_v47 = vld [vmem:[#allocation8 + $0x5e4] sm:$0xf]  ;;  %v5262_v8 = vld [vmem:[#allocation8 + $0x5f0] sm:$0xf0] }
 0x127   : > { %v1085_v53 = vmax.f32 %v942_v43, %v1045_v36  ;;  %2881 = vmatpush.bf16.msra.mxu1 %v4641_v63  ;;  %v1080_v36 = vmax.f32 %v1009_v52, %v1040_v14  ;;  %v5502_v13 = vld [vmem:[#allocation8 + $0x7d0] sm:$0xf0]  ;;  %v6002_v0 = vld [vmem:[#allocation8 + $0x484] sm:$0xf] }
 0x128   : > { %v1086_v1 = vmax.f32 %v965_v32, %v1046_v44  ;;  %v5954_v32 = vld [vmem:[#allocation8 + $0x304] sm:$0xf]  ;;  %2904 = vmatpush.bf16.msra.mxu2 %v4769_v31  ;;  %v5230_v56 = vld [vmem:[#allocation8 + $0x5b0] sm:$0xf0] }
 0x129   : > { %v6849_v3 = vpack.c.bf16 %v1085_v53, %v1077_v51  ;;  %v987_v7 = vpop.f32.mrf.mxu2  ;;  %v6078_v53 = vld [vmem:[#allocation8 + $0x6e4] sm:$0xf]  ;;  %2943 = vmatpush.bf16.msrb.mxu0 %v5137_v30 }
 0x12a   : > { %v6851_v11 = vpack.c.bf16 %v1086_v1, %v1078_v39  ;;  %v988_v12 = vadd.f32 %v987_v7, %v6794_v22  ;;  %v1010_v16 = vpop.f32.mrf.mxu3  ;;  %v944_v18 = vpop.f32.mrf.mxu0  ;;  %v5393_v1 = vor.u32 %v6078_v53, %v5390_v54  ;;  %v5518_v7 = vld [vmem:[#allocation8 + $0x7f0] sm:$0xf0]  ;;  %v6038_v54 = vld [vmem:[#allocation8 + $0x5a4] sm:$0xf] }
 0x12b   : > { %v1011_v20 = vadd.f32 %v1010_v16, %v6797_v23  ;;  %2772 = vmatmul.bf16.gmra.mxu0 %v6849_v3  ;;  %v945_v57 = vadd.f32 %v944_v18, %v6778_v59  ;;  %v967_v15 = vpop.f32.mrf.mxu1  ;;  %v4897_v59 = vor.u32 %v5954_v32, %v4894_v42  ;;  %v5521_v63 = vor.u32 %v6110_v5, %v5518_v7  ;;  %v5374_v16 = vld [vmem:[#allocation8 + $0x6d0] sm:$0xf0]  ;;  %v6098_v7 = vld [vmem:[#allocation8 + $0x784] sm:$0xf] }
 0x12c   : > { %v1047_v24 = vmul.f32 0.2, %v988_v12  ;;  %2795 = vmatmul.bf16.gmra.mxu1 %v6851_v11  ;;  %v968_v43 = vadd.f32 %v967_v15, %v6781_v60  ;;  %2989 = vmatpush.bf16.msrb.mxu2 %v5393_v1  ;;  %v5265_v18 = vor.u32 %v6046_v47, %v5262_v8  ;;  %v5246_v42 = vld [vmem:[#allocation8 + $0x5d0] sm:$0xf0] }
 0x12d   : > { %v1048_v29 = vmul.f32 0.2, %v1011_v20  ;;  %v1053_v48 = vmul.f32 0.2, %v945_v57  ;;  %2927 = vmatpush.bf16.msra.mxu3 %v4897_v59  ;;  %v6006_v59 = vld [vmem:[#allocation8 + $0x4a4] sm:$0xf] }
 0x12e   : > { %v1087_v35 = vmax.f32 %v988_v12, %v1047_v24  ;;  %v1054_v44 = vmul.f32 0.2, %v968_v43  ;;  %v6074_v12 = vld [vmem:[#allocation8 + $0x6c4] sm:$0xf]  ;;  %2966 = vmatpush.bf16.msrb.mxu1 %v5265_v18  ;;  %v5342_v1 = vld [vmem:[#allocation8 + $0x690] sm:$0xf0] }
 0x12f   : > { %v1088_v37 = vmax.f32 %v1011_v20, %v1048_v29  ;;  %v1093_v41 = vmax.f32 %v945_v57, %v1053_v48  ;;  %v5377_v14 = vor.u32 %v6074_v12, %v5374_v16  ;;  %v6010_v20 = vld [vmem:[#allocation8 + $0x4c4] sm:$0xf]  ;;  %v5358_v48 = vld [vmem:[#allocation8 + $0x6b0] sm:$0xf0] }
 0x130   : > { %v6859_v39 = vpack.c.bf16 %v1087_v35, %v1079_v34  ;;  %v1094_v62 = vmax.f32 %v968_v43, %v1054_v44  ;;  %v6106_v57 = vld [vmem:[#allocation8 + $0x7c4] sm:$0xf]  ;;  %v5102_v44 = vld [vmem:[#allocation8 + $0x4b0] sm:$0xf0] }
 0x131   : > { %v6861_v46 = vpack.c.bf16 %v1088_v37, %v1080_v36  ;;  %v990_v60 = vpop.f32.mrf.mxu2  ;;  %3012 = vmatpush.bf16.msrb.mxu3 %v5521_v63  ;;  %v5505_v29 = vor.u32 %v6106_v57, %v5502_v13  ;;  %2990 = vmatpush.bf16.msrb.mxu2 %v5377_v14  ;;  %v6042_v35 = vld [vmem:[#allocation8 + $0x5c4] sm:$0xf]  ;;  %v5086_v5 = vld [vmem:[#allocation8 + $0x490] sm:$0xf0] }
 0x132   : > { %2818 = vmatmul.bf16.gmra.mxu2 %v6859_v39  ;;  %v1013_v45 = vpop.f32.mrf.mxu3  ;;  %v946_v50 = vpop.f32.mrf.mxu0  ;;  %v991_v61 = vadd.f32 %v990_v60, %v6794_v22  ;;  %v5118_v22 = vld [vmem:[#allocation8 + $0x4d0] sm:$0xf0]  ;;  %v6869_v24 = vpack.c.bf16 %v1094_v62, %v1094_v62  ;;  %v6070_v36 = vld [vmem:[#allocation8 + $0x6a4] sm:$0xf]  ;;  %v5249_v37 = vor.u32 %v6042_v35, %v5246_v42  ;;  %v5233_v62 = vor.u32 %v6038_v54, %v5230_v56 }
 0x133   : > { %2841 = vmatmul.bf16.gmra.mxu3 %v6861_v46  ;;  %v1014_v51 = vadd.f32 %v1013_v45, %v6797_v23  ;;  %v969_v52 = vpop.f32.mrf.mxu1  ;;  %v6867_v23 = vpack.c.bf16 %v1093_v41, %v1093_v41  ;;  %v5121_v43 = vor.u32 %v6010_v20, %v5118_v22  ;;  %v5361_v60 = vor.u32 %v6070_v36, %v5358_v48  ;;  %v6102_v50 = vld [vmem:[#allocation8 + $0x7a4] sm:$0xf]  ;;  %v5486_v41 = vld [vmem:[#allocation8 + $0x7b0] sm:$0xf0] }
 0x134   : > { %v1055_v15 = vmul.f32 0.2, %v991_v61  ;;  %v5105_v45 = vor.u32 %v6006_v59, %v5102_v44  ;;  %2967 = vmatpush.bf16.msrb.mxu1 %v5249_v37  ;;  %v5089_v30 = vor.u32 %v6002_v0, %v5086_v5  ;;  %v5470_v47 = vld [vmem:[#allocation8 + $0x790] sm:$0xf0]  ;;  %v6034_v63 = vld [vmem:[#allocation8 + $0x584] sm:$0xf] }
 0x135   : > { %v1056_v2 = vmul.f32 0.2, %v1014_v51  ;;  %2944 = vmatpush.bf16.msrb.mxu0 %v5121_v43  ;;  %3013 = vmatpush.bf16.msrb.mxu3 %v5505_v29  ;;  %v5473_v8 = vor.u32 %v6098_v7, %v5470_v47  ;;  %v5214_v12 = vld [vmem:[#allocation8 + $0x590] sm:$0xf0]  ;;  %v6062_v18 = vld [vmem:[#allocation8 + $0x664] sm:$0xf] }
 0x136   : > { %v1095_v34 = vmax.f32 %v991_v61, %v1055_v15  ;;  %2991 = vmatpush.bf16.msrb.mxu2 %v5361_v60  ;;  %v6066_v61 = vld [vmem:[#allocation8 + $0x684] sm:$0xf]  ;;  %v5217_v16 = vor.u32 %v6034_v63, %v5214_v12  ;;  %v5326_v14 = vld [vmem:[#allocation8 + $0x670] sm:$0xf0] }
 0x137   : > { %v1096_v32 = vmax.f32 %v1014_v51, %v1056_v2  ;;  %v5489_v51 = vor.u32 %v6102_v50, %v5486_v41  ;;  %v5345_v2 = vor.u32 %v6066_v61, %v5342_v1  ;;  %v5998_v20 = vld [vmem:[#allocation8 + $0x464] sm:$0xf]  ;;  %v5329_v22 = vor.u32 %v6062_v18, %v5326_v14  ;;  %v5070_v57 = vld [vmem:[#allocation8 + $0x470] sm:$0xf0] }
 0x138   : > { %v6875_v53 = vpack.c.bf16 %v1095_v34, %v1095_v34  ;;  %2968 = vmatpush.bf16.msrb.mxu1 %v5233_v62  ;;  %v6094_v15 = vld [vmem:[#allocation8 + $0x764] sm:$0xf]  ;;  %v5454_v43 = vld [vmem:[#allocation8 + $0x770] sm:$0xf0]  ;;  %v5073_v13 = vor.u32 %v5998_v20, %v5070_v57 }
 0x139   : > { %v992_v28 = vpop.f32.mrf.mxu2  ;;  %v6873_v52 = vpack.c.bf16 %v1096_v32, %v1096_v32  ;;  %2945 = vmatpush.bf16.msrb.mxu0 %v5105_v45  ;;  %3014 = vmatpush.bf16.msrb.mxu3 %v5489_v51  ;;  %v6030_v29 = vld [vmem:[#allocation8 + $0x564] sm:$0xf]  ;;  %v5310_v35 = vld [vmem:[#allocation8 + $0x650] sm:$0xf0] }
 0x13a   : > { %v1015_v31 = vpop.f32.mrf.mxu3  ;;  %2992 = vmatpush.bf16.msrb.mxu2 %v5345_v2  ;;  %v5457_v28 = vor.u32 %v6094_v15, %v5454_v43  ;;  %v6058_v32 = vld [vmem:[#allocation8 + $0x644] sm:$0xf]  ;;  %v5054_v37 = vld [vmem:[#allocation8 + $0x450] sm:$0xf0] }
 0x13b   : > { %2777 = vmatmul.bf16.gmra.mxu0 %v6867_v23  ;;  %v5198_v31 = vld [vmem:[#allocation8 + $0x570] sm:$0xf0]  ;;  %v5313_v42 = vor.u32 %v6058_v32, %v5310_v35  ;;  %v5994_v36 = vld [vmem:[#allocation8 + $0x444] sm:$0xf]  ;;  %v4628_v32 = vld [vmem:[#allocation8 + $0xe8] sm:$0xf] }
 0x13c   : > { %2800 = vmatmul.bf16.gmra.mxu1 %v6869_v24  ;;  %v5201_v34 = vor.u32 %v6030_v29, %v5198_v31  ;;  %v6026_v48 = vld [vmem:[#allocation8 + $0x544] sm:$0xf]  ;;  %v5057_v59 = vor.u32 %v5994_v36, %v5054_v37  ;;  %v5182_v44 = vld [vmem:[#allocation8 + $0x550] sm:$0xf0]  ;;  %v4884_v29 = vld [vmem:[#allocation8 + $0x2e8] sm:$0xf] }
 0x13d   : > { %2946 = vmatpush.bf16.msrb.mxu0 %v5089_v30  ;;  %3015 = vmatpush.bf16.msrb.mxu3 %v5473_v8  ;;  %v5185_v60 = vor.u32 %v6026_v48, %v5182_v44  ;;  %v6090_v45 = vld [vmem:[#allocation8 + $0x744] sm:$0xf]  ;;  %v5438_v50 = vld [vmem:[#allocation8 + $0x750] sm:$0xf0]  ;;  %v5953_v31 = vld [vmem:[#allocation8 + $0x2f4] sm:$0xf0] }
 0x13e   : > { %2969 = vmatpush.bf16.msrb.mxu1 %v5217_v16  ;;  %2993 = vmatpush.bf16.msrb.mxu2 %v5329_v22  ;;  %v5990_v41 = vld [vmem:[#allocation8 + $0x424] sm:$0xf]  ;;  %v5441_v51 = vor.u32 %v6090_v45, %v5438_v50  ;;  %v5038_v54 = vld [vmem:[#allocation8 + $0x430] sm:$0xf0]  ;;  %v5889_v35 = vld [vmem:[#allocation8 + $0xf4] sm:$0xf0] }
 0x13f   : > { %v6022_v56 = vld [vmem:[#allocation8 + $0x524] sm:$0xf]  ;;  %v5166_v61 = vld [vmem:[#allocation8 + $0x530] sm:$0xf0]  ;;  %v5041_v62 = vor.u32 %v5990_v41, %v5038_v54  ;;  %v5985_v36 = vld [vmem:[#allocation8 + $0x3f4] sm:$0xf0]  ;;  %v4629_v48 = vor.u32 %v5889_v35, %v4628_v32 }
 0x140   : > { %v5169_v1 = vor.u32 %v6022_v56, %v5166_v61  ;;  %v5986_v0 = vld [vmem:[#allocation8 + $0x404] sm:$0xf]  ;;  %v5022_v5 = vld [vmem:[#allocation8 + $0x410] sm:$0xf0]  ;;  %v5921_v45 = vld [vmem:[#allocation8 + $0x1f4] sm:$0xf0] }
 0x141   : > { %2947 = vmatpush.bf16.msrb.mxu0 %v5073_v13  ;;  %3016 = vmatpush.bf16.msrb.mxu3 %v5457_v28  ;;  %v6018_v2 = vld [vmem:[#allocation8 + $0x504] sm:$0xf]  ;;  %v5294_v7 = vld [vmem:[#allocation8 + $0x630] sm:$0xf0]  ;;  %v5025_v12 = vor.u32 %v5986_v0, %v5022_v5  ;;  %v4868_v50 = vld [vmem:[#allocation8 + $0x2c8] sm:$0xf] }
 0x142   : > { %2823 = vmatmul.bf16.gmra.mxu2 %v6875_v53  ;;  %2970 = vmatpush.bf16.msrb.mxu1 %v5201_v34  ;;  %v6054_v30 = vld [vmem:[#allocation8 + $0x624] sm:$0xf]  ;;  %v5422_v8 = vld [vmem:[#allocation8 + $0x730] sm:$0xf0]  ;;  %v4885_v34 = vor.u32 %v5953_v31, %v4884_v29  ;;  %v5949_v56 = vld [vmem:[#allocation8 + $0x2d4] sm:$0xf0] }
 0x143   : > { %2846 = vmatmul.bf16.gmra.mxu3 %v6873_v52  ;;  %2994 = vmatpush.bf16.msrb.mxu2 %v5313_v42  ;;  %v6086_v47 = vld [vmem:[#allocation8 + $0x724] sm:$0xf]  ;;  %v5297_v63 = vor.u32 %v6054_v30, %v5294_v7  ;;  %v5150_v16 = vld [vmem:[#allocation8 + $0x510] sm:$0xf0]  ;;  %v5012_v42 = vld [vmem:[#allocation8 + $0x3e8] sm:$0xf]  ;;  %v4869_v61 = vor.u32 %v5949_v56, %v4868_v50 }
 0x144   : > { %v5425_v18 = vor.u32 %v6086_v47, %v5422_v8  ;;  %v5153_v14 = vor.u32 %v6018_v2, %v5150_v16  ;;  %v6050_v20 = vld [vmem:[#allocation8 + $0x604] sm:$0xf]  ;;  %v5278_v22 = vld [vmem:[#allocation8 + $0x610] sm:$0xf0]  ;;  %v5885_v0 = vld [vmem:[#allocation8 + $0xd4] sm:$0xf0] }
 0x145   : > { %2948 = vmatpush.bf16.msrb.mxu0 %v5057_v59  ;;  %3017 = vmatpush.bf16.msrb.mxu3 %v5441_v51  ;;  %v5281_v57 = vor.u32 %v6050_v20, %v5278_v22  ;;  %v6082_v15 = vld [vmem:[#allocation8 + $0x704] sm:$0xf]  ;;  %v5406_v43 = vld [vmem:[#allocation8 + $0x710] sm:$0xf0]  ;;  %v5013_v59 = vor.u32 %v5985_v36, %v5012_v42  ;;  %v4996_v5 = vld [vmem:[#allocation8 + $0x3c8] sm:$0xf] }
 0x146   : > { %2971 = vmatpush.bf16.msrb.mxu1 %v5185_v60  ;;  %v5409_v13 = vor.u32 %v6082_v15, %v5406_v43  ;;  %v6889_v28 = vld [vmem:[%s7245_s4] sm:$0xf]  ;;  %v5981_v30 = vld [vmem:[#allocation8 + $0x3d4] sm:$0xf0] }
 0x147   : > { %2995 = vmatpush.bf16.msrb.mxu2 %v5297_v63  ;;  %v6893_v37 = vperm.slane %v6889_v28, 0  ;;  %v4756_v60 = vld [vmem:[#allocation8 + $0x1e8] sm:$0xf]  ;;  %v5917_v47 = vld [vmem:[#allocation8 + $0x1d4] sm:$0xf0]  ;;  %v4997_v63 = vor.u32 %v5981_v30, %v4996_v5 }
 0x148   : > { %v4757_v54 = vor.u32 %v5921_v45, %v4756_v60  ;;  %v4740_v7 = vld [vmem:[#allocation8 + $0x1c8] sm:$0xf]  ;;  %v5881_v15 = vld [vmem:[#allocation8 + $0xb4] sm:$0xf0] }
 0x149   : > { %2949 = vmatpush.bf16.msrb.mxu0 %v5041_v62  ;;  %3018 = vmatpush.bf16.msrb.mxu3 %v5425_v18  ;;  %v4741_v8 = vor.u32 %v5917_v47, %v4740_v7  ;;  %v4852_v16 = vld [vmem:[#allocation8 + $0x2a8] sm:$0xf]  ;;  %v5945_v18 = vld [vmem:[#allocation8 + $0x2b4] sm:$0xf0] }
 0x14a   : > { %2972 = vmatpush.bf16.msrb.mxu1 %v5169_v1  ;;  %v4612_v1 = vld [vmem:[#allocation8 + $0xc8] sm:$0xf]  ;;  %v5913_v35 = vld [vmem:[#allocation8 + $0x1b4] sm:$0xf0] }
 0x14b   : > { %2859 = vmatmul.bf16.vlgmr.msra.gmra.mxu0 %v6732_v49  ;;  %2996 = vmatpush.bf16.msrb.mxu2 %v5281_v57  ;;  %v4613_v2 = vor.u32 %v5885_v0, %v4612_v1  ;;  %v4853_v57 = vor.u32 %v5945_v18, %v4852_v16  ;;  %v4980_v43 = vld [vmem:[#allocation8 + $0x3a8] sm:$0xf]  ;;  %v5973_v0 = vld [vmem:[#allocation8 + $0x394] sm:$0xf0] }
 0x14c   : > { %2882 = vmatmul.bf16.vlgmr.msra.gmra.mxu1 %v6734_v55  ;;  %v4836_v42 = vld [vmem:[#allocation8 + $0x288] sm:$0xf]  ;;  %v5909_v5 = vld [vmem:[#allocation8 + $0x194] sm:$0xf0] }
 0x14d   : > { %2950 = vmatpush.bf16.msrb.mxu0 %v5025_v12  ;;  %3019 = vmatpush.bf16.msrb.mxu3 %v5409_v13  ;;  %v5977_v13 = vld [vmem:[#allocation8 + $0x3b4] sm:$0xf0]  ;;  %v4580_v50 = vld [vmem:[#allocation8 + $0x88] sm:$0xf] }
 0x14e   : > { %2973 = vmatpush.bf16.msrb.mxu1 %v5153_v14  ;;  %v4596_v14 = vld [vmem:[#allocation8 + $0xa8] sm:$0xf]  ;;  %v4981_v31 = vor.u32 %v5977_v13, %v4980_v43  ;;  %v5873_v18 = vld [vmem:[#allocation8 + $0x74] sm:$0xf0] }
 0x14f   : > { %v4597_v29 = vor.u32 %v5881_v15, %v4596_v14  ;;  %v4964_v1 = vld [vmem:[#allocation8 + $0x388] sm:$0xf]  ;;  %v5905_v13 = vld [vmem:[#allocation8 + $0x174] sm:$0xf0] }
 0x150   : > { %v4965_v7 = vor.u32 %v5973_v0, %v4964_v1  ;;  %v4948_v14 = vld [vmem:[#allocation8 + $0x368] sm:$0xf]  ;;  %v5965_v0 = vld [vmem:[#allocation8 + $0x354] sm:$0xf0] }
 0x151   : > { %3035 = vmatpush.bf16.msra.mxu0 %v4629_v48  ;;  %v5941_v48 = vld [vmem:[#allocation8 + $0x294] sm:$0xf0]  ;;  %v4692_v43 = vld [vmem:[#allocation8 + $0x168] sm:$0xf] }
 0x152   : > { %2905 = vmatmul.bf16.vlgmr.msra.gmra.mxu2 %v6745_v21  ;;  %3058 = vmatpush.bf16.msra.mxu1 %v4757_v54  ;;  %v4932_v1 = vld [vmem:[#allocation8 + $0x348] sm:$0xf] }
 0x153   : > { %2928 = vmatmul.bf16.vlgmr.msra.gmra.mxu3 %v6747_v25  ;;  %3081 = vmatpush.bf16.msra.mxu2 %v4885_v34  ;;  %v4724_v34 = vld [vmem:[#allocation8 + $0x1a8] sm:$0xf] }
 0x154   : > { %3104 = vmatpush.bf16.msra.mxu3 %v5013_v59  ;;  %v4725_v36 = vor.u32 %v5913_v35, %v4724_v34  ;;  %v4693_v34 = vor.u32 %v5905_v13, %v4692_v43  ;;  %v4804_v35 = vld [vmem:[#allocation8 + $0x248] sm:$0xf]  ;;  %v5893_v43 = vld [vmem:[#allocation8 + $0x114] sm:$0xf0] }
 0x155   : > { %3036 = vmatpush.bf16.msra.mxu0 %v4613_v2 }
 0x156   : > { %3059 = vmatpush.bf16.msra.mxu1 %v4741_v8  ;;  %v5937_v8 = vld [vmem:[#allocation8 + $0x274] sm:$0xf0] }
 0x157   : > { %3082 = vmatpush.bf16.msra.mxu2 %v4869_v61 }
 0x158   : > { %3105 = vmatpush.bf16.msra.mxu3 %v4997_v63  ;;  %v4820_v63 = vld [vmem:[#allocation8 + $0x268] sm:$0xf] }
 0x159   : > { %3037 = vmatpush.bf16.msra.mxu0 %v4597_v29  ;;  %v4821_v16 = vor.u32 %v5937_v8, %v4820_v63 }
 0x15a   : > { %3060 = vmatpush.bf16.msra.mxu1 %v4725_v36 }
 0x15b   : > { %2864 = vmatmul.bf16.gmra.mxu0 %v6757_v6  ;;  %3083 = vmatpush.bf16.msra.mxu2 %v4853_v57 }
 0x15c   : > { %2887 = vmatmul.bf16.gmra.mxu1 %v6759_v9  ;;  %3106 = vmatpush.bf16.msra.mxu3 %v4981_v31 }
 0x160   : > { %3107 = vmatpush.bf16.msra.mxu3 %v4965_v7  ;;  %v4660_v7 = vld [vmem:[#allocation8 + $0x128] sm:$0xf] }
 0x162   : > { %2910 = vmatmul.bf16.gmra.mxu2 %v6767_v38 }
 0x163   : > { %2933 = vmatmul.bf16.gmra.mxu3 %v6769_v40 }
 0x168   : > { %v2676_v44 = vpop.f32.mrf.mxu0 }
 0x169   : > { %v2677_v41 = vadd.f32 %v2676_v44, %v6893_v37  ;;  %v2699_v51 = vpop.f32.mrf.mxu1  ;;  %v4837_v44 = vor.u32 %v5941_v48, %v4836_v42  ;;  %v5933_v42 = vld [vmem:[#allocation8 + $0x254] sm:$0xf0]  ;;  %v4548_v48 = vld [vmem:[#allocation8 + $0x48] sm:$0xf] }
 0x16a   : > { %v4805_v36 = vor.u32 %v5933_v42, %v4804_v35  ;;  %v4916_v35 = vld [vmem:[#allocation8 + $0x328] sm:$0xf] }
 0x16b   : > { %v2700_v62 = vadd.f32 %v2699_v51, %v2677_v41  ;;  %2869 = vmatmul.bf16.gmra.mxu0 %v6783_v4  ;;  %3084 = vmatpush.bf16.msra.mxu2 %v4837_v44  ;;  %v5877_v41 = vld [vmem:[#allocation8 + $0x94] sm:$0xf0]  ;;  %v4708_v51 = vld [vmem:[#allocation8 + $0x188] sm:$0xf] }
 0x16c   : > { %2892 = vmatmul.bf16.gmra.mxu1 %v6775_v58  ;;  %v4581_v61 = vor.u32 %v5877_v41, %v4580_v50  ;;  %v4709_v47 = vor.u32 %v5909_v5, %v4708_v51  ;;  %v4676_v44 = vld [vmem:[#allocation8 + $0x148] sm:$0xf]  ;;  %v5901_v41 = vld [vmem:[#allocation8 + $0x154] sm:$0xf0] }
 0x16d   : > { %v4532_v5 = vld [vmem:[#allocation8 + $0x28] sm:$0xf] }
 0x16e   : > { %3038 = vmatpush.bf16.msra.mxu0 %v4581_v61  ;;  %3061 = vmatpush.bf16.msra.mxu1 %v4709_v47  ;;  %v5897_v47 = vld [vmem:[#allocation8 + $0x134] sm:$0xf0] }
 0x16f   : > { %3085 = vmatpush.bf16.msra.mxu2 %v4821_v16 }
 0x170   : > { %v2678_v12 = vpop.f32.mrf.mxu0 }
 0x171   : > { %v2679_v20 = vadd.f32 %v2678_v12, %v6893_v37  ;;  %v2701_v22 = vpop.f32.mrf.mxu1  ;;  %v4564_v12 = vld [vmem:[#allocation8 + $0x68] sm:$0xf] }
 0x172   : > { %2915 = vmatmul.bf16.gmra.mxu2 %v6799_v27  ;;  %v4565_v57 = vor.u32 %v5873_v18, %v4564_v12  ;;  %3062 = vmatpush.bf16.msra.mxu1 %v4693_v34  ;;  %v4661_v12 = vor.u32 %v5897_v47, %v4660_v7  ;;  %v5929_v34 = vld [vmem:[#allocation8 + $0x234] sm:$0xf0] }
 0x173   : > { %v2702_v32 = vadd.f32 %v2701_v22, %v2679_v20  ;;  %2938 = vmatmul.bf16.gmra.mxu3 %v6803_v33  ;;  %v5969_v20 = vld [vmem:[#allocation8 + $0x374] sm:$0xf0]  ;;  %3086 = vmatpush.bf16.msra.mxu2 %v4805_v36 }
 0x174   : > { %v4949_v15 = vor.u32 %v5969_v20, %v4948_v14  ;;  %3039 = vmatpush.bf16.msra.mxu0 %v4565_v57  ;;  %v4516_v14 = vld [vmem:[#allocation8 + $0x8] sm:$0xf]  ;;  %v5861_v20 = vld [vmem:[#allocation8 + $0x14] sm:$0xf0] }
 0x175   : > { %v2722_v59 = vpop.f32.mrf.mxu2  ;;  %v4517_v42 = vor.u32 %v5861_v20, %v4516_v14  ;;  %v5524_v14 = vld [vmem:[#allocation8 + $0x7e8] sm:$0xf]  ;;  %v6113_v20 = vld [vmem:[#allocation8 + $0x7f4] sm:$0xf0] }
 0x176   : > { %v2723_v60 = vadd.f32 %v2722_v59, %v2700_v62  ;;  %v2745_v45 = vpop.f32.mrf.mxu3  ;;  %3108 = vmatpush.bf16.msra.mxu3 %v4949_v15  ;;  %v5869_v59 = vld [vmem:[#allocation8 + $0x54] sm:$0xf0] }
 0x177   : > { %v4549_v50 = vor.u32 %v5869_v59, %v4548_v48 }
 0x178   : > { %v6901_v54 = vadd.f32 %v2745_v45, %v2723_v60  ;;  %v2681_v56 = vpop.f32.mrf.mxu0 }
 0x179   : > { %v2682_v2 = vadd.f32 %v2681_v56, %v6893_v37  ;;  %v2704_v30 = vpop.f32.mrf.mxu1  ;;  %3040 = vmatpush.bf16.msra.mxu0 %v4549_v50  ;;  %v5925_v50 = vld [vmem:[#allocation8 + $0x214] sm:$0xf0] }
 0x17b   : > { %v2705_v62 = vadd.f32 %v2704_v30, %v2682_v2  ;;  %2951 = vmatmul.bf16.vlgmr.msrb.gmra.mxu0 %v6819_v19  ;;  %v4933_v2 = vor.u32 %v5965_v0, %v4932_v1  ;;  %v5865_v30 = vld [vmem:[#allocation8 + $0x34] sm:$0xf0] }
 0x17c   : > { %2974 = vmatmul.bf16.vlgmr.msrb.gmra.mxu1 %v6821_v26  ;;  %v4533_v8 = vor.u32 %v5865_v30, %v4532_v5 }
 0x17d   : > { %v2724_v22 = vpop.f32.mrf.mxu2  ;;  %3109 = vmatpush.bf16.msra.mxu3 %v4933_v2 }
 0x17e   : > { %v2725_v29 = vadd.f32 %v2724_v22, %v2702_v32  ;;  %v2747_v31 = vpop.f32.mrf.mxu3  ;;  %v4677_v32 = vor.u32 %v5901_v41, %v4676_v44  ;;  %v4644_v22 = vld [vmem:[#allocation8 + $0x108] sm:$0xf]  ;;  %3041 = vmatpush.bf16.msra.mxu0 %v4533_v8 }
 0x17f   : > { %v4645_v48 = vor.u32 %v5893_v43, %v4644_v22  ;;  %v5396_v8 = vld [vmem:[#allocation8 + $0x6e8] sm:$0xf] }
 0x180   : > { %v6906_v60 = vadd.f32 %v2747_v31, %v2725_v29  ;;  %v2683_v45 = vpop.f32.mrf.mxu0  ;;  %3063 = vmatpush.bf16.msra.mxu1 %v4677_v32  ;;  %v4788_v31 = vld [vmem:[#allocation8 + $0x228] sm:$0xf] }
 0x181   : > { %v2684_v51 = vadd.f32 %v2683_v45, %v6893_v37  ;;  %v2706_v56 = vpop.f32.mrf.mxu1  ;;  %v4789_v36 = vor.u32 %v5929_v34, %v4788_v31  ;;  %v4772_v45 = vld [vmem:[#allocation8 + $0x208] sm:$0xf] }
 0x182   : > { %2997 = vmatmul.bf16.vlgmr.msrb.gmra.mxu2 %v6835_v10  ;;  %3042 = vmatpush.bf16.msra.mxu0 %v4517_v42  ;;  %v6049_v42 = vld [vmem:[#allocation8 + $0x5f4] sm:$0xf0] }
 0x183   : > { %v2707_v61 = vadd.f32 %v2706_v56, %v2684_v51  ;;  %3020 = vmatmul.bf16.vlgmr.msrb.gmra.mxu3 %v6837_v17  ;;  %3087 = vmatpush.bf16.msra.mxu2 %v4789_v36  ;;  %v4900_v51 = vld [vmem:[#allocation8 + $0x308] sm:$0xf]  ;;  %v5957_v56 = vld [vmem:[#allocation8 + $0x314] sm:$0xf0] }
 0x184   : > { %3064 = vmatpush.bf16.msra.mxu1 %v4661_v12  ;;  %v4901_v0 = vor.u32 %v5957_v56, %v4900_v51  ;;  %v6081_v12 = vld [vmem:[#allocation8 + $0x6f4] sm:$0xf0] }
 0x185   : > { %v2727_v63 = vpop.f32.mrf.mxu2 }
 0x186   : > { %v2728_v16 = vadd.f32 %v2727_v63, %v2705_v62  ;;  %v2750_v18 = vpop.f32.mrf.mxu3  ;;  %v5961_v62 = vld [vmem:[#allocation8 + $0x334] sm:$0xf0] }
 0x187   : > { %v4917_v44 = vor.u32 %v5961_v62, %v4916_v35  ;;  %v5268_v35 = vld [vmem:[#allocation8 + $0x5e8] sm:$0xf] }
 0x188   : > { %v6911_v57 = vadd.f32 %v2750_v18, %v2728_v16  ;;  %v2686_v15 = vpop.f32.mrf.mxu0  ;;  %3065 = vmatpush.bf16.msra.mxu1 %v4645_v48  ;;  %v5140_v16 = vld [vmem:[#allocation8 + $0x4e8] sm:$0xf]  ;;  %v6017_v18 = vld [vmem:[#allocation8 + $0x4f4] sm:$0xf0]  ;;  %v5269_v36 = vor.u32 %v6049_v42, %v5268_v35 }
 0x189   : > { %v2687_v13 = vadd.f32 %v2686_v15, %v6893_v37  ;;  %v2709_v29 = vpop.f32.mrf.mxu1  ;;  %3110 = vmatpush.bf16.msra.mxu3 %v4917_v44  ;;  %v4773_v37 = vor.u32 %v5925_v50, %v4772_v45  ;;  %v5141_v43 = vor.u32 %v6017_v18, %v5140_v16  ;;  %v5380_v62 = vld [vmem:[#allocation8 + $0x6c8] sm:$0xf]  ;;  %v6077_v48 = vld [vmem:[#allocation8 + $0x6d4] sm:$0xf0] }
 0x18a   : > { %v5381_v45 = vor.u32 %v6077_v48, %v5380_v62  ;;  %v6013_v50 = vld [vmem:[#allocation8 + $0x4d4] sm:$0xf0]  ;;  %v5364_v16 = vld [vmem:[#allocation8 + $0x6a8] sm:$0xf] }
 0x18b   : > { %v2710_v59 = vadd.f32 %v2709_v29, %v2687_v13  ;;  %2956 = vmatmul.bf16.gmra.mxu0 %v6849_v3  ;;  %3088 = vmatpush.bf16.msra.mxu2 %v4773_v37  ;;  %v5525_v13 = vor.u32 %v6113_v20, %v5524_v14  ;;  %v5492_v14 = vld [vmem:[#allocation8 + $0x7a8] sm:$0xf] }
 0x18c   : > { %2979 = vmatmul.bf16.gmra.mxu1 %v6851_v11  ;;  %3127 = vmatpush.bf16.msrb.mxu0 %v5141_v43  ;;  %v6105_v43 = vld [vmem:[#allocation8 + $0x7b4] sm:$0xf0]  ;;  %v5092_v48 = vld [vmem:[#allocation8 + $0x488] sm:$0xf] }
 0x18d   : > { %v2729_v41 = vpop.f32.mrf.mxu2  ;;  %3111 = vmatpush.bf16.msra.mxu3 %v4901_v0  ;;  %3150 = vmatpush.bf16.msrb.mxu1 %v5269_v36  ;;  %v5493_v35 = vor.u32 %v6105_v43, %v5492_v14  ;;  %v6069_v36 = vld [vmem:[#allocation8 + $0x694] sm:$0xf0]  ;;  %v5332_v14 = vld [vmem:[#allocation8 + $0x668] sm:$0xf] }
 0x18e   : > { %v2730_v32 = vadd.f32 %v2729_v41, %v2707_v61  ;;  %v2752_v1 = vpop.f32.mrf.mxu3  ;;  %v5397_v61 = vor.u32 %v6081_v12, %v5396_v8  ;;  %v5508_v41 = vld [vmem:[#allocation8 + $0x7c8] sm:$0xf]  ;;  %v6009_v8 = vld [vmem:[#allocation8 + $0x4b4] sm:$0xf0] }
 0x18f   : > { %v5236_v12 = vld [vmem:[#allocation8 + $0x5a8] sm:$0xf] }
 0x190   : > { %v6916_v5 = vadd.f32 %v2752_v1, %v2730_v32  ;;  %v2688_v2 = vpop.f32.mrf.mxu0  ;;  %3173 = vmatpush.bf16.msrb.mxu2 %v5397_v61  ;;  %v5252_v32 = vld [vmem:[#allocation8 + $0x5c8] sm:$0xf]  ;;  %v6045_v1 = vld [vmem:[#allocation8 + $0x5d4] sm:$0xf0] }
 0x191   : > { %v2711_v30 = vpop.f32.mrf.mxu1  ;;  %3196 = vmatpush.bf16.msrb.mxu3 %v5525_v13  ;;  %v5253_v0 = vor.u32 %v6045_v1, %v5252_v32  ;;  %v6073_v61 = vld [vmem:[#allocation8 + $0x6b4] sm:$0xf0]  ;;  %v5076_v32 = vld [vmem:[#allocation8 + $0x468] sm:$0xf] }
 0x192   : > { %3002 = vmatmul.bf16.gmra.mxu2 %v6859_v39  ;;  %v6041_v13 = vld [vmem:[#allocation8 + $0x5b4] sm:$0xf0] }
 0x193   : > { %3025 = vmatmul.bf16.gmra.mxu3 %v6861_v46  ;;  %3151 = vmatpush.bf16.msrb.mxu1 %v5253_v0  ;;  %v5237_v42 = vor.u32 %v6041_v13, %v5236_v12  ;;  %v6001_v1 = vld [vmem:[#allocation8 + $0x474] sm:$0xf0]  ;;  %v5204_v0 = vld [vmem:[#allocation8 + $0x568] sm:$0xf] }
 0x194   : > { %3174 = vmatpush.bf16.msrb.mxu2 %v5381_v45  ;;  %v6101_v12 = vld [vmem:[#allocation8 + $0x794] sm:$0xf0] }
 0x195   : > { %v2732_v7 = vpop.f32.mrf.mxu2  ;;  %v6097_v13 = vld [vmem:[#allocation8 + $0x774] sm:$0xf0] }
 0x196   : > { %v2733_v47 = vadd.f32 %v2732_v7, %v2710_v59  ;;  %v2755_v63 = vpop.f32.mrf.mxu3  ;;  %v5124_v59 = vld [vmem:[#allocation8 + $0x4c8] sm:$0xf] }
 0x197   : > { %v5125_v51 = vor.u32 %v6013_v50, %v5124_v59  ;;  %v6005_v59 = vld [vmem:[#allocation8 + $0x494] sm:$0xf0]  ;;  %3152 = vmatpush.bf16.msrb.mxu1 %v5237_v42 }
 0x198   : > { %v6920_v22 = vadd.f32 %v2755_v63, %v2733_v47  ;;  %v2768_v15 = vpop.f32.mrf.mxu0  ;;  %v5108_v63 = vld [vmem:[#allocation8 + $0x4a8] sm:$0xf] }
 0x199   : > { %v2769_v29 = vadd.f32 %v2768_v15, %v6901_v54  ;;  %v2791_v31 = vpop.f32.mrf.mxu1  ;;  %v6109_v54 = vld [vmem:[#allocation8 + $0x7d4] sm:$0xf0]  ;;  %3128 = vmatpush.bf16.msrb.mxu0 %v5125_v51  ;;  %v5109_v18 = vor.u32 %v6009_v8, %v5108_v63  ;;  %v5365_v15 = vor.u32 %v6073_v61, %v5364_v16  ;;  %v5476_v8 = vld [vmem:[#allocation8 + $0x788] sm:$0xf] }
 0x19a   : > { %v5509_v56 = vor.u32 %v6109_v54, %v5508_v41  ;;  %v5093_v41 = vor.u32 %v6005_v59, %v5092_v48  ;;  %v6037_v54 = vld [vmem:[#allocation8 + $0x594] sm:$0xf0]  ;;  %v5188_v48 = vld [vmem:[#allocation8 + $0x548] sm:$0xf] }
 0x19b   : > { %v2792_v34 = vadd.f32 %v2791_v31, %v2769_v29  ;;  %2961 = vmatmul.bf16.gmra.mxu0 %v6867_v23  ;;  %v5348_v29 = vld [vmem:[#allocation8 + $0x688] sm:$0xf]  ;;  %3175 = vmatpush.bf16.msrb.mxu2 %v5365_v15 }
 0x19c   : > { %2984 = vmatmul.bf16.gmra.mxu1 %v6869_v24  ;;  %3197 = vmatpush.bf16.msrb.mxu3 %v5509_v56  ;;  %v5349_v62 = vor.u32 %v6069_v36, %v5348_v29  ;;  %v5460_v15 = vld [vmem:[#allocation8 + $0x768] sm:$0xf] }
 0x19d   : > { %v2734_v44 = vpop.f32.mrf.mxu2  ;;  %3129 = vmatpush.bf16.msrb.mxu0 %v5109_v18  ;;  %v5477_v18 = vor.u32 %v6101_v12, %v5476_v8  ;;  %v5316_v29 = vld [vmem:[#allocation8 + $0x648] sm:$0xf]  ;;  %v5461_v42 = vor.u32 %v6097_v13, %v5460_v15  ;;  %v6025_v8 = vld [vmem:[#allocation8 + $0x534] sm:$0xf0] }
 0x19e   : > { %v2757_v37 = vpop.f32.mrf.mxu3  ;;  %v5220_v44 = vld [vmem:[#allocation8 + $0x588] sm:$0xf]  ;;  %v5989_v15 = vld [vmem:[#allocation8 + $0x414] sm:$0xf0] }
 0x19f   : > { %v5221_v51 = vor.u32 %v6037_v54, %v5220_v44  ;;  %3176 = vmatpush.bf16.msrb.mxu2 %v5349_v62  ;;  %v5060_v36 = vld [vmem:[#allocation8 + $0x448] sm:$0xf]  ;;  %v5997_v62 = vld [vmem:[#allocation8 + $0x454] sm:$0xf0] }
 0x1a0   : > { %v2770_v2 = vpop.f32.mrf.mxu0  ;;  %3198 = vmatpush.bf16.msrb.mxu3 %v5493_v35  ;;  %v5300_v13 = vld [vmem:[#allocation8 + $0x628] sm:$0xf] }
 0x1a1   : > { %v2771_v30 = vadd.f32 %v2770_v2, %v6906_v60  ;;  %v2793_v7 = vpop.f32.mrf.mxu1  ;;  %3130 = vmatpush.bf16.msrb.mxu0 %v5093_v41  ;;  %v5077_v2 = vor.u32 %v6001_v1, %v5076_v32  ;;  %3153 = vmatpush.bf16.msrb.mxu1 %v5221_v51  ;;  %v6029_v41 = vld [vmem:[#allocation8 + $0x554] sm:$0xf0]  ;;  %v5444_v51 = vld [vmem:[#allocation8 + $0x748] sm:$0xf] }
 0x1a2   : > { %3007 = vmatmul.bf16.gmra.mxu2 %v6875_v53  ;;  %v6093_v32 = vld [vmem:[#allocation8 + $0x754] sm:$0xf0]  ;;  %v5044_v1 = vld [vmem:[#allocation8 + $0x428] sm:$0xf] }
 0x1a3   : > { %v2794_v47 = vadd.f32 %v2793_v7, %v2771_v30  ;;  %3030 = vmatmul.bf16.gmra.mxu3 %v6873_v52  ;;  %v6033_v30 = vld [vmem:[#allocation8 + $0x574] sm:$0xf0] }
 0x1a4   : > { %3199 = vmatpush.bf16.msrb.mxu3 %v5477_v18 }
 0x1a5   : > { %v2814_v20 = vpop.f32.mrf.mxu2  ;;  %3131 = vmatpush.bf16.msrb.mxu0 %v5077_v2  ;;  %v5445_v2 = vor.u32 %v6093_v32, %v5444_v51 }
 0x1a6   : > { %v2815_v60 = vadd.f32 %v2814_v20, %v2792_v34  ;;  %v2837_v31 = vpop.f32.mrf.mxu3  ;;  %v6065_v20 = vld [vmem:[#allocation8 + $0x674] sm:$0xf0] }
 0x1a7   : > { %v5333_v43 = vor.u32 %v6065_v20, %v5332_v14  ;;  %v5028_v20 = vld [vmem:[#allocation8 + $0x408] sm:$0xf] }
 0x1a8   : > { %v6928_v45 = vadd.f32 %v2837_v31, %v2815_v60  ;;  %v2773_v50 = vpop.f32.mrf.mxu0  ;;  %v6061_v60 = vld [vmem:[#allocation8 + $0x654] sm:$0xf0]  ;;  %3200 = vmatpush.bf16.msrb.mxu3 %v5461_v42 }
 0x1a9   : > { %v2774_v37 = vadd.f32 %v2773_v50, %v6911_v57  ;;  %v2796_v34 = vpop.f32.mrf.mxu1  ;;  %v5205_v57 = vor.u32 %v6033_v30, %v5204_v0  ;;  %3177 = vmatpush.bf16.msrb.mxu2 %v5333_v43  ;;  %v5317_v44 = vor.u32 %v6061_v60, %v5316_v29  ;;  %v5061_v50 = vor.u32 %v5997_v62, %v5060_v36  ;;  %v5993_v30 = vld [vmem:[#allocation8 + $0x434] sm:$0xf0]  ;;  %v5156_v43 = vld [vmem:[#allocation8 + $0x508] sm:$0xf] }
 0x1aa   : > { %v3403_v7 = vmul.f32 0.2, %v6928_v45  ;;  %v6057_v29 = vld [vmem:[#allocation8 + $0x634] sm:$0xf0]  ;;  %v5428_v60 = vld [vmem:[#allocation8 + $0x728] sm:$0xf]  ;;  %v5029_v62 = vor.u32 %v5989_v15, %v5028_v20 }
 0x1ab   : > { %v2797_v56 = vadd.f32 %v2796_v34, %v2774_v37  ;;  %3043 = vmatmul.bf16.vlgmr.msra.gmra.mxu0 %v6732_v49  ;;  %3154 = vmatpush.bf16.msrb.mxu1 %v5205_v57  ;;  %v5189_v37 = vor.u32 %v6029_v41, %v5188_v48  ;;  %v5045_v57 = vor.u32 %v5993_v30, %v5044_v1  ;;  %v6089_v36 = vld [vmem:[#allocation8 + $0x734] sm:$0xf0]  ;;  %v5983_v20 = vld [vmem:[#allocation8 + $0x3ec] sm:$0xf]  ;;  %v5014_v15 = vld [vmem:[#allocation8 + $0x3f8] sm:$0xf0] }
 0x1ac   : > { %3066 = vmatmul.bf16.vlgmr.msra.gmra.mxu1 %v6734_v55  ;;  %3132 = vmatpush.bf16.msrb.mxu0 %v5061_v50  ;;  %v3423_v0 = vmax.f32 %v6928_v45, %v3403_v7  ;;  %v5301_v42 = vor.u32 %v6057_v29, %v5300_v13  ;;  %v6021_v48 = vld [vmem:[#allocation8 + $0x514] sm:$0xf0]  ;;  %v5017_v29 = vor.u32 %v5983_v20, %v5014_v15  ;;  %v5975_v20 = vld [vmem:[#allocation8 + $0x3ac] sm:$0xf]  ;;  %v4982_v15 = vld [vmem:[#allocation8 + $0x3b8] sm:$0xf0] }
 0x1ad   : > { %v2816_v63 = vpop.f32.mrf.mxu2  ;;  %3178 = vmatpush.bf16.msrb.mxu2 %v5317_v44  ;;  %3201 = vmatpush.bf16.msrb.mxu3 %v5445_v2  ;;  %v5284_v44 = vld [vmem:[#allocation8 + $0x608] sm:$0xf]  ;;  %v6053_v50 = vld [vmem:[#allocation8 + $0x614] sm:$0xf0] }
 0x1ae   : > { %v2817_v16 = vadd.f32 %v2816_v63, %v2794_v47  ;;  %v2839_v61 = vpop.f32.mrf.mxu3  ;;  %v5172_v63 = vld [vmem:[#allocation8 + $0x528] sm:$0xf] }
 0x1af   : > { %3155 = vmatpush.bf16.msrb.mxu1 %v5189_v37  ;;  %v6085_v37 = vld [vmem:[#allocation8 + $0x714] sm:$0xf0] }
 0x1b0   : > { %v2840_v31 = vadd.f32 %v2839_v61, %v2817_v16  ;;  %v2775_v35 = vpop.f32.mrf.mxu0  ;;  %v5173_v16 = vor.u32 %v6025_v8, %v5172_v63  ;;  %3133 = vmatpush.bf16.msrb.mxu0 %v5045_v57  ;;  %v5951_v8 = vld [vmem:[#allocation8 + $0x2ec] sm:$0xf] }
 0x1b1   : > { %v2776_v59 = vadd.f32 %v2775_v35, %v6916_v5  ;;  %v2798_v47 = vpop.f32.mrf.mxu1  ;;  %3179 = vmatpush.bf16.msrb.mxu2 %v5301_v42  ;;  %v5887_v57 = vld [vmem:[#allocation8 + $0xec] sm:$0xf] }
 0x1b2   : > { %v3407_v54 = vmul.f32 0.2, %v2840_v31  ;;  %3089 = vmatmul.bf16.vlgmr.msra.gmra.mxu2 %v6745_v21 }
 0x1b3   : > { %v2799_v34 = vadd.f32 %v2798_v47, %v2776_v59  ;;  %3112 = vmatmul.bf16.vlgmr.msra.gmra.mxu3 %v6747_v25  ;;  %3156 = vmatpush.bf16.msrb.mxu1 %v5173_v16  ;;  %v5157_v59 = vor.u32 %v6021_v48, %v5156_v43  ;;  %v5947_v48 = vld [vmem:[#allocation8 + $0x2cc] sm:$0xf] }
 0x1b4   : > { %v3427_v5 = vmax.f32 %v2840_v31, %v3407_v54  ;;  %3134 = vmatpush.bf16.msrb.mxu0 %v5029_v62  ;;  %v5412_v54 = vld [vmem:[#allocation8 + $0x708] sm:$0xf]  ;;  %v4758_v62 = vld [vmem:[#allocation8 + $0x1f8] sm:$0xf0] }
 0x1b5   : > { %v2819_v12 = vpop.f32.mrf.mxu2  ;;  %v5413_v1 = vor.u32 %v6085_v37, %v5412_v54  ;;  %v5979_v54 = vld [vmem:[#allocation8 + $0x3cc] sm:$0xf] }
 0x1b6   : > { %v6938_v61 = vpack.c.bf16 %v3427_v5, %v3423_v0  ;;  %v2820_v18 = vadd.f32 %v2819_v12, %v2797_v56  ;;  %v2842_v14 = vpop.f32.mrf.mxu3  ;;  %v5429_v56 = vor.u32 %v6089_v36, %v5428_v60  ;;  %v4886_v12 = vld [vmem:[#allocation8 + $0x2f8] sm:$0xf0]  ;;  %v5919_v36 = vld [vmem:[#allocation8 + $0x1ec] sm:$0xf] }
 0x1b7   : > { %3157 = vmatpush.bf16.msrb.mxu1 %v5157_v59 }
 0x1b8   : > { %v2843_v45 = vadd.f32 %v2842_v14, %v2820_v18  ;;  %v2778_v7 = vpop.f32.mrf.mxu0  ;;  %3202 = vmatpush.bf16.msrb.mxu3 %v5429_v56  ;;  %v4889_v14 = vor.u32 %v5951_v8, %v4886_v12  ;;  %v5943_v8 = vld [vmem:[#allocation8 + $0x2ac] sm:$0xf]  ;;  %v4854_v12 = vld [vmem:[#allocation8 + $0x2b8] sm:$0xf0] }
 0x1b9   : > { %v2779_v31 = vadd.f32 %v2778_v7, %v6920_v22  ;;  %v2801_v35 = vpop.f32.mrf.mxu1  ;;  %v5285_v22 = vor.u32 %v6053_v50, %v5284_v44  ;;  %v6946_v7 = vperm.slane %v6889_v28, 1  ;;  %v4761_v28 = vor.u32 %v5919_v36, %v4758_v62  ;;  %v4870_v44 = vld [vmem:[#allocation8 + $0x2d8] sm:$0xf0] }
 0x1ba   : > { %v3411_v0 = vmul.f32 0.2, %v2843_v45  ;;  %v4873_v50 = vor.u32 %v5947_v48, %v4870_v44  ;;  %v4838_v62 = vld [vmem:[#allocation8 + $0x298] sm:$0xf0]  ;;  %v5875_v44 = vld [vmem:[#allocation8 + $0x8c] sm:$0xf] }
 0x1bb   : > { %v2802_v47 = vadd.f32 %v2801_v35, %v2779_v31  ;;  %3048 = vmatmul.bf16.gmra.mxu0 %v6757_v6  ;;  %3180 = vmatpush.bf16.msrb.mxu2 %v5285_v22  ;;  %v4614_v22 = vld [vmem:[#allocation8 + $0xd8] sm:$0xf0] }
 0x1bc   : > { %3071 = vmatmul.bf16.gmra.mxu1 %v6759_v9  ;;  %3203 = vmatpush.bf16.msrb.mxu3 %v5413_v1  ;;  %v3431_v16 = vmax.f32 %v2843_v45, %v3411_v0  ;;  %v4742_v1 = vld [vmem:[#allocation8 + $0x1d8] sm:$0xf0] }
 0x1bd   : > { %v2821_v41 = vpop.f32.mrf.mxu2  ;;  %3242 = vmatpush.bf16.msra.mxu1 %v4761_v28 }
 0x1be   : > { %v2822_v51 = vadd.f32 %v2821_v41, %v2799_v34  ;;  %v2844_v32 = vpop.f32.mrf.mxu3  ;;  %v4630_v34 = vld [vmem:[#allocation8 + $0xf8] sm:$0xf0] }
 0x1bf   : > { %v4633_v13 = vor.u32 %v5887_v57, %v4630_v34  ;;  %3265 = vmatpush.bf16.msra.mxu2 %v4889_v14  ;;  %v5879_v57 = vld [vmem:[#allocation8 + $0xac] sm:$0xf]  ;;  %v4857_v14 = vor.u32 %v5943_v8, %v4854_v12  ;;  %v4598_v34 = vld [vmem:[#allocation8 + $0xb8] sm:$0xf0] }
 0x1c0   : > { %v2845_v5 = vadd.f32 %v2844_v32, %v2822_v51  ;;  %v2780_v2 = vpop.f32.mrf.mxu0  ;;  %3288 = vmatpush.bf16.msra.mxu3 %v5017_v29  ;;  %v4998_v51 = vld [vmem:[#allocation8 + $0x3d8] sm:$0xf0]  ;;  %v5915_v32 = vld [vmem:[#allocation8 + $0x1cc] sm:$0xf] }
 0x1c1   : > { %v2803_v30 = vpop.f32.mrf.mxu1  ;;  %3219 = vmatpush.bf16.msra.mxu0 %v4633_v13  ;;  %v4745_v2 = vor.u32 %v5915_v32, %v4742_v1  ;;  %v4985_v13 = vor.u32 %v5975_v20, %v4982_v15  ;;  %v4966_v32 = vld [vmem:[#allocation8 + $0x398] sm:$0xf0]  ;;  %v5871_v12 = vld [vmem:[#allocation8 + $0x6c] sm:$0xf] }
 0x1c2   : > { %v3415_v63 = vmul.f32 0.2, %v2845_v5  ;;  %3094 = vmatmul.bf16.gmra.mxu2 %v6767_v38  ;;  %v4710_v1 = vld [vmem:[#allocation8 + $0x198] sm:$0xf0] }
 0x1c3   : > { %3117 = vmatmul.bf16.gmra.mxu3 %v6769_v40  ;;  %3266 = vmatpush.bf16.msra.mxu2 %v4873_v50  ;;  %v4582_v50 = vld [vmem:[#allocation8 + $0x98] sm:$0xf0] }
 0x1c4   : > { %v3435_v18 = vmax.f32 %v2845_v5, %v3415_v63  ;;  %v5001_v5 = vor.u32 %v5979_v54, %v4998_v51  ;;  %3243 = vmatpush.bf16.msra.mxu1 %v4745_v2  ;;  %v5971_v51 = vld [vmem:[#allocation8 + $0x38c] sm:$0xf]  ;;  %v4822_v8 = vld [vmem:[#allocation8 + $0x278] sm:$0xf0] }
 0x1c5   : > { %v2824_v43 = vpop.f32.mrf.mxu2  ;;  %v4969_v2 = vor.u32 %v5971_v51, %v4966_v32 }
 0x1c6   : > { %v2825_v60 = vadd.f32 %v2824_v43, %v2802_v47  ;;  %v2847_v31 = vpop.f32.mrf.mxu3  ;;  %v6948_v35 = vpack.c.bf16 %v3435_v18, %v3431_v16  ;;  %v5883_v47 = vld [vmem:[#allocation8 + $0xcc] sm:$0xf]  ;;  %3289 = vmatpush.bf16.msra.mxu3 %v5001_v5  ;;  %v4601_v43 = vor.u32 %v5879_v57, %v4598_v34 }
 0x1c7   : > { %v4617_v37 = vor.u32 %v5883_v47, %v4614_v22  ;;  %3267 = vmatpush.bf16.msra.mxu2 %v4857_v14  ;;  %v5907_v47 = vld [vmem:[#allocation8 + $0x18c] sm:$0xf]  ;;  %v4950_v14 = vld [vmem:[#allocation8 + $0x378] sm:$0xf0] }
 0x1c8   : > { %v6950_v42 = vadd.f32 %v2847_v31, %v2825_v60  ;;  %v2860_v45 = vpop.f32.mrf.mxu0  ;;  %v5911_v60 = vld [vmem:[#allocation8 + $0x1ac] sm:$0xf]  ;;  %v4726_v31 = vld [vmem:[#allocation8 + $0x1b8] sm:$0xf0] }
 0x1c9   : > { %v2861_v56 = vadd.f32 %v2860_v45, %v6946_v7  ;;  %v2883_v59 = vpop.f32.mrf.mxu1  ;;  %3220 = vmatpush.bf16.msra.mxu0 %v4617_v37  ;;  %v5939_v45 = vld [vmem:[#allocation8 + $0x28c] sm:$0xf]  ;;  %v4729_v36 = vor.u32 %v5911_v60, %v4726_v31  ;;  %v4585_v37 = vor.u32 %v5875_v44, %v4582_v50 }
 0x1ca   : > { %3290 = vmatpush.bf16.msra.mxu3 %v4985_v13  ;;  %v4694_v13 = vld [vmem:[#allocation8 + $0x178] sm:$0xf0] }
 0x1cb   : > { %v2884_v41 = vadd.f32 %v2883_v59, %v2861_v56  ;;  %3053 = vmatmul.bf16.gmra.mxu0 %v6783_v4  ;;  %v4841_v56 = vor.u32 %v5939_v45, %v4838_v62  ;;  %3244 = vmatpush.bf16.msra.mxu1 %v4729_v36  ;;  %v5931_v36 = vld [vmem:[#allocation8 + $0x24c] sm:$0xf]  ;;  %v4806_v62 = vld [vmem:[#allocation8 + $0x258] sm:$0xf0] }
 0x1cc   : > { %3076 = vmatmul.bf16.gmra.mxu1 %v6775_v58 }
 0x1cd   : > { %v2826_v0 = vpop.f32.mrf.mxu2  ;;  %3221 = vmatpush.bf16.msra.mxu0 %v4601_v43  ;;  %3268 = vmatpush.bf16.msra.mxu2 %v4841_v56  ;;  %v5903_v43 = vld [vmem:[#allocation8 + $0x16c] sm:$0xf] }
 0x1ce   : > { %v2849_v30 = vpop.f32.mrf.mxu3  ;;  %3291 = vmatpush.bf16.msra.mxu3 %v4969_v2  ;;  %v4697_v45 = vor.u32 %v5903_v43, %v4694_v13  ;;  %v5867_v56 = vld [vmem:[#allocation8 + $0x4c] sm:$0xf] }
 0x1cf   : > { %v4713_v30 = vor.u32 %v5907_v47, %v4710_v1  ;;  %v5963_v1 = vld [vmem:[#allocation8 + $0x34c] sm:$0xf] }
 0x1d0   : > { %v2862_v63 = vpop.f32.mrf.mxu0 }
 0x1d1   : > { %v2863_v16 = vadd.f32 %v2862_v63, %v6946_v7  ;;  %v2885_v18 = vpop.f32.mrf.mxu1  ;;  %3222 = vmatpush.bf16.msra.mxu0 %v4585_v37  ;;  %v5935_v63 = vld [vmem:[#allocation8 + $0x26c] sm:$0xf]  ;;  %3245 = vmatpush.bf16.msra.mxu1 %v4713_v30  ;;  %v4534_v30 = vld [vmem:[#allocation8 + $0x38] sm:$0xf0] }
 0x1d2   : > { %3099 = vmatmul.bf16.gmra.mxu2 %v6799_v27  ;;  %v4825_v57 = vor.u32 %v5935_v63, %v4822_v8  ;;  %v5895_v63 = vld [vmem:[#allocation8 + $0x12c] sm:$0xf]  ;;  %v4662_v8 = vld [vmem:[#allocation8 + $0x138] sm:$0xf0] }
 0x1d3   : > { %v2886_v29 = vadd.f32 %v2885_v18, %v2863_v16  ;;  %3122 = vmatmul.bf16.gmra.mxu3 %v6803_v33  ;;  %v4566_v16 = vld [vmem:[#allocation8 + $0x78] sm:$0xf0]  ;;  %v5967_v18 = vld [vmem:[#allocation8 + $0x36c] sm:$0xf] }
 0x1d4   : > { %v4569_v20 = vor.u32 %v5871_v12, %v4566_v16  ;;  %v4953_v15 = vor.u32 %v5967_v18, %v4950_v14  ;;  %3269 = vmatpush.bf16.msra.mxu2 %v4825_v57  ;;  %v4665_v16 = vor.u32 %v5895_v63, %v4662_v8 }
 0x1d5   : > { %v2906_v48 = vpop.f32.mrf.mxu2  ;;  %3246 = vmatpush.bf16.msra.mxu1 %v4697_v45 }
 0x1d6   : > { %v2907_v59 = vadd.f32 %v2906_v48, %v2884_v41  ;;  %v2929_v28 = vpop.f32.mrf.mxu3  ;;  %3223 = vmatpush.bf16.msra.mxu0 %v4569_v20  ;;  %3292 = vmatpush.bf16.msra.mxu3 %v4953_v15  ;;  %v4809_v48 = vor.u32 %v5931_v36, %v4806_v62  ;;  %v4518_v20 = vld [vmem:[#allocation8 + $0x18] sm:$0xf0]  ;;  %v5891_v15 = vld [vmem:[#allocation8 + $0x10c] sm:$0xf] }
 0x1d7   : > { %v5927_v36 = vld [vmem:[#allocation8 + $0x22c] sm:$0xf]  ;;  %v4790_v62 = vld [vmem:[#allocation8 + $0x238] sm:$0xf0] }
 0x1d8   : > { %v6958_v22 = vadd.f32 %v2929_v28, %v2907_v59  ;;  %v2865_v54 = vpop.f32.mrf.mxu0  ;;  %v4550_v59 = vld [vmem:[#allocation8 + $0x58] sm:$0xf0]  ;;  %v5899_v28 = vld [vmem:[#allocation8 + $0x14c] sm:$0xf]  ;;  %3270 = vmatpush.bf16.msra.mxu2 %v4809_v48 }
 0x1d9   : > { %v2866_v0 = vadd.f32 %v2865_v54, %v6946_v7  ;;  %v2888_v5 = vpop.f32.mrf.mxu1  ;;  %v4553_v47 = vor.u32 %v5867_v56, %v4550_v59  ;;  %v4678_v54 = vld [vmem:[#allocation8 + $0x158] sm:$0xf0]  ;;  %v5959_v48 = vld [vmem:[#allocation8 + $0x32c] sm:$0xf]  ;;  %v4793_v59 = vor.u32 %v5927_v36, %v4790_v62 }
 0x1db   : > { %v2889_v41 = vadd.f32 %v2888_v5, %v2866_v0  ;;  %3135 = vmatmul.bf16.vlgmr.msrb.gmra.mxu0 %v6819_v19  ;;  %v4934_v0 = vld [vmem:[#allocation8 + $0x358] sm:$0xf0]  ;;  %v5863_v5 = vld [vmem:[#allocation8 + $0x2c] sm:$0xf] }
 0x1dc   : > { %3158 = vmatmul.bf16.vlgmr.msrb.gmra.mxu1 %v6821_v26  ;;  %3224 = vmatpush.bf16.msra.mxu0 %v4553_v47  ;;  %v4937_v2 = vor.u32 %v5963_v1, %v4934_v0  ;;  %v4537_v57 = vor.u32 %v5863_v5, %v4534_v30  ;;  %v4902_v1 = vld [vmem:[#allocation8 + $0x318] sm:$0xf0] }
 0x1dd   : > { %v2908_v34 = vpop.f32.mrf.mxu2  ;;  %3271 = vmatpush.bf16.msra.mxu2 %v4793_v59  ;;  %v6047_v59 = vld [vmem:[#allocation8 + $0x5ec] sm:$0xf] }
 0x1de   : > { %v2909_v60 = vadd.f32 %v2908_v34, %v2886_v29  ;;  %v2931_v31 = vpop.f32.mrf.mxu3  ;;  %v4681_v29 = vor.u32 %v5899_v28, %v4678_v54  ;;  %3293 = vmatpush.bf16.msra.mxu3 %v4937_v2  ;;  %v5859_v34 = vld [vmem:[#allocation8 + $0xc] sm:$0xf] }
 0x1df   : > { %v4521_v56 = vor.u32 %v5859_v34, %v4518_v20  ;;  %v5923_v54 = vld [vmem:[#allocation8 + $0x20c] sm:$0xf]  ;;  %v5142_v20 = vld [vmem:[#allocation8 + $0x4f8] sm:$0xf0] }
 0x1e0   : > { %v6963_v44 = vadd.f32 %v2931_v31, %v2909_v60  ;;  %v2867_v50 = vpop.f32.mrf.mxu0  ;;  %3247 = vmatpush.bf16.msra.mxu1 %v4681_v29  ;;  %3225 = vmatpush.bf16.msra.mxu0 %v4537_v57  ;;  %v4646_v60 = vld [vmem:[#allocation8 + $0x118] sm:$0xf0]  ;;  %v5955_v29 = vld [vmem:[#allocation8 + $0x30c] sm:$0xf] }
 0x1e1   : > { %v2868_v37 = vadd.f32 %v2867_v50, %v6946_v7  ;;  %v2890_v51 = vpop.f32.mrf.mxu1  ;;  %v4649_v28 = vor.u32 %v5891_v15, %v4646_v60  ;;  %v4905_v2 = vor.u32 %v5955_v29, %v4902_v1  ;;  %v6015_v34 = vld [vmem:[#allocation8 + $0x4ec] sm:$0xf] }
 0x1e2   : > { %3181 = vmatmul.bf16.vlgmr.msrb.gmra.mxu2 %v6835_v10  ;;  %v6111_v15 = vld [vmem:[#allocation8 + $0x7ec] sm:$0xf] }
 0x1e3   : > { %v2891_v32 = vadd.f32 %v2890_v51, %v2868_v37  ;;  %3204 = vmatmul.bf16.vlgmr.msrb.gmra.mxu3 %v6837_v17  ;;  %v4774_v37 = vld [vmem:[#allocation8 + $0x218] sm:$0xf0]  ;;  %v6107_v29 = vld [vmem:[#allocation8 + $0x7cc] sm:$0xf] }
 0x1e4   : > { %3248 = vmatpush.bf16.msra.mxu1 %v4665_v16  ;;  %3226 = vmatpush.bf16.msra.mxu0 %v4521_v56 }
 0x1e5   : > { %v2911_v12 = vpop.f32.mrf.mxu2 }
 0x1e6   : > { %v2912_v18 = vadd.f32 %v2911_v12, %v2889_v41  ;;  %v2934_v14 = vpop.f32.mrf.mxu3  ;;  %v4918_v41 = vld [vmem:[#allocation8 + $0x338] sm:$0xf0] }
 0x1e7   : > { %v4921_v47 = vor.u32 %v5959_v48, %v4918_v41  ;;  %v5270_v41 = vld [vmem:[#allocation8 + $0x5f8] sm:$0xf0] }
 0x1e8   : > { %v6968_v43 = vadd.f32 %v2934_v14, %v2912_v18  ;;  %v2870_v13 = vpop.f32.mrf.mxu0  ;;  %3249 = vmatpush.bf16.msra.mxu1 %v4649_v28  ;;  %v6079_v18 = vld [vmem:[#allocation8 + $0x6ec] sm:$0xf]  ;;  %v5398_v14 = vld [vmem:[#allocation8 + $0x6f8] sm:$0xf0]  ;;  %v5273_v28 = vor.u32 %v6047_v59, %v5270_v41 }
 0x1e9   : > { %v2871_v31 = vadd.f32 %v2870_v13, %v6946_v7  ;;  %v2893_v45 = vpop.f32.mrf.mxu1  ;;  %3294 = vmatpush.bf16.msra.mxu3 %v4921_v47  ;;  %v4777_v7 = vor.u32 %v5923_v54, %v4774_v37  ;;  %v5526_v13 = vld [vmem:[#allocation8 + $0x7f8] sm:$0xf0]  ;;  %v6011_v54 = vld [vmem:[#allocation8 + $0x4cc] sm:$0xf] }
 0x1ea   : > { %v5529_v36 = vor.u32 %v6111_v15, %v5526_v13  ;;  %v5382_v47 = vld [vmem:[#allocation8 + $0x6d8] sm:$0xf0]  ;;  %v6067_v59 = vld [vmem:[#allocation8 + $0x68c] sm:$0xf] }
 0x1eb   : > { %v2894_v50 = vadd.f32 %v2893_v45, %v2871_v31  ;;  %3140 = vmatmul.bf16.gmra.mxu0 %v6849_v3  ;;  %3272 = vmatpush.bf16.msra.mxu2 %v4777_v7  ;;  %v5145_v45 = vor.u32 %v6015_v34, %v5142_v20  ;;  %v5126_v7 = vld [vmem:[#allocation8 + $0x4d8] sm:$0xf0]  ;;  %v6071_v20 = vld [vmem:[#allocation8 + $0x6ac] sm:$0xf] }
 0x1ec   : > { %3163 = vmatmul.bf16.gmra.mxu1 %v6851_v11  ;;  %v5110_v34 = vld [vmem:[#allocation8 + $0x4b8] sm:$0xf0] }
 0x1ed   : > { %v2913_v51 = vpop.f32.mrf.mxu2  ;;  %3295 = vmatpush.bf16.msra.mxu3 %v4905_v2  ;;  %3311 = vmatpush.bf16.msrb.mxu0 %v5145_v45  ;;  %v6043_v2 = vld [vmem:[#allocation8 + $0x5cc] sm:$0xf]  ;;  %v5366_v15 = vld [vmem:[#allocation8 + $0x6b8] sm:$0xf0] }
 0x1ee   : > { %v2914_v0 = vadd.f32 %v2913_v51, %v2891_v32  ;;  %v2936_v5 = vpop.f32.mrf.mxu3  ;;  %v5401_v32 = vor.u32 %v6079_v18, %v5398_v14  ;;  %3334 = vmatpush.bf16.msrb.mxu1 %v5273_v28  ;;  %v6007_v14 = vld [vmem:[#allocation8 + $0x4ac] sm:$0xf] }
 0x1ef   : > { %v5113_v13 = vor.u32 %v6007_v14, %v5110_v34  ;;  %v5206_v14 = vld [vmem:[#allocation8 + $0x578] sm:$0xf0] }
 0x1f0   : > { %v6973_v30 = vadd.f32 %v2936_v5, %v2914_v0  ;;  %v2872_v63 = vpop.f32.mrf.mxu0  ;;  %3357 = vmatpush.bf16.msrb.mxu2 %v5401_v32  ;;  %v5129_v0 = vor.u32 %v6011_v54, %v5126_v7  ;;  %v6039_v32 = vld [vmem:[#allocation8 + $0x5ac] sm:$0xf] }
 0x1f1   : > { %v2895_v8 = vpop.f32.mrf.mxu1  ;;  %3380 = vmatpush.bf16.msrb.mxu3 %v5529_v36  ;;  %v5254_v63 = vld [vmem:[#allocation8 + $0x5d8] sm:$0xf0]  ;;  %v5369_v36 = vor.u32 %v6071_v20, %v5366_v15  ;;  %v6035_v7 = vld [vmem:[#allocation8 + $0x58c] sm:$0xf] }
 0x1f2   : > { %3186 = vmatmul.bf16.gmra.mxu2 %v6859_v39  ;;  %v5257_v8 = vor.u32 %v6043_v2, %v5254_v63  ;;  %3312 = vmatpush.bf16.msrb.mxu0 %v5129_v0  ;;  %v5222_v0 = vld [vmem:[#allocation8 + $0x598] sm:$0xf0]  ;;  %v6099_v20 = vld [vmem:[#allocation8 + $0x78c] sm:$0xf] }
 0x1f3   : > { %3209 = vmatmul.bf16.gmra.mxu3 %v6861_v46  ;;  %v5225_v2 = vor.u32 %v6035_v7, %v5222_v0  ;;  %v5478_v15 = vld [vmem:[#allocation8 + $0x798] sm:$0xf0] }
 0x1f4   : > { %3335 = vmatpush.bf16.msrb.mxu1 %v5257_v8  ;;  %v5999_v8 = vld [vmem:[#allocation8 + $0x46c] sm:$0xf] }
 0x1f5   : > { %v2916_v12 = vpop.f32.mrf.mxu2 }
 0x1f6   : > { %v2917_v57 = vadd.f32 %v2916_v12, %v2894_v50  ;;  %v2939_v16 = vpop.f32.mrf.mxu3  ;;  %v6075_v50 = vld [vmem:[#allocation8 + $0x6cc] sm:$0xf]  ;;  %3313 = vmatpush.bf16.msrb.mxu0 %v5113_v13 }
 0x1f7   : > { %v5385_v51 = vor.u32 %v6075_v50, %v5382_v47  ;;  %v5350_v47 = vld [vmem:[#allocation8 + $0x698] sm:$0xf0] }
 0x1f8   : > { %v6977_v60 = vadd.f32 %v2939_v16, %v2917_v57  ;;  %v2952_v31 = vpop.f32.mrf.mxu0  ;;  %v5353_v54 = vor.u32 %v6067_v59, %v5350_v47  ;;  %v5462_v59 = vld [vmem:[#allocation8 + $0x778] sm:$0xf0]  ;;  %v5995_v47 = vld [vmem:[#allocation8 + $0x44c] sm:$0xf] }
 0x1f9   : > { %v2953_v62 = vadd.f32 %v2952_v31, %v6958_v22  ;;  %v2975_v48 = vpop.f32.mrf.mxu1  ;;  %v5510_v22 = vld [vmem:[#allocation8 + $0x7d8] sm:$0xf0]  ;;  %3358 = vmatpush.bf16.msrb.mxu2 %v5385_v51  ;;  %v6103_v31 = vld [vmem:[#allocation8 + $0x7ac] sm:$0xf] }
 0x1fa   : > { %v5513_v5 = vor.u32 %v6107_v29, %v5510_v22  ;;  %v5094_v51 = vld [vmem:[#allocation8 + $0x498] sm:$0xf0] }
 0x1fb   : > { %v2976_v56 = vadd.f32 %v2975_v48, %v2953_v62  ;;  %3145 = vmatmul.bf16.gmra.mxu0 %v6867_v23  ;;  %v5494_v62 = vld [vmem:[#allocation8 + $0x7b8] sm:$0xf0] }
 0x1fc   : > { %3168 = vmatmul.bf16.gmra.mxu1 %v6869_v24  ;;  %3381 = vmatpush.bf16.msrb.mxu3 %v5513_v5  ;;  %v5238_v48 = vld [vmem:[#allocation8 + $0x5b8] sm:$0xf0]  ;;  %v5497_v28 = vor.u32 %v6103_v31, %v5494_v62  ;;  %v6095_v62 = vld [vmem:[#allocation8 + $0x76c] sm:$0xf] }
 0x1fd   : > { %v2918_v37 = vpop.f32.mrf.mxu2  ;;  %v5241_v50 = vor.u32 %v6039_v32, %v5238_v48  ;;  %3359 = vmatpush.bf16.msrb.mxu2 %v5369_v36  ;;  %v6063_v36 = vld [vmem:[#allocation8 + $0x66c] sm:$0xf] }
 0x1fe   : > { %v2941_v1 = vpop.f32.mrf.mxu3  ;;  %v6003_v37 = vld [vmem:[#allocation8 + $0x48c] sm:$0xf] }
 0x1ff   : > { %3336 = vmatpush.bf16.msrb.mxu1 %v5241_v50  ;;  %v5097_v1 = vor.u32 %v6003_v37, %v5094_v51  ;;  %v5465_v50 = vor.u32 %v6095_v62, %v5462_v59  ;;  %v6027_v37 = vld [vmem:[#allocation8 + $0x54c] sm:$0xf] }
 0x200   : > { %v2954_v12 = vpop.f32.mrf.mxu0  ;;  %3382 = vmatpush.bf16.msrb.mxu3 %v5497_v28  ;;  %v6055_v62 = vld [vmem:[#allocation8 + $0x62c] sm:$0xf] }
 0x201   : > { %v2955_v57 = vadd.f32 %v2954_v12, %v6963_v44  ;;  %v2977_v16 = vpop.f32.mrf.mxu1  ;;  %3314 = vmatpush.bf16.msrb.mxu0 %v5097_v1  ;;  %3360 = vmatpush.bf16.msrb.mxu2 %v5353_v54  ;;  %v5078_v12 = vld [vmem:[#allocation8 + $0x478] sm:$0xf0]  ;;  %v6087_v59 = vld [vmem:[#allocation8 + $0x72c] sm:$0xf] }
 0x202   : > { %3191 = vmatmul.bf16.gmra.mxu2 %v6875_v53  ;;  %v5062_v54 = vld [vmem:[#allocation8 + $0x458] sm:$0xf0] }
 0x203   : > { %v2978_v18 = vadd.f32 %v2977_v16, %v2955_v57  ;;  %3214 = vmatmul.bf16.gmra.mxu3 %v6873_v52  ;;  %v6031_v57 = vld [vmem:[#allocation8 + $0x56c] sm:$0xf]  ;;  %v5081_v16 = vor.u32 %v5999_v8, %v5078_v12  ;;  %3337 = vmatpush.bf16.msrb.mxu1 %v5225_v2  ;;  %v5190_v1 = vld [vmem:[#allocation8 + $0x558] sm:$0xf0] }
 0x204   : > { %v6091_v2 = vld [vmem:[#allocation8 + $0x74c] sm:$0xf]  ;;  %v5446_v8 = vld [vmem:[#allocation8 + $0x758] sm:$0xf0] }
 0x205   : > { %v2998_v45 = vpop.f32.mrf.mxu2  ;;  %3315 = vmatpush.bf16.msrb.mxu0 %v5081_v16  ;;  %v5991_v12 = vld [vmem:[#allocation8 + $0x42c] sm:$0xf]  ;;  %v5449_v16 = vor.u32 %v6091_v2, %v5446_v8 }
 0x206   : > { %v2999_v44 = vadd.f32 %v2998_v45, %v2976_v56  ;;  %v3021_v41 = vpop.f32.mrf.mxu3  ;;  %v5481_v45 = vor.u32 %v6099_v20, %v5478_v15  ;;  %v5174_v20 = vld [vmem:[#allocation8 + $0x538] sm:$0xf0] }
 0x208   : > { %v6985_v29 = vadd.f32 %v3021_v41, %v2999_v44  ;;  %v2957_v22 = vpop.f32.mrf.mxu0  ;;  %v6059_v44 = vld [vmem:[#allocation8 + $0x64c] sm:$0xf]  ;;  %3383 = vmatpush.bf16.msrb.mxu3 %v5481_v45 }
 0x209   : > { %v2958_v5 = vadd.f32 %v2957_v22, %v6968_v43  ;;  %v2980_v56 = vpop.f32.mrf.mxu1  ;;  %v5209_v43 = vor.u32 %v6031_v57, %v5206_v14  ;;  %v5065_v22 = vor.u32 %v5995_v47, %v5062_v54  ;;  %v5046_v14 = vld [vmem:[#allocation8 + $0x438] sm:$0xf0]  ;;  %v5987_v45 = vld [vmem:[#allocation8 + $0x40c] sm:$0xf] }
 0x20a   : > { %v3404_v34 = vmul.f32 0.2, %v6985_v29  ;;  %v5158_v47 = vld [vmem:[#allocation8 + $0x518] sm:$0xf0] }
 0x20b   : > { %v2981_v63 = vadd.f32 %v2980_v56, %v2958_v5  ;;  %3227 = vmatmul.bf16.vlgmr.msra.gmra.mxu0 %v6732_v49  ;;  %v5334_v49 = vld [vmem:[#allocation8 + $0x678] sm:$0xf0]  ;;  %3338 = vmatpush.bf16.msrb.mxu1 %v5209_v43  ;;  %v5193_v5 = vor.u32 %v6027_v37, %v5190_v1 }
 0x20c   : > { %3250 = vmatmul.bf16.vlgmr.msra.gmra.mxu1 %v6734_v55  ;;  %v5337_v48 = vor.u32 %v6063_v36, %v5334_v49  ;;  %v5318_v55 = vld [vmem:[#allocation8 + $0x658] sm:$0xf0]  ;;  %3316 = vmatpush.bf16.msrb.mxu0 %v5065_v22  ;;  %v3424_v57 = vmax.f32 %v6985_v29, %v3404_v34  ;;  %v6019_v49 = vld [vmem:[#allocation8 + $0x50c] sm:$0xf] }
 0x20d   : > { %v3000_v32 = vpop.f32.mrf.mxu2  ;;  %v5321_v7 = vor.u32 %v6059_v44, %v5318_v55  ;;  %3384 = vmatpush.bf16.msrb.mxu3 %v5465_v50  ;;  %v5030_v36 = vld [vmem:[#allocation8 + $0x418] sm:$0xf0]  ;;  %v5161_v54 = vor.u32 %v6019_v49, %v5158_v47  ;;  %v6083_v22 = vld [vmem:[#allocation8 + $0x70c] sm:$0xf] }
 0x20e   : > { %v3001_v13 = vadd.f32 %v3000_v32, %v2978_v18  ;;  %v3023_v31 = vpop.f32.mrf.mxu3  ;;  %3361 = vmatpush.bf16.msrb.mxu2 %v5337_v48  ;;  %v6023_v32 = vld [vmem:[#allocation8 + $0x52c] sm:$0xf]  ;;  %v5302_v48 = vld [vmem:[#allocation8 + $0x638] sm:$0xf0]  ;;  %v5033_v50 = vor.u32 %v5987_v45, %v5030_v36  ;;  %v6145_v45 = vld [vmem:[#allocation10 + $0xf4] sm:$0xf0] }
 0x20f   : > { %3339 = vmatpush.bf16.msrb.mxu1 %v5193_v5  ;;  %v5177_v43 = vor.u32 %v6023_v32, %v5174_v20  ;;  %v5414_v1 = vld [vmem:[#allocation8 + $0x718] sm:$0xf0] }
 0x210   : > { %v3024_v41 = vadd.f32 %v3023_v31, %v3001_v13  ;;  %v2959_v28 = vpop.f32.mrf.mxu0  ;;  %v5417_v2 = vor.u32 %v6083_v22, %v5414_v1  ;;  %v5716_v1 = vld [vmem:[#allocation10 + $0x170] sm:$0xf] }
 0x211   : > { %v2960_v51 = vadd.f32 %v2959_v28, %v6973_v30  ;;  %v2982_v18 = vpop.f32.mrf.mxu1  ;;  %3385 = vmatpush.bf16.msrb.mxu3 %v5449_v16  ;;  %v5430_v28 = vld [vmem:[#allocation8 + $0x738] sm:$0xf0] }
 0x212   : > { %v3408_v0 = vmul.f32 0.2, %v3024_v41  ;;  %3273 = vmatmul.bf16.vlgmr.msra.gmra.mxu2 %v6745_v21  ;;  %v5049_v21 = vor.u32 %v5991_v12, %v5046_v14 }
 0x213   : > { %v2983_v56 = vadd.f32 %v2982_v18, %v2960_v51  ;;  %3296 = vmatmul.bf16.vlgmr.msra.gmra.mxu3 %v6747_v25  ;;  %3362 = vmatpush.bf16.msrb.mxu2 %v5321_v7  ;;  %v6051_v51 = vld [vmem:[#allocation8 + $0x60c] sm:$0xf]  ;;  %v5286_v18 = vld [vmem:[#allocation8 + $0x618] sm:$0xf0] }
 0x214   : > { %v3428_v30 = vmax.f32 %v3024_v41, %v3408_v0  ;;  %3317 = vmatpush.bf16.msrb.mxu0 %v5049_v21  ;;  %3340 = vmatpush.bf16.msrb.mxu1 %v5177_v43  ;;  %v5305_v41 = vor.u32 %v6055_v62, %v5302_v48  ;;  %v6127_v62 = vld [vmem:[#allocation10 + $0x64] sm:$0xf0]  ;;  %v5644_v48 = vld [vmem:[#allocation10 + $0xe0] sm:$0xf] }
 0x215   : > { %v3003_v15 = vpop.f32.mrf.mxu2 }
 0x216   : > { %v6995_v13 = vpack.c.bf16 %v3428_v30, %v3424_v57  ;;  %v3004_v25 = vadd.f32 %v3003_v15, %v2981_v63  ;;  %v3026_v31 = vpop.f32.mrf.mxu3  ;;  %v5433_v63 = vor.u32 %v6087_v59, %v5430_v28  ;;  %v6125_v28 = vld [vmem:[#allocation10 + $0x54] sm:$0xf0] }
 0x217   : > { %3363 = vmatpush.bf16.msrb.mxu2 %v5305_v41 }
 0x218   : > { %v3027_v29 = vadd.f32 %v3026_v31, %v3004_v25  ;;  %v2962_v34 = vpop.f32.mrf.mxu0  ;;  %3386 = vmatpush.bf16.msrb.mxu3 %v5433_v63  ;;  %3318 = vmatpush.bf16.msrb.mxu0 %v5033_v50  ;;  %v5588_v25 = vld [vmem:[#allocation10 + $0x70] sm:$0xf]  ;;  %v6129_v31 = vld [vmem:[#allocation10 + $0x74] sm:$0xf0] }
 0x219   : > { %v2963_v44 = vadd.f32 %v2962_v34, %v6977_v60  ;;  %v2985_v55 = vpop.f32.mrf.mxu1  ;;  %3341 = vmatpush.bf16.msrb.mxu1 %v5161_v54  ;;  %v5289_v60 = vor.u32 %v6051_v51, %v5286_v18  ;;  %v5580_v34 = vld [vmem:[#allocation10 + $0x60] sm:$0xf]  ;;  %v5636_v50 = vld [vmem:[#allocation10 + $0xd0] sm:$0xf]  ;;  %v6141_v63 = vld [vmem:[#allocation10 + $0xd4] sm:$0xf0] }
 0x21a   : > { %v3412_v8 = vmul.f32 0.2, %v3027_v29  ;;  %v5564_v18 = vld [vmem:[#allocation10 + $0x40] sm:$0xf] }
 0x21b   : > { %v2986_v37 = vadd.f32 %v2985_v55, %v2963_v44  ;;  %3232 = vmatmul.bf16.gmra.mxu0 %v6757_v6  ;;  %3364 = vmatpush.bf16.msrb.mxu2 %v5289_v60  ;;  %v5581_v44 = vor.u32 %v6127_v62, %v5580_v34  ;;  %v6143_v55 = vld [vmem:[#allocation10 + $0xe4] sm:$0xf0]  ;;  %v5628_v60 = vld [vmem:[#allocation10 + $0xc0] sm:$0xf] }
 0x21c   : > { %3255 = vmatmul.bf16.gmra.mxu1 %v6759_v9  ;;  %3387 = vmatpush.bf16.msrb.mxu3 %v5417_v2  ;;  %v3432_v9 = vmax.f32 %v3027_v29, %v3412_v8  ;;  %v5645_v41 = vor.u32 %v6143_v55, %v5644_v48  ;;  %v6117_v55 = vld [vmem:[#allocation10 + $0x14] sm:$0xf0] }
 0x21d   : > { %v3005_v7 = vpop.f32.mrf.mxu2 }
 0x21e   : > { %v3006_v0 = vadd.f32 %v3005_v7, %v2983_v56  ;;  %v3028_v5 = vpop.f32.mrf.mxu3  ;;  %v6123_v7 = vld [vmem:[#allocation10 + $0x44] sm:$0xf0] }
 0x21f   : > { %v5565_v22 = vor.u32 %v6123_v7, %v5564_v18 }
 0x220   : > { %v3029_v12 = vadd.f32 %v3028_v5, %v3006_v0  ;;  %v2964_v57 = vpop.f32.mrf.mxu0  ;;  %v6161_v0 = vld [vmem:[#allocation10 + $0x174] sm:$0xf0] }
 0x221   : > { %v2987_v6 = vpop.f32.mrf.mxu1  ;;  %v5717_v8 = vor.u32 %v6161_v0, %v5716_v1  ;;  %v6121_v57 = vld [vmem:[#allocation10 + $0x34] sm:$0xf0]  ;;  %v6131_v1 = vld [vmem:[#allocation10 + $0x84] sm:$0xf0]  ;;  %v5684_v0 = vld [vmem:[#allocation10 + $0x130] sm:$0xf] }
 0x222   : > { %v3416_v30 = vmul.f32 0.2, %v3029_v12  ;;  %3278 = vmatmul.bf16.gmra.mxu2 %v6767_v38  ;;  %v5652_v38 = vld [vmem:[#allocation10 + $0xf0] sm:$0xf] }
 0x223   : > { %3301 = vmatmul.bf16.gmra.mxu3 %v6769_v40  ;;  %v5589_v40 = vor.u32 %v6129_v31, %v5588_v25  ;;  %v5653_v49 = vor.u32 %v6145_v45, %v5652_v38  ;;  %v5620_v6 = vld [vmem:[#allocation10 + $0xb0] sm:$0xf]  ;;  %3891 = vmatpush.bf16.msra.mxu2 %v5717_v8  ;;  %v6119_v38 = vld [vmem:[#allocation10 + $0x24] sm:$0xf0] }
 0x224   : > { %v3436_v16 = vmax.f32 %v3029_v12, %v3416_v30  ;;  %v5556_v12 = vld [vmem:[#allocation10 + $0x30] sm:$0xf] }
 0x225   : > { %v3008_v14 = vpop.f32.mrf.mxu2  ;;  %3845 = vmatpush.bf16.msra.mxu0 %v5589_v40  ;;  %3868 = vmatpush.bf16.msra.mxu1 %v5653_v49  ;;  %v5557_v30 = vor.u32 %v6121_v57, %v5556_v12  ;;  %v5612_v40 = vld [vmem:[#allocation10 + $0xa0] sm:$0xf]  ;;  %v5700_v49 = vld [vmem:[#allocation10 + $0x150] sm:$0xf] }
 0x226   : > { %v3009_v32 = vadd.f32 %v3008_v14, %v2986_v37  ;;  %v3031_v20 = vpop.f32.mrf.mxu3  ;;  %v7002_v15 = vpack.c.bf16 %v3436_v16, %v3432_v9  ;;  %v5637_v37 = vor.u32 %v6141_v63, %v5636_v50  ;;  %v6137_v9 = vld [vmem:[#allocation10 + $0xb4] sm:$0xf0]  ;;  %v5708_v16 = vld [vmem:[#allocation10 + $0x160] sm:$0xf]  ;;  %v6159_v14 = vld [vmem:[#allocation10 + $0x164] sm:$0xf0] }
 0x227   : > { %v5709_v25 = vor.u32 %v6159_v14, %v5708_v16  ;;  %v5692_v50 = vld [vmem:[#allocation10 + $0x140] sm:$0xf] }
 0x228   : > { %v7004_v56 = vadd.f32 %v3031_v20, %v3009_v32  ;;  %v7006_v21 = vpop.f32.mrf.mxu0  ;;  %v5621_v20 = vor.u32 %v6137_v9, %v5620_v6  ;;  %v5676_v6 = vld [vmem:[#allocation10 + $0x120] sm:$0xf] }
 0x229   : > { %v7008_v43 = vpop.f32.mrf.mxu1  ;;  %3846 = vmatpush.bf16.msra.mxu0 %v5581_v44  ;;  %3869 = vmatpush.bf16.msra.mxu1 %v5645_v41  ;;  %v5540_v44 = vld [vmem:[#allocation10 + $0x10] sm:$0xf] }
 0x22a   : > { %3892 = vmatpush.bf16.msra.mxu2 %v5709_v25  ;;  %v5604_v41 = vld [vmem:[#allocation10 + $0x90] sm:$0xf]  ;;  %v6149_v25 = vld [vmem:[#allocation10 + $0x114] sm:$0xf0] }
 0x22b   : > { %3237 = vmatmul.bf16.gmra.mxu0 %v6783_v4 }
 0x22c   : > { %3260 = vmatmul.bf16.gmra.mxu1 %v6775_v58  ;;  %v5572_v58 = vld [vmem:[#allocation10 + $0x50] sm:$0xf] }
 0x22d   : > { %v3010_v36 = vpop.f32.mrf.mxu2  ;;  %v5573_v47 = vor.u32 %v6125_v28, %v5572_v58  ;;  %3870 = vmatpush.bf16.msra.mxu1 %v5637_v37  ;;  %v5541_v58 = vor.u32 %v6117_v55, %v5540_v44  ;;  %v6133_v28 = vld [vmem:[#allocation10 + $0x94] sm:$0xf0] }
 0x22e   : > { %v3033_v29 = vpop.f32.mrf.mxu3  ;;  %v6135_v36 = vld [vmem:[#allocation10 + $0xa4] sm:$0xf0]  ;;  %v5605_v37 = vor.u32 %v6133_v28, %v5604_v41  ;;  %v6144_v28 = vld [vmem:[#allocation10 + $0xf4] sm:$0xf] }
 0x22f   : > { %3847 = vmatpush.bf16.msra.mxu0 %v5573_v47  ;;  %v6157_v29 = vld [vmem:[#allocation10 + $0x154] sm:$0xf0]  ;;  %v5613_v62 = vor.u32 %v6135_v36, %v5612_v40  ;;  %v6155_v47 = vld [vmem:[#allocation10 + $0x144] sm:$0xf0] }
 0x230   : > { %v7012_v59 = vpop.f32.mrf.mxu0  ;;  %v5701_v48 = vor.u32 %v6157_v29, %v5700_v49  ;;  %v5693_v18 = vor.u32 %v6155_v47, %v5692_v50  ;;  %v6147_v36 = vld [vmem:[#allocation10 + $0x104] sm:$0xf0]  ;;  %v5654_v47 = vld [vmem:[#allocation10 + $0xf8] sm:$0xf0] }
 0x231   : > { %v7014_v4 = vpop.f32.mrf.mxu1 }
 0x232   : > { %3283 = vmatmul.bf16.gmra.mxu2 %v6799_v27 }
 0x233   : > { %3306 = vmatmul.bf16.gmra.mxu3 %v6803_v33  ;;  %v6139_v33 = vld [vmem:[#allocation10 + $0xc4] sm:$0xf0]  ;;  %3848 = vmatpush.bf16.msra.mxu0 %v5565_v22 }
 0x234   : > { %v5629_v2 = vor.u32 %v6139_v33, %v5628_v60  ;;  %3893 = vmatpush.bf16.msra.mxu2 %v5701_v48  ;;  %v6115_v60 = vld [vmem:[#allocation10 + $0x4] sm:$0xf0] }
 0x235   : > { %v7018_v54 = vpop.f32.mrf.mxu2 }
 0x236   : > { %v7020_v51 = vpop.f32.mrf.mxu3  ;;  %3871 = vmatpush.bf16.msra.mxu1 %v5629_v2  ;;  %v6153_v2 = vld [vmem:[#allocation10 + $0x134] sm:$0xf0] }
 0x237   : > { %3849 = vmatpush.bf16.msra.mxu0 %v5557_v30  ;;  %v5685_v57 = vor.u32 %v6153_v2, %v5684_v0  ;;  %v6151_v30 = vld [vmem:[#allocation10 + $0x124] sm:$0xf0] }
 0x238   : > { %v7022_v27 = vpop.f32.mrf.mxu0  ;;  %3894 = vmatpush.bf16.msra.mxu2 %v5693_v18  ;;  %v5677_v9 = vor.u32 %v6151_v30, %v5676_v6  ;;  %v5657_v18 = vor.u32 %v6144_v28, %v5654_v47  ;;  %v6140_v6 = vld [vmem:[#allocation10 + $0xd4] sm:$0xf] }
 0x239   : > { %v7024_v5 = vpop.f32.mrf.mxu1  ;;  %v6136_v47 = vld [vmem:[#allocation10 + $0xb4] sm:$0xf] }
 0x23a   : > { %3872 = vmatpush.bf16.msra.mxu1 %v5621_v20  ;;  %v5668_v20 = vld [vmem:[#allocation10 + $0x110] sm:$0xf] }
 0x23b   : > { %3319 = vmatmul.bf16.vlgmr.msrb.gmra.mxu0 %v6819_v19  ;;  %v5548_v19 = vld [vmem:[#allocation10 + $0x20] sm:$0xf]  ;;  %v5669_v40 = vor.u32 %v6149_v25, %v5668_v20 }
 0x23c   : > { %3342 = vmatmul.bf16.vlgmr.msrb.gmra.mxu1 %v6821_v26  ;;  %v5549_v26 = vor.u32 %v6119_v38, %v5548_v19  ;;  %3895 = vmatpush.bf16.msra.mxu2 %v5685_v57  ;;  %v7055_v19 = vld [vmem:[%s7245_s4] sm:$0xf]  ;;  %v5574_v57 = vld [vmem:[#allocation10 + $0x58] sm:$0xf0] }
 0x23d   : > { %v7028_v32 = vpop.f32.mrf.mxu2 }
 0x23e   : > { %v7030_v31 = vpop.f32.mrf.mxu3  ;;  %3850 = vmatpush.bf16.msra.mxu0 %v5549_v26  ;;  %3873 = vmatpush.bf16.msra.mxu1 %v5613_v62  ;;  %v5660_v26 = vld [vmem:[#allocation10 + $0x100] sm:$0xf] }
 0x23f   : > { %v5661_v29 = vor.u32 %v6147_v36, %v5660_v26  ;;  %v6138_v26 = vld [vmem:[#allocation10 + $0xc4] sm:$0xf] }
 0x240   : > { %v7032_v45 = vpop.f32.mrf.mxu0  ;;  %3896 = vmatpush.bf16.msra.mxu2 %v5677_v9 }
 0x241   : > { %v7034_v34 = vpop.f32.mrf.mxu1 }
 0x242   : > { %3365 = vmatmul.bf16.vlgmr.msrb.gmra.mxu2 %v6835_v10  ;;  %3851 = vmatpush.bf16.msra.mxu0 %v5541_v58  ;;  %v5532_v10 = vld [vmem:[#allocation10] sm:$0xf]  ;;  %v5590_v58 = vld [vmem:[#allocation10 + $0x78] sm:$0xf0] }
 0x243   : > { %3388 = vmatmul.bf16.vlgmr.msrb.gmra.mxu3 %v6837_v17  ;;  %3874 = vmatpush.bf16.msra.mxu1 %v5605_v37  ;;  %v5596_v17 = vld [vmem:[#allocation10 + $0x80] sm:$0xf]  ;;  %v5533_v33 = vor.u32 %v6115_v60, %v5532_v10  ;;  %v5582_v60 = vld [vmem:[#allocation10 + $0x68] sm:$0xf0] }
 0x244   : > { %v5597_v12 = vor.u32 %v6131_v1, %v5596_v17  ;;  %3897 = vmatpush.bf16.msra.mxu2 %v5669_v40 }
 0x245   : > { %v7038_v63 = vpop.f32.mrf.mxu2 }
 0x246   : > { %v7040_v7 = vpop.f32.mrf.mxu3  ;;  %3852 = vmatpush.bf16.msra.mxu0 %v5533_v33 }
 0x247   : > { %3875 = vmatpush.bf16.msra.mxu1 %v5597_v12 }
 0x248   : > { %v7042_v22 = vpop.f32.mrf.mxu0  ;;  %3898 = vmatpush.bf16.msra.mxu2 %v5661_v29 }
 0x249   : > { %v7044_v8 = vpop.f32.mrf.mxu1 }
 0x24b   : > { %3324 = vmatmul.bf16.gmra.mxu0 %v6849_v3  ;;  %v7058_v3 = vperm.slane %v7055_v19, 2  ;;  %3960 = vmatpush.bf16.msrb.mxu1 %v5657_v18 }
 0x24c   : > { %3347 = vmatmul.bf16.gmra.mxu1 %v6851_v11 }
 0x24d   : > { %v7048_v16 = vpop.f32.mrf.mxu2  ;;  %v3045_v49 = vadd.f32 %v7006_v21, %v7058_v3  ;;  %v3047_v21 = vadd.f32 %v7012_v59, %v7058_v3  ;;  %v5646_v59 = vld [vmem:[#allocation10 + $0xe8] sm:$0xf0]  ;;  %v3052_v28 = vadd.f32 %v7032_v45, %v7058_v3 }
 0x24e   : > { %v7050_v14 = vpop.f32.mrf.mxu3 }
 0x24f   : > { %v3068_v44 = vadd.f32 %v7008_v43, %v3045_v49  ;;  %v3070_v17 = vadd.f32 %v7014_v4, %v3047_v21  ;;  %v5638_v4 = vld [vmem:[#allocation10 + $0xd8] sm:$0xf0]  ;;  %v6120_v21 = vld [vmem:[#allocation10 + $0x34] sm:$0xf] }
 0x250   : > { %v3056_v38 = vpop.f32.mrf.mxu0  ;;  %v5641_v25 = vor.u32 %v6140_v6, %v5638_v4  ;;  %v5614_v6 = vld [vmem:[#allocation10 + $0xa8] sm:$0xf0] }
 0x251   : > { %v3079_v11 = vpop.f32.mrf.mxu1  ;;  %v3093_v12 = vadd.f32 %v7028_v32, %v3070_v17  ;;  %v3050_v38 = vadd.f32 %v7022_v27, %v7058_v3 }
 0x252   : > { %3370 = vmatmul.bf16.gmra.mxu2 %v6859_v39  ;;  %v3091_v39 = vadd.f32 %v7018_v54, %v3068_v44  ;;  %v6126_v54 = vld [vmem:[#allocation10 + $0x64] sm:$0xf]  ;;  %v5630_v44 = vld [vmem:[#allocation10 + $0xc8] sm:$0xf0] }
 0x253   : > { %3393 = vmatmul.bf16.gmra.mxu3 %v6861_v46  ;;  %v6128_v46 = vld [vmem:[#allocation10 + $0x74] sm:$0xf]  ;;  %v5585_v0 = vor.u32 %v6126_v54, %v5582_v60  ;;  %v3116_v40 = vadd.f32 %v7030_v31, %v3093_v12  ;;  %v3073_v27 = vadd.f32 %v7024_v5, %v3050_v38  ;;  %v6158_v5 = vld [vmem:[#allocation10 + $0x164] sm:$0xf]  ;;  %v5710_v54 = vld [vmem:[#allocation10 + $0x168] sm:$0xf0] }
 0x254   : > { %v5593_v50 = vor.u32 %v6128_v46, %v5590_v58  ;;  %v3114_v43 = vadd.f32 %v7020_v51, %v3091_v39  ;;  %v6124_v51 = vld [vmem:[#allocation10 + $0x54] sm:$0xf]  ;;  %v5633_v46 = vor.u32 %v6138_v26, %v5630_v44  ;;  %v5713_v17 = vor.u32 %v6158_v5, %v5710_v54  ;;  %v6154_v44 = vld [vmem:[#allocation10 + $0x144] sm:$0xf] }
 0x255   : > { %v7064_v62 = vpop.f32.mrf.mxu2  ;;  %v5577_v9 = vor.u32 %v6124_v51, %v5574_v57 }
 0x256   : > { %v7066_v48 = vpop.f32.mrf.mxu3  ;;  %3937 = vmatpush.bf16.msrb.mxu0 %v5593_v50  ;;  %v5558_v50 = vld [vmem:[#allocation10 + $0x38] sm:$0xf0] }
 0x258   : > { %v3136_v55 = vpop.f32.mrf.mxu0 }
 0x259   : > { %v3159_v41 = vpop.f32.mrf.mxu1  ;;  %v3137_v33 = vadd.f32 %v3136_v55, %v3114_v43  ;;  %v6160_v55 = vld [vmem:[#allocation10 + $0x174] sm:$0xf]  ;;  %v5561_v43 = vor.u32 %v6120_v21, %v5558_v50 }
 0x25a   : > { %3938 = vmatpush.bf16.msrb.mxu0 %v5585_v0  ;;  %v6118_v0 = vld [vmem:[#allocation10 + $0x24] sm:$0xf] }
 0x25b   : > { %3329 = vmatmul.bf16.gmra.mxu0 %v6867_v23  ;;  %v6142_v23 = vld [vmem:[#allocation10 + $0xe4] sm:$0xf]  ;;  %v3160_v30 = vadd.f32 %v3159_v41, %v3137_v33  ;;  %v5718_v41 = vld [vmem:[#allocation10 + $0x178] sm:$0xf0] }
 0x25c   : > { %3352 = vmatmul.bf16.gmra.mxu1 %v6869_v24  ;;  %v5649_v24 = vor.u32 %v6142_v23, %v5646_v59  ;;  %v5721_v58 = vor.u32 %v6160_v55, %v5718_v41  ;;  %v5550_v59 = vld [vmem:[#allocation10 + $0x28] sm:$0xf0] }
 0x25d   : > { %v3102_v37 = vpop.f32.mrf.mxu2  ;;  %v5553_v57 = vor.u32 %v6118_v0, %v5550_v59  ;;  %v5694_v55 = vld [vmem:[#allocation10 + $0x148] sm:$0xf0] }
 0x25e   : > { %v3125_v10 = vpop.f32.mrf.mxu3  ;;  %3961 = vmatpush.bf16.msrb.mxu1 %v5649_v24  ;;  %3939 = vmatpush.bf16.msrb.mxu0 %v5577_v9  ;;  %v3096_v37 = vadd.f32 %v7038_v63, %v3073_v27  ;;  %v6134_v24 = vld [vmem:[#allocation10 + $0xa4] sm:$0xf]  ;;  %v3075_v63 = vadd.f32 %v7034_v34, %v3052_v28  ;;  %v5702_v9 = vld [vmem:[#allocation10 + $0x158] sm:$0xf0] }
 0x25f   : > { %3983 = vmatpush.bf16.msrb.mxu2 %v5721_v58  ;;  %v5622_v10 = vld [vmem:[#allocation10 + $0xb8] sm:$0xf0] }
 0x260   : > { %v3138_v1 = vpop.f32.mrf.mxu0  ;;  %v5625_v23 = vor.u32 %v6136_v47, %v5622_v10  ;;  %v3098_v38 = vadd.f32 %v7048_v16, %v3075_v63  ;;  %v5542_v34 = vld [vmem:[#allocation10 + $0x18] sm:$0xf0]  ;;  %v5697_v16 = vor.u32 %v6154_v44, %v5694_v55  ;;  %v6148_v63 = vld [vmem:[#allocation10 + $0x114] sm:$0xf]  ;;  %v5780_v44 = vld [vmem:[#allocation10 + $0x1f0] sm:$0xf] }
 0x261   : > { %v3161_v2 = vpop.f32.mrf.mxu1  ;;  %v3139_v36 = vadd.f32 %v3138_v1, %v3116_v40  ;;  %v5686_v10 = vld [vmem:[#allocation10 + $0x138] sm:$0xf0]  ;;  %v6177_v55 = vld [vmem:[#allocation10 + $0x1f4] sm:$0xf0] }
 0x262   : > { %3375 = vmatmul.bf16.gmra.mxu2 %v6875_v53  ;;  %3962 = vmatpush.bf16.msrb.mxu1 %v5641_v25  ;;  %v6122_v53 = vld [vmem:[#allocation10 + $0x44] sm:$0xf] }
 0x263   : > { %3398 = vmatmul.bf16.gmra.mxu3 %v6873_v52  ;;  %v5566_v52 = vld [vmem:[#allocation10 + $0x48] sm:$0xf0]  ;;  %v3162_v18 = vadd.f32 %v3161_v2, %v3139_v36  ;;  %v3119_v2 = vadd.f32 %v7040_v7, %v3096_v37  ;;  %3984 = vmatpush.bf16.msrb.mxu2 %v5713_v17  ;;  %v3055_v7 = vadd.f32 %v7042_v22, %v7058_v3  ;;  %v6114_v22 = vld [vmem:[#allocation10 + $0x4] sm:$0xf] }
 0x264   : > { %v5569_v29 = vor.u32 %v6122_v53, %v5566_v52  ;;  %v6132_v53 = vld [vmem:[#allocation10 + $0x94] sm:$0xf]  ;;  %v5534_v3 = vld [vmem:[#allocation10 + $0x8] sm:$0xf0] }
 0x265   : > { %v3182_v20 = vpop.f32.mrf.mxu2  ;;  %v3078_v21 = vadd.f32 %v7044_v8, %v3055_v7  ;;  %v6150_v8 = vld [vmem:[#allocation10 + $0x124] sm:$0xf] }
 0x266   : > { %v3183_v32 = vadd.f32 %v3182_v20, %v3160_v30  ;;  %v3205_v11 = vpop.f32.mrf.mxu3  ;;  %3940 = vmatpush.bf16.msrb.mxu0 %v5569_v29  ;;  %3963 = vmatpush.bf16.msrb.mxu1 %v5633_v46  ;;  %v6156_v30 = vld [vmem:[#allocation10 + $0x154] sm:$0xf]  ;;  %v5617_v20 = vor.u32 %v6134_v24, %v5614_v6  ;;  %v5606_v29 = vld [vmem:[#allocation10 + $0x98] sm:$0xf0]  ;;  %v3419_v6 = vmul.f32 0.2, %v6950_v42 }
 0x267   : > { %v5705_v25 = vor.u32 %v6156_v30, %v5702_v9  ;;  %v5609_v46 = vor.u32 %v6132_v53, %v5606_v29 }
 0x268   : > { %v3141_v49 = vpop.f32.mrf.mxu0  ;;  %v3206_v31 = vadd.f32 %v3205_v11, %v3183_v32  ;;  %v6116_v11 = vld [vmem:[#allocation10 + $0x14] sm:$0xf] }
 0x269   : > { %v7082_v39 = vpop.f32.mrf.mxu1  ;;  %v3142_v40 = vadd.f32 %v3141_v49, %v3119_v2  ;;  %3985 = vmatpush.bf16.msrb.mxu2 %v5705_v25  ;;  %v5545_v36 = vor.u32 %v6116_v11, %v5542_v34  ;;  %v3121_v49 = vadd.f32 %v7050_v14, %v3098_v38  ;;  %v6152_v14 = vld [vmem:[#allocation10 + $0x134] sm:$0xf]  ;;  %v5670_v2 = vld [vmem:[#allocation10 + $0x118] sm:$0xf0]  ;;  %v6146_v25 = vld [vmem:[#allocation10 + $0x104] sm:$0xf]  ;;  %v3439_v11 = vmax.f32 %v6950_v42, %v3419_v6 }
 0x26a   : > { %v3405_v45 = vmul.f32 0.2, %v3206_v31  ;;  %3941 = vmatpush.bf16.msrb.mxu0 %v5561_v43  ;;  %3964 = vmatpush.bf16.msrb.mxu1 %v5625_v23  ;;  %v5598_v43 = vld [vmem:[#allocation10 + $0x88] sm:$0xf0]  ;;  %v5689_v54 = vor.u32 %v6152_v14, %v5686_v10  ;;  %v5673_v9 = vor.u32 %v6148_v63, %v5670_v2  ;;  %v5781_v42 = vor.u32 %v6177_v55, %v5780_v44  ;;  %v6165_v6 = vld [vmem:[#allocation10 + $0x194] sm:$0xf0] }
 0x26b   : > { %3853 = vmatmul.bf16.vlgmr.msra.gmra.mxu0 %v6938_v61  ;;  %v3165_v58 = vadd.f32 %v7082_v39, %v3142_v40  ;;  %v5678_v23 = vld [vmem:[#allocation10 + $0x128] sm:$0xf0] }
 0x26c   : > { %3876 = vmatmul.bf16.vlgmr.msra.gmra.mxu1 %v6995_v13  ;;  %v3425_v52 = vmax.f32 %v3206_v31, %v3405_v45  ;;  %v6130_v31 = vld [vmem:[#allocation10 + $0x84] sm:$0xf]  ;;  %v5662_v38 = vld [vmem:[#allocation10 + $0x108] sm:$0xf0]  ;;  %3914 = vmatpush.bf16.msra.mxu3 %v5781_v42 }
 0x26d   : > { %v3184_v60 = vpop.f32.mrf.mxu2  ;;  %3986 = vmatpush.bf16.msrb.mxu2 %v5697_v16  ;;  %v5601_v5 = vor.u32 %v6130_v31, %v5598_v43  ;;  %v5665_v53 = vor.u32 %v6146_v25, %v5662_v38  ;;  %v6175_v31 = vld [vmem:[#allocation10 + $0x1e4] sm:$0xf0]  ;;  %v7155_v25 = vperm.slane %v7055_v19, 3 }
 0x26e   : > { %v3185_v33 = vadd.f32 %v3184_v60, %v3162_v18  ;;  %v3207_v1 = vpop.f32.mrf.mxu3  ;;  %3942 = vmatpush.bf16.msrb.mxu0 %v5553_v57  ;;  %3965 = vmatpush.bf16.msrb.mxu1 %v5617_v20  ;;  %v5537_v18 = vor.u32 %v6114_v22, %v5534_v3  ;;  %v3101_v60 = vadd.f32 %v7064_v62, %v3078_v21  ;;  %v5772_v3 = vld [vmem:[#allocation10 + $0x1e0] sm:$0xf]  ;;  %v6163_v38 = vld [vmem:[#allocation10 + $0x184] sm:$0xf0] }
 0x270   : > { %v3208_v12 = vadd.f32 %v3207_v1, %v3185_v33  ;;  %v3143_v51 = vpop.f32.mrf.mxu0  ;;  %v5681_v1 = vor.u32 %v6150_v8, %v5678_v23  ;;  %v3124_v0 = vadd.f32 %v7066_v48, %v3101_v60  ;;  %v5756_v60 = vld [vmem:[#allocation10 + $0x1c0] sm:$0xf]  ;;  %v6171_v8 = vld [vmem:[#allocation10 + $0x1c4] sm:$0xf0] }
 0x271   : > { %v3166_v4 = vpop.f32.mrf.mxu1  ;;  %v3144_v50 = vadd.f32 %v3143_v51, %v3121_v49  ;;  %3987 = vmatpush.bf16.msrb.mxu2 %v5689_v54  ;;  %v5757_v23 = vor.u32 %v6171_v8, %v5756_v60 }
 0x272   : > { %v3409_v32 = vmul.f32 0.2, %v3208_v12  ;;  %3943 = vmatpush.bf16.msrb.mxu0 %v5545_v36  ;;  %3966 = vmatpush.bf16.msrb.mxu1 %v5609_v46 }
 0x273   : > { %v3167_v17 = vadd.f32 %v3166_v4, %v3144_v50  ;;  %v3420_v4 = vmul.f32 0.2, %v7004_v56  ;;  %v5773_v50 = vor.u32 %v6175_v31, %v5772_v3  ;;  %v6172_v3 = vld [vmem:[#allocation10 + $0x1d4] sm:$0xf] }
 0x274   : > { %v3429_v26 = vmax.f32 %v3208_v12, %v3409_v32 }
 0x275   : > { %v3187_v41 = vpop.f32.mrf.mxu2  ;;  %3988 = vmatpush.bf16.msrb.mxu2 %v5681_v1  ;;  %v3440_v7 = vmax.f32 %v7004_v56, %v3420_v4  ;;  %3915 = vmatpush.bf16.msra.mxu3 %v5773_v50  ;;  %v6169_v1 = vld [vmem:[#allocation10 + $0x1b4] sm:$0xf0]  ;;  %v5766_v50 = vld [vmem:[#allocation10 + $0x1d8] sm:$0xf0] }
 0x276   : > { %v7097_v27 = vpack.c.bf16 %v3429_v26, %v3425_v52  ;;  %v3210_v28 = vpop.f32.mrf.mxu3  ;;  %v3188_v47 = vadd.f32 %v3187_v41, %v3165_v58  ;;  %3944 = vmatpush.bf16.msrb.mxu0 %v5537_v18  ;;  %3967 = vmatpush.bf16.msrb.mxu1 %v5601_v5  ;;  %v7114_v41 = vpack.c.bf16 %v3439_v11, %v3439_v11 }
 0x277   : > { %v7118_v16 = vpack.c.bf16 %v3440_v7, %v3440_v7 }
 0x278   : > { %3899 = vmatmul.bf16.vlgmr.msra.gmra.mxu2 %v7097_v27  ;;  %v3146_v37 = vpop.f32.mrf.mxu0  ;;  %v3211_v45 = vadd.f32 %v3210_v28, %v3188_v47  ;;  %v5764_v47 = vld [vmem:[#allocation10 + $0x1d0] sm:$0xf] }
 0x279   : > { %v3169_v39 = vpop.f32.mrf.mxu1  ;;  %v3147_v12 = vadd.f32 %v3146_v37, %v3124_v0  ;;  %3989 = vmatpush.bf16.msrb.mxu2 %v5673_v9  ;;  %v6173_v37 = vld [vmem:[#allocation10 + $0x1d4] sm:$0xf0] }
 0x27a   : > { %v3413_v62 = vmul.f32 0.2, %v3211_v45  ;;  %v5765_v43 = vor.u32 %v6173_v37, %v5764_v47 }
 0x27b   : > { %3858 = vmatmul.bf16.gmra.mxu0 %v6948_v35  ;;  %v3170_v48 = vadd.f32 %v3169_v39, %v3147_v12  ;;  %v6167_v12 = vld [vmem:[#allocation10 + $0x1a4] sm:$0xf0] }
 0x27c   : > { %3881 = vmatmul.bf16.gmra.mxu1 %v7002_v15  ;;  %v3433_v40 = vmax.f32 %v3211_v45, %v3413_v62  ;;  %3916 = vmatpush.bf16.msra.mxu3 %v5765_v43  ;;  %v5740_v62 = vld [vmem:[#allocation10 + $0x1a0] sm:$0xf]  ;;  %v5769_v43 = vor.u32 %v6172_v3, %v5766_v50 }
 0x27d   : > { %v3189_v33 = vpop.f32.mrf.mxu2  ;;  %3990 = vmatpush.bf16.msrb.mxu2 %v5665_v53 }
 0x27e   : > { %v3190_v59 = vadd.f32 %v3189_v33, %v3167_v17  ;;  %v3212_v24 = vpop.f32.mrf.mxu3  ;;  %v5748_v33 = vld [vmem:[#allocation10 + $0x1b0] sm:$0xf] }
 0x27f   : > { %v5749_v0 = vor.u32 %v6169_v1, %v5748_v33 }
 0x280   : > { %v3213_v51 = vadd.f32 %v3212_v24, %v3190_v59  ;;  %v3148_v57 = vpop.f32.mrf.mxu0  ;;  %3917 = vmatpush.bf16.msra.mxu3 %v5757_v23 }
 0x281   : > { %v3171_v30 = vpop.f32.mrf.mxu1  ;;  %v5732_v57 = vld [vmem:[#allocation10 + $0x190] sm:$0xf] }
 0x282   : > { %v3417_v20 = vmul.f32 0.2, %v3213_v51  ;;  %v5733_v4 = vor.u32 %v6165_v6, %v5732_v57 }
 0x284   : > { %v3437_v32 = vmax.f32 %v3213_v51, %v3417_v20  ;;  %3918 = vmatpush.bf16.msra.mxu3 %v5749_v0  ;;  %v5741_v51 = vor.u32 %v6167_v12, %v5740_v62  ;;  %v6170_v62 = vld [vmem:[#allocation10 + $0x1c4] sm:$0xf]  ;;  %v5758_v12 = vld [vmem:[#allocation10 + $0x1c8] sm:$0xf0] }
 0x285   : > { %v3192_v34 = vpop.f32.mrf.mxu2  ;;  %v5761_v57 = vor.u32 %v6170_v62, %v5758_v12 }
 0x286   : > { %v3193_v52 = vadd.f32 %v3192_v34, %v3170_v48  ;;  %v3215_v26 = vpop.f32.mrf.mxu3  ;;  %v7109_v36 = vpack.c.bf16 %v3437_v32, %v3433_v40 }
 0x288   : > { %3904 = vmatmul.bf16.gmra.mxu2 %v7109_v36  ;;  %v7112_v29 = vpop.f32.mrf.mxu0  ;;  %v3216_v49 = vadd.f32 %v3215_v26, %v3193_v52  ;;  %3919 = vmatpush.bf16.msra.mxu3 %v5741_v51  ;;  %v6176_v52 = vld [vmem:[#allocation10 + $0x1f4] sm:$0xf]  ;;  %v5782_v26 = vld [vmem:[#allocation10 + $0x1f8] sm:$0xf0] }
 0x289   : > { %v7116_v46 = vpop.f32.mrf.mxu1  ;;  %v5785_v44 = vor.u32 %v6176_v52, %v5782_v26  ;;  %v6168_v51 = vld [vmem:[#allocation10 + $0x1b4] sm:$0xf] }
 0x28a   : > { %v3421_v58 = vmul.f32 0.2, %v3216_v49 }
 0x28b   : > { %3863 = vmatmul.bf16.gmra.mxu0 %v7114_v41 }
 0x28c   : > { %3886 = vmatmul.bf16.gmra.mxu1 %v7118_v16  ;;  %v3441_v18 = vmax.f32 %v3216_v49, %v3421_v58  ;;  %3920 = vmatpush.bf16.msra.mxu3 %v5733_v4 }
 0x28d   : > { %v3194_v56 = vpop.f32.mrf.mxu2 }
 0x28e   : > { %v3217_v28 = vpop.f32.mrf.mxu3  ;;  %v7126_v10 = vpack.c.bf16 %v3441_v18, %v3441_v18 }
 0x28f   : > { %v5774_v28 = vld [vmem:[#allocation10 + $0x1e8] sm:$0xf0] }
 0x290   : > { %v7122_v22 = vpop.f32.mrf.mxu0 }
 0x291   : > { %v7124_v21 = vpop.f32.mrf.mxu1  ;;  %v3231_v19 = vadd.f32 %v7122_v22, %v7155_v25 }
 0x295   : > { %v3274_v14 = vpop.f32.mrf.mxu2 }
 0x296   : > { %v3297_v39 = vpop.f32.mrf.mxu3 }
 0x298   : > { %3909 = vmatmul.bf16.gmra.mxu2 %v7126_v10  ;;  %v7129_v5 = vpop.f32.mrf.mxu0 }
 0x299   : > { %v7131_v54 = vpop.f32.mrf.mxu1 }
 0x29b   : > { %3945 = vmatmul.bf16.vlgmr.msrb.gmra.mxu0 %v6938_v61 }
 0x29c   : > { %3968 = vmatmul.bf16.vlgmr.msrb.gmra.mxu1 %v6995_v13 }
 0x29d   : > { %v3276_v17 = vpop.f32.mrf.mxu2 }
 0x29e   : > { %v3299_v45 = vpop.f32.mrf.mxu3 }
 0x2a0   : > { %v7135_v59 = vpop.f32.mrf.mxu0 }
 0x2a1   : > { %v7137_v24 = vpop.f32.mrf.mxu1  ;;  %v3236_v23 = vadd.f32 %v7135_v59, %v7155_v25 }
 0x2a3   : > { %v3259_v6 = vadd.f32 %v7137_v24, %v3236_v23 }
 0x2a5   : > { %v7139_v63 = vpop.f32.mrf.mxu2 }
 0x2a6   : > { %v7141_v2 = vpop.f32.mrf.mxu3 }
 0x2a8   : > { %3991 = vmatmul.bf16.vlgmr.msrb.gmra.mxu2 %v7097_v27  ;;  %v7144_v61 = vpop.f32.mrf.mxu0 }
 0x2a9   : > { %v7146_v13 = vpop.f32.mrf.mxu1 }
 0x2ab   : > { %3950 = vmatmul.bf16.gmra.mxu0 %v6948_v35  ;;  %v5724_v35 = vld [vmem:[#allocation10 + $0x180] sm:$0xf] }
 0x2ac   : > { %3973 = vmatmul.bf16.gmra.mxu1 %v7002_v15  ;;  %v5725_v40 = vor.u32 %v6163_v38, %v5724_v35  ;;  %v3229_v15 = vadd.f32 %v7112_v29, %v7155_v25 }
 0x2ad   : > { %v7150_v30 = vpop.f32.mrf.mxu2 }
 0x2ae   : > { %v7152_v9 = vpop.f32.mrf.mxu3  ;;  %3921 = vmatpush.bf16.msra.mxu3 %v5725_v40  ;;  %v3252_v53 = vadd.f32 %v7116_v46, %v3229_v15  ;;  %v3282_v35 = vadd.f32 %v7150_v30, %v3259_v6  ;;  %v6166_v15 = vld [vmem:[#allocation10 + $0x1a4] sm:$0xf] }
 0x2b0   : > { %v3240_v27 = vpop.f32.mrf.mxu0  ;;  %v3275_v7 = vadd.f32 %v3274_v14, %v3252_v53 }
 0x2b1   : > { %v3263_v20 = vpop.f32.mrf.mxu1 }
 0x2b2   : > { %4006 = vmatpush.bf16.msrb.mxu3 %v5785_v44  ;;  %v3298_v42 = vadd.f32 %v3297_v39, %v3275_v7  ;;  %v3305_v7 = vadd.f32 %v7152_v9, %v3282_v35 }
 0x2b5   : > { %v7157_v48 = vpop.f32.mrf.mxu2 }
 0x2b6   : > { %v7161_v32 = vpop.f32.mrf.mxu3 }
 0x2b8   : > { %3996 = vmatmul.bf16.gmra.mxu2 %v7109_v36  ;;  %v3320_v11 = vpop.f32.mrf.mxu0  ;;  %v3254_v36 = vadd.f32 %v7124_v21, %v3231_v19 }
 0x2b9   : > { %v3343_v34 = vpop.f32.mrf.mxu1  ;;  %v3321_v58 = vadd.f32 %v3320_v11, %v3298_v42  ;;  %v5742_v11 = vld [vmem:[#allocation10 + $0x1a8] sm:$0xf0] }
 0x2ba   : > { %v3277_v46 = vadd.f32 %v3276_v17, %v3254_v36 }
 0x2bb   : > { %3955 = vmatmul.bf16.gmra.mxu0 %v7114_v41  ;;  %v6174_v41 = vld [vmem:[#allocation10 + $0x1e4] sm:$0xf]  ;;  %v3344_v37 = vadd.f32 %v3343_v34, %v3321_v58  ;;  %v3239_v34 = vadd.f32 %v7144_v61, %v7155_v25 }
 0x2bc   : > { %3978 = vmatmul.bf16.gmra.mxu1 %v7118_v16  ;;  %v5777_v31 = vor.u32 %v6174_v41, %v5774_v28  ;;  %v3234_v16 = vadd.f32 %v7129_v5, %v7155_v25  ;;  %v3300_v47 = vadd.f32 %v3299_v45, %v3277_v46  ;;  %v5734_v46 = vld [vmem:[#allocation10 + $0x198] sm:$0xf0] }
 0x2bd   : > { %v3286_v29 = vpop.f32.mrf.mxu2  ;;  %v3262_v30 = vadd.f32 %v7146_v13, %v3239_v34 }
 0x2be   : > { %v3309_v55 = vpop.f32.mrf.mxu3  ;;  %4007 = vmatpush.bf16.msrb.mxu3 %v5777_v31  ;;  %v3257_v8 = vadd.f32 %v7131_v54, %v3234_v16 }
 0x2bf   : > { %v3285_v61 = vadd.f32 %v7157_v48, %v3262_v30  ;;  %v3519_v48 = vld [vmem:[%s7247_s6] sm:$0x3] }
 0x2c0   : > { %v3322_v49 = vpop.f32.mrf.mxu0  ;;  %v3280_v17 = vadd.f32 %v7139_v63, %v3257_v8 }
 0x2c1   : > { %v3345_v56 = vpop.f32.mrf.mxu1  ;;  %v3323_v21 = vadd.f32 %v3322_v49, %v3300_v47  ;;  %v3308_v41 = vadd.f32 %v7161_v32, %v3285_v61 }
 0x2c2   : > { %4008 = vmatpush.bf16.msrb.mxu3 %v5769_v43  ;;  %v3303_v54 = vadd.f32 %v7141_v2, %v3280_v17  ;;  %v5745_v2 = vor.u32 %v6166_v15, %v5742_v11 }
 0x2c3   : > { %v3346_v5 = vadd.f32 %v3345_v56, %v3323_v21  ;;  %v6164_v56 = vld [vmem:[#allocation10 + $0x194] sm:$0xf] }
 0x2c4   : > { %v5737_v58 = vor.u32 %v6164_v56, %v5734_v46 }
 0x2c5   : > { %v3366_v22 = vpop.f32.mrf.mxu2 }
 0x2c6   : > { %v3389_v18 = vpop.f32.mrf.mxu3  ;;  %v3367_v14 = vadd.f32 %v3366_v22, %v3344_v37  ;;  %4009 = vmatpush.bf16.msrb.mxu3 %v5761_v57  ;;  %v6162_v37 = vld [vmem:[#allocation10 + $0x184] sm:$0xf] }
 0x2c8   : > { %4001 = vmatmul.bf16.gmra.mxu2 %v7126_v10  ;;  %v3325_v39 = vpop.f32.mrf.mxu0  ;;  %v3390_v45 = vadd.f32 %v3389_v18, %v3367_v14  ;;  %v5750_v10 = vld [vmem:[#allocation10 + $0x1b8] sm:$0xf0]  ;;  %v5726_v18 = vld [vmem:[#allocation10 + $0x188] sm:$0xf0] }
 0x2c9   : > { %v3348_v60 = vpop.f32.mrf.mxu1  ;;  %v5753_v63 = vor.u32 %v6168_v51, %v5750_v10  ;;  %v3326_v38 = vadd.f32 %v3325_v39, %v3303_v54  ;;  %v5729_v39 = vor.u32 %v6162_v37, %v5726_v18 }
 0x2ca   : > { %v3406_v4 = vmul.f32 0.2, %v3390_v45 }
 0x2cb   : > { %4010 = vmatpush.bf16.msrb.mxu3 %v5753_v63  ;;  %v3349_v52 = vadd.f32 %v3348_v60, %v3326_v38  ;;  %v3521_v60 = vperm.slane %v3519_v48, 0 }
 0x2cc   : > { %v3426_v53 = vmax.f32 %v3390_v45, %v3406_v4 }
 0x2cd   : > { %v3368_v33 = vpop.f32.mrf.mxu2 }
 0x2ce   : > { %v3369_v1 = vadd.f32 %v3368_v33, %v3346_v5  ;;  %v3391_v0 = vpop.f32.mrf.mxu3 }
 0x2cf   : > { %4011 = vmatpush.bf16.msrb.mxu3 %v5745_v2 }
 0x2d0   : > { %v3392_v27 = vadd.f32 %v3391_v0, %v3369_v1  ;;  %v3327_v20 = vpop.f32.mrf.mxu0 }
 0x2d1   : > { %v3350_v59 = vpop.f32.mrf.mxu1  ;;  %v3328_v44 = vadd.f32 %v3327_v20, %v3305_v7 }
 0x2d2   : > { %v3410_v40 = vmul.f32 0.2, %v3392_v27 }
 0x2d3   : > { %v3351_v25 = vadd.f32 %v3350_v59, %v3328_v44  ;;  %4012 = vmatpush.bf16.msrb.mxu3 %v5737_v58 }
 0x2d4   : > { %v3430_v19 = vmax.f32 %v3392_v27, %v3410_v40 }
 0x2d5   : > { %v3371_v24 = vpop.f32.mrf.mxu2 }
 0x2d6   : > { %v7183_v26 = vpack.c.bf16 %v3430_v19, %v3426_v53  ;;  %v3394_v29 = vpop.f32.mrf.mxu3  ;;  %v3372_v55 = vadd.f32 %v3371_v24, %v3349_v52 }
 0x2d7   : > { %4013 = vmatpush.bf16.msrb.mxu3 %v5729_v39 }
 0x2d8   : > { %3922 = vmatmul.bf16.vlgmr.msra.gmra.mxu3 %v7183_v26  ;;  %v3330_v36 = vpop.f32.mrf.mxu0  ;;  %v3395_v49 = vadd.f32 %v3394_v29, %v3372_v55 }
 0x2d9   : > { %v3353_v42 = vpop.f32.mrf.mxu1  ;;  %v3331_v22 = vadd.f32 %v3330_v36, %v3308_v41 }
 0x2da   : > { %v3414_v13 = vmul.f32 0.2, %v3395_v49 }
 0x2db   : > { %v3354_v21 = vadd.f32 %v3353_v42, %v3331_v22 }
 0x2dc   : > { %v3434_v43 = vmax.f32 %v3395_v49, %v3414_v13 }
 0x2dd   : > { %v3373_v9 = vpop.f32.mrf.mxu2 }
 0x2de   : > { %v3374_v28 = vadd.f32 %v3373_v9, %v3351_v25  ;;  %v3396_v3 = vpop.f32.mrf.mxu3  ;;  %v3522_v25 = vperm.slane %v3519_v48, 1 }
 0x2e0   : > { %v3397_v31 = vadd.f32 %v3396_v3, %v3374_v28  ;;  %v3332_v50 = vpop.f32.mrf.mxu0 }
 0x2e1   : > { %v3355_v16 = vpop.f32.mrf.mxu1 }
 0x2e2   : > { %v3418_v47 = vmul.f32 0.2, %v3397_v31 }
 0x2e4   : > { %v3438_v14 = vmax.f32 %v3397_v31, %v3418_v47 }
 0x2e5   : > { %v3376_v32 = vpop.f32.mrf.mxu2 }
 0x2e6   : > { %v3377_v8 = vadd.f32 %v3376_v32, %v3354_v21  ;;  %v3399_v23 = vpop.f32.mrf.mxu3  ;;  %v3450_v17 = vpack.c.bf16 %v3438_v14, %v3434_v43 }
 0x2e8   : > { %3927 = vmatmul.bf16.gmra.mxu3 %v3450_v17  ;;  %v3854_v5 = vpop.f32.mrf.mxu0  ;;  %v3400_v1 = vadd.f32 %v3399_v23, %v3377_v8 }
 0x2e9   : > { %v3855_v45 = vadd.f32 %v3854_v5, %v3521_v60  ;;  %v3877_v33 = vpop.f32.mrf.mxu1 }
 0x2ea   : > { %v3422_v12 = vmul.f32 0.2, %v3400_v1 }
 0x2eb   : > { %v3878_v0 = vadd.f32 %v3877_v33, %v3855_v45 }
 0x2ec   : > { %v3442_v54 = vmax.f32 %v3400_v1, %v3422_v12 }
 0x2ed   : > { %v3378_v62 = vpop.f32.mrf.mxu2 }
 0x2ee   : > { %v3401_v51 = vpop.f32.mrf.mxu3  ;;  %v3454_v27 = vpack.c.bf16 %v3442_v54, %v3442_v54 }
 0x2f0   : > { %v3856_v57 = vpop.f32.mrf.mxu0 }
 0x2f1   : > { %v3857_v10 = vadd.f32 %v3856_v57, %v3521_v60  ;;  %v3879_v6 = vpop.f32.mrf.mxu1 }
 0x2f3   : > { %v3880_v4 = vadd.f32 %v3879_v6, %v3857_v10 }
 0x2f8   : > { %3932 = vmatmul.bf16.gmra.mxu3 %v3454_v27  ;;  %v3859_v20 = vpop.f32.mrf.mxu0 }
 0x2f9   : > { %v3860_v59 = vadd.f32 %v3859_v20, %v3521_v60  ;;  %v3882_v63 = vpop.f32.mrf.mxu1 }
 0x2fb   : > { %v3883_v35 = vadd.f32 %v3882_v63, %v3860_v59  ;;  %v3900_v38 = vpop.f32.mrf.mxu2 }
 0x2fc   : > { %v7192_v40 = vadd.f32 %v3900_v38, %v3878_v0 }
 0x300   : > { %v3861_v15 = vpop.f32.mrf.mxu0 }
 0x301   : > { %v3862_v11 = vadd.f32 %v3861_v15, %v3521_v60  ;;  %v3884_v34 = vpop.f32.mrf.mxu1 }
 0x303   : > { %v3885_v53 = vadd.f32 %v3884_v34, %v3862_v11  ;;  %v3902_v19 = vpop.f32.mrf.mxu2 }
 0x304   : > { %v7194_v24 = vadd.f32 %v3902_v19, %v3880_v4 }
 0x308   : > { %4014 = vmatmul.bf16.vlgmr.msrb.gmra.mxu3 %v7183_v26  ;;  %v3864_v2 = vpop.f32.mrf.mxu0 }
 0x309   : > { %v3865_v7 = vadd.f32 %v3864_v2, %v3521_v60  ;;  %v3887_v52 = vpop.f32.mrf.mxu1 }
 0x30b   : > { %v3888_v29 = vadd.f32 %v3887_v52, %v3865_v7  ;;  %v3905_v30 = vpop.f32.mrf.mxu2 }
 0x30c   : > { %v7197_v44 = vadd.f32 %v3905_v30, %v3883_v35  ;;  %v4049_v35 = vld [vmem:[%s7248_s7] sm:$0x3] }
 0x30d   : > { %v4051_v11 = vperm.slane %v4049_v35, 0  ;;  %v4052_v2 = vperm.slane %v4049_v35, 1 }
 0x310   : > { %v3866_v55 = vpop.f32.mrf.mxu0 }
 0x311   : > { %v3889_v36 = vpop.f32.mrf.mxu1 }
 0x313   : > { %v3907_v42 = vpop.f32.mrf.mxu2 }
 0x314   : > { %v7199_v61 = vadd.f32 %v3907_v42, %v3885_v53 }
 0x318   : > { %4019 = vmatmul.bf16.gmra.mxu3 %v3450_v17  ;;  %v3946_v49 = vpop.f32.mrf.mxu0 }
 0x319   : > { %v3947_v56 = vadd.f32 %v3946_v49, %v3522_v25  ;;  %v3969_v46 = vpop.f32.mrf.mxu1 }
 0x31b   : > { %v3970_v9 = vadd.f32 %v3969_v46, %v3947_v56  ;;  %v3910_v58 = vpop.f32.mrf.mxu2 }
 0x31c   : > { %v7201_v26 = vadd.f32 %v3910_v58, %v3888_v29 }
 0x320   : > { %v3948_v41 = vpop.f32.mrf.mxu0 }
 0x321   : > { %v3949_v28 = vadd.f32 %v3948_v41, %v3522_v25  ;;  %v3971_v3 = vpop.f32.mrf.mxu1 }
 0x323   : > { %v3972_v13 = vadd.f32 %v3971_v3, %v3949_v28  ;;  %v3912_v22 = vpop.f32.mrf.mxu2 }
 0x328   : > { %4024 = vmatmul.bf16.gmra.mxu3 %v3454_v27  ;;  %v3951_v31 = vpop.f32.mrf.mxu0 }
 0x329   : > { %v3952_v50 = vadd.f32 %v3951_v31, %v3522_v25  ;;  %v3974_v16 = vpop.f32.mrf.mxu1 }
 0x32b   : > { %v3975_v47 = vadd.f32 %v3974_v16, %v3952_v50  ;;  %v3992_v37 = vpop.f32.mrf.mxu2 }
 0x32c   : > { %v3993_v48 = vadd.f32 %v3992_v37, %v3970_v9 }
 0x330   : > { %v3953_v18 = vpop.f32.mrf.mxu0 }
 0x331   : > { %v3954_v43 = vadd.f32 %v3953_v18, %v3522_v25  ;;  %v3976_v21 = vpop.f32.mrf.mxu1 }
 0x333   : > { %v3977_v14 = vadd.f32 %v3976_v21, %v3954_v43  ;;  %v3994_v39 = vpop.f32.mrf.mxu2 }
 0x334   : > { %v3995_v32 = vadd.f32 %v3994_v39, %v3972_v13 }
 0x338   : > { %v3956_v60 = vpop.f32.mrf.mxu0 }
 0x339   : > { %v3957_v8 = vadd.f32 %v3956_v60, %v3522_v25  ;;  %v3979_v23 = vpop.f32.mrf.mxu1 }
 0x33b   : > { %v3980_v17 = vadd.f32 %v3979_v23, %v3957_v8  ;;  %v3997_v5 = vpop.f32.mrf.mxu2 }
 0x33c   : > { %v3998_v45 = vadd.f32 %v3997_v5, %v3975_v47 }
 0x340   : > { %v3958_v33 = vpop.f32.mrf.mxu0 }
 0x341   : > { %v3981_v1 = vpop.f32.mrf.mxu1 }
 0x343   : > { %v3999_v0 = vpop.f32.mrf.mxu2 }
 0x344   : > { %v4000_v62 = vadd.f32 %v3999_v0, %v3977_v14 }
 0x34b   : > { %v4002_v12 = vpop.f32.mrf.mxu2 }
 0x34c   : > { %v4003_v51 = vadd.f32 %v4002_v12, %v3980_v17 }
 0x353   : > { %v4004_v57 = vpop.f32.mrf.mxu2 }
 0x35b   : > { %v3923_v10 = vpop.f32.mrf.mxu3 }
 0x35c   : > { %v3924_v59 = vadd.f32 %v3923_v10, %v7192_v40 }
 0x35e   : > { %v4029_v63 = vmul.f32 0.2, %v3924_v59 }
 0x360   : > { %v4039_v34 = vmax.f32 %v3924_v59, %v4029_v63 }
 0x362   : > { %v4055_v29 = vmul.f32 %v4051_v11, %v4039_v34 }
 0x363   : > { %v3925_v6 = vpop.f32.mrf.mxu3 }
 0x364   : > { %v3926_v53 = vadd.f32 %v3925_v6, %v7194_v24 }
 0x366   : > { %v4031_v52 = vmul.f32 0.2, %v3926_v53 }
 0x368   : > { %v4041_v42 = vmax.f32 %v3926_v53, %v4031_v52 }
 0x36a   : > { %v4057_v9 = vmul.f32 %v4051_v11, %v4041_v42 }
 0x36b   : > { %v3928_v54 = vpop.f32.mrf.mxu3 }
 0x36c   : > { %v3929_v25 = vadd.f32 %v3928_v54, %v7197_v44 }
 0x36e   : > { %v4033_v46 = vmul.f32 0.2, %v3929_v25 }
 0x370   : > { %v4043_v3 = vmax.f32 %v3929_v25, %v4033_v46 }
 0x372   : > { %v4059_v16 = vmul.f32 %v4051_v11, %v4043_v3 }
 0x373   : > { %v3930_v4 = vpop.f32.mrf.mxu3 }
 0x374   : > { %v3931_v13 = vadd.f32 %v3930_v4, %v7199_v61 }
 0x376   : > { %v4035_v50 = vmul.f32 0.2, %v3931_v13 }
 0x378   : > { %v4045_v18 = vmax.f32 %v3931_v13, %v4035_v50 }
 0x37b   : > { %v3933_v27 = vpop.f32.mrf.mxu3 }
 0x37c   : > { %v3934_v43 = vadd.f32 %v3933_v27, %v7201_v26  ;;  %v6266_v26 = vld [vmem:[#allocation2] ss:$0 sm:$0xff] }
 0x37e   : > { %v4037_v39 = vmul.f32 0.2, %v3934_v43 }
 0x380   : > { %v4047_v17 = vmax.f32 %v3934_v43, %v4037_v39 }
 0x382   : > { %v4063_v33 = vmul.f32 %v4051_v11, %v4047_v17 }
 0x383   : > { %v3935_v20 = vpop.f32.mrf.mxu3 }
 0x38b   : > { %v4015_v38 = vpop.f32.mrf.mxu3 }
 0x38c   : > { %v4016_v15 = vadd.f32 %v4015_v38, %v3993_v48 }
 0x38e   : > { %v4030_v19 = vmul.f32 0.2, %v4016_v15 }
 0x390   : > { %v4040_v7 = vmax.f32 %v4016_v15, %v4030_v19 }
 0x392   : > { %v4056_v30 = vmul.f32 %v4052_v2, %v4040_v7 }
 0x393   : > { %v4017_v55 = vpop.f32.mrf.mxu3 }
 0x394   : > { %v4018_v36 = vadd.f32 %v4017_v55, %v3995_v32  ;;  %v4065_v40 = vadd.f32 %v4056_v30, %v4055_v29  ;;  %v4061_v32 = vmul.f32 %v4051_v11, %v4045_v18 }
 0x396   : > { %v4032_v49 = vmul.f32 0.2, %v4018_v36  ;;  %4066 = vadd.xlane.f32.xlu0 %v4065_v40 }
 0x398   : > { %v4042_v56 = vmax.f32 %v4018_v36, %v4032_v49 }
 0x39a   : > { %v4058_v58 = vmul.f32 %v4052_v2, %v4042_v56 }
 0x39b   : > { %v4020_v41 = vpop.f32.mrf.mxu3 }
 0x39c   : > { %v4021_v24 = vadd.f32 %v4020_v41, %v3998_v45  ;;  %v4068_v28 = vadd.f32 %v4058_v58, %v4057_v9 }
 0x39e   : > { %v4034_v22 = vmul.f32 0.2, %v4021_v24  ;;  %4069 = vadd.xlane.f32.xlu0 %v4068_v28 }
 0x3a0   : > { %v4044_v31 = vmax.f32 %v4021_v24, %v4034_v22 }
 0x3a2   : > { %v4060_v47 = vmul.f32 %v4052_v2, %v4044_v31 }
 0x3a3   : > { %v4022_v37 = vpop.f32.mrf.mxu3 }
 0x3a4   : > { %v4023_v44 = vadd.f32 %v4022_v37, %v4000_v62  ;;  %v4071_v48 = vadd.f32 %v4060_v47, %v4059_v16 }
 0x3a6   : > { %v4036_v21 = vmul.f32 0.2, %v4023_v44  ;;  %4072 = vadd.xlane.f32.xlu1 %v4071_v48 }
 0x3a8   : > { %v4046_v14 = vmax.f32 %v4023_v44, %v4036_v21 }
 0x3aa   : > { %v4062_v60 = vmul.f32 %v4052_v2, %v4046_v14 }
 0x3ab   : > { %v4025_v8 = vpop.f32.mrf.mxu3 }
 0x3ac   : > { %v4026_v61 = vadd.f32 %v4025_v8, %v4003_v51  ;;  %v4074_v23 = vadd.f32 %v4062_v60, %v4061_v32 }
 0x3ae   : > { %v4038_v5 = vmul.f32 0.2, %v4026_v61  ;;  %4075 = vadd.xlane.f32.xlu1 %v4074_v23 }
 0x3b0   : > { %v4048_v45 = vmax.f32 %v4026_v61, %v4038_v5 }
 0x3b2   : > { %v4064_v1 = vmul.f32 %v4052_v2, %v4048_v45 }
 0x3b3   : > { %v4027_v0 = vpop.f32.mrf.mxu3 }
 0x3b4   : > { %v4077_v62 = vadd.f32 %v4064_v1, %v4063_v33 }
 0x3b6   : > { %4078 = vadd.xlane.f32.xlu2 %v4077_v62 }
 0x409   : > { %v4067_v12 = vpop.xlane.xlu0 %4066 }
 0x40a   : > { %v4084_v57 = vadd.f32 %v6266_v26, %v4067_v12 }
 0x40c   : > { %v5786_v10 = vclamps-f32 %v4084_v57, 30.0 }
 0x40e   : > { %v4099_v6 = vsub.f32 0.0, %v5786_v10 }
 0x410   : > { %v4104_v54 = vmul.f32 1.442695, %v4099_v6 }
 0x411   : > { %v4070_v51 = vpop.xlane.xlu0 %4069 }
 0x412   : > { %6267 = vpow2.f32 %v4104_v54  ;;  %v4085_v4 = vadd.f32 %v6266_v26, %v4070_v51 }
 0x414   : > { %v5787_v27 = vclamps-f32 %v4085_v4, 30.0 }
 0x416   : > { %v4100_v20 = vsub.f32 0.0, %v5787_v27 }
 0x418   : > { %v6268_v59 = vpop.eup %6267  ;;  %v4106_v63 = vmul.f32 1.442695, %v4100_v20 }
 0x419   : > { %v4114_v35 = vadd.f32 1.0, %v6268_v59  ;;  %v4073_v38 = vpop.xlane.xlu1 %4072 }
 0x41a   : > { %6269 = vpow2.f32 %v4106_v63  ;;  %v4086_v15 = vadd.f32 %v6266_v26, %v4073_v38 }
 0x41b   : > { %6271 = vrcp.f32 %v4114_v35 }
 0x41c   : > { %v5788_v11 = vclamps-f32 %v4086_v15, 30.0 }
 0x41e   : > { %v4101_v34 = vsub.f32 0.0, %v5788_v11 }
 0x420   : > { %v6270_v53 = vpop.eup %6269  ;;  %v4108_v19 = vmul.f32 1.442695, %v4101_v34 }
 0x421   : > { %v6272_v2 = vpop.eup %6271  ;;  %v4115_v7 = vadd.f32 1.0, %v6270_v53  ;;  %v4076_v52 = vpop.xlane.xlu1 %4075 }
 0x422   : > { %4125 = vst.msk [vmem:[%s7216_s21] sm:$0xff] %vm4124_vm0, %v6272_v2  ;;  %6273 = vpow2.f32 %v4108_v19  ;;  %v4087_v29 = vadd.f32 %v6266_v26, %v4076_v52 }
 0x423   : > { %6275 = vrcp.f32 %v4115_v7 }
 0x424   : > { %v5789_v30 = vclamps-f32 %v4087_v29, 30.0 }
 0x426   : > { %v4102_v55 = vsub.f32 0.0, %v5789_v30 }
 0x428   : > { %v6274_v36 = vpop.eup %6273  ;;  %v4110_v40 = vmul.f32 1.442695, %v4102_v55 }
 0x429   : > { %v6276_v42 = vpop.eup %6275  ;;  %v4116_v25 = vadd.f32 1.0, %v6274_v36  ;;  %v4079_v49 = vpop.xlane.xlu2 %4078 }
 0x42a   : > { %4126 = vst.msk [vmem:[%s7216_s21 + $0x8] sm:$0xff] %vm4124_vm0, %v6276_v42  ;;  %6277 = vpow2.f32 %v4110_v40  ;;  %v4088_v56 = vadd.f32 %v6266_v26, %v4079_v49 }
 0x42b   : > { %6279 = vrcp.f32 %v4116_v25 }
 0x42c   : > { %v5790_v46 = vclamps-f32 %v4088_v56, 30.0 }
 0x42e   : > { %v4103_v9 = vsub.f32 0.0, %v5790_v46 }
 0x430   : > { %v6278_v58 = vpop.eup %6277  ;;  %v4112_v41 = vmul.f32 1.442695, %v4103_v9 }
 0x431   : > { %v6280_v24 = vpop.eup %6279  ;;  %v4117_v28 = vadd.f32 1.0, %v6278_v58 }
 0x432   : > { %4127 = vst.msk [vmem:[%s7216_s21 + $0x10] sm:$0xff] %vm4124_vm0, %v6280_v24  ;;  %6281 = vpow2.f32 %v4112_v41 }
 0x433   : > { %6283 = vrcp.f32 %v4117_v28 }
 0x438   : > { %v6282_v3 = vpop.eup %6281 }
 0x439   : > { %v6284_v13 = vpop.eup %6283  ;;  %v4118_v22 = vadd.f32 1.0, %v6282_v3 }
 0x43a   : > { %4128 = vst.msk [vmem:[%s7216_s21 + $0x18] sm:$0xff] %vm4124_vm0, %v6284_v13 }
 0x43b   : > { %6285 = vrcp.f32 %v4118_v22 }
 0x441   : > { %v6286_v31 = vpop.eup %6285 }
 0x442   : > { %4129 = vst.msk [vmem:[%s7216_s21 + $0x20] sm:$0xff] %vm4124_vm0, %v6286_v31 }
 0x443 PF: > { %p23_p4 = scmp.ge.s32.totalorder %s6615_s10, 4   ;;  %s7264_s11 = smov %s6472_s12 }
 0x444   : > { %s7265_s12 = smov %s6476_s13  ;;  %s7266_s13 = smov %s6624_s18 }
 0x445   : > { %s7267_s14 = smov %s6615_s10  ;;  %25 = sbr.rel (!%p23_p4) target bundleno = 8 (0x8), region = 112 }
 0x44a   :  { %4152 = vsyncpa [#allocation4], 1 }
 0x44b   :  { %4154 = vsyncpa [#allocation4 + $0x1], 1 }
 0x44c   :  { %4155 = vsyncpa [#allocation6], 1 }
 0x44d   :  { %4156 = vsyncpa [#allocation9], 1 }

// kernel: _forward_impl.1
= control target key start
LH: loop header
LB: loop body
LE: loop exit
PB: predicated region body
PF: predicated region fallthrough
CT: control target
= control target key end

     0   :  { %s7241_s0 = inlined_call_operand.hbm [shape: f32[80,128], index: 0, kind: input, shape index: {}]   ;;  %s7242_s1 = inlined_call_operand.hbm [shape: bf16[128,1024], index: 1, kind: input, shape index: {}]   ;;  %s7243_s2 = inlined_call_operand.hbm [shape: f32[1,1024], index: 2, kind: input, shape index: {}]   ;;  %s7244_s3 = inlined_call_operand.hbm [shape: bf16[1024,512], index: 3, kind: input, shape index: {}]   ;;  %s7245_s4 = inlined_call_operand.vmem [shape: f32[1,512], index: 4, kind: input, shape index: {}]   ;;  %s7246_s5 = inlined_call_operand.hbm [shape: bf16[512,256], index: 5, kind: input, shape index: {}]   ;;  %s7247_s6 = inlined_call_operand.vmem [shape: f32[1,256], index: 6, kind: input, shape index: {}]   ;;  %s7248_s7 = inlined_call_operand.vmem [shape: f32[1,256], index: 7, kind: input, shape index: {}]   ;;  %s7249_s8 = inlined_call_operand.<no memory space> [shape: f32[1,1], index: 8, kind: input, shape index: {}]   ;;  %s7250_s9 = inlined_call_operand.vmem [shape: f32[80,1], index: 9, kind: output, shape index: {}]  }
   0x1   :  { %7254 = sst [smem:[#allocation14_spill]] %s7242_s1  ;;  %v14_v0 = vstv %s7249_s8 }
   0x2   :  { %15 = vst [vmem:[#allocation2] sm:$0x1] %v14_v0 }
   0x3   :  { %16 = vsyncpa [#allocation4], 0 }
   0x4   :  { %18 = vsyncpa [#allocation4 + $0x1], 0 }
   0x5   :  { %19 = vsyncpa [#allocation6], 0 }
   0x6   :  { %20 = vsyncpa [#allocation9], 0  ;;  %s6545_s11 = smov 0   ;;  %s6547_s12 = smov 0  }
   0x7   :  { %s6549_s13 = smov 0   ;;  %s6551_s14 = smov 0  }
   0x8 LB: > { %s7251_s8 = sadd.s32 4294967295, %s6480_s14   ;;  %p46_p0 = scmp.ne.s32.totalorder %s6472_s12, %s6468_s11  ;;  %s6480_s14 = sphi %s6551_s14, %s7267_s14   ;;  %s6476_s13 = sphi %s6549_s13, %s7266_s13   ;;  %s6472_s12 = sphi %s6547_s12, %s7265_s12   ;;  %s6468_s11 = sphi %s6545_s11, %s7264_s11  }
   0x9   : > { %p6567_p1 = scmp.eq.s32.totalorder %s7251_s8, 0  ;;  %p4237_p2 = scmp.ge.s32.totalorder %s6480_s14, 1 }
   0xa   : > { %p251_p3 = scmp.lt.s32.totalorder %s6480_s14, 3  ;;  %s7257_s1 = sld [smem:[#allocation14_spill]] }
   0xb   : > { %p6575_p4 = por %p6567_p1, %p46_p0  ;;  %s6482_s21 = smov [#allocation5]  }
   0xc   : > { %p6582_p5 = pnand %p4237_p2, %p251_p3  ;;  %s264_s22 = sshll.u32 %s6482_s21, 4  ;;  %s265_s22 = int_to_ptr.vmem [resolvable:$true] %s264_s22 }
   0xd   : > { %s288_s26 = sshll.u32 %s7244_s3, 4  ;;  %s6483_s27 = smov 512   ;;  %s289_s26 = int_to_ptr.hbm [resolvable:$true] %s288_s26 }
   0xe   : > { %p6198_p6 = pneg %p6582_p5  ;;  %s6484_s28 = smov 32  }
   0xf   : > { %s6485_s29 = smov [#allocation8]   ;;  %s6486_s10 = smov 256  }
  0x10   : > { %s262_s19 = sshll.u32 %s7257_s1, 4  ;;  %p6590_p7 = pnand %p6198_p6, %p6567_p1  ;;  %s263_s19 = int_to_ptr.hbm [resolvable:$true] %s262_s19 }
  0x11   : > { %s290_s30 = sshll.u32 %s6485_s29, 4  ;;  %s6487_s11 = smov 16   ;;  %s291_s30 = int_to_ptr.vmem [resolvable:$true] %s290_s30 }
  0x12   : > { %6201 = dma.hbm_to_vmem [thread:$0]  (!%p6590_p7), %s263_s19, 8192, %s265_s22, [#allocation6], %s6483_s27, %s6483_s27, %s6484_s28  }
  0x13   : > { %6207 = dma.hbm_to_vmem [thread:$0]  (!%p6590_p7), %s289_s26, 32768, %s291_s30, [#allocation9], %s6486_s10, %s6486_s10, %s6487_s11  }
  0x14   : > { %s277_s21 = sshll.u32 %s7243_s2, 4  ;;  %s6488_s24 = smov [#allocation7]   ;;  %s278_s21 = int_to_ptr.hbm [resolvable:$true] %s277_s21 }
  0x15   : > { %s279_s19 = sshll.u32 %s6488_s24, 4  ;;  %s305_s27 = sshll.u32 %s7246_s5, 4  ;;  %s280_s19 = int_to_ptr.vmem [resolvable:$true] %s279_s19  ;;  %s306_s27 = int_to_ptr.hbm [resolvable:$true] %s305_s27 }
  0x16   : > { %6204 = dma.hbm_to_vmem [thread:$0]  (!%p6590_p7), %s278_s21, 128, %s280_s19, [#allocation6]  }
  0x17   : > { %s6489_s26 = smov [#allocation10]   ;;  %s7252_s29 = smov 128  }
  0x18   : > { %s307_s28 = sshll.u32 %s6489_s26, 4  ;;  %s7253_s30 = smov 8   ;;  %s308_s28 = int_to_ptr.vmem [resolvable:$true] %s307_s28 }
  0x19   : > { %6210 = dma.hbm_to_vmem [thread:$0]  (!%p6590_p7), %s306_s27, 8192, %s308_s28, [#allocation9], %s7252_s29, %s7252_s29, %s7253_s30  }
  0x1a   : > { %s6615_s10 = sadd.s32 1, %s6480_s14   ;;  %s33_s17 = sadd.s32 1, %s6476_s13 }
  0x1b   : > { %s30_s11 = ssub.s32 %s6480_s14, %s6615_s10  ;;  %p40_p9 = scmp.ne.s32.totalorder %s6476_s13, %s6472_s12 }
  0x1c   : > { %p31_p8 = scmp.eq.s32.totalorder %s30_s11, 0  ;;  %p41_p10 = scmp.eq.s32.totalorder %s6480_s14, 0 }
  0x1d   : > { %p6219_p12 = scmp.lt.s32.totalorder %s6480_s14, 2  ;;  %s330_s21 = sand.u32 1, %s6476_s13  }
  0x1e   : > { %s6624_s18 = scalar_select %p31_p8, %s6476_s13, %s33_s17  }
  0x1f   : > { %p42_p11 = por %p41_p10, %p40_p9  ;;  %s5793_s24 = smul.u32 40, %s6480_s14 }
  0x20   : > { %s6178_s19 = smul.u32 40, %s330_s21  ;;  %s331_s17 = scalar_lea.sflag [#allocation4], %s330_s21 }
  0x21   : > { %s339_s25 = scalar_lea.hbm %s7241_s0, %s5793_s24  ;;  %p6632_p13 = pnand %p6219_p12, %p42_p11 }
  0x22   : > { %s340_s26 = sshll.u32 %s339_s25, 4  ;;  %s334_s28 = scalar_lea.vmem [#allocation3], %s6178_s19  ;;  %s341_s26 = int_to_ptr.hbm [resolvable:$true] %s340_s26 }
  0x23   : > { %s342_s11 = sshll.u32 %s334_s28, 4  ;;  %s6408_s8 = sshra.s32 %s341_s26, 4  ;;  %s343_s11 = int_to_ptr.vmem [resolvable:$true] %s342_s11  ;;  %s6409_s8 = int_to_ptr.hbm [resolvable:$true] %s6408_s8 }
  0x24   : > { %s6410_s29 = scalar_lea.hbm %s6409_s8, 40  ;;  %p6412_p2 = pneg %p6632_p13 }
  0x25   : > { %p6411_p0 = scmp.ne.s32.totalorder %s6409_s8, %s6410_s29  ;;  %s6415_s22 = scalar_lea.hbm %s7241_s0, 80 }
  0x26   : > { %p6416_p7 = scmp.lt.s32.totalorder %s6409_s8, %s7241_s0  ;;  %p6417_p8 = scmp.lt.s32.totalorder %s6415_s22, %s6410_s29 }
  0x27   : > { %p6413_p3 = pnand %p6412_p2, %p6411_p0 }
  0x28   : > { %p6418_p9 = por %p6417_p8, %p6416_p7 }
  0x29   : > { %p6414_p6 = pneg %p6413_p3 }
  0x2b   : > { %p6419_p10 = pnand %p6418_p9, %p6414_p6 }
  0x2d   : > { %6422 = shalt.err (!%p6419_p10)
}
  0x2e   : > { %s7261_s21 = smov 8   ;;  %s7262_s19 = smov 128  }
  0x2f   : > { %6214 = dma.hbm_to_vmem [thread:$0]  (!%p6632_p13), %s341_s26, 640, %s343_s11, %s331_s17, %s7262_s19, %s7262_s19, %s7261_s21  }
  0x30   : > { %354 = sbr.rel (%p6582_p5) target bundleno = 1091 (0x443), region = 56  ;;  %s356_s25 = sand.u32 (!%p6582_p5), 1, %s6472_s12  }
  0x31   : > { %s6179_s28 = smul.u32 (!%p6582_p5), 40, %s356_s25  ;;  %s357_s24 = scalar_lea.sflag (!%p6582_p5), [#allocation4], %s356_s25 }
  0x33   : > { %s6652_s1 = scalar_lea.vmem (!%p6582_p5), [#allocation3], %s6179_s28 }
  0x35   : > { %6455 = dma.done.wait (%p6575_p4), %s357_s24, 640  }
  0x36   : > { %6457 = vsyncadd (%p6575_p4), %s357_s24, 4294966656 }
  0x37   : > { %6459 = dma.done.wait (%p6567_p1), [#allocation6], 8320  }
  0x38   : > { %6461 = vsyncadd (%p6567_p1), [#allocation6], 4294958976 }
  0x39   : > { %6463 = dma.done.wait (%p6567_p1), [#allocation9], 40960  }
  0x3a   : > { %6465 = vsyncadd (%p6567_p1), [#allocation9], 4294926336  ;;  %v4476_v1 = vld [vmem:[#allocation5 + $0x1c0] sm:$0xf]  ;;  %v5850_v3 = vld [vmem:[#allocation5 + $0x1c4] sm:$0xf] }
  0x3b   : > { %v5854_v2 = vld [vmem:[#allocation5 + $0x1dc] sm:$0xf0]  ;;  %v4478_v5 = vld [vmem:[#allocation5 + $0x1e0] sm:$0xf0]  ;;  %v4484_v6 = vld [vmem:[#allocation5 + $0x1c8] sm:$0xf] }
  0x3c   : > { %v4477_v4 = vor.u32 %v5854_v2, %v4476_v1  ;;  %v5855_v7 = vld [vmem:[#allocation5 + $0x1e4] sm:$0xf0]  ;;  %v4481_v8 = vor.u32 %v5850_v3, %v4478_v5  ;;  %v5851_v10 = vld [vmem:[#allocation5 + $0x1cc] sm:$0xf]  ;;  %v4444_v12 = vld [vmem:[#allocation5 + $0x180] sm:$0xf] }
  0x3d   : > { %v4485_v9 = vor.u32 %v5855_v7, %v4484_v6  ;;  %v4486_v11 = vld [vmem:[#allocation5 + $0x1e8] sm:$0xf0]  ;;  %v5846_v14 = vld [vmem:[#allocation5 + $0x19c] sm:$0xf0]  ;;  %v5842_v15 = vld [vmem:[#allocation5 + $0x184] sm:$0xf] }
  0x3e   : > { %833 = vmatpush.bf16.msra.mxu0 %v4477_v4  ;;  %v4489_v13 = vor.u32 %v5851_v10, %v4486_v11  ;;  %v4446_v16 = vld [vmem:[#allocation5 + $0x1a0] sm:$0xf0]  ;;  %856 = vmatpush.bf16.msra.mxu1 %v4481_v8  ;;  %v4445_v17 = vor.u32 %v5846_v14, %v4444_v12  ;;  %v4452_v19 = vld [vmem:[#allocation5 + $0x188] sm:$0xf]  ;;  %v5843_v21 = vld [vmem:[#allocation5 + $0x18c] sm:$0xf] }
  0x3f   : > { %879 = vmatpush.bf16.msra.mxu2 %v4485_v9  ;;  %v4449_v18 = vor.u32 %v5842_v15, %v4446_v16  ;;  %v5847_v20 = vld [vmem:[#allocation5 + $0x1a4] sm:$0xf0]  ;;  %v4454_v23 = vld [vmem:[#allocation5 + $0x1a8] sm:$0xf0]  ;;  %v4412_v24 = vld [vmem:[#allocation5 + $0x140] sm:$0xf] }
  0x40   : > { %902 = vmatpush.bf16.msra.mxu3 %v4489_v13  ;;  %v4453_v22 = vor.u32 %v5847_v20, %v4452_v19  ;;  %v5838_v25 = vld [vmem:[#allocation5 + $0x15c] sm:$0xf0]  ;;  %v4457_v26 = vor.u32 %v5843_v21, %v4454_v23  ;;  %v5834_v27 = vld [vmem:[#allocation5 + $0x144] sm:$0xf]  ;;  %v4420_v29 = vld [vmem:[#allocation5 + $0x148] sm:$0xf] }
  0x41   : > { %v4414_v28 = vld [vmem:[#allocation5 + $0x160] sm:$0xf0]  ;;  %v4413_v30 = vor.u32 %v5838_v25, %v4412_v24  ;;  %v5839_v31 = vld [vmem:[#allocation5 + $0x164] sm:$0xf0]  ;;  %v5835_v32 = vld [vmem:[#allocation5 + $0x14c] sm:$0xf] }
  0x42   : > { %834 = vmatpush.bf16.msra.mxu0 %v4445_v17  ;;  %v4422_v33 = vld [vmem:[#allocation5 + $0x168] sm:$0xf0]  ;;  %857 = vmatpush.bf16.msra.mxu1 %v4449_v18  ;;  %v4417_v34 = vor.u32 %v5834_v27, %v4414_v28  ;;  %v4421_v35 = vor.u32 %v5839_v31, %v4420_v29  ;;  %v4380_v36 = vld [vmem:[#allocation5 + $0x100] sm:$0xf]  ;;  %v5826_v38 = vld [vmem:[#allocation5 + $0x104] sm:$0xf] }
  0x43   : > { %880 = vmatpush.bf16.msra.mxu2 %v4453_v22  ;;  %v5830_v37 = vld [vmem:[#allocation5 + $0x11c] sm:$0xf0]  ;;  %v4425_v39 = vor.u32 %v5835_v32, %v4422_v33  ;;  %v4382_v40 = vld [vmem:[#allocation5 + $0x120] sm:$0xf0]  ;;  %v4388_v41 = vld [vmem:[#allocation5 + $0x108] sm:$0xf] }
  0x44   : > { %903 = vmatpush.bf16.msra.mxu3 %v4457_v26  ;;  %v5831_v42 = vld [vmem:[#allocation5 + $0x124] sm:$0xf0]  ;;  %v5827_v43 = vld [vmem:[#allocation5 + $0x10c] sm:$0xf]  ;;  %v4381_v45 = vor.u32 %v5830_v37, %v4380_v36  ;;  %v4385_v46 = vor.u32 %v5826_v38, %v4382_v40  ;;  %v4348_v48 = vld [vmem:[#allocation5 + $0xc0] sm:$0xf] }
  0x45   : > { %v4390_v44 = vld [vmem:[#allocation5 + $0x128] sm:$0xf0]  ;;  %v4389_v47 = vor.u32 %v5831_v42, %v4388_v41  ;;  %v5822_v49 = vld [vmem:[#allocation5 + $0xdc] sm:$0xf0]  ;;  %v5818_v50 = vld [vmem:[#allocation5 + $0xc4] sm:$0xf] }
  0x46   : > { %835 = vmatpush.bf16.msra.mxu0 %v4413_v30  ;;  %858 = vmatpush.bf16.msra.mxu1 %v4417_v34  ;;  %v4393_v51 = vor.u32 %v5827_v43, %v4390_v44  ;;  %v4350_v52 = vld [vmem:[#allocation5 + $0xe0] sm:$0xf0]  ;;  %v4356_v53 = vld [vmem:[#allocation5 + $0xc8] sm:$0xf]  ;;  %v5819_v55 = vld [vmem:[#allocation5 + $0xcc] sm:$0xf]  ;;  %v4349_v57 = vor.u32 %v5822_v49, %v4348_v48 }
  0x47   : > { %881 = vmatpush.bf16.msra.mxu2 %v4421_v35  ;;  %v5823_v54 = vld [vmem:[#allocation5 + $0xe4] sm:$0xf0]  ;;  %v4358_v56 = vld [vmem:[#allocation5 + $0xe8] sm:$0xf0]  ;;  %v4353_v58 = vor.u32 %v5818_v50, %v4350_v52  ;;  %v4316_v60 = vld [vmem:[#allocation5 + $0x80] sm:$0xf] }
  0x48   : > { %904 = vmatpush.bf16.msra.mxu3 %v4425_v39  ;;  %v4357_v59 = vor.u32 %v5823_v54, %v4356_v53  ;;  %v5814_v61 = vld [vmem:[#allocation5 + $0x9c] sm:$0xf0]  ;;  %v5810_v62 = vld [vmem:[#allocation5 + $0x84] sm:$0xf]  ;;  %v4361_v63 = vor.u32 %v5819_v55, %v4358_v56  ;;  %v4324_v1 = vld [vmem:[#allocation5 + $0x88] sm:$0xf] }
  0x49   : > { %v4318_v0 = vld [vmem:[#allocation5 + $0xa0] sm:$0xf0]  ;;  %v5815_v2 = vld [vmem:[#allocation5 + $0xa4] sm:$0xf0]  ;;  %v5811_v3 = vld [vmem:[#allocation5 + $0x8c] sm:$0xf]  ;;  %v4317_v5 = vor.u32 %v5814_v61, %v4316_v60 }
  0x4a   : > { %836 = vmatpush.bf16.msra.mxu0 %v4381_v45  ;;  %859 = vmatpush.bf16.msra.mxu1 %v4385_v46  ;;  %v4326_v4 = vld [vmem:[#allocation5 + $0xa8] sm:$0xf0]  ;;  %v4321_v6 = vor.u32 %v5810_v62, %v4318_v0  ;;  %v4325_v7 = vor.u32 %v5815_v2, %v4324_v1  ;;  %v4284_v8 = vld [vmem:[#allocation5 + $0x40] sm:$0xf]  ;;  %v5802_v10 = vld [vmem:[#allocation5 + $0x44] sm:$0xf] }
  0x4b   : > { %882 = vmatpush.bf16.msra.mxu2 %v4389_v47  ;;  %v5806_v9 = vld [vmem:[#allocation5 + $0x5c] sm:$0xf0]  ;;  %v4329_v11 = vor.u32 %v5811_v3, %v4326_v4  ;;  %v4286_v12 = vld [vmem:[#allocation5 + $0x60] sm:$0xf0]  ;;  %v4292_v13 = vld [vmem:[#allocation5 + $0x48] sm:$0xf] }
  0x4c   : > { %905 = vmatpush.bf16.msra.mxu3 %v4393_v51  ;;  %v5807_v14 = vld [vmem:[#allocation5 + $0x64] sm:$0xf0]  ;;  %v5803_v15 = vld [vmem:[#allocation5 + $0x4c] sm:$0xf]  ;;  %v4285_v17 = vor.u32 %v5806_v9, %v4284_v8  ;;  %v4252_v18 = vld [vmem:[#allocation5] sm:$0xf]  ;;  %v4289_v20 = vor.u32 %v5802_v10, %v4286_v12 }
  0x4d   : > { %v4294_v16 = vld [vmem:[#allocation5 + $0x68] sm:$0xf0]  ;;  %v5798_v19 = vld [vmem:[#allocation5 + $0x1c] sm:$0xf0]  ;;  %v4293_v21 = vor.u32 %v5807_v14, %v4292_v13  ;;  %v5794_v22 = vld [vmem:[#allocation5 + $0x4] sm:$0xf] }
  0x4e   : > { %837 = vmatpush.bf16.msra.mxu0 %v4349_v57  ;;  %860 = vmatpush.bf16.msra.mxu1 %v4353_v58  ;;  %v4254_v23 = vld [vmem:[#allocation5 + $0x20] sm:$0xf0]  ;;  %v4260_v24 = vld [vmem:[#allocation5 + $0x8] sm:$0xf]  ;;  %v4297_v25 = vor.u32 %v5803_v15, %v4294_v16  ;;  %v5795_v27 = vld [vmem:[#allocation5 + $0xc] sm:$0xf]  ;;  %v4253_v32 = vor.u32 %v5798_v19, %v4252_v18 }
  0x4f   : > { %883 = vmatpush.bf16.msra.mxu2 %v4357_v59  ;;  %v5799_v26 = vld [vmem:[#allocation5 + $0x24] sm:$0xf0]  ;;  %v4262_v28 = vld [vmem:[#allocation5 + $0x28] sm:$0xf0]  ;;  %v423_v29 = vld [vmem:[%s6652_s1] sm:$0xff]  ;;  %v4257_v36 = vor.u32 %v5794_v22, %v4254_v23  ;;  %s7263_s11 = sadd.s32 4294967295, %s6480_s14  }
  0x50   : > { %906 = vmatpush.bf16.msra.mxu3 %v4361_v63  ;;  %v4500_v30 = vld [vmem:[#allocation5 + $0x1d8] sm:$0xf]  ;;  %v5853_v34 = vld [vmem:[#allocation5 + $0x1dc] sm:$0xf]  ;;  %v4261_v37 = vor.u32 %v5799_v26, %v4260_v24  ;;  %v4265_v38 = vor.u32 %v5795_v27, %v4262_v28  ;;  %v4492_v41 = vld [vmem:[#allocation5 + $0x1d0] sm:$0xf] }
  0x51   : > { %v5857_v31 = vld [vmem:[#allocation5 + $0x1f4] sm:$0xf0]  ;;  %v4502_v35 = vld [vmem:[#allocation5 + $0x1f8] sm:$0xf0]  ;;  %v5856_v42 = vld [vmem:[#allocation5 + $0x1ec] sm:$0xf0] }
  0x52   : > { %838 = vmatpush.bf16.msra.mxu0 %v4317_v5  ;;  %861 = vmatpush.bf16.msra.mxu1 %v4321_v6  ;;  %v424_v33 = vld [vmem:[%s6652_s1 + $0x8] sm:$0xff]  ;;  %v4501_v39 = vor.u32 %v5857_v31, %v4500_v30  ;;  %v4505_v44 = vor.u32 %v5853_v34, %v4502_v35  ;;  %v5852_v46 = vld [vmem:[#allocation5 + $0x1d4] sm:$0xf]  ;;  %v4493_v50 = vor.u32 %v5856_v42, %v4492_v41  ;;  %v4460_v54 = vld [vmem:[#allocation5 + $0x190] sm:$0xf]  ;;  %s417_s17 = smul.u32 5, %s7263_s11 }
  0x53   : > { %884 = vmatpush.bf16.msra.mxu2 %v4325_v7  ;;  %v4468_v40 = vld [vmem:[#allocation5 + $0x198] sm:$0xf]  ;;  %v6668_v43 = vpack.c.bf16 %v424_v33, %v423_v29  ;;  %v4494_v47 = vld [vmem:[#allocation5 + $0x1f0] sm:$0xf0]  ;;  %v5845_v48 = vld [vmem:[#allocation5 + $0x19c] sm:$0xf] }
  0x54   : > { %907 = vmatpush.bf16.msra.mxu3 %v4329_v11  ;;  %v5849_v45 = vld [vmem:[#allocation5 + $0x1b4] sm:$0xf0]  ;;  %v4470_v49 = vld [vmem:[#allocation5 + $0x1b8] sm:$0xf0]  ;;  %v4497_v52 = vor.u32 %v5852_v46, %v4494_v47  ;;  %v5848_v55 = vld [vmem:[#allocation5 + $0x1ac] sm:$0xf0] }
  0x55   : > { %v4469_v51 = vor.u32 %v5849_v45, %v4468_v40  ;;  %v4436_v53 = vld [vmem:[#allocation5 + $0x158] sm:$0xf]  ;;  %v4473_v56 = vor.u32 %v5845_v48, %v4470_v49  ;;  %v5844_v58 = vld [vmem:[#allocation5 + $0x194] sm:$0xf]  ;;  %v5837_v60 = vld [vmem:[#allocation5 + $0x15c] sm:$0xf]  ;;  %v4461_v62 = vor.u32 %v5848_v55, %v4460_v54 }
  0x56   : > { %839 = vmatpush.bf16.msra.mxu0 %v4285_v17  ;;  %862 = vmatpush.bf16.msra.mxu1 %v4289_v20  ;;  %v5841_v57 = vld [vmem:[#allocation5 + $0x174] sm:$0xf0]  ;;  %v4462_v59 = vld [vmem:[#allocation5 + $0x1b0] sm:$0xf0]  ;;  %v4438_v61 = vld [vmem:[#allocation5 + $0x178] sm:$0xf0] }
  0x57   : > { %885 = vmatpush.bf16.msra.mxu2 %v4293_v21  ;;  %v4437_v63 = vor.u32 %v5841_v57, %v4436_v53  ;;  %v4465_v0 = vor.u32 %v5844_v58, %v4462_v59  ;;  %v4404_v1 = vld [vmem:[#allocation5 + $0x118] sm:$0xf]  ;;  %v4428_v2 = vld [vmem:[#allocation5 + $0x150] sm:$0xf]  ;;  %v4441_v4 = vor.u32 %v5837_v60, %v4438_v61  ;;  %v5836_v6 = vld [vmem:[#allocation5 + $0x154] sm:$0xf] }
  0x58   : > { %908 = vmatpush.bf16.msra.mxu3 %v4297_v25  ;;  %v5840_v3 = vld [vmem:[#allocation5 + $0x16c] sm:$0xf0]  ;;  %v5833_v5 = vld [vmem:[#allocation5 + $0x134] sm:$0xf0]  ;;  %v4430_v7 = vld [vmem:[#allocation5 + $0x170] sm:$0xf0] }
  0x59   : > { %v5829_v8 = vld [vmem:[#allocation5 + $0x11c] sm:$0xf]  ;;  %v4429_v10 = vor.u32 %v5840_v3, %v4428_v2  ;;  %v425_v11 = vld [vmem:[%s6652_s1 + $0x10] sm:$0xff]  ;;  %v4405_v12 = vor.u32 %v5833_v5, %v4404_v1  ;;  %v4433_v13 = vor.u32 %v5836_v6, %v4430_v7  ;;  %v4372_v14 = vld [vmem:[#allocation5 + $0xd8] sm:$0xf]  ;;  %p418_p1 = scmp.lt.s32.totalorder %s417_s17, 9 }
  0x5a   : > { %840 = vmatpush.bf16.msra.mxu0 %v4253_v32  ;;  %863 = vmatpush.bf16.msra.mxu1 %v4257_v36  ;;  %v4406_v9 = vld [vmem:[#allocation5 + $0x138] sm:$0xf0]  ;;  %v4396_v15 = vld [vmem:[#allocation5 + $0x110] sm:$0xf]  ;;  %v5825_v18 = vld [vmem:[#allocation5 + $0xf4] sm:$0xf0] }
  0x5b   : > { %886 = vmatpush.bf16.msra.mxu2 %v4261_v37  ;;  %v5832_v16 = vld [vmem:[#allocation5 + $0x12c] sm:$0xf0]  ;;  %v4409_v17 = vor.u32 %v5829_v8, %v4406_v9  ;;  %v5828_v19 = vld [vmem:[#allocation5 + $0x114] sm:$0xf]  ;;  %v5821_v22 = vld [vmem:[#allocation5 + $0xdc] sm:$0xf]  ;;  %v4373_v25 = vor.u32 %v5825_v18, %v4372_v14 }
  0x5c   : > { %909 = vmatpush.bf16.msra.mxu3 %v4265_v38  ;;  %v4398_v20 = vld [vmem:[#allocation5 + $0x130] sm:$0xf0]  ;;  %v4374_v23 = vld [vmem:[#allocation5 + $0xf8] sm:$0xf0]  ;;  %v4397_v24 = vor.u32 %v5832_v16, %v4396_v15  ;;  %v4340_v27 = vld [vmem:[#allocation5 + $0x98] sm:$0xf] }
  0x5d   : > { %841 = vmatmul.bf16.vlgmr.msra.gmra.mxu0 %v6668_v43  ;;  %864 = vmatmul.bf16.vlgmr.msra.gmra.mxu1 %v6668_v43  ;;  %v426_v21 = vld [vmem:[%s6652_s1 + $0x18] sm:$0xff]  ;;  %v4401_v26 = vor.u32 %v5828_v19, %v4398_v20  ;;  %v4377_v31 = vor.u32 %v5821_v22, %v4374_v23  ;;  %v5817_v32 = vld [vmem:[#allocation5 + $0xb4] sm:$0xf0]  ;;  %v5813_v35 = vld [vmem:[#allocation5 + $0x9c] sm:$0xf]  ;;  %s7269_s17 = smov (!%p418_p1, %s417_s17), 9 }
  0x5e   : > { %887 = vmatmul.bf16.vlgmr.msra.gmra.mxu2 %v6668_v43  ;;  %925 = vmatpush.bf16.msrb.mxu0 %v4493_v50  ;;  %v4364_v28 = vld [vmem:[#allocation5 + $0xd0] sm:$0xf]  ;;  %v6676_v30 = vpack.c.bf16 %v426_v21, %v425_v11  ;;  %v5820_v33 = vld [vmem:[#allocation5 + $0xd4] sm:$0xf]  ;;  %v4342_v36 = vld [vmem:[#allocation5 + $0xb8] sm:$0xf0]  ;;  %v4341_v38 = vor.u32 %v5817_v32, %v4340_v27 }
  0x5f   : > { %971 = vmatpush.bf16.msrb.mxu2 %v4501_v39  ;;  %910 = vmatmul.bf16.vlgmr.msra.gmra.mxu3 %v6668_v43  ;;  %v5824_v29 = vld [vmem:[#allocation5 + $0xec] sm:$0xf0]  ;;  %v4366_v34 = vld [vmem:[#allocation5 + $0xf0] sm:$0xf0]  ;;  %v4308_v40 = vld [vmem:[#allocation5 + $0x58] sm:$0xf] }
  0x60   : > { %994 = vmatpush.bf16.msrb.mxu3 %v4505_v44  ;;  %948 = vmatpush.bf16.msrb.mxu1 %v4497_v52  ;;  %v4365_v37 = vor.u32 %v5824_v29, %v4364_v28  ;;  %v4369_v39 = vor.u32 %v5820_v33, %v4366_v34  ;;  %v4332_v41 = vld [vmem:[#allocation5 + $0x90] sm:$0xf]  ;;  %v4345_v44 = vor.u32 %v5813_v35, %v4342_v36  ;;  %v5809_v45 = vld [vmem:[#allocation5 + $0x74] sm:$0xf0]  ;;  %v5812_v46 = vld [vmem:[#allocation5 + $0x94] sm:$0xf] }
  0x61   : > { %v5816_v42 = vld [vmem:[#allocation5 + $0xac] sm:$0xf0]  ;;  %v4334_v47 = vld [vmem:[#allocation5 + $0xb0] sm:$0xf0]  ;;  %v5805_v48 = vld [vmem:[#allocation5 + $0x5c] sm:$0xf] }
  0x62   : > { %926 = vmatpush.bf16.msrb.mxu0 %v4461_v62  ;;  %v4310_v49 = vld [vmem:[#allocation5 + $0x78] sm:$0xf0]  ;;  %v4333_v50 = vor.u32 %v5816_v42, %v4332_v41  ;;  %v4337_v52 = vor.u32 %v5812_v46, %v4334_v47  ;;  %v4300_v53 = vld [vmem:[#allocation5 + $0x50] sm:$0xf]  ;;  %v5804_v55 = vld [vmem:[#allocation5 + $0x54] sm:$0xf] }
  0x63   : > { %972 = vmatpush.bf16.msrb.mxu2 %v4469_v51  ;;  %v4309_v51 = vor.u32 %v5809_v45, %v4308_v40  ;;  %v5808_v54 = vld [vmem:[#allocation5 + $0x6c] sm:$0xf0]  ;;  %v4302_v57 = vld [vmem:[#allocation5 + $0x70] sm:$0xf0]  ;;  %v4276_v58 = vld [vmem:[#allocation5 + $0x18] sm:$0xf] }
  0x64   : > { %995 = vmatpush.bf16.msrb.mxu3 %v4473_v56  ;;  %949 = vmatpush.bf16.msrb.mxu1 %v4465_v0  ;;  %v4313_v56 = vor.u32 %v5805_v48, %v4310_v49  ;;  %v5801_v59 = vld [vmem:[#allocation5 + $0x34] sm:$0xf0]  ;;  %v5797_v60 = vld [vmem:[#allocation5 + $0x1c] sm:$0xf]  ;;  %v4301_v62 = vor.u32 %v5808_v54, %v4300_v53  ;;  %v4268_v1 = vld [vmem:[#allocation5 + $0x10] sm:$0xf] }
  0x65   : > { %v4278_v61 = vld [vmem:[#allocation5 + $0x38] sm:$0xf0]  ;;  %v4277_v0 = vor.u32 %v5801_v59, %v4276_v58  ;;  %v5800_v2 = vld [vmem:[#allocation5 + $0x2c] sm:$0xf0]  ;;  %v4270_v5 = vld [vmem:[#allocation5 + $0x30] sm:$0xf0] }
  0x66   : > { %927 = vmatpush.bf16.msrb.mxu0 %v4429_v10  ;;  %v4281_v3 = vor.u32 %v5797_v60, %v4278_v61  ;;  %v427_v6 = vld [vmem:[%s6652_s1 + $0x20] sm:$0xff]  ;;  %v4269_v7 = vor.u32 %v5800_v2, %v4268_v1  ;;  %v4876_v10 = vld [vmem:[#allocation8 + $0x2e0] sm:$0xf]  ;;  %s4249_s23 = sshll.u32 %s7269_s17, 3  ;;  %vm4124_vm0 = vcmask 7168  }
  0x67   : > { %973 = vmatpush.bf16.msrb.mxu2 %v4437_v63  ;;  %v4305_v63 = vor.u32 %v5804_v55, %v4302_v57  ;;  %v6683_v9 = vpack.c.bf16 %v427_v6, %v427_v6  ;;  %v5952_v11 = vld [vmem:[#allocation8 + $0x2ec] sm:$0xf0]  ;;  %v5004_v15 = vld [vmem:[#allocation8 + $0x3e0] sm:$0xf]  ;;  %s7216_s21 = scalar_lea.vmem %s7250_s9, %s4249_s23 }
  0x68   : > { %996 = vmatpush.bf16.msrb.mxu3 %v4441_v4  ;;  %950 = vmatpush.bf16.msrb.mxu1 %v4433_v13  ;;  %v5796_v4 = vld [vmem:[#allocation5 + $0x14] sm:$0xf]  ;;  %v4877_v13 = vor.u32 %v5952_v11, %v4876_v10  ;;  %v5888_v14 = vld [vmem:[#allocation8 + $0xec] sm:$0xf0]  ;;  %v4748_v19 = vld [vmem:[#allocation8 + $0x1e0] sm:$0xf] }
  0x69   : > { %v4273_v8 = vor.u32 %v5796_v4, %v4270_v5  ;;  %v5984_v16 = vld [vmem:[#allocation8 + $0x3ec] sm:$0xf0]  ;;  %v4860_v21 = vld [vmem:[#allocation8 + $0x2c0] sm:$0xf] }
  0x6a   : > { %928 = vmatpush.bf16.msrb.mxu0 %v4397_v24  ;;  %v5005_v18 = vor.u32 %v5984_v16, %v5004_v15  ;;  %v5920_v20 = vld [vmem:[#allocation8 + $0x1ec] sm:$0xf0]  ;;  %v4604_v24 = vld [vmem:[#allocation8 + $0xc0] sm:$0xf] }
  0x6b   : > { %974 = vmatpush.bf16.msrb.mxu2 %v4405_v12  ;;  %v4620_v12 = vld [vmem:[#allocation8 + $0xe0] sm:$0xf]  ;;  %v4749_v22 = vor.u32 %v5920_v20, %v4748_v19  ;;  %v5948_v23 = vld [vmem:[#allocation8 + $0x2cc] sm:$0xf0] }
  0x6c   : > { %997 = vmatpush.bf16.msrb.mxu3 %v4409_v17  ;;  %951 = vmatpush.bf16.msrb.mxu1 %v4401_v26  ;;  %v4621_v17 = vor.u32 %v5888_v14, %v4620_v12  ;;  %v4988_v27 = vld [vmem:[#allocation8 + $0x3c0] sm:$0xf]  ;;  %v5980_v28 = vld [vmem:[#allocation8 + $0x3cc] sm:$0xf0] }
  0x6d   : > { %846 = vmatmul.bf16.gmra.mxu0 %v6676_v30  ;;  %869 = vmatmul.bf16.gmra.mxu1 %v6676_v30  ;;  %v4732_v29 = vld [vmem:[#allocation8 + $0x1c0] sm:$0xf]  ;;  %v5916_v32 = vld [vmem:[#allocation8 + $0x1cc] sm:$0xf0] }
  0x6e   : > { %892 = vmatmul.bf16.gmra.mxu2 %v6676_v30  ;;  %929 = vmatpush.bf16.msrb.mxu0 %v4365_v37  ;;  %v4844_v33 = vld [vmem:[#allocation8 + $0x2a0] sm:$0xf]  ;;  %v5944_v34 = vld [vmem:[#allocation8 + $0x2ac] sm:$0xf0]  ;;  %v4733_v35 = vor.u32 %v5916_v32, %v4732_v29 }
  0x6f   : > { %975 = vmatpush.bf16.msrb.mxu2 %v4373_v25  ;;  %915 = vmatmul.bf16.gmra.mxu3 %v6676_v30  ;;  %v5884_v25 = vld [vmem:[#allocation8 + $0xcc] sm:$0xf0]  ;;  %v4588_v36 = vld [vmem:[#allocation8 + $0xa0] sm:$0xf] }
  0x70   : > { %998 = vmatpush.bf16.msrb.mxu3 %v4377_v31  ;;  %952 = vmatpush.bf16.msrb.mxu1 %v4369_v39  ;;  %v4605_v26 = vor.u32 %v5884_v25, %v4604_v24  ;;  %v4989_v31 = vor.u32 %v5980_v28, %v4988_v27  ;;  %v5880_v37 = vld [vmem:[#allocation8 + $0xac] sm:$0xf0]  ;;  %v4845_v39 = vor.u32 %v5944_v34, %v4844_v33  ;;  %v4716_v41 = vld [vmem:[#allocation8 + $0x1a0] sm:$0xf] }
  0x71   : > { %v5976_v40 = vld [vmem:[#allocation8 + $0x3ac] sm:$0xf0]  ;;  %v4828_v47 = vld [vmem:[#allocation8 + $0x280] sm:$0xf] }
  0x72   : > { %930 = vmatpush.bf16.msrb.mxu0 %v4333_v50  ;;  %v5912_v42 = vld [vmem:[#allocation8 + $0x1ac] sm:$0xf0]  ;;  %v4572_v49 = vld [vmem:[#allocation8 + $0x80] sm:$0xf] }
  0x73   : > { %976 = vmatpush.bf16.msrb.mxu2 %v4341_v38  ;;  %v4972_v38 = vld [vmem:[#allocation8 + $0x3a0] sm:$0xf]  ;;  %v4717_v46 = vor.u32 %v5912_v42, %v4716_v41  ;;  %v5940_v48 = vld [vmem:[#allocation8 + $0x28c] sm:$0xf0]  ;;  %v6701_v42 = vld [vmem:[#allocation7] sm:$0xff] }
  0x74   : > { %999 = vmatpush.bf16.msrb.mxu3 %v4345_v44  ;;  %953 = vmatpush.bf16.msrb.mxu1 %v4337_v52  ;;  %v4589_v44 = vor.u32 %v5880_v37, %v4588_v36  ;;  %v4973_v45 = vor.u32 %v5976_v40, %v4972_v38  ;;  %v5876_v50 = vld [vmem:[#allocation8 + $0x8c] sm:$0xf0]  ;;  %v4700_v53 = vld [vmem:[#allocation8 + $0x180] sm:$0xf]  ;;  %v4829_v55 = vor.u32 %v5940_v48, %v4828_v47  ;;  %v6707_v48 = vperm.slane %v6701_v42, 1 }
  0x75   : > { %v5972_v52 = vld [vmem:[#allocation8 + $0x38c] sm:$0xf0]  ;;  %v4812_v58 = vld [vmem:[#allocation8 + $0x260] sm:$0xf] }
  0x76   : > { %931 = vmatpush.bf16.msrb.mxu0 %v4301_v62  ;;  %v5908_v54 = vld [vmem:[#allocation8 + $0x18c] sm:$0xf0]  ;;  %v4556_v62 = vld [vmem:[#allocation8 + $0x60] sm:$0xf] }
  0x77   : > { %977 = vmatpush.bf16.msrb.mxu2 %v4309_v51  ;;  %v4956_v51 = vld [vmem:[#allocation8 + $0x380] sm:$0xf]  ;;  %v5936_v59 = vld [vmem:[#allocation8 + $0x26c] sm:$0xf0]  ;;  %v4701_v60 = vor.u32 %v5908_v54, %v4700_v53 }
  0x78   : > { %1000 = vmatpush.bf16.msrb.mxu3 %v4313_v56  ;;  %954 = vmatpush.bf16.msrb.mxu1 %v4305_v63  ;;  %v4573_v56 = vor.u32 %v5876_v50, %v4572_v49  ;;  %v4957_v57 = vor.u32 %v5972_v52, %v4956_v51  ;;  %v4813_v61 = vor.u32 %v5936_v59, %v4812_v58  ;;  %v5872_v63 = vld [vmem:[#allocation8 + $0x6c] sm:$0xf0]  ;;  %v4940_v5 = vld [vmem:[#allocation8 + $0x360] sm:$0xf] }
  0x79   : > { %v4557_v1 = vor.u32 %v5872_v63, %v4556_v62  ;;  %v5904_v2 = vld [vmem:[#allocation8 + $0x16c] sm:$0xf0]  ;;  %v4668_v12 = vld [vmem:[#allocation8 + $0x140] sm:$0xf] }
  0x7a   : > { %932 = vmatpush.bf16.msrb.mxu0 %v4269_v7  ;;  %v5868_v4 = vld [vmem:[#allocation8 + $0x4c] sm:$0xf0]  ;;  %v4796_v7 = vld [vmem:[#allocation8 + $0x240] sm:$0xf] }
  0x7b   : > { %978 = vmatpush.bf16.msrb.mxu2 %v4277_v0  ;;  %v4684_v0 = vld [vmem:[#allocation8 + $0x160] sm:$0xf]  ;;  %v5968_v6 = vld [vmem:[#allocation8 + $0x36c] sm:$0xf0] }
  0x7c   : > { %1001 = vmatpush.bf16.msrb.mxu3 %v4281_v3  ;;  %955 = vmatpush.bf16.msrb.mxu1 %v4273_v8  ;;  %v4540_v3 = vld [vmem:[#allocation8 + $0x40] sm:$0xf]  ;;  %v4941_v10 = vor.u32 %v5968_v6, %v4940_v5  ;;  %v5932_v11 = vld [vmem:[#allocation8 + $0x24c] sm:$0xf0]  ;;  %v6720_v5 = vperm.slane %v6701_v42, 3 }
  0x7d   : > { %851 = vmatmul.bf16.gmra.mxu0 %v6683_v9  ;;  %874 = vmatmul.bf16.gmra.mxu1 %v6683_v9  ;;  %v4541_v8 = vor.u32 %v5868_v4, %v4540_v3  ;;  %v4524_v15 = vld [vmem:[#allocation8 + $0x20] sm:$0xf]  ;;  %v5864_v16 = vld [vmem:[#allocation8 + $0x2c] sm:$0xf0]  ;;  %v6717_v4 = vperm.slane %v6701_v42, 2 }
  0x7e   : > { %897 = vmatmul.bf16.gmra.mxu2 %v6683_v9  ;;  %2667 = vmatpush.bf16.msra.mxu0 %v4621_v17  ;;  %v4652_v17 = vld [vmem:[#allocation8 + $0x120] sm:$0xf]  ;;  %v5896_v19 = vld [vmem:[#allocation8 + $0x12c] sm:$0xf0] }
  0x7f   : > { %920 = vmatmul.bf16.gmra.mxu3 %v6683_v9  ;;  %2713 = vmatpush.bf16.msra.mxu2 %v4877_v13  ;;  %v4797_v13 = vor.u32 %v5932_v11, %v4796_v7  ;;  %v4924_v20 = vld [vmem:[#allocation8 + $0x340] sm:$0xf]  ;;  %v5860_v25 = vld [vmem:[#allocation8 + $0xc] sm:$0xf0] }
  0x80   : > { %2736 = vmatpush.bf16.msra.mxu3 %v5005_v18  ;;  %2690 = vmatpush.bf16.msra.mxu1 %v4749_v22  ;;  %v4525_v18 = vor.u32 %v5864_v16, %v4524_v15  ;;  %v4653_v22 = vor.u32 %v5896_v19, %v4652_v17  ;;  %v4508_v24 = vld [vmem:[#allocation8] sm:$0xf]  ;;  %v5892_v27 = vld [vmem:[#allocation8 + $0x10c] sm:$0xf0] }
  0x81   : > { %v4780_v28 = vld [vmem:[#allocation8 + $0x220] sm:$0xf]  ;;  %v5928_v29 = vld [vmem:[#allocation8 + $0x22c] sm:$0xf0] }
  0x82   : > { %2668 = vmatpush.bf16.msra.mxu0 %v4605_v26  ;;  %v4509_v26 = vor.u32 %v5860_v25, %v4508_v24  ;;  %v4781_v33 = vor.u32 %v5928_v29, %v4780_v28  ;;  %v5960_v34 = vld [vmem:[#allocation8 + $0x32c] sm:$0xf0]  ;;  %v4764_v36 = vld [vmem:[#allocation8 + $0x200] sm:$0xf] }
  0x83   : > { %v5924_v37 = vld [vmem:[#allocation8 + $0x20c] sm:$0xf0]  ;;  %v4892_v38 = vld [vmem:[#allocation8 + $0x300] sm:$0xf] }
  0x84   : > { %2737 = vmatpush.bf16.msra.mxu3 %v4989_v31  ;;  %2691 = vmatpush.bf16.msra.mxu1 %v4733_v35  ;;  %v4908_v31 = vld [vmem:[#allocation8 + $0x320] sm:$0xf]  ;;  %v5956_v40 = vld [vmem:[#allocation8 + $0x30c] sm:$0xf0] }
  0x85   : > { %v4909_v35 = vor.u32 %v5960_v34, %v4908_v31  ;;  %v4893_v41 = vor.u32 %v5956_v40, %v4892_v38  ;;  %v5132_v50 = vld [vmem:[#allocation8 + $0x4e0] sm:$0xf]  ;;  %v6016_v51 = vld [vmem:[#allocation8 + $0x4ec] sm:$0xf0] }
  0x86   : > { %2669 = vmatpush.bf16.msra.mxu0 %v4589_v44  ;;  %v5388_v44 = vld [vmem:[#allocation8 + $0x6e0] sm:$0xf]  ;;  %v5133_v54 = vor.u32 %v6016_v51, %v5132_v50  ;;  %v6076_v62 = vld [vmem:[#allocation8 + $0x6cc] sm:$0xf0] }
  0x87   : > { %v5516_v52 = vld [vmem:[#allocation8 + $0x7e0] sm:$0xf]  ;;  %v6044_v7 = vld [vmem:[#allocation8 + $0x5cc] sm:$0xf0] }
  0x88   : > { %2738 = vmatpush.bf16.msra.mxu3 %v4973_v45  ;;  %2692 = vmatpush.bf16.msra.mxu1 %v4717_v46  ;;  %v6080_v45 = vld [vmem:[#allocation8 + $0x6ec] sm:$0xf0]  ;;  %v6704_v46 = vperm.slane %v6701_v42, 0  ;;  %v5500_v11 = vld [vmem:[#allocation8 + $0x7c0] sm:$0xf] }
  0x89   : > { %v5389_v47 = vor.u32 %v6080_v45, %v5388_v44  ;;  %v5356_v16 = vld [vmem:[#allocation8 + $0x6a0] sm:$0xf]  ;;  %v6072_v17 = vld [vmem:[#allocation8 + $0x6ac] sm:$0xf0] }
  0x8a   : > { %2670 = vmatpush.bf16.msra.mxu0 %v4573_v56  ;;  %v5260_v56 = vld [vmem:[#allocation8 + $0x5e0] sm:$0xf]  ;;  %v6104_v24 = vld [vmem:[#allocation8 + $0x7ac] sm:$0xf0] }
  0x8b   : > { %v5228_v28 = vld [vmem:[#allocation8 + $0x5a0] sm:$0xf]  ;;  %v6040_v29 = vld [vmem:[#allocation8 + $0x5ac] sm:$0xf0] }
  0x8c   : > { %2739 = vmatpush.bf16.msra.mxu3 %v4957_v57  ;;  %2693 = vmatpush.bf16.msra.mxu1 %v4701_v60  ;;  %v6048_v57 = vld [vmem:[#allocation8 + $0x5ec] sm:$0xf0]  ;;  %v5084_v38 = vld [vmem:[#allocation8 + $0x480] sm:$0xf] }
  0x8d   : > { %933 = vmatmul.bf16.vlgmr.msrb.gmra.mxu0 %v6668_v43  ;;  %956 = vmatmul.bf16.vlgmr.msrb.gmra.mxu1 %v6668_v43  ;;  %v5261_v60 = vor.u32 %v6048_v57, %v5260_v56  ;;  %v5212_v40 = vld [vmem:[#allocation8 + $0x580] sm:$0xf] }
  0x8e   : > { %979 = vmatmul.bf16.vlgmr.msrb.gmra.mxu2 %v6668_v43  ;;  %2671 = vmatpush.bf16.msra.mxu0 %v4557_v1  ;;  %v5116_v1 = vld [vmem:[#allocation8 + $0x4c0] sm:$0xf] }
  0x8f   : > { %1002 = vmatmul.bf16.vlgmr.msrb.gmra.mxu3 %v6668_v43  ;;  %v4861_v43 = vor.u32 %v5948_v23, %v4860_v21  ;;  %v5964_v21 = vld [vmem:[#allocation8 + $0x34c] sm:$0xf0]  ;;  %v5340_v51 = vld [vmem:[#allocation8 + $0x680] sm:$0xf] }
  0x90   : > { %2740 = vmatpush.bf16.msra.mxu3 %v4941_v10  ;;  %v4925_v23 = vor.u32 %v5964_v21, %v4924_v20  ;;  %v5357_v21 = vor.u32 %v6072_v17, %v5356_v16 }
  0x91   : > { %2714 = vmatpush.bf16.msra.mxu2 %v4861_v43  ;;  %v4636_v43 = vld [vmem:[#allocation8 + $0x100] sm:$0xf] }
  0x92   : > { %2672 = vmatpush.bf16.msra.mxu0 %v4541_v8  ;;  %v4637_v32 = vor.u32 %v5892_v27, %v4636_v43 }
  0x94   : > { %2741 = vmatpush.bf16.msra.mxu3 %v4925_v23  ;;  %v5484_v23 = vld [vmem:[#allocation8 + $0x7a0] sm:$0xf] }
  0x95   : > { %2715 = vmatpush.bf16.msra.mxu2 %v4845_v39  ;;  %v4765_v39 = vor.u32 %v5924_v37, %v4764_v36  ;;  %v5485_v27 = vor.u32 %v6104_v24, %v5484_v23  ;;  %v6096_v23 = vld [vmem:[#allocation8 + $0x76c] sm:$0xf0]  ;;  %v5308_v24 = vld [vmem:[#allocation8 + $0x640] sm:$0xf] }
  0x96   : > { %2673 = vmatpush.bf16.msra.mxu0 %v4525_v18  ;;  %v5100_v18 = vld [vmem:[#allocation8 + $0x4a0] sm:$0xf] }
  0x98   : > { %2742 = vmatpush.bf16.msra.mxu3 %v4909_v35 }
  0x99   : > { %2716 = vmatpush.bf16.msra.mxu2 %v4829_v55  ;;  %v6112_v55 = vld [vmem:[#allocation8 + $0x7ec] sm:$0xf0] }
  0x9a   : > { %2674 = vmatpush.bf16.msra.mxu0 %v4509_v26  ;;  %v5517_v59 = vor.u32 %v6112_v55, %v5516_v52  ;;  %v6068_v52 = vld [vmem:[#allocation8 + $0x68c] sm:$0xf0] }
  0x9c   : > { %2743 = vmatpush.bf16.msra.mxu3 %v4893_v41 }
  0x9d   : > { %938 = vmatmul.bf16.gmra.mxu0 %v6676_v30  ;;  %961 = vmatmul.bf16.gmra.mxu1 %v6676_v30 }
  0x9e   : > { %984 = vmatmul.bf16.gmra.mxu2 %v6676_v30  ;;  %2759 = vmatpush.bf16.msrb.mxu0 %v5133_v54 }
  0x9f   : > { %1007 = vmatmul.bf16.gmra.mxu3 %v6676_v30  ;;  %2717 = vmatpush.bf16.msra.mxu2 %v4813_v61  ;;  %v4685_v30 = vor.u32 %v5904_v2, %v4684_v0  ;;  %v5372_v61 = vld [vmem:[#allocation8 + $0x6c0] sm:$0xf]  ;;  %v6012_v2 = vld [vmem:[#allocation8 + $0x4cc] sm:$0xf0] }
  0xa0   : > { %v5373_v0 = vor.u32 %v6076_v62, %v5372_v61  ;;  %2828 = vmatpush.bf16.msrb.mxu3 %v5517_v59  ;;  %v5117_v6 = vor.u32 %v6012_v2, %v5116_v1  ;;  %v5341_v59 = vor.u32 %v6068_v52, %v5340_v51  ;;  %v5324_v61 = vld [vmem:[#allocation8 + $0x660] sm:$0xf]  ;;  %v6064_v62 = vld [vmem:[#allocation8 + $0x66c] sm:$0xf0] }
  0xa1   : > { %2694 = vmatpush.bf16.msra.mxu1 %v4685_v30  ;;  %v5244_v30 = vld [vmem:[#allocation8 + $0x5c0] sm:$0xf] }
  0xa2   : > { %2760 = vmatpush.bf16.msrb.mxu0 %v5117_v6  ;;  %v5436_v52 = vld [vmem:[#allocation8 + $0x740] sm:$0xf] }
  0xa3   : > { %2718 = vmatpush.bf16.msra.mxu2 %v4797_v13  ;;  %v5245_v13 = vor.u32 %v6044_v7, %v5244_v30  ;;  %v5068_v30 = vld [vmem:[#allocation8 + $0x460] sm:$0xf]  ;;  %v5325_v7 = vor.u32 %v6064_v62, %v5324_v61 }
  0xa7   : > { %2719 = vmatpush.bf16.msra.mxu2 %v4781_v33 }
  0xab   : > { %2720 = vmatpush.bf16.msra.mxu2 %v4765_v39  ;;  %v6004_v39 = vld [vmem:[#allocation8 + $0x48c] sm:$0xf0] }
  0xac   : > { %v5085_v45 = vor.u32 %v6004_v39, %v5084_v38 }
  0xad   : > { %943 = vmatmul.bf16.gmra.mxu0 %v6683_v9  ;;  %966 = vmatmul.bf16.gmra.mxu1 %v6683_v9 }
  0xae   : > { %989 = vmatmul.bf16.gmra.mxu2 %v6683_v9 }
  0xaf   : > { %1012 = vmatmul.bf16.gmra.mxu3 %v6683_v9  ;;  %v5900_v9 = vld [vmem:[#allocation8 + $0x14c] sm:$0xf0]  ;;  %2805 = vmatpush.bf16.msrb.mxu2 %v5389_v47 }
  0xb0   : > { %v4669_v14 = vor.u32 %v5900_v9, %v4668_v12  ;;  %v6108_v12 = vld [vmem:[#allocation8 + $0x7cc] sm:$0xf0] }
  0xb1   : > { %v5501_v15 = vor.u32 %v6108_v12, %v5500_v11  ;;  %v6036_v47 = vld [vmem:[#allocation8 + $0x58c] sm:$0xf0] }
  0xb2   : > { %2695 = vmatpush.bf16.msra.mxu1 %v4669_v14  ;;  %v5213_v54 = vor.u32 %v6036_v47, %v5212_v40  ;;  %v6032_v11 = vld [vmem:[#allocation8 + $0x56c] sm:$0xf0]  ;;  %v5036_v40 = vld [vmem:[#allocation8 + $0x420] sm:$0xf] }
  0xb3   : > { %2806 = vmatpush.bf16.msrb.mxu2 %v5373_v0  ;;  %2829 = vmatpush.bf16.msrb.mxu3 %v5501_v15 }
  0xb6   : > { %2696 = vmatpush.bf16.msra.mxu1 %v4653_v22  ;;  %v6008_v22 = vld [vmem:[#allocation8 + $0x4ac] sm:$0xf0] }
  0xb7   : > { %v5101_v26 = vor.u32 %v6008_v22, %v5100_v18  ;;  %2807 = vmatpush.bf16.msrb.mxu2 %v5357_v21  ;;  %2830 = vmatpush.bf16.msrb.mxu3 %v5485_v27  ;;  %v5452_v22 = vld [vmem:[#allocation8 + $0x760] sm:$0xf] }
  0xb8   : > { %v5453_v27 = vor.u32 %v6096_v23, %v5452_v22 }
  0xb9   : > { %2761 = vmatpush.bf16.msrb.mxu0 %v5101_v26 }
  0xba   : > { %2697 = vmatpush.bf16.msra.mxu1 %v4637_v32  ;;  %v5229_v32 = vor.u32 %v6040_v29, %v5228_v28  ;;  %v6060_v28 = vld [vmem:[#allocation8 + $0x64c] sm:$0xf0]  ;;  %v5180_v29 = vld [vmem:[#allocation8 + $0x540] sm:$0xf] }
  0xbb   : > { %2808 = vmatpush.bf16.msrb.mxu2 %v5341_v59 }
  0xbd   : > { %2762 = vmatpush.bf16.msrb.mxu0 %v5085_v45 }
  0xbe   : > { %2782 = vmatpush.bf16.msrb.mxu1 %v5261_v60  ;;  %v6100_v60 = vld [vmem:[#allocation8 + $0x78c] sm:$0xf0] }
  0xbf   : > { %2809 = vmatpush.bf16.msrb.mxu2 %v5325_v7 }
  0xc2   : > { %2783 = vmatpush.bf16.msrb.mxu1 %v5245_v13 }
  0xc6   : > { %2784 = vmatpush.bf16.msrb.mxu1 %v5229_v32 }
  0xca   : > { %2785 = vmatpush.bf16.msrb.mxu1 %v5213_v54 }
  0xda   : > { %v842_v49 = vpop.f32.mrf.mxu0  ;;  %v865_v53 = vpop.f32.mrf.mxu1 }
  0xdb   : > { %v6710_v58 = vadd.f32 %v842_v49, %v6704_v46  ;;  %v6713_v63 = vadd.f32 %v865_v53, %v6707_v48  ;;  %v5468_v53 = vld [vmem:[#allocation8 + $0x780] sm:$0xf] }
  0xdc   : > { %v5469_v2 = vor.u32 %v6100_v60, %v5468_v53 }
  0xdd   : > { %v1017_v3 = vmul.f32 0.2, %v6710_v58  ;;  %v1018_v8 = vmul.f32 0.2, %v6713_v63 }
  0xde   : > { %2831 = vmatpush.bf16.msrb.mxu3 %v5469_v2 }
  0xdf   : > { %v1058_v33 = vmax.f32 %v6713_v63, %v1018_v8  ;;  %v1057_v35 = vmax.f32 %v6710_v58, %v1017_v3  ;;  %v6000_v3 = vld [vmem:[#allocation8 + $0x46c] sm:$0xf0] }
  0xe0   : > { %v5069_v8 = vor.u32 %v6000_v3, %v5068_v30  ;;  %v6020_v3 = vld [vmem:[#allocation8 + $0x50c] sm:$0xf0] }
  0xe1   : > { %v888_v10 = vpop.f32.mrf.mxu2 }
  0xe2   : > { %v911_v9 = vpop.f32.mrf.mxu3  ;;  %v844_v14 = vpop.f32.mrf.mxu0  ;;  %v6725_v25 = vadd.f32 %v888_v10, %v6717_v4  ;;  %v5196_v10 = vld [vmem:[#allocation8 + $0x560] sm:$0xf]  ;;  %2763 = vmatpush.bf16.msrb.mxu0 %v5069_v8  ;;  %2832 = vmatpush.bf16.msrb.mxu3 %v5453_v27 }
  0xe3   : > { %v845_v19 = vadd.f32 %v844_v14, %v6704_v46  ;;  %v867_v20 = vpop.f32.mrf.mxu1  ;;  %v912_v36 = vadd.f32 %v911_v9, %v6720_v5  ;;  %v5197_v13 = vor.u32 %v6032_v11, %v5196_v10  ;;  %v5292_v8 = vld [vmem:[#allocation8 + $0x620] sm:$0xf]  ;;  %v6056_v10 = vld [vmem:[#allocation8 + $0x62c] sm:$0xf0] }
  0xe4   : > { %v868_v43 = vadd.f32 %v867_v20, %v6707_v48  ;;  %v1019_v41 = vmul.f32 0.2, %v6725_v25  ;;  %v5996_v20 = vld [vmem:[#allocation8 + $0x44c] sm:$0xf0]  ;;  %v5420_v11 = vld [vmem:[#allocation8 + $0x720] sm:$0xf] }
  0xe5   : > { %v1025_v31 = vmul.f32 0.2, %v845_v19  ;;  %v1020_v63 = vmul.f32 0.2, %v912_v36  ;;  %2786 = vmatpush.bf16.msrb.mxu1 %v5197_v13 }
  0xe6   : > { %v1026_v34 = vmul.f32 0.2, %v868_v43  ;;  %v1059_v9 = vmax.f32 %v6725_v25, %v1019_v41  ;;  %v5992_v41 = vld [vmem:[#allocation8 + $0x42c] sm:$0xf0] }
  0xe7   : > { %v1065_v37 = vmax.f32 %v845_v19, %v1025_v31  ;;  %v1060_v17 = vmax.f32 %v912_v36, %v1020_v63  ;;  %v5052_v19 = vld [vmem:[#allocation8 + $0x440] sm:$0xf]  ;;  %v6028_v36 = vld [vmem:[#allocation8 + $0x54c] sm:$0xf0]  ;;  %v5037_v47 = vor.u32 %v5992_v41, %v5036_v40 }
  0xe8   : > { %v1066_v44 = vmax.f32 %v868_v43, %v1026_v34  ;;  %v5053_v43 = vor.u32 %v5996_v20, %v5052_v19  ;;  %v5181_v39 = vor.u32 %v6028_v36, %v5180_v29  ;;  %v5020_v63 = vld [vmem:[#allocation8 + $0x400] sm:$0xf] }
  0xe9   : > { %v6732_v49 = vpack.c.bf16 %v1065_v37, %v1057_v35  ;;  %v890_v50 = vpop.f32.mrf.mxu2  ;;  %v5309_v35 = vor.u32 %v6060_v28, %v5308_v24  ;;  %v5276_v28 = vld [vmem:[#allocation8 + $0x600] sm:$0xf] }
  0xea   : > { %v6734_v55 = vpack.c.bf16 %v1066_v44, %v1058_v33  ;;  %v891_v56 = vadd.f32 %v890_v50, %v6717_v4  ;;  %v913_v57 = vpop.f32.mrf.mxu3  ;;  %v847_v58 = vpop.f32.mrf.mxu0  ;;  %2764 = vmatpush.bf16.msrb.mxu0 %v5053_v43  ;;  %v5164_v44 = vld [vmem:[#allocation8 + $0x520] sm:$0xf]  ;;  %v6024_v50 = vld [vmem:[#allocation8 + $0x52c] sm:$0xf0]  ;;  %2787 = vmatpush.bf16.msrb.mxu1 %v5181_v39 }
  0xeb   : > { %v914_v0 = vadd.f32 %v913_v57, %v6720_v5  ;;  %v870_v1 = vpop.f32.mrf.mxu1  ;;  %2675 = vmatmul.bf16.vlgmr.msra.gmra.mxu0 %v6732_v49  ;;  %v848_v15 = vadd.f32 %v847_v58, %v6704_v46  ;;  %2810 = vmatpush.bf16.msrb.mxu2 %v5309_v35  ;;  %v5165_v53 = vor.u32 %v6024_v50, %v5164_v44  ;;  %v6092_v58 = vld [vmem:[#allocation8 + $0x74c] sm:$0xf0] }
  0xec   : > { %v1027_v6 = vmul.f32 0.2, %v891_v56  ;;  %2698 = vmatmul.bf16.vlgmr.msra.gmra.mxu1 %v6734_v55  ;;  %v6743_v16 = vadd.f32 %v870_v1, %v6707_v48  ;;  %v5437_v62 = vor.u32 %v6092_v58, %v5436_v52  ;;  %v5148_v1 = vld [vmem:[#allocation8 + $0x500] sm:$0xf] }
  0xed   : > { %v1028_v12 = vmul.f32 0.2, %v914_v0  ;;  %v1033_v31 = vmul.f32 0.2, %v848_v15 }
  0xee   : > { %v1067_v14 = vmax.f32 %v891_v56, %v1027_v6  ;;  %v1034_v32 = vmul.f32 0.2, %v6743_v16  ;;  %2765 = vmatpush.bf16.msrb.mxu0 %v5037_v47  ;;  %2833 = vmatpush.bf16.msrb.mxu3 %v5437_v62 }
  0xef   : > { %v1068_v18 = vmax.f32 %v914_v0, %v1028_v12  ;;  %v1073_v59 = vmax.f32 %v848_v15, %v1033_v31  ;;  %v5988_v0 = vld [vmem:[#allocation8 + $0x40c] sm:$0xf0]  ;;  %2788 = vmatpush.bf16.msrb.mxu1 %v5165_v53  ;;  %v5149_v12 = vor.u32 %v6020_v3, %v5148_v1 }
  0xf0   : > { %v6745_v21 = vpack.c.bf16 %v1067_v14, %v1059_v9  ;;  %v1074_v54 = vmax.f32 %v6743_v16, %v1034_v32  ;;  %v5021_v30 = vor.u32 %v5988_v0, %v5020_v63  ;;  %v6052_v32 = vld [vmem:[#allocation8 + $0x60c] sm:$0xf0] }
  0xf1   : > { %v6747_v25 = vpack.c.bf16 %v1068_v18, %v1060_v17  ;;  %v893_v26 = vpop.f32.mrf.mxu2  ;;  %v5293_v17 = vor.u32 %v6056_v10, %v5292_v8  ;;  %v6088_v18 = vld [vmem:[#allocation8 + $0x72c] sm:$0xf0]  ;;  %v5277_v36 = vor.u32 %v6052_v32, %v5276_v28  ;;  %v5006_v10 = vld [vmem:[#allocation8 + $0x3f0] sm:$0xf0] }
  0xf2   : > { %v916_v33 = vpop.f32.mrf.mxu3  ;;  %2721 = vmatmul.bf16.vlgmr.msra.gmra.mxu2 %v6745_v21  ;;  %v849_v34 = vpop.f32.mrf.mxu0  ;;  %v894_v56 = vadd.f32 %v893_v26, %v6717_v4  ;;  %2766 = vmatpush.bf16.msrb.mxu0 %v5021_v30  ;;  %v5421_v23 = vor.u32 %v6088_v18, %v5420_v11  ;;  %v5982_v30 = vld [vmem:[#allocation8 + $0x3e4] sm:$0xf]  ;;  %v4862_v18 = vld [vmem:[#allocation8 + $0x2d0] sm:$0xf0] }
  0xf3   : > { %2744 = vmatmul.bf16.vlgmr.msra.gmra.mxu3 %v6747_v25  ;;  %v850_v37 = vadd.f32 %v849_v34, %v6704_v46  ;;  %v872_v38 = vpop.f32.mrf.mxu1  ;;  %v917_v60 = vadd.f32 %v916_v33, %v6720_v5  ;;  %2811 = vmatpush.bf16.msrb.mxu2 %v5293_v17  ;;  %v5404_v33 = vld [vmem:[#allocation8 + $0x700] sm:$0xf]  ;;  %v5918_v11 = vld [vmem:[#allocation8 + $0x1e4] sm:$0xf]  ;;  %v4734_v32 = vld [vmem:[#allocation8 + $0x1d0] sm:$0xf0] }
  0xf4   : > { %v873_v45 = vadd.f32 %v872_v38, %v6707_v48  ;;  %v1035_v13 = vmul.f32 0.2, %v894_v56  ;;  %2834 = vmatpush.bf16.msrb.mxu3 %v5421_v23  ;;  %2789 = vmatpush.bf16.msrb.mxu1 %v5149_v12  ;;  %v4750_v12 = vld [vmem:[#allocation8 + $0x1f0] sm:$0xf0]  ;;  %v5946_v17 = vld [vmem:[#allocation8 + $0x2c4] sm:$0xf] }
  0xf5   : > { %v1041_v51 = vmul.f32 0.2, %v850_v37  ;;  %v1036_v19 = vmul.f32 0.2, %v917_v60  ;;  %v6797_v23 = vperm.slane %v6701_v42, 7 }
  0xf6   : > { %v1042_v57 = vmul.f32 0.2, %v873_v45  ;;  %v1075_v29 = vmax.f32 %v894_v56, %v1035_v13  ;;  %v5950_v56 = vld [vmem:[#allocation8 + $0x2e4] sm:$0xf] }
  0xf7   : > { %v1081_v61 = vmax.f32 %v850_v37, %v1041_v51  ;;  %v1076_v34 = vmax.f32 %v917_v60, %v1036_v19  ;;  %v6084_v37 = vld [vmem:[#allocation8 + $0x70c] sm:$0xf0]  ;;  %2812 = vmatpush.bf16.msrb.mxu2 %v5277_v36  ;;  %v6781_v60 = vperm.slane %v6701_v42, 5 }
  0xf8   : > { %v1082_v2 = vmax.f32 %v873_v45, %v1042_v57  ;;  %v5405_v39 = vor.u32 %v6084_v37, %v5404_v33  ;;  %v4878_v57 = vld [vmem:[#allocation8 + $0x2f0] sm:$0xf0]  ;;  %v5942_v37 = vld [vmem:[#allocation8 + $0x2a4] sm:$0xf] }
  0xf9   : > { %v6757_v6 = vpack.c.bf16 %v1081_v61, %v1073_v59  ;;  %v895_v7 = vpop.f32.mrf.mxu2  ;;  %v6778_v59 = vperm.slane %v6701_v42, 4  ;;  %v4881_v61 = vor.u32 %v5950_v56, %v4878_v57  ;;  %v5910_v56 = vld [vmem:[#allocation8 + $0x1a4] sm:$0xf] }
  0xfa   : > { %v6759_v9 = vpack.c.bf16 %v1082_v2, %v1074_v54  ;;  %v896_v14 = vadd.f32 %v895_v7, %v6717_v4  ;;  %v918_v15 = vpop.f32.mrf.mxu3  ;;  %v852_v16 = vpop.f32.mrf.mxu0  ;;  %2835 = vmatpush.bf16.msrb.mxu3 %v5405_v39  ;;  %v4622_v2 = vld [vmem:[#allocation8 + $0xf0] sm:$0xf0] }
  0xfb   : > { %v919_v20 = vadd.f32 %v918_v15, %v6720_v5  ;;  %v875_v22 = vpop.f32.mrf.mxu1  ;;  %2680 = vmatmul.bf16.gmra.mxu0 %v6757_v6  ;;  %v853_v27 = vadd.f32 %v852_v16, %v6704_v46  ;;  %2897 = vmatpush.bf16.msra.mxu2 %v4881_v61  ;;  %v5009_v15 = vor.u32 %v5982_v30, %v5006_v10  ;;  %v4574_v10 = vld [vmem:[#allocation8 + $0x90] sm:$0xf0] }
  0xfc   : > { %v1043_v24 = vmul.f32 0.2, %v896_v14  ;;  %v876_v43 = vadd.f32 %v875_v22, %v6707_v48  ;;  %2703 = vmatmul.bf16.gmra.mxu1 %v6759_v9  ;;  %v4753_v16 = vor.u32 %v5918_v11, %v4750_v12  ;;  %v6794_v22 = vperm.slane %v6701_v42, 6  ;;  %v4990_v42 = vld [vmem:[#allocation8 + $0x3d0] sm:$0xf0] }
  0xfd   : > { %v1044_v26 = vmul.f32 0.2, %v919_v20  ;;  %v1049_v41 = vmul.f32 0.2, %v853_v27  ;;  %v5906_v11 = vld [vmem:[#allocation8 + $0x184] sm:$0xf] }
  0xfe   : > { %v1083_v31 = vmax.f32 %v896_v14, %v1043_v24  ;;  %v1050_v48 = vmul.f32 0.2, %v876_v43  ;;  %2920 = vmatpush.bf16.msra.mxu3 %v5009_v15  ;;  %2874 = vmatpush.bf16.msra.mxu1 %v4753_v16  ;;  %v5882_v24 = vld [vmem:[#allocation8 + $0xc4] sm:$0xf] }
  0xff   : > { %v1084_v35 = vmax.f32 %v919_v20, %v1044_v26  ;;  %v1089_v52 = vmax.f32 %v853_v27, %v1049_v41  ;;  %v4865_v20 = vor.u32 %v5946_v17, %v4862_v18  ;;  %v5914_v26 = vld [vmem:[#allocation8 + $0x1c4] sm:$0xf]  ;;  %v4702_v18 = vld [vmem:[#allocation8 + $0x190] sm:$0xf0] }
 0x100   : > { %v6767_v38 = vpack.c.bf16 %v1083_v31, %v1075_v29  ;;  %v1090_v51 = vmax.f32 %v876_v43, %v1050_v48  ;;  %v4606_v43 = vld [vmem:[#allocation8 + $0xd0] sm:$0xf0]  ;;  %v4737_v36 = vor.u32 %v5914_v26, %v4734_v32 }
 0x101   : > { %v6769_v40 = vpack.c.bf16 %v1084_v35, %v1076_v34  ;;  %v898_v44 = vpop.f32.mrf.mxu2  ;;  %2898 = vmatpush.bf16.msra.mxu2 %v4865_v20  ;;  %v4609_v31 = vor.u32 %v5882_v24, %v4606_v43  ;;  %v5978_v35 = vld [vmem:[#allocation8 + $0x3c4] sm:$0xf]  ;;  %v4830_v24 = vld [vmem:[#allocation8 + $0x290] sm:$0xf0] }
 0x102   : > { %v921_v46 = vpop.f32.mrf.mxu3  ;;  %2726 = vmatmul.bf16.gmra.mxu2 %v6767_v38  ;;  %v854_v45 = vpop.f32.mrf.mxu0  ;;  %v899_v47 = vadd.f32 %v898_v44, %v6717_v4  ;;  %v6775_v58 = vpack.c.bf16 %v1090_v51, %v1090_v51  ;;  %v6783_v4 = vpack.c.bf16 %v1089_v52, %v1089_v52  ;;  %v4993_v41 = vor.u32 %v5978_v35, %v4990_v42  ;;  %v4846_v44 = vld [vmem:[#allocation8 + $0x2b0] sm:$0xf0]  ;;  %v5938_v20 = vld [vmem:[#allocation8 + $0x284] sm:$0xf] }
 0x103   : > { %2749 = vmatmul.bf16.gmra.mxu3 %v6769_v40  ;;  %v877_v50 = vpop.f32.mrf.mxu1  ;;  %v922_v53 = vadd.f32 %v921_v46, %v6720_v5  ;;  %v5886_v5 = vld [vmem:[#allocation8 + $0xe4] sm:$0xf]  ;;  %v4590_v45 = vld [vmem:[#allocation8 + $0xb0] sm:$0xf0]  ;;  %2875 = vmatpush.bf16.msra.mxu1 %v4737_v36  ;;  %v4849_v52 = vor.u32 %v5942_v37, %v4846_v44  ;;  %v4833_v32 = vor.u32 %v5938_v20, %v4830_v24 }
 0x104   : > { %v1051_v54 = vmul.f32 0.2, %v899_v47  ;;  %v4625_v8 = vor.u32 %v5886_v5, %v4622_v2  ;;  %v5878_v46 = vld [vmem:[#allocation8 + $0xa4] sm:$0xf]  ;;  %2921 = vmatpush.bf16.msra.mxu3 %v4993_v41  ;;  %v4814_v42 = vld [vmem:[#allocation8 + $0x270] sm:$0xf0] }
 0x105   : > { %v1052_v62 = vmul.f32 0.2, %v922_v53  ;;  %2899 = vmatpush.bf16.msra.mxu2 %v4849_v52  ;;  %v5970_v43 = vld [vmem:[#allocation8 + $0x384] sm:$0xf]  ;;  %v4558_v41 = vld [vmem:[#allocation8 + $0x70] sm:$0xf0] }
 0x106   : > { %v1091_v3 = vmax.f32 %v899_v47, %v1051_v54  ;;  %2851 = vmatpush.bf16.msra.mxu0 %v4625_v8  ;;  %v4974_v54 = vld [vmem:[#allocation8 + $0x3b0] sm:$0xf0]  ;;  %v5874_v8 = vld [vmem:[#allocation8 + $0x84] sm:$0xf] }
 0x107   : > { %v1092_v19 = vmax.f32 %v922_v53, %v1052_v62  ;;  %v5974_v53 = vld [vmem:[#allocation8 + $0x3a4] sm:$0xf]  ;;  %v4593_v62 = vor.u32 %v5878_v46, %v4590_v45  ;;  %v4577_v17 = vor.u32 %v5874_v8, %v4574_v10  ;;  %v4942_v52 = vld [vmem:[#allocation8 + $0x370] sm:$0xf0] }
 0x108   : > { %v6799_v27 = vpack.c.bf16 %v1091_v3, %v1091_v3  ;;  %v5934_v35 = vld [vmem:[#allocation8 + $0x264] sm:$0xf] }
 0x109   : > { %v900_v63 = vpop.f32.mrf.mxu2  ;;  %v6803_v33 = vpack.c.bf16 %v1092_v19, %v1092_v19  ;;  %v5902_v44 = vld [vmem:[#allocation8 + $0x164] sm:$0xf]  ;;  %2900 = vmatpush.bf16.msra.mxu2 %v4833_v32  ;;  %v4817_v45 = vor.u32 %v5934_v35, %v4814_v42  ;;  %v4526_v35 = vld [vmem:[#allocation8 + $0x30] sm:$0xf0] }
 0x10a   : > { %v923_v0 = vpop.f32.mrf.mxu3  ;;  %v934_v1 = vpop.f32.mrf.mxu0  ;;  %2852 = vmatpush.bf16.msra.mxu0 %v4609_v31  ;;  %v4977_v63 = vor.u32 %v5974_v53, %v4974_v54  ;;  %v5898_v8 = vld [vmem:[#allocation8 + $0x144] sm:$0xf] }
 0x10b   : > { %v957_v7 = vpop.f32.mrf.mxu1  ;;  %2685 = vmatmul.bf16.gmra.mxu0 %v6783_v4  ;;  %v6787_v13 = vadd.f32 %v934_v1, %v6778_v59  ;;  %v4718_v0 = vld [vmem:[#allocation8 + $0x1b0] sm:$0xf0]  ;;  %v5894_v42 = vld [vmem:[#allocation8 + $0x124] sm:$0xf] }
 0x10c   : > { %v6790_v14 = vadd.f32 %v957_v7, %v6781_v60  ;;  %2708 = vmatmul.bf16.gmra.mxu1 %v6775_v58  ;;  %v4721_v5 = vor.u32 %v5910_v56, %v4718_v0  ;;  %2922 = vmatpush.bf16.msra.mxu3 %v4977_v63 }
 0x10d   : > { %v1021_v28 = vmul.f32 0.2, %v6787_v13  ;;  %2901 = vmatpush.bf16.msra.mxu2 %v4817_v45  ;;  %v5926_v45 = vld [vmem:[#allocation8 + $0x224] sm:$0xf] }
 0x10e   : > { %v1022_v29 = vmul.f32 0.2, %v6790_v14  ;;  %2853 = vmatpush.bf16.msra.mxu0 %v4593_v62  ;;  %2876 = vmatpush.bf16.msra.mxu1 %v4721_v5  ;;  %v5930_v5 = vld [vmem:[#allocation8 + $0x244] sm:$0xf] }
 0x10f   : > { %v1061_v3 = vmax.f32 %v6787_v13, %v1021_v28  ;;  %v4705_v13 = vor.u32 %v5906_v11, %v4702_v18 }
 0x110   : > { %v1062_v2 = vmax.f32 %v6790_v14, %v1022_v29 }
 0x111   : > { %v980_v34 = vpop.f32.mrf.mxu2 }
 0x112   : > { %v1003_v48 = vpop.f32.mrf.mxu3  ;;  %2731 = vmatmul.bf16.gmra.mxu2 %v6799_v27  ;;  %v936_v39 = vpop.f32.mrf.mxu0  ;;  %v6807_v47 = vadd.f32 %v980_v34, %v6794_v22  ;;  %2854 = vmatpush.bf16.msra.mxu0 %v4577_v17  ;;  %v4958_v34 = vld [vmem:[#allocation8 + $0x390] sm:$0xf0] }
 0x113   : > { %2754 = vmatmul.bf16.gmra.mxu3 %v6803_v33  ;;  %v937_v50 = vadd.f32 %v936_v39, %v6778_v59  ;;  %v959_v51 = vpop.f32.mrf.mxu1  ;;  %v6812_v57 = vadd.f32 %v1003_v48, %v6797_v23  ;;  %v4961_v48 = vor.u32 %v5970_v43, %v4958_v34  ;;  %2877 = vmatpush.bf16.msra.mxu1 %v4705_v13  ;;  %v5870_v39 = vld [vmem:[#allocation8 + $0x64] sm:$0xf] }
 0x114   : > { %v960_v61 = vadd.f32 %v959_v51, %v6781_v60  ;;  %v1023_v12 = vmul.f32 0.2, %v6807_v47  ;;  %v5966_v51 = vld [vmem:[#allocation8 + $0x364] sm:$0xf] }
 0x115   : > { %v1029_v1 = vmul.f32 0.2, %v937_v50  ;;  %v1024_v15 = vmul.f32 0.2, %v6812_v57  ;;  %2923 = vmatpush.bf16.msra.mxu3 %v4961_v48  ;;  %v4945_v56 = vor.u32 %v5966_v51, %v4942_v52  ;;  %v4654_v48 = vld [vmem:[#allocation8 + $0x130] sm:$0xf0] }
 0x116   : > { %v1030_v30 = vmul.f32 0.2, %v960_v61  ;;  %v1063_v53 = vmax.f32 %v6807_v47, %v1023_v12  ;;  %v4542_v47 = vld [vmem:[#allocation8 + $0x50] sm:$0xf0] }
 0x117   : > { %v1069_v7 = vmax.f32 %v937_v50, %v1029_v1  ;;  %v4561_v50 = vor.u32 %v5870_v39, %v4558_v41 }
 0x118   : > { %v1070_v16 = vmax.f32 %v960_v61, %v1030_v30  ;;  %v4686_v61 = vld [vmem:[#allocation8 + $0x170] sm:$0xf0]  ;;  %v1064_v30 = vmax.f32 %v6812_v57, %v1024_v15 }
 0x119   : > { %v6819_v19 = vpack.c.bf16 %v1069_v7, %v1061_v3  ;;  %v982_v14 = vpop.f32.mrf.mxu2  ;;  %2855 = vmatpush.bf16.msra.mxu0 %v4561_v50  ;;  %v4689_v1 = vor.u32 %v5902_v44, %v4686_v61  ;;  %v5866_v7 = vld [vmem:[#allocation8 + $0x44] sm:$0xf]  ;;  %2924 = vmatpush.bf16.msra.mxu3 %v4945_v56  ;;  %v4782_v50 = vld [vmem:[#allocation8 + $0x230] sm:$0xf0] }
 0x11a   : > { %v6821_v26 = vpack.c.bf16 %v1070_v16, %v1062_v2  ;;  %v983_v28 = vadd.f32 %v982_v14, %v6794_v22  ;;  %v1005_v29 = vpop.f32.mrf.mxu3  ;;  %v939_v31 = vpop.f32.mrf.mxu0  ;;  %v4798_v2 = vld [vmem:[#allocation8 + $0x250] sm:$0xf0]  ;;  %v4545_v12 = vor.u32 %v5866_v7, %v4542_v47  ;;  %v5958_v56 = vld [vmem:[#allocation8 + $0x324] sm:$0xf] }
 0x11b   : > { %v1006_v36 = vadd.f32 %v1005_v29, %v6797_v23  ;;  %v962_v37 = vpop.f32.mrf.mxu1  ;;  %2767 = vmatmul.bf16.vlgmr.msrb.gmra.mxu0 %v6819_v19  ;;  %v6829_v63 = vadd.f32 %v939_v31, %v6778_v59  ;;  %2878 = vmatpush.bf16.msra.mxu1 %v4689_v1  ;;  %v4801_v11 = vor.u32 %v5930_v5, %v4798_v2  ;;  %v4670_v16 = vld [vmem:[#allocation8 + $0x150] sm:$0xf0]  ;;  %v5862_v31 = vld [vmem:[#allocation8 + $0x24] sm:$0xf] }
 0x11c   : > { %v1031_v46 = vmul.f32 0.2, %v983_v28  ;;  %2790 = vmatmul.bf16.vlgmr.msrb.gmra.mxu1 %v6821_v26  ;;  %v6832_v0 = vadd.f32 %v962_v37, %v6781_v60  ;;  %v4673_v14 = vor.u32 %v5898_v8, %v4670_v16  ;;  %v4926_v29 = vld [vmem:[#allocation8 + $0x350] sm:$0xf0]  ;;  %v4529_v37 = vor.u32 %v5862_v31, %v4526_v35  ;;  %v5890_v2 = vld [vmem:[#allocation8 + $0x104] sm:$0xf] }
 0x11d   : > { %v1032_v54 = vmul.f32 0.2, %v1006_v36  ;;  %v1037_v20 = vmul.f32 0.2, %v6829_v63  ;;  %2856 = vmatpush.bf16.msra.mxu0 %v4545_v12  ;;  %2902 = vmatpush.bf16.msra.mxu2 %v4801_v11  ;;  %v4910_v61 = vld [vmem:[#allocation8 + $0x330] sm:$0xf0] }
 0x11e   : > { %v1071_v62 = vmax.f32 %v983_v28, %v1031_v46  ;;  %v1038_v57 = vmul.f32 0.2, %v6832_v0  ;;  %v5962_v28 = vld [vmem:[#allocation8 + $0x344] sm:$0xf]  ;;  %v4657_v46 = vor.u32 %v5894_v42, %v4654_v48  ;;  %v4510_v5 = vld [vmem:[#allocation8 + $0x10] sm:$0xf0] }
 0x11f   : > { %v1072_v3 = vmax.f32 %v1006_v36, %v1032_v54  ;;  %2879 = vmatpush.bf16.msra.mxu1 %v4673_v14  ;;  %v4929_v34 = vor.u32 %v5962_v28, %v4926_v29  ;;  %v1077_v51 = vmax.f32 %v6829_v63, %v1037_v20  ;;  %v4785_v54 = vor.u32 %v5926_v45, %v4782_v50  ;;  %v4766_v28 = vld [vmem:[#allocation8 + $0x210] sm:$0xf0] }
 0x120   : > { %v6835_v10 = vpack.c.bf16 %v1071_v62, %v1063_v53  ;;  %v1078_v39 = vmax.f32 %v6832_v0, %v1038_v57  ;;  %v5858_v62 = vld [vmem:[#allocation8 + $0x4] sm:$0xf]  ;;  %v4913_v0 = vor.u32 %v5958_v56, %v4910_v61  ;;  %v4894_v42 = vld [vmem:[#allocation8 + $0x310] sm:$0xf0] }
 0x121   : > { %v6837_v17 = vpack.c.bf16 %v1072_v3, %v1064_v30  ;;  %v985_v18 = vpop.f32.mrf.mxu2  ;;  %2925 = vmatpush.bf16.msra.mxu3 %v4929_v34  ;;  %2857 = vmatpush.bf16.msra.mxu0 %v4529_v37  ;;  %v4638_v30 = vld [vmem:[#allocation8 + $0x110] sm:$0xf0]  ;;  %v4513_v47 = vor.u32 %v5858_v62, %v4510_v5  ;;  %v6014_v56 = vld [vmem:[#allocation8 + $0x4e4] sm:$0xf] }
 0x122   : > { %v1008_v15 = vpop.f32.mrf.mxu3  ;;  %2813 = vmatmul.bf16.vlgmr.msrb.gmra.mxu2 %v6835_v10  ;;  %v941_v24 = vpop.f32.mrf.mxu0  ;;  %v986_v41 = vadd.f32 %v985_v18, %v6794_v22  ;;  %v4641_v63 = vor.u32 %v5890_v2, %v4638_v30  ;;  %v6110_v5 = vld [vmem:[#allocation8 + $0x7e4] sm:$0xf] }
 0x123   : > { %2836 = vmatmul.bf16.vlgmr.msrb.gmra.mxu3 %v6837_v17  ;;  %v942_v43 = vadd.f32 %v941_v24, %v6778_v59  ;;  %v964_v13 = vpop.f32.mrf.mxu1  ;;  %v1009_v52 = vadd.f32 %v1008_v15, %v6797_v23  ;;  %2880 = vmatpush.bf16.msra.mxu1 %v4657_v46 }
 0x124   : > { %v965_v32 = vadd.f32 %v964_v13, %v6781_v60  ;;  %2903 = vmatpush.bf16.msra.mxu2 %v4785_v54  ;;  %v1039_v8 = vmul.f32 0.2, %v986_v41  ;;  %v5922_v13 = vld [vmem:[#allocation8 + $0x204] sm:$0xf]  ;;  %v5390_v54 = vld [vmem:[#allocation8 + $0x6f0] sm:$0xf0] }
 0x125   : > { %v1045_v36 = vmul.f32 0.2, %v942_v43  ;;  %2926 = vmatpush.bf16.msra.mxu3 %v4913_v0  ;;  %v1040_v14 = vmul.f32 0.2, %v1009_v52  ;;  %2858 = vmatpush.bf16.msra.mxu0 %v4513_v47  ;;  %v4769_v31 = vor.u32 %v5922_v13, %v4766_v28  ;;  %v5134_v0 = vld [vmem:[#allocation8 + $0x4f0] sm:$0xf0] }
 0x126   : > { %v1046_v44 = vmul.f32 0.2, %v965_v32  ;;  %v1079_v34 = vmax.f32 %v986_v41, %v1039_v8  ;;  %v5137_v30 = vor.u32 %v6014_v56, %v5134_v0  ;;  %v6046_v47 = vld [vmem:[#allocation8 + $0x5e4] sm:$0xf]  ;;  %v5262_v8 = vld [vmem:[#allocation8 + $0x5f0] sm:$0xf0] }
 0x127   : > { %v1085_v53 = vmax.f32 %v942_v43, %v1045_v36  ;;  %2881 = vmatpush.bf16.msra.mxu1 %v4641_v63  ;;  %v1080_v36 = vmax.f32 %v1009_v52, %v1040_v14  ;;  %v5502_v13 = vld [vmem:[#allocation8 + $0x7d0] sm:$0xf0]  ;;  %v6002_v0 = vld [vmem:[#allocation8 + $0x484] sm:$0xf] }
 0x128   : > { %v1086_v1 = vmax.f32 %v965_v32, %v1046_v44  ;;  %v5954_v32 = vld [vmem:[#allocation8 + $0x304] sm:$0xf]  ;;  %2904 = vmatpush.bf16.msra.mxu2 %v4769_v31  ;;  %v5230_v56 = vld [vmem:[#allocation8 + $0x5b0] sm:$0xf0] }
 0x129   : > { %v6849_v3 = vpack.c.bf16 %v1085_v53, %v1077_v51  ;;  %v987_v7 = vpop.f32.mrf.mxu2  ;;  %v6078_v53 = vld [vmem:[#allocation8 + $0x6e4] sm:$0xf]  ;;  %2943 = vmatpush.bf16.msrb.mxu0 %v5137_v30 }
 0x12a   : > { %v6851_v11 = vpack.c.bf16 %v1086_v1, %v1078_v39  ;;  %v988_v12 = vadd.f32 %v987_v7, %v6794_v22  ;;  %v1010_v16 = vpop.f32.mrf.mxu3  ;;  %v944_v18 = vpop.f32.mrf.mxu0  ;;  %v5393_v1 = vor.u32 %v6078_v53, %v5390_v54  ;;  %v5518_v7 = vld [vmem:[#allocation8 + $0x7f0] sm:$0xf0]  ;;  %v6038_v54 = vld [vmem:[#allocation8 + $0x5a4] sm:$0xf] }
 0x12b   : > { %v1011_v20 = vadd.f32 %v1010_v16, %v6797_v23  ;;  %2772 = vmatmul.bf16.gmra.mxu0 %v6849_v3  ;;  %v945_v57 = vadd.f32 %v944_v18, %v6778_v59  ;;  %v967_v15 = vpop.f32.mrf.mxu1  ;;  %v4897_v59 = vor.u32 %v5954_v32, %v4894_v42  ;;  %v5521_v63 = vor.u32 %v6110_v5, %v5518_v7  ;;  %v5374_v16 = vld [vmem:[#allocation8 + $0x6d0] sm:$0xf0]  ;;  %v6098_v7 = vld [vmem:[#allocation8 + $0x784] sm:$0xf] }
 0x12c   : > { %v1047_v24 = vmul.f32 0.2, %v988_v12  ;;  %2795 = vmatmul.bf16.gmra.mxu1 %v6851_v11  ;;  %v968_v43 = vadd.f32 %v967_v15, %v6781_v60  ;;  %2989 = vmatpush.bf16.msrb.mxu2 %v5393_v1  ;;  %v5265_v18 = vor.u32 %v6046_v47, %v5262_v8  ;;  %v5246_v42 = vld [vmem:[#allocation8 + $0x5d0] sm:$0xf0] }
 0x12d   : > { %v1048_v29 = vmul.f32 0.2, %v1011_v20  ;;  %v1053_v48 = vmul.f32 0.2, %v945_v57  ;;  %2927 = vmatpush.bf16.msra.mxu3 %v4897_v59  ;;  %v6006_v59 = vld [vmem:[#allocation8 + $0x4a4] sm:$0xf] }
 0x12e   : > { %v1087_v35 = vmax.f32 %v988_v12, %v1047_v24  ;;  %v1054_v44 = vmul.f32 0.2, %v968_v43  ;;  %v6074_v12 = vld [vmem:[#allocation8 + $0x6c4] sm:$0xf]  ;;  %2966 = vmatpush.bf16.msrb.mxu1 %v5265_v18  ;;  %v5342_v1 = vld [vmem:[#allocation8 + $0x690] sm:$0xf0] }
 0x12f   : > { %v1088_v37 = vmax.f32 %v1011_v20, %v1048_v29  ;;  %v1093_v41 = vmax.f32 %v945_v57, %v1053_v48  ;;  %v5377_v14 = vor.u32 %v6074_v12, %v5374_v16  ;;  %v6010_v20 = vld [vmem:[#allocation8 + $0x4c4] sm:$0xf]  ;;  %v5358_v48 = vld [vmem:[#allocation8 + $0x6b0] sm:$0xf0] }
 0x130   : > { %v6859_v39 = vpack.c.bf16 %v1087_v35, %v1079_v34  ;;  %v1094_v62 = vmax.f32 %v968_v43, %v1054_v44  ;;  %v6106_v57 = vld [vmem:[#allocation8 + $0x7c4] sm:$0xf]  ;;  %v5102_v44 = vld [vmem:[#allocation8 + $0x4b0] sm:$0xf0] }
 0x131   : > { %v6861_v46 = vpack.c.bf16 %v1088_v37, %v1080_v36  ;;  %v990_v60 = vpop.f32.mrf.mxu2  ;;  %3012 = vmatpush.bf16.msrb.mxu3 %v5521_v63  ;;  %v5505_v29 = vor.u32 %v6106_v57, %v5502_v13  ;;  %2990 = vmatpush.bf16.msrb.mxu2 %v5377_v14  ;;  %v6042_v35 = vld [vmem:[#allocation8 + $0x5c4] sm:$0xf]  ;;  %v5086_v5 = vld [vmem:[#allocation8 + $0x490] sm:$0xf0] }
 0x132   : > { %2818 = vmatmul.bf16.gmra.mxu2 %v6859_v39  ;;  %v1013_v45 = vpop.f32.mrf.mxu3  ;;  %v946_v50 = vpop.f32.mrf.mxu0  ;;  %v991_v61 = vadd.f32 %v990_v60, %v6794_v22  ;;  %v5118_v22 = vld [vmem:[#allocation8 + $0x4d0] sm:$0xf0]  ;;  %v6869_v24 = vpack.c.bf16 %v1094_v62, %v1094_v62  ;;  %v6070_v36 = vld [vmem:[#allocation8 + $0x6a4] sm:$0xf]  ;;  %v5249_v37 = vor.u32 %v6042_v35, %v5246_v42  ;;  %v5233_v62 = vor.u32 %v6038_v54, %v5230_v56 }
 0x133   : > { %2841 = vmatmul.bf16.gmra.mxu3 %v6861_v46  ;;  %v1014_v51 = vadd.f32 %v1013_v45, %v6797_v23  ;;  %v969_v52 = vpop.f32.mrf.mxu1  ;;  %v6867_v23 = vpack.c.bf16 %v1093_v41, %v1093_v41  ;;  %v5121_v43 = vor.u32 %v6010_v20, %v5118_v22  ;;  %v5361_v60 = vor.u32 %v6070_v36, %v5358_v48  ;;  %v6102_v50 = vld [vmem:[#allocation8 + $0x7a4] sm:$0xf]  ;;  %v5486_v41 = vld [vmem:[#allocation8 + $0x7b0] sm:$0xf0] }
 0x134   : > { %v1055_v15 = vmul.f32 0.2, %v991_v61  ;;  %v5105_v45 = vor.u32 %v6006_v59, %v5102_v44  ;;  %2967 = vmatpush.bf16.msrb.mxu1 %v5249_v37  ;;  %v5089_v30 = vor.u32 %v6002_v0, %v5086_v5  ;;  %v5470_v47 = vld [vmem:[#allocation8 + $0x790] sm:$0xf0]  ;;  %v6034_v63 = vld [vmem:[#allocation8 + $0x584] sm:$0xf] }
 0x135   : > { %v1056_v2 = vmul.f32 0.2, %v1014_v51  ;;  %2944 = vmatpush.bf16.msrb.mxu0 %v5121_v43  ;;  %3013 = vmatpush.bf16.msrb.mxu3 %v5505_v29  ;;  %v5473_v8 = vor.u32 %v6098_v7, %v5470_v47  ;;  %v5214_v12 = vld [vmem:[#allocation8 + $0x590] sm:$0xf0]  ;;  %v6062_v18 = vld [vmem:[#allocation8 + $0x664] sm:$0xf] }
 0x136   : > { %v1095_v34 = vmax.f32 %v991_v61, %v1055_v15  ;;  %2991 = vmatpush.bf16.msrb.mxu2 %v5361_v60  ;;  %v6066_v61 = vld [vmem:[#allocation8 + $0x684] sm:$0xf]  ;;  %v5217_v16 = vor.u32 %v6034_v63, %v5214_v12  ;;  %v5326_v14 = vld [vmem:[#allocation8 + $0x670] sm:$0xf0] }
 0x137   : > { %v1096_v32 = vmax.f32 %v1014_v51, %v1056_v2  ;;  %v5489_v51 = vor.u32 %v6102_v50, %v5486_v41  ;;  %v5345_v2 = vor.u32 %v6066_v61, %v5342_v1  ;;  %v5998_v20 = vld [vmem:[#allocation8 + $0x464] sm:$0xf]  ;;  %v5329_v22 = vor.u32 %v6062_v18, %v5326_v14  ;;  %v5070_v57 = vld [vmem:[#allocation8 + $0x470] sm:$0xf0] }
 0x138   : > { %v6875_v53 = vpack.c.bf16 %v1095_v34, %v1095_v34  ;;  %2968 = vmatpush.bf16.msrb.mxu1 %v5233_v62  ;;  %v6094_v15 = vld [vmem:[#allocation8 + $0x764] sm:$0xf]  ;;  %v5454_v43 = vld [vmem:[#allocation8 + $0x770] sm:$0xf0]  ;;  %v5073_v13 = vor.u32 %v5998_v20, %v5070_v57 }
 0x139   : > { %v992_v28 = vpop.f32.mrf.mxu2  ;;  %v6873_v52 = vpack.c.bf16 %v1096_v32, %v1096_v32  ;;  %2945 = vmatpush.bf16.msrb.mxu0 %v5105_v45  ;;  %3014 = vmatpush.bf16.msrb.mxu3 %v5489_v51  ;;  %v6030_v29 = vld [vmem:[#allocation8 + $0x564] sm:$0xf]  ;;  %v5310_v35 = vld [vmem:[#allocation8 + $0x650] sm:$0xf0] }
 0x13a   : > { %v1015_v31 = vpop.f32.mrf.mxu3  ;;  %2992 = vmatpush.bf16.msrb.mxu2 %v5345_v2  ;;  %v5457_v28 = vor.u32 %v6094_v15, %v5454_v43  ;;  %v6058_v32 = vld [vmem:[#allocation8 + $0x644] sm:$0xf]  ;;  %v5054_v37 = vld [vmem:[#allocation8 + $0x450] sm:$0xf0] }
 0x13b   : > { %2777 = vmatmul.bf16.gmra.mxu0 %v6867_v23  ;;  %v5198_v31 = vld [vmem:[#allocation8 + $0x570] sm:$0xf0]  ;;  %v5313_v42 = vor.u32 %v6058_v32, %v5310_v35  ;;  %v5994_v36 = vld [vmem:[#allocation8 + $0x444] sm:$0xf]  ;;  %v4628_v32 = vld [vmem:[#allocation8 + $0xe8] sm:$0xf] }
 0x13c   : > { %2800 = vmatmul.bf16.gmra.mxu1 %v6869_v24  ;;  %v5201_v34 = vor.u32 %v6030_v29, %v5198_v31  ;;  %v6026_v48 = vld [vmem:[#allocation8 + $0x544] sm:$0xf]  ;;  %v5057_v59 = vor.u32 %v5994_v36, %v5054_v37  ;;  %v5182_v44 = vld [vmem:[#allocation8 + $0x550] sm:$0xf0]  ;;  %v4884_v29 = vld [vmem:[#allocation8 + $0x2e8] sm:$0xf] }
 0x13d   : > { %2946 = vmatpush.bf16.msrb.mxu0 %v5089_v30  ;;  %3015 = vmatpush.bf16.msrb.mxu3 %v5473_v8  ;;  %v5185_v60 = vor.u32 %v6026_v48, %v5182_v44  ;;  %v6090_v45 = vld [vmem:[#allocation8 + $0x744] sm:$0xf]  ;;  %v5438_v50 = vld [vmem:[#allocation8 + $0x750] sm:$0xf0]  ;;  %v5953_v31 = vld [vmem:[#allocation8 + $0x2f4] sm:$0xf0] }
 0x13e   : > { %2969 = vmatpush.bf16.msrb.mxu1 %v5217_v16  ;;  %2993 = vmatpush.bf16.msrb.mxu2 %v5329_v22  ;;  %v5990_v41 = vld [vmem:[#allocation8 + $0x424] sm:$0xf]  ;;  %v5441_v51 = vor.u32 %v6090_v45, %v5438_v50  ;;  %v5038_v54 = vld [vmem:[#allocation8 + $0x430] sm:$0xf0]  ;;  %v5889_v35 = vld [vmem:[#allocation8 + $0xf4] sm:$0xf0] }
 0x13f   : > { %v6022_v56 = vld [vmem:[#allocation8 + $0x524] sm:$0xf]  ;;  %v5166_v61 = vld [vmem:[#allocation8 + $0x530] sm:$0xf0]  ;;  %v5041_v62 = vor.u32 %v5990_v41, %v5038_v54  ;;  %v5985_v36 = vld [vmem:[#allocation8 + $0x3f4] sm:$0xf0]  ;;  %v4629_v48 = vor.u32 %v5889_v35, %v4628_v32 }
 0x140   : > { %v5169_v1 = vor.u32 %v6022_v56, %v5166_v61  ;;  %v5986_v0 = vld [vmem:[#allocation8 + $0x404] sm:$0xf]  ;;  %v5022_v5 = vld [vmem:[#allocation8 + $0x410] sm:$0xf0]  ;;  %v5921_v45 = vld [vmem:[#allocation8 + $0x1f4] sm:$0xf0] }
 0x141   : > { %2947 = vmatpush.bf16.msrb.mxu0 %v5073_v13  ;;  %3016 = vmatpush.bf16.msrb.mxu3 %v5457_v28  ;;  %v6018_v2 = vld [vmem:[#allocation8 + $0x504] sm:$0xf]  ;;  %v5294_v7 = vld [vmem:[#allocation8 + $0x630] sm:$0xf0]  ;;  %v5025_v12 = vor.u32 %v5986_v0, %v5022_v5  ;;  %v4868_v50 = vld [vmem:[#allocation8 + $0x2c8] sm:$0xf] }
 0x142   : > { %2823 = vmatmul.bf16.gmra.mxu2 %v6875_v53  ;;  %2970 = vmatpush.bf16.msrb.mxu1 %v5201_v34  ;;  %v6054_v30 = vld [vmem:[#allocation8 + $0x624] sm:$0xf]  ;;  %v5422_v8 = vld [vmem:[#allocation8 + $0x730] sm:$0xf0]  ;;  %v4885_v34 = vor.u32 %v5953_v31, %v4884_v29  ;;  %v5949_v56 = vld [vmem:[#allocation8 + $0x2d4] sm:$0xf0] }
 0x143   : > { %2846 = vmatmul.bf16.gmra.mxu3 %v6873_v52  ;;  %2994 = vmatpush.bf16.msrb.mxu2 %v5313_v42  ;;  %v6086_v47 = vld [vmem:[#allocation8 + $0x724] sm:$0xf]  ;;  %v5297_v63 = vor.u32 %v6054_v30, %v5294_v7  ;;  %v5150_v16 = vld [vmem:[#allocation8 + $0x510] sm:$0xf0]  ;;  %v5012_v42 = vld [vmem:[#allocation8 + $0x3e8] sm:$0xf]  ;;  %v4869_v61 = vor.u32 %v5949_v56, %v4868_v50 }
 0x144   : > { %v5425_v18 = vor.u32 %v6086_v47, %v5422_v8  ;;  %v5153_v14 = vor.u32 %v6018_v2, %v5150_v16  ;;  %v6050_v20 = vld [vmem:[#allocation8 + $0x604] sm:$0xf]  ;;  %v5278_v22 = vld [vmem:[#allocation8 + $0x610] sm:$0xf0]  ;;  %v5885_v0 = vld [vmem:[#allocation8 + $0xd4] sm:$0xf0] }
 0x145   : > { %2948 = vmatpush.bf16.msrb.mxu0 %v5057_v59  ;;  %3017 = vmatpush.bf16.msrb.mxu3 %v5441_v51  ;;  %v5281_v57 = vor.u32 %v6050_v20, %v5278_v22  ;;  %v6082_v15 = vld [vmem:[#allocation8 + $0x704] sm:$0xf]  ;;  %v5406_v43 = vld [vmem:[#allocation8 + $0x710] sm:$0xf0]  ;;  %v5013_v59 = vor.u32 %v5985_v36, %v5012_v42  ;;  %v4996_v5 = vld [vmem:[#allocation8 + $0x3c8] sm:$0xf] }
 0x146   : > { %2971 = vmatpush.bf16.msrb.mxu1 %v5185_v60  ;;  %v5409_v13 = vor.u32 %v6082_v15, %v5406_v43  ;;  %v6889_v28 = vld [vmem:[%s7245_s4] sm:$0xf]  ;;  %v5981_v30 = vld [vmem:[#allocation8 + $0x3d4] sm:$0xf0] }
 0x147   : > { %2995 = vmatpush.bf16.msrb.mxu2 %v5297_v63  ;;  %v6893_v37 = vperm.slane %v6889_v28, 0  ;;  %v4756_v60 = vld [vmem:[#allocation8 + $0x1e8] sm:$0xf]  ;;  %v5917_v47 = vld [vmem:[#allocation8 + $0x1d4] sm:$0xf0]  ;;  %v4997_v63 = vor.u32 %v5981_v30, %v4996_v5 }
 0x148   : > { %v4757_v54 = vor.u32 %v5921_v45, %v4756_v60  ;;  %v4740_v7 = vld [vmem:[#allocation8 + $0x1c8] sm:$0xf]  ;;  %v5881_v15 = vld [vmem:[#allocation8 + $0xb4] sm:$0xf0] }
 0x149   : > { %2949 = vmatpush.bf16.msrb.mxu0 %v5041_v62  ;;  %3018 = vmatpush.bf16.msrb.mxu3 %v5425_v18  ;;  %v4741_v8 = vor.u32 %v5917_v47, %v4740_v7  ;;  %v4852_v16 = vld [vmem:[#allocation8 + $0x2a8] sm:$0xf]  ;;  %v5945_v18 = vld [vmem:[#allocation8 + $0x2b4] sm:$0xf0] }
 0x14a   : > { %2972 = vmatpush.bf16.msrb.mxu1 %v5169_v1  ;;  %v4612_v1 = vld [vmem:[#allocation8 + $0xc8] sm:$0xf]  ;;  %v5913_v35 = vld [vmem:[#allocation8 + $0x1b4] sm:$0xf0] }
 0x14b   : > { %2859 = vmatmul.bf16.vlgmr.msra.gmra.mxu0 %v6732_v49  ;;  %2996 = vmatpush.bf16.msrb.mxu2 %v5281_v57  ;;  %v4613_v2 = vor.u32 %v5885_v0, %v4612_v1  ;;  %v4853_v57 = vor.u32 %v5945_v18, %v4852_v16  ;;  %v4980_v43 = vld [vmem:[#allocation8 + $0x3a8] sm:$0xf]  ;;  %v5973_v0 = vld [vmem:[#allocation8 + $0x394] sm:$0xf0] }
 0x14c   : > { %2882 = vmatmul.bf16.vlgmr.msra.gmra.mxu1 %v6734_v55  ;;  %v4836_v42 = vld [vmem:[#allocation8 + $0x288] sm:$0xf]  ;;  %v5909_v5 = vld [vmem:[#allocation8 + $0x194] sm:$0xf0] }
 0x14d   : > { %2950 = vmatpush.bf16.msrb.mxu0 %v5025_v12  ;;  %3019 = vmatpush.bf16.msrb.mxu3 %v5409_v13  ;;  %v5977_v13 = vld [vmem:[#allocation8 + $0x3b4] sm:$0xf0]  ;;  %v4580_v50 = vld [vmem:[#allocation8 + $0x88] sm:$0xf] }
 0x14e   : > { %2973 = vmatpush.bf16.msrb.mxu1 %v5153_v14  ;;  %v4596_v14 = vld [vmem:[#allocation8 + $0xa8] sm:$0xf]  ;;  %v4981_v31 = vor.u32 %v5977_v13, %v4980_v43  ;;  %v5873_v18 = vld [vmem:[#allocation8 + $0x74] sm:$0xf0] }
 0x14f   : > { %v4597_v29 = vor.u32 %v5881_v15, %v4596_v14  ;;  %v4964_v1 = vld [vmem:[#allocation8 + $0x388] sm:$0xf]  ;;  %v5905_v13 = vld [vmem:[#allocation8 + $0x174] sm:$0xf0] }
 0x150   : > { %v4965_v7 = vor.u32 %v5973_v0, %v4964_v1  ;;  %v4948_v14 = vld [vmem:[#allocation8 + $0x368] sm:$0xf]  ;;  %v5965_v0 = vld [vmem:[#allocation8 + $0x354] sm:$0xf0] }
 0x151   : > { %3035 = vmatpush.bf16.msra.mxu0 %v4629_v48  ;;  %v5941_v48 = vld [vmem:[#allocation8 + $0x294] sm:$0xf0]  ;;  %v4692_v43 = vld [vmem:[#allocation8 + $0x168] sm:$0xf] }
 0x152   : > { %2905 = vmatmul.bf16.vlgmr.msra.gmra.mxu2 %v6745_v21  ;;  %3058 = vmatpush.bf16.msra.mxu1 %v4757_v54  ;;  %v4932_v1 = vld [vmem:[#allocation8 + $0x348] sm:$0xf] }
 0x153   : > { %2928 = vmatmul.bf16.vlgmr.msra.gmra.mxu3 %v6747_v25  ;;  %3081 = vmatpush.bf16.msra.mxu2 %v4885_v34  ;;  %v4724_v34 = vld [vmem:[#allocation8 + $0x1a8] sm:$0xf] }
 0x154   : > { %3104 = vmatpush.bf16.msra.mxu3 %v5013_v59  ;;  %v4725_v36 = vor.u32 %v5913_v35, %v4724_v34  ;;  %v4693_v34 = vor.u32 %v5905_v13, %v4692_v43  ;;  %v4804_v35 = vld [vmem:[#allocation8 + $0x248] sm:$0xf]  ;;  %v5893_v43 = vld [vmem:[#allocation8 + $0x114] sm:$0xf0] }
 0x155   : > { %3036 = vmatpush.bf16.msra.mxu0 %v4613_v2 }
 0x156   : > { %3059 = vmatpush.bf16.msra.mxu1 %v4741_v8  ;;  %v5937_v8 = vld [vmem:[#allocation8 + $0x274] sm:$0xf0] }
 0x157   : > { %3082 = vmatpush.bf16.msra.mxu2 %v4869_v61 }
 0x158   : > { %3105 = vmatpush.bf16.msra.mxu3 %v4997_v63  ;;  %v4820_v63 = vld [vmem:[#allocation8 + $0x268] sm:$0xf] }
 0x159   : > { %3037 = vmatpush.bf16.msra.mxu0 %v4597_v29  ;;  %v4821_v16 = vor.u32 %v5937_v8, %v4820_v63 }
 0x15a   : > { %3060 = vmatpush.bf16.msra.mxu1 %v4725_v36 }
 0x15b   : > { %2864 = vmatmul.bf16.gmra.mxu0 %v6757_v6  ;;  %3083 = vmatpush.bf16.msra.mxu2 %v4853_v57 }
 0x15c   : > { %2887 = vmatmul.bf16.gmra.mxu1 %v6759_v9  ;;  %3106 = vmatpush.bf16.msra.mxu3 %v4981_v31 }
 0x160   : > { %3107 = vmatpush.bf16.msra.mxu3 %v4965_v7  ;;  %v4660_v7 = vld [vmem:[#allocation8 + $0x128] sm:$0xf] }
 0x162   : > { %2910 = vmatmul.bf16.gmra.mxu2 %v6767_v38 }
 0x163   : > { %2933 = vmatmul.bf16.gmra.mxu3 %v6769_v40 }
 0x168   : > { %v2676_v44 = vpop.f32.mrf.mxu0 }
 0x169   : > { %v2677_v41 = vadd.f32 %v2676_v44, %v6893_v37  ;;  %v2699_v51 = vpop.f32.mrf.mxu1  ;;  %v4837_v44 = vor.u32 %v5941_v48, %v4836_v42  ;;  %v5933_v42 = vld [vmem:[#allocation8 + $0x254] sm:$0xf0]  ;;  %v4548_v48 = vld [vmem:[#allocation8 + $0x48] sm:$0xf] }
 0x16a   : > { %v4805_v36 = vor.u32 %v5933_v42, %v4804_v35  ;;  %v4916_v35 = vld [vmem:[#allocation8 + $0x328] sm:$0xf] }
 0x16b   : > { %v2700_v62 = vadd.f32 %v2699_v51, %v2677_v41  ;;  %2869 = vmatmul.bf16.gmra.mxu0 %v6783_v4  ;;  %3084 = vmatpush.bf16.msra.mxu2 %v4837_v44  ;;  %v5877_v41 = vld [vmem:[#allocation8 + $0x94] sm:$0xf0]  ;;  %v4708_v51 = vld [vmem:[#allocation8 + $0x188] sm:$0xf] }
 0x16c   : > { %2892 = vmatmul.bf16.gmra.mxu1 %v6775_v58  ;;  %v4581_v61 = vor.u32 %v5877_v41, %v4580_v50  ;;  %v4709_v47 = vor.u32 %v5909_v5, %v4708_v51  ;;  %v4676_v44 = vld [vmem:[#allocation8 + $0x148] sm:$0xf]  ;;  %v5901_v41 = vld [vmem:[#allocation8 + $0x154] sm:$0xf0] }
 0x16d   : > { %v4532_v5 = vld [vmem:[#allocation8 + $0x28] sm:$0xf] }
 0x16e   : > { %3038 = vmatpush.bf16.msra.mxu0 %v4581_v61  ;;  %3061 = vmatpush.bf16.msra.mxu1 %v4709_v47  ;;  %v5897_v47 = vld [vmem:[#allocation8 + $0x134] sm:$0xf0] }
 0x16f   : > { %3085 = vmatpush.bf16.msra.mxu2 %v4821_v16 }
 0x170   : > { %v2678_v12 = vpop.f32.mrf.mxu0 }
 0x171   : > { %v2679_v20 = vadd.f32 %v2678_v12, %v6893_v37  ;;  %v2701_v22 = vpop.f32.mrf.mxu1  ;;  %v4564_v12 = vld [vmem:[#allocation8 + $0x68] sm:$0xf] }
 0x172   : > { %2915 = vmatmul.bf16.gmra.mxu2 %v6799_v27  ;;  %v4565_v57 = vor.u32 %v5873_v18, %v4564_v12  ;;  %3062 = vmatpush.bf16.msra.mxu1 %v4693_v34  ;;  %v4661_v12 = vor.u32 %v5897_v47, %v4660_v7  ;;  %v5929_v34 = vld [vmem:[#allocation8 + $0x234] sm:$0xf0] }
 0x173   : > { %v2702_v32 = vadd.f32 %v2701_v22, %v2679_v20  ;;  %2938 = vmatmul.bf16.gmra.mxu3 %v6803_v33  ;;  %v5969_v20 = vld [vmem:[#allocation8 + $0x374] sm:$0xf0]  ;;  %3086 = vmatpush.bf16.msra.mxu2 %v4805_v36 }
 0x174   : > { %v4949_v15 = vor.u32 %v5969_v20, %v4948_v14  ;;  %3039 = vmatpush.bf16.msra.mxu0 %v4565_v57  ;;  %v4516_v14 = vld [vmem:[#allocation8 + $0x8] sm:$0xf]  ;;  %v5861_v20 = vld [vmem:[#allocation8 + $0x14] sm:$0xf0] }
 0x175   : > { %v2722_v59 = vpop.f32.mrf.mxu2  ;;  %v4517_v42 = vor.u32 %v5861_v20, %v4516_v14  ;;  %v5524_v14 = vld [vmem:[#allocation8 + $0x7e8] sm:$0xf]  ;;  %v6113_v20 = vld [vmem:[#allocation8 + $0x7f4] sm:$0xf0] }
 0x176   : > { %v2723_v60 = vadd.f32 %v2722_v59, %v2700_v62  ;;  %v2745_v45 = vpop.f32.mrf.mxu3  ;;  %3108 = vmatpush.bf16.msra.mxu3 %v4949_v15  ;;  %v5869_v59 = vld [vmem:[#allocation8 + $0x54] sm:$0xf0] }
 0x177   : > { %v4549_v50 = vor.u32 %v5869_v59, %v4548_v48 }
 0x178   : > { %v6901_v54 = vadd.f32 %v2745_v45, %v2723_v60  ;;  %v2681_v56 = vpop.f32.mrf.mxu0 }
 0x179   : > { %v2682_v2 = vadd.f32 %v2681_v56, %v6893_v37  ;;  %v2704_v30 = vpop.f32.mrf.mxu1  ;;  %3040 = vmatpush.bf16.msra.mxu0 %v4549_v50  ;;  %v5925_v50 = vld [vmem:[#allocation8 + $0x214] sm:$0xf0] }
 0x17b   : > { %v2705_v62 = vadd.f32 %v2704_v30, %v2682_v2  ;;  %2951 = vmatmul.bf16.vlgmr.msrb.gmra.mxu0 %v6819_v19  ;;  %v4933_v2 = vor.u32 %v5965_v0, %v4932_v1  ;;  %v5865_v30 = vld [vmem:[#allocation8 + $0x34] sm:$0xf0] }
 0x17c   : > { %2974 = vmatmul.bf16.vlgmr.msrb.gmra.mxu1 %v6821_v26  ;;  %v4533_v8 = vor.u32 %v5865_v30, %v4532_v5 }
 0x17d   : > { %v2724_v22 = vpop.f32.mrf.mxu2  ;;  %3109 = vmatpush.bf16.msra.mxu3 %v4933_v2 }
 0x17e   : > { %v2725_v29 = vadd.f32 %v2724_v22, %v2702_v32  ;;  %v2747_v31 = vpop.f32.mrf.mxu3  ;;  %v4677_v32 = vor.u32 %v5901_v41, %v4676_v44  ;;  %v4644_v22 = vld [vmem:[#allocation8 + $0x108] sm:$0xf]  ;;  %3041 = vmatpush.bf16.msra.mxu0 %v4533_v8 }
 0x17f   : > { %v4645_v48 = vor.u32 %v5893_v43, %v4644_v22  ;;  %v5396_v8 = vld [vmem:[#allocation8 + $0x6e8] sm:$0xf] }
 0x180   : > { %v6906_v60 = vadd.f32 %v2747_v31, %v2725_v29  ;;  %v2683_v45 = vpop.f32.mrf.mxu0  ;;  %3063 = vmatpush.bf16.msra.mxu1 %v4677_v32  ;;  %v4788_v31 = vld [vmem:[#allocation8 + $0x228] sm:$0xf] }
 0x181   : > { %v2684_v51 = vadd.f32 %v2683_v45, %v6893_v37  ;;  %v2706_v56 = vpop.f32.mrf.mxu1  ;;  %v4789_v36 = vor.u32 %v5929_v34, %v4788_v31  ;;  %v4772_v45 = vld [vmem:[#allocation8 + $0x208] sm:$0xf] }
 0x182   : > { %2997 = vmatmul.bf16.vlgmr.msrb.gmra.mxu2 %v6835_v10  ;;  %3042 = vmatpush.bf16.msra.mxu0 %v4517_v42  ;;  %v6049_v42 = vld [vmem:[#allocation8 + $0x5f4] sm:$0xf0] }
 0x183   : > { %v2707_v61 = vadd.f32 %v2706_v56, %v2684_v51  ;;  %3020 = vmatmul.bf16.vlgmr.msrb.gmra.mxu3 %v6837_v17  ;;  %3087 = vmatpush.bf16.msra.mxu2 %v4789_v36  ;;  %v4900_v51 = vld [vmem:[#allocation8 + $0x308] sm:$0xf]  ;;  %v5957_v56 = vld [vmem:[#allocation8 + $0x314] sm:$0xf0] }
 0x184   : > { %3064 = vmatpush.bf16.msra.mxu1 %v4661_v12  ;;  %v4901_v0 = vor.u32 %v5957_v56, %v4900_v51  ;;  %v6081_v12 = vld [vmem:[#allocation8 + $0x6f4] sm:$0xf0] }
 0x185   : > { %v2727_v63 = vpop.f32.mrf.mxu2 }
 0x186   : > { %v2728_v16 = vadd.f32 %v2727_v63, %v2705_v62  ;;  %v2750_v18 = vpop.f32.mrf.mxu3  ;;  %v5961_v62 = vld [vmem:[#allocation8 + $0x334] sm:$0xf0] }
 0x187   : > { %v4917_v44 = vor.u32 %v5961_v62, %v4916_v35  ;;  %v5268_v35 = vld [vmem:[#allocation8 + $0x5e8] sm:$0xf] }
 0x188   : > { %v6911_v57 = vadd.f32 %v2750_v18, %v2728_v16  ;;  %v2686_v15 = vpop.f32.mrf.mxu0  ;;  %3065 = vmatpush.bf16.msra.mxu1 %v4645_v48  ;;  %v5140_v16 = vld [vmem:[#allocation8 + $0x4e8] sm:$0xf]  ;;  %v6017_v18 = vld [vmem:[#allocation8 + $0x4f4] sm:$0xf0]  ;;  %v5269_v36 = vor.u32 %v6049_v42, %v5268_v35 }
 0x189   : > { %v2687_v13 = vadd.f32 %v2686_v15, %v6893_v37  ;;  %v2709_v29 = vpop.f32.mrf.mxu1  ;;  %3110 = vmatpush.bf16.msra.mxu3 %v4917_v44  ;;  %v4773_v37 = vor.u32 %v5925_v50, %v4772_v45  ;;  %v5141_v43 = vor.u32 %v6017_v18, %v5140_v16  ;;  %v5380_v62 = vld [vmem:[#allocation8 + $0x6c8] sm:$0xf]  ;;  %v6077_v48 = vld [vmem:[#allocation8 + $0x6d4] sm:$0xf0] }
 0x18a   : > { %v5381_v45 = vor.u32 %v6077_v48, %v5380_v62  ;;  %v6013_v50 = vld [vmem:[#allocation8 + $0x4d4] sm:$0xf0]  ;;  %v5364_v16 = vld [vmem:[#allocation8 + $0x6a8] sm:$0xf] }
 0x18b   : > { %v2710_v59 = vadd.f32 %v2709_v29, %v2687_v13  ;;  %2956 = vmatmul.bf16.gmra.mxu0 %v6849_v3  ;;  %3088 = vmatpush.bf16.msra.mxu2 %v4773_v37  ;;  %v5525_v13 = vor.u32 %v6113_v20, %v5524_v14  ;;  %v5492_v14 = vld [vmem:[#allocation8 + $0x7a8] sm:$0xf] }
 0x18c   : > { %2979 = vmatmul.bf16.gmra.mxu1 %v6851_v11  ;;  %3127 = vmatpush.bf16.msrb.mxu0 %v5141_v43  ;;  %v6105_v43 = vld [vmem:[#allocation8 + $0x7b4] sm:$0xf0]  ;;  %v5092_v48 = vld [vmem:[#allocation8 + $0x488] sm:$0xf] }
 0x18d   : > { %v2729_v41 = vpop.f32.mrf.mxu2  ;;  %3111 = vmatpush.bf16.msra.mxu3 %v4901_v0  ;;  %3150 = vmatpush.bf16.msrb.mxu1 %v5269_v36  ;;  %v5493_v35 = vor.u32 %v6105_v43, %v5492_v14  ;;  %v6069_v36 = vld [vmem:[#allocation8 + $0x694] sm:$0xf0]  ;;  %v5332_v14 = vld [vmem:[#allocation8 + $0x668] sm:$0xf] }
 0x18e   : > { %v2730_v32 = vadd.f32 %v2729_v41, %v2707_v61  ;;  %v2752_v1 = vpop.f32.mrf.mxu3  ;;  %v5397_v61 = vor.u32 %v6081_v12, %v5396_v8  ;;  %v5508_v41 = vld [vmem:[#allocation8 + $0x7c8] sm:$0xf]  ;;  %v6009_v8 = vld [vmem:[#allocation8 + $0x4b4] sm:$0xf0] }
 0x18f   : > { %v5236_v12 = vld [vmem:[#allocation8 + $0x5a8] sm:$0xf] }
 0x190   : > { %v6916_v5 = vadd.f32 %v2752_v1, %v2730_v32  ;;  %v2688_v2 = vpop.f32.mrf.mxu0  ;;  %3173 = vmatpush.bf16.msrb.mxu2 %v5397_v61  ;;  %v5252_v32 = vld [vmem:[#allocation8 + $0x5c8] sm:$0xf]  ;;  %v6045_v1 = vld [vmem:[#allocation8 + $0x5d4] sm:$0xf0] }
 0x191   : > { %v2711_v30 = vpop.f32.mrf.mxu1  ;;  %3196 = vmatpush.bf16.msrb.mxu3 %v5525_v13  ;;  %v5253_v0 = vor.u32 %v6045_v1, %v5252_v32  ;;  %v6073_v61 = vld [vmem:[#allocation8 + $0x6b4] sm:$0xf0]  ;;  %v5076_v32 = vld [vmem:[#allocation8 + $0x468] sm:$0xf] }
 0x192   : > { %3002 = vmatmul.bf16.gmra.mxu2 %v6859_v39  ;;  %v6041_v13 = vld [vmem:[#allocation8 + $0x5b4] sm:$0xf0] }
 0x193   : > { %3025 = vmatmul.bf16.gmra.mxu3 %v6861_v46  ;;  %3151 = vmatpush.bf16.msrb.mxu1 %v5253_v0  ;;  %v5237_v42 = vor.u32 %v6041_v13, %v5236_v12  ;;  %v6001_v1 = vld [vmem:[#allocation8 + $0x474] sm:$0xf0]  ;;  %v5204_v0 = vld [vmem:[#allocation8 + $0x568] sm:$0xf] }
 0x194   : > { %3174 = vmatpush.bf16.msrb.mxu2 %v5381_v45  ;;  %v6101_v12 = vld [vmem:[#allocation8 + $0x794] sm:$0xf0] }
 0x195   : > { %v2732_v7 = vpop.f32.mrf.mxu2  ;;  %v6097_v13 = vld [vmem:[#allocation8 + $0x774] sm:$0xf0] }
 0x196   : > { %v2733_v47 = vadd.f32 %v2732_v7, %v2710_v59  ;;  %v2755_v63 = vpop.f32.mrf.mxu3  ;;  %v5124_v59 = vld [vmem:[#allocation8 + $0x4c8] sm:$0xf] }
 0x197   : > { %v5125_v51 = vor.u32 %v6013_v50, %v5124_v59  ;;  %v6005_v59 = vld [vmem:[#allocation8 + $0x494] sm:$0xf0]  ;;  %3152 = vmatpush.bf16.msrb.mxu1 %v5237_v42 }
 0x198   : > { %v6920_v22 = vadd.f32 %v2755_v63, %v2733_v47  ;;  %v2768_v15 = vpop.f32.mrf.mxu0  ;;  %v5108_v63 = vld [vmem:[#allocation8 + $0x4a8] sm:$0xf] }
 0x199   : > { %v2769_v29 = vadd.f32 %v2768_v15, %v6901_v54  ;;  %v2791_v31 = vpop.f32.mrf.mxu1  ;;  %v6109_v54 = vld [vmem:[#allocation8 + $0x7d4] sm:$0xf0]  ;;  %3128 = vmatpush.bf16.msrb.mxu0 %v5125_v51  ;;  %v5109_v18 = vor.u32 %v6009_v8, %v5108_v63  ;;  %v5365_v15 = vor.u32 %v6073_v61, %v5364_v16  ;;  %v5476_v8 = vld [vmem:[#allocation8 + $0x788] sm:$0xf] }
 0x19a   : > { %v5509_v56 = vor.u32 %v6109_v54, %v5508_v41  ;;  %v5093_v41 = vor.u32 %v6005_v59, %v5092_v48  ;;  %v6037_v54 = vld [vmem:[#allocation8 + $0x594] sm:$0xf0]  ;;  %v5188_v48 = vld [vmem:[#allocation8 + $0x548] sm:$0xf] }
 0x19b   : > { %v2792_v34 = vadd.f32 %v2791_v31, %v2769_v29  ;;  %2961 = vmatmul.bf16.gmra.mxu0 %v6867_v23  ;;  %v5348_v29 = vld [vmem:[#allocation8 + $0x688] sm:$0xf]  ;;  %3175 = vmatpush.bf16.msrb.mxu2 %v5365_v15 }
 0x19c   : > { %2984 = vmatmul.bf16.gmra.mxu1 %v6869_v24  ;;  %3197 = vmatpush.bf16.msrb.mxu3 %v5509_v56  ;;  %v5349_v62 = vor.u32 %v6069_v36, %v5348_v29  ;;  %v5460_v15 = vld [vmem:[#allocation8 + $0x768] sm:$0xf] }
 0x19d   : > { %v2734_v44 = vpop.f32.mrf.mxu2  ;;  %3129 = vmatpush.bf16.msrb.mxu0 %v5109_v18  ;;  %v5477_v18 = vor.u32 %v6101_v12, %v5476_v8  ;;  %v5316_v29 = vld [vmem:[#allocation8 + $0x648] sm:$0xf]  ;;  %v5461_v42 = vor.u32 %v6097_v13, %v5460_v15  ;;  %v6025_v8 = vld [vmem:[#allocation8 + $0x534] sm:$0xf0] }
 0x19e   : > { %v2757_v37 = vpop.f32.mrf.mxu3  ;;  %v5220_v44 = vld [vmem:[#allocation8 + $0x588] sm:$0xf]  ;;  %v5989_v15 = vld [vmem:[#allocation8 + $0x414] sm:$0xf0] }
 0x19f   : > { %v5221_v51 = vor.u32 %v6037_v54, %v5220_v44  ;;  %3176 = vmatpush.bf16.msrb.mxu2 %v5349_v62  ;;  %v5060_v36 = vld [vmem:[#allocation8 + $0x448] sm:$0xf]  ;;  %v5997_v62 = vld [vmem:[#allocation8 + $0x454] sm:$0xf0] }
 0x1a0   : > { %v2770_v2 = vpop.f32.mrf.mxu0  ;;  %3198 = vmatpush.bf16.msrb.mxu3 %v5493_v35  ;;  %v5300_v13 = vld [vmem:[#allocation8 + $0x628] sm:$0xf] }
 0x1a1   : > { %v2771_v30 = vadd.f32 %v2770_v2, %v6906_v60  ;;  %v2793_v7 = vpop.f32.mrf.mxu1  ;;  %3130 = vmatpush.bf16.msrb.mxu0 %v5093_v41  ;;  %v5077_v2 = vor.u32 %v6001_v1, %v5076_v32  ;;  %3153 = vmatpush.bf16.msrb.mxu1 %v5221_v51  ;;  %v6029_v41 = vld [vmem:[#allocation8 + $0x554] sm:$0xf0]  ;;  %v5444_v51 = vld [vmem:[#allocation8 + $0x748] sm:$0xf] }
 0x1a2   : > { %3007 = vmatmul.bf16.gmra.mxu2 %v6875_v53  ;;  %v6093_v32 = vld [vmem:[#allocation8 + $0x754] sm:$0xf0]  ;;  %v5044_v1 = vld [vmem:[#allocation8 + $0x428] sm:$0xf] }
 0x1a3   : > { %v2794_v47 = vadd.f32 %v2793_v7, %v2771_v30  ;;  %3030 = vmatmul.bf16.gmra.mxu3 %v6873_v52  ;;  %v6033_v30 = vld [vmem:[#allocation8 + $0x574] sm:$0xf0] }
 0x1a4   : > { %3199 = vmatpush.bf16.msrb.mxu3 %v5477_v18 }
 0x1a5   : > { %v2814_v20 = vpop.f32.mrf.mxu2  ;;  %3131 = vmatpush.bf16.msrb.mxu0 %v5077_v2  ;;  %v5445_v2 = vor.u32 %v6093_v32, %v5444_v51 }
 0x1a6   : > { %v2815_v60 = vadd.f32 %v2814_v20, %v2792_v34  ;;  %v2837_v31 = vpop.f32.mrf.mxu3  ;;  %v6065_v20 = vld [vmem:[#allocation8 + $0x674] sm:$0xf0] }
 0x1a7   : > { %v5333_v43 = vor.u32 %v6065_v20, %v5332_v14  ;;  %v5028_v20 = vld [vmem:[#allocation8 + $0x408] sm:$0xf] }
 0x1a8   : > { %v6928_v45 = vadd.f32 %v2837_v31, %v2815_v60  ;;  %v2773_v50 = vpop.f32.mrf.mxu0  ;;  %v6061_v60 = vld [vmem:[#allocation8 + $0x654] sm:$0xf0]  ;;  %3200 = vmatpush.bf16.msrb.mxu3 %v5461_v42 }
 0x1a9   : > { %v2774_v37 = vadd.f32 %v2773_v50, %v6911_v57  ;;  %v2796_v34 = vpop.f32.mrf.mxu1  ;;  %v5205_v57 = vor.u32 %v6033_v30, %v5204_v0  ;;  %3177 = vmatpush.bf16.msrb.mxu2 %v5333_v43  ;;  %v5317_v44 = vor.u32 %v6061_v60, %v5316_v29  ;;  %v5061_v50 = vor.u32 %v5997_v62, %v5060_v36  ;;  %v5993_v30 = vld [vmem:[#allocation8 + $0x434] sm:$0xf0]  ;;  %v5156_v43 = vld [vmem:[#allocation8 + $0x508] sm:$0xf] }
 0x1aa   : > { %v3403_v7 = vmul.f32 0.2, %v6928_v45  ;;  %v6057_v29 = vld [vmem:[#allocation8 + $0x634] sm:$0xf0]  ;;  %v5428_v60 = vld [vmem:[#allocation8 + $0x728] sm:$0xf]  ;;  %v5029_v62 = vor.u32 %v5989_v15, %v5028_v20 }
 0x1ab   : > { %v2797_v56 = vadd.f32 %v2796_v34, %v2774_v37  ;;  %3043 = vmatmul.bf16.vlgmr.msra.gmra.mxu0 %v6732_v49  ;;  %3154 = vmatpush.bf16.msrb.mxu1 %v5205_v57  ;;  %v5189_v37 = vor.u32 %v6029_v41, %v5188_v48  ;;  %v5045_v57 = vor.u32 %v5993_v30, %v5044_v1  ;;  %v6089_v36 = vld [vmem:[#allocation8 + $0x734] sm:$0xf0]  ;;  %v5983_v20 = vld [vmem:[#allocation8 + $0x3ec] sm:$0xf]  ;;  %v5014_v15 = vld [vmem:[#allocation8 + $0x3f8] sm:$0xf0] }
 0x1ac   : > { %3066 = vmatmul.bf16.vlgmr.msra.gmra.mxu1 %v6734_v55  ;;  %3132 = vmatpush.bf16.msrb.mxu0 %v5061_v50  ;;  %v3423_v0 = vmax.f32 %v6928_v45, %v3403_v7  ;;  %v5301_v42 = vor.u32 %v6057_v29, %v5300_v13  ;;  %v6021_v48 = vld [vmem:[#allocation8 + $0x514] sm:$0xf0]  ;;  %v5017_v29 = vor.u32 %v5983_v20, %v5014_v15  ;;  %v5975_v20 = vld [vmem:[#allocation8 + $0x3ac] sm:$0xf]  ;;  %v4982_v15 = vld [vmem:[#allocation8 + $0x3b8] sm:$0xf0] }
 0x1ad   : > { %v2816_v63 = vpop.f32.mrf.mxu2  ;;  %3178 = vmatpush.bf16.msrb.mxu2 %v5317_v44  ;;  %3201 = vmatpush.bf16.msrb.mxu3 %v5445_v2  ;;  %v5284_v44 = vld [vmem:[#allocation8 + $0x608] sm:$0xf]  ;;  %v6053_v50 = vld [vmem:[#allocation8 + $0x614] sm:$0xf0] }
 0x1ae   : > { %v2817_v16 = vadd.f32 %v2816_v63, %v2794_v47  ;;  %v2839_v61 = vpop.f32.mrf.mxu3  ;;  %v5172_v63 = vld [vmem:[#allocation8 + $0x528] sm:$0xf] }
 0x1af   : > { %3155 = vmatpush.bf16.msrb.mxu1 %v5189_v37  ;;  %v6085_v37 = vld [vmem:[#allocation8 + $0x714] sm:$0xf0] }
 0x1b0   : > { %v2840_v31 = vadd.f32 %v2839_v61, %v2817_v16  ;;  %v2775_v35 = vpop.f32.mrf.mxu0  ;;  %v5173_v16 = vor.u32 %v6025_v8, %v5172_v63  ;;  %3133 = vmatpush.bf16.msrb.mxu0 %v5045_v57  ;;  %v5951_v8 = vld [vmem:[#allocation8 + $0x2ec] sm:$0xf] }
 0x1b1   : > { %v2776_v59 = vadd.f32 %v2775_v35, %v6916_v5  ;;  %v2798_v47 = vpop.f32.mrf.mxu1  ;;  %3179 = vmatpush.bf16.msrb.mxu2 %v5301_v42  ;;  %v5887_v57 = vld [vmem:[#allocation8 + $0xec] sm:$0xf] }
 0x1b2   : > { %v3407_v54 = vmul.f32 0.2, %v2840_v31  ;;  %3089 = vmatmul.bf16.vlgmr.msra.gmra.mxu2 %v6745_v21 }
 0x1b3   : > { %v2799_v34 = vadd.f32 %v2798_v47, %v2776_v59  ;;  %3112 = vmatmul.bf16.vlgmr.msra.gmra.mxu3 %v6747_v25  ;;  %3156 = vmatpush.bf16.msrb.mxu1 %v5173_v16  ;;  %v5157_v59 = vor.u32 %v6021_v48, %v5156_v43  ;;  %v5947_v48 = vld [vmem:[#allocation8 + $0x2cc] sm:$0xf] }
 0x1b4   : > { %v3427_v5 = vmax.f32 %v2840_v31, %v3407_v54  ;;  %3134 = vmatpush.bf16.msrb.mxu0 %v5029_v62  ;;  %v5412_v54 = vld [vmem:[#allocation8 + $0x708] sm:$0xf]  ;;  %v4758_v62 = vld [vmem:[#allocation8 + $0x1f8] sm:$0xf0] }
 0x1b5   : > { %v2819_v12 = vpop.f32.mrf.mxu2  ;;  %v5413_v1 = vor.u32 %v6085_v37, %v5412_v54  ;;  %v5979_v54 = vld [vmem:[#allocation8 + $0x3cc] sm:$0xf] }
 0x1b6   : > { %v6938_v61 = vpack.c.bf16 %v3427_v5, %v3423_v0  ;;  %v2820_v18 = vadd.f32 %v2819_v12, %v2797_v56  ;;  %v2842_v14 = vpop.f32.mrf.mxu3  ;;  %v5429_v56 = vor.u32 %v6089_v36, %v5428_v60  ;;  %v4886_v12 = vld [vmem:[#allocation8 + $0x2f8] sm:$0xf0]  ;;  %v5919_v36 = vld [vmem:[#allocation8 + $0x1ec] sm:$0xf] }
 0x1b7   : > { %3157 = vmatpush.bf16.msrb.mxu1 %v5157_v59 }
 0x1b8   : > { %v2843_v45 = vadd.f32 %v2842_v14, %v2820_v18  ;;  %v2778_v7 = vpop.f32.mrf.mxu0  ;;  %3202 = vmatpush.bf16.msrb.mxu3 %v5429_v56  ;;  %v4889_v14 = vor.u32 %v5951_v8, %v4886_v12  ;;  %v5943_v8 = vld [vmem:[#allocation8 + $0x2ac] sm:$0xf]  ;;  %v4854_v12 = vld [vmem:[#allocation8 + $0x2b8] sm:$0xf0] }
 0x1b9   : > { %v2779_v31 = vadd.f32 %v2778_v7, %v6920_v22  ;;  %v2801_v35 = vpop.f32.mrf.mxu1  ;;  %v5285_v22 = vor.u32 %v6053_v50, %v5284_v44  ;;  %v6946_v7 = vperm.slane %v6889_v28, 1  ;;  %v4761_v28 = vor.u32 %v5919_v36, %v4758_v62  ;;  %v4870_v44 = vld [vmem:[#allocation8 + $0x2d8] sm:$0xf0] }
 0x1ba   : > { %v3411_v0 = vmul.f32 0.2, %v2843_v45  ;;  %v4873_v50 = vor.u32 %v5947_v48, %v4870_v44  ;;  %v4838_v62 = vld [vmem:[#allocation8 + $0x298] sm:$0xf0]  ;;  %v5875_v44 = vld [vmem:[#allocation8 + $0x8c] sm:$0xf] }
 0x1bb   : > { %v2802_v47 = vadd.f32 %v2801_v35, %v2779_v31  ;;  %3048 = vmatmul.bf16.gmra.mxu0 %v6757_v6  ;;  %3180 = vmatpush.bf16.msrb.mxu2 %v5285_v22  ;;  %v4614_v22 = vld [vmem:[#allocation8 + $0xd8] sm:$0xf0] }
 0x1bc   : > { %3071 = vmatmul.bf16.gmra.mxu1 %v6759_v9  ;;  %3203 = vmatpush.bf16.msrb.mxu3 %v5413_v1  ;;  %v3431_v16 = vmax.f32 %v2843_v45, %v3411_v0  ;;  %v4742_v1 = vld [vmem:[#allocation8 + $0x1d8] sm:$0xf0] }
 0x1bd   : > { %v2821_v41 = vpop.f32.mrf.mxu2  ;;  %3242 = vmatpush.bf16.msra.mxu1 %v4761_v28 }
 0x1be   : > { %v2822_v51 = vadd.f32 %v2821_v41, %v2799_v34  ;;  %v2844_v32 = vpop.f32.mrf.mxu3  ;;  %v4630_v34 = vld [vmem:[#allocation8 + $0xf8] sm:$0xf0] }
 0x1bf   : > { %v4633_v13 = vor.u32 %v5887_v57, %v4630_v34  ;;  %3265 = vmatpush.bf16.msra.mxu2 %v4889_v14  ;;  %v5879_v57 = vld [vmem:[#allocation8 + $0xac] sm:$0xf]  ;;  %v4857_v14 = vor.u32 %v5943_v8, %v4854_v12  ;;  %v4598_v34 = vld [vmem:[#allocation8 + $0xb8] sm:$0xf0] }
 0x1c0   : > { %v2845_v5 = vadd.f32 %v2844_v32, %v2822_v51  ;;  %v2780_v2 = vpop.f32.mrf.mxu0  ;;  %3288 = vmatpush.bf16.msra.mxu3 %v5017_v29  ;;  %v4998_v51 = vld [vmem:[#allocation8 + $0x3d8] sm:$0xf0]  ;;  %v5915_v32 = vld [vmem:[#allocation8 + $0x1cc] sm:$0xf] }
 0x1c1   : > { %v2803_v30 = vpop.f32.mrf.mxu1  ;;  %3219 = vmatpush.bf16.msra.mxu0 %v4633_v13  ;;  %v4745_v2 = vor.u32 %v5915_v32, %v4742_v1  ;;  %v4985_v13 = vor.u32 %v5975_v20, %v4982_v15  ;;  %v4966_v32 = vld [vmem:[#allocation8 + $0x398] sm:$0xf0]  ;;  %v5871_v12 = vld [vmem:[#allocation8 + $0x6c] sm:$0xf] }
 0x1c2   : > { %v3415_v63 = vmul.f32 0.2, %v2845_v5  ;;  %3094 = vmatmul.bf16.gmra.mxu2 %v6767_v38  ;;  %v4710_v1 = vld [vmem:[#allocation8 + $0x198] sm:$0xf0] }
 0x1c3   : > { %3117 = vmatmul.bf16.gmra.mxu3 %v6769_v40  ;;  %3266 = vmatpush.bf16.msra.mxu2 %v4873_v50  ;;  %v4582_v50 = vld [vmem:[#allocation8 + $0x98] sm:$0xf0] }
 0x1c4   : > { %v3435_v18 = vmax.f32 %v2845_v5, %v3415_v63  ;;  %v5001_v5 = vor.u32 %v5979_v54, %v4998_v51  ;;  %3243 = vmatpush.bf16.msra.mxu1 %v4745_v2  ;;  %v5971_v51 = vld [vmem:[#allocation8 + $0x38c] sm:$0xf]  ;;  %v4822_v8 = vld [vmem:[#allocation8 + $0x278] sm:$0xf0] }
 0x1c5   : > { %v2824_v43 = vpop.f32.mrf.mxu2  ;;  %v4969_v2 = vor.u32 %v5971_v51, %v4966_v32 }
 0x1c6   : > { %v2825_v60 = vadd.f32 %v2824_v43, %v2802_v47  ;;  %v2847_v31 = vpop.f32.mrf.mxu3  ;;  %v6948_v35 = vpack.c.bf16 %v3435_v18, %v3431_v16  ;;  %v5883_v47 = vld [vmem:[#allocation8 + $0xcc] sm:$0xf]  ;;  %3289 = vmatpush.bf16.msra.mxu3 %v5001_v5  ;;  %v4601_v43 = vor.u32 %v5879_v57, %v4598_v34 }
 0x1c7   : > { %v4617_v37 = vor.u32 %v5883_v47, %v4614_v22  ;;  %3267 = vmatpush.bf16.msra.mxu2 %v4857_v14  ;;  %v5907_v47 = vld [vmem:[#allocation8 + $0x18c] sm:$0xf]  ;;  %v4950_v14 = vld [vmem:[#allocation8 + $0x378] sm:$0xf0] }
 0x1c8   : > { %v6950_v42 = vadd.f32 %v2847_v31, %v2825_v60  ;;  %v2860_v45 = vpop.f32.mrf.mxu0  ;;  %v5911_v60 = vld [vmem:[#allocation8 + $0x1ac] sm:$0xf]  ;;  %v4726_v31 = vld [vmem:[#allocation8 + $0x1b8] sm:$0xf0] }
 0x1c9   : > { %v2861_v56 = vadd.f32 %v2860_v45, %v6946_v7  ;;  %v2883_v59 = vpop.f32.mrf.mxu1  ;;  %3220 = vmatpush.bf16.msra.mxu0 %v4617_v37  ;;  %v5939_v45 = vld [vmem:[#allocation8 + $0x28c] sm:$0xf]  ;;  %v4729_v36 = vor.u32 %v5911_v60, %v4726_v31  ;;  %v4585_v37 = vor.u32 %v5875_v44, %v4582_v50 }
 0x1ca   : > { %3290 = vmatpush.bf16.msra.mxu3 %v4985_v13  ;;  %v4694_v13 = vld [vmem:[#allocation8 + $0x178] sm:$0xf0] }
 0x1cb   : > { %v2884_v41 = vadd.f32 %v2883_v59, %v2861_v56  ;;  %3053 = vmatmul.bf16.gmra.mxu0 %v6783_v4  ;;  %v4841_v56 = vor.u32 %v5939_v45, %v4838_v62  ;;  %3244 = vmatpush.bf16.msra.mxu1 %v4729_v36  ;;  %v5931_v36 = vld [vmem:[#allocation8 + $0x24c] sm:$0xf]  ;;  %v4806_v62 = vld [vmem:[#allocation8 + $0x258] sm:$0xf0] }
 0x1cc   : > { %3076 = vmatmul.bf16.gmra.mxu1 %v6775_v58 }
 0x1cd   : > { %v2826_v0 = vpop.f32.mrf.mxu2  ;;  %3221 = vmatpush.bf16.msra.mxu0 %v4601_v43  ;;  %3268 = vmatpush.bf16.msra.mxu2 %v4841_v56  ;;  %v5903_v43 = vld [vmem:[#allocation8 + $0x16c] sm:$0xf] }
 0x1ce   : > { %v2849_v30 = vpop.f32.mrf.mxu3  ;;  %3291 = vmatpush.bf16.msra.mxu3 %v4969_v2  ;;  %v4697_v45 = vor.u32 %v5903_v43, %v4694_v13  ;;  %v5867_v56 = vld [vmem:[#allocation8 + $0x4c] sm:$0xf] }
 0x1cf   : > { %v4713_v30 = vor.u32 %v5907_v47, %v4710_v1  ;;  %v5963_v1 = vld [vmem:[#allocation8 + $0x34c] sm:$0xf] }
 0x1d0   : > { %v2862_v63 = vpop.f32.mrf.mxu0 }
 0x1d1   : > { %v2863_v16 = vadd.f32 %v2862_v63, %v6946_v7  ;;  %v2885_v18 = vpop.f32.mrf.mxu1  ;;  %3222 = vmatpush.bf16.msra.mxu0 %v4585_v37  ;;  %v5935_v63 = vld [vmem:[#allocation8 + $0x26c] sm:$0xf]  ;;  %3245 = vmatpush.bf16.msra.mxu1 %v4713_v30  ;;  %v4534_v30 = vld [vmem:[#allocation8 + $0x38] sm:$0xf0] }
 0x1d2   : > { %3099 = vmatmul.bf16.gmra.mxu2 %v6799_v27  ;;  %v4825_v57 = vor.u32 %v5935_v63, %v4822_v8  ;;  %v5895_v63 = vld [vmem:[#allocation8 + $0x12c] sm:$0xf]  ;;  %v4662_v8 = vld [vmem:[#allocation8 + $0x138] sm:$0xf0] }
 0x1d3   : > { %v2886_v29 = vadd.f32 %v2885_v18, %v2863_v16  ;;  %3122 = vmatmul.bf16.gmra.mxu3 %v6803_v33  ;;  %v4566_v16 = vld [vmem:[#allocation8 + $0x78] sm:$0xf0]  ;;  %v5967_v18 = vld [vmem:[#allocation8 + $0x36c] sm:$0xf] }
 0x1d4   : > { %v4569_v20 = vor.u32 %v5871_v12, %v4566_v16  ;;  %v4953_v15 = vor.u32 %v5967_v18, %v4950_v14  ;;  %3269 = vmatpush.bf16.msra.mxu2 %v4825_v57  ;;  %v4665_v16 = vor.u32 %v5895_v63, %v4662_v8 }
 0x1d5   : > { %v2906_v48 = vpop.f32.mrf.mxu2  ;;  %3246 = vmatpush.bf16.msra.mxu1 %v4697_v45 }
 0x1d6   : > { %v2907_v59 = vadd.f32 %v2906_v48, %v2884_v41  ;;  %v2929_v28 = vpop.f32.mrf.mxu3  ;;  %3223 = vmatpush.bf16.msra.mxu0 %v4569_v20  ;;  %3292 = vmatpush.bf16.msra.mxu3 %v4953_v15  ;;  %v4809_v48 = vor.u32 %v5931_v36, %v4806_v62  ;;  %v4518_v20 = vld [vmem:[#allocation8 + $0x18] sm:$0xf0]  ;;  %v5891_v15 = vld [vmem:[#allocation8 + $0x10c] sm:$0xf] }
 0x1d7   : > { %v5927_v36 = vld [vmem:[#allocation8 + $0x22c] sm:$0xf]  ;;  %v4790_v62 = vld [vmem:[#allocation8 + $0x238] sm:$0xf0] }
 0x1d8   : > { %v6958_v22 = vadd.f32 %v2929_v28, %v2907_v59  ;;  %v2865_v54 = vpop.f32.mrf.mxu0  ;;  %v4550_v59 = vld [vmem:[#allocation8 + $0x58] sm:$0xf0]  ;;  %v5899_v28 = vld [vmem:[#allocation8 + $0x14c] sm:$0xf]  ;;  %3270 = vmatpush.bf16.msra.mxu2 %v4809_v48 }
 0x1d9   : > { %v2866_v0 = vadd.f32 %v2865_v54, %v6946_v7  ;;  %v2888_v5 = vpop.f32.mrf.mxu1  ;;  %v4553_v47 = vor.u32 %v5867_v56, %v4550_v59  ;;  %v4678_v54 = vld [vmem:[#allocation8 + $0x158] sm:$0xf0]  ;;  %v5959_v48 = vld [vmem:[#allocation8 + $0x32c] sm:$0xf]  ;;  %v4793_v59 = vor.u32 %v5927_v36, %v4790_v62 }
 0x1db   : > { %v2889_v41 = vadd.f32 %v2888_v5, %v2866_v0  ;;  %3135 = vmatmul.bf16.vlgmr.msrb.gmra.mxu0 %v6819_v19  ;;  %v4934_v0 = vld [vmem:[#allocation8 + $0x358] sm:$0xf0]  ;;  %v5863_v5 = vld [vmem:[#allocation8 + $0x2c] sm:$0xf] }
 0x1dc   : > { %3158 = vmatmul.bf16.vlgmr.msrb.gmra.mxu1 %v6821_v26  ;;  %3224 = vmatpush.bf16.msra.mxu0 %v4553_v47  ;;  %v4937_v2 = vor.u32 %v5963_v1, %v4934_v0  ;;  %v4537_v57 = vor.u32 %v5863_v5, %v4534_v30  ;;  %v4902_v1 = vld [vmem:[#allocation8 + $0x318] sm:$0xf0] }
 0x1dd   : > { %v2908_v34 = vpop.f32.mrf.mxu2  ;;  %3271 = vmatpush.bf16.msra.mxu2 %v4793_v59  ;;  %v6047_v59 = vld [vmem:[#allocation8 + $0x5ec] sm:$0xf] }
 0x1de   : > { %v2909_v60 = vadd.f32 %v2908_v34, %v2886_v29  ;;  %v2931_v31 = vpop.f32.mrf.mxu3  ;;  %v4681_v29 = vor.u32 %v5899_v28, %v4678_v54  ;;  %3293 = vmatpush.bf16.msra.mxu3 %v4937_v2  ;;  %v5859_v34 = vld [vmem:[#allocation8 + $0xc] sm:$0xf] }
 0x1df   : > { %v4521_v56 = vor.u32 %v5859_v34, %v4518_v20  ;;  %v5923_v54 = vld [vmem:[#allocation8 + $0x20c] sm:$0xf]  ;;  %v5142_v20 = vld [vmem:[#allocation8 + $0x4f8] sm:$0xf0] }
 0x1e0   : > { %v6963_v44 = vadd.f32 %v2931_v31, %v2909_v60  ;;  %v2867_v50 = vpop.f32.mrf.mxu0  ;;  %3247 = vmatpush.bf16.msra.mxu1 %v4681_v29  ;;  %3225 = vmatpush.bf16.msra.mxu0 %v4537_v57  ;;  %v4646_v60 = vld [vmem:[#allocation8 + $0x118] sm:$0xf0]  ;;  %v5955_v29 = vld [vmem:[#allocation8 + $0x30c] sm:$0xf] }
 0x1e1   : > { %v2868_v37 = vadd.f32 %v2867_v50, %v6946_v7  ;;  %v2890_v51 = vpop.f32.mrf.mxu1  ;;  %v4649_v28 = vor.u32 %v5891_v15, %v4646_v60  ;;  %v4905_v2 = vor.u32 %v5955_v29, %v4902_v1  ;;  %v6015_v34 = vld [vmem:[#allocation8 + $0x4ec] sm:$0xf] }
 0x1e2   : > { %3181 = vmatmul.bf16.vlgmr.msrb.gmra.mxu2 %v6835_v10  ;;  %v6111_v15 = vld [vmem:[#allocation8 + $0x7ec] sm:$0xf] }
 0x1e3   : > { %v2891_v32 = vadd.f32 %v2890_v51, %v2868_v37  ;;  %3204 = vmatmul.bf16.vlgmr.msrb.gmra.mxu3 %v6837_v17  ;;  %v4774_v37 = vld [vmem:[#allocation8 + $0x218] sm:$0xf0]  ;;  %v6107_v29 = vld [vmem:[#allocation8 + $0x7cc] sm:$0xf] }
 0x1e4   : > { %3248 = vmatpush.bf16.msra.mxu1 %v4665_v16  ;;  %3226 = vmatpush.bf16.msra.mxu0 %v4521_v56 }
 0x1e5   : > { %v2911_v12 = vpop.f32.mrf.mxu2 }
 0x1e6   : > { %v2912_v18 = vadd.f32 %v2911_v12, %v2889_v41  ;;  %v2934_v14 = vpop.f32.mrf.mxu3  ;;  %v4918_v41 = vld [vmem:[#allocation8 + $0x338] sm:$0xf0] }
 0x1e7   : > { %v4921_v47 = vor.u32 %v5959_v48, %v4918_v41  ;;  %v5270_v41 = vld [vmem:[#allocation8 + $0x5f8] sm:$0xf0] }
 0x1e8   : > { %v6968_v43 = vadd.f32 %v2934_v14, %v2912_v18  ;;  %v2870_v13 = vpop.f32.mrf.mxu0  ;;  %3249 = vmatpush.bf16.msra.mxu1 %v4649_v28  ;;  %v6079_v18 = vld [vmem:[#allocation8 + $0x6ec] sm:$0xf]  ;;  %v5398_v14 = vld [vmem:[#allocation8 + $0x6f8] sm:$0xf0]  ;;  %v5273_v28 = vor.u32 %v6047_v59, %v5270_v41 }
 0x1e9   : > { %v2871_v31 = vadd.f32 %v2870_v13, %v6946_v7  ;;  %v2893_v45 = vpop.f32.mrf.mxu1  ;;  %3294 = vmatpush.bf16.msra.mxu3 %v4921_v47  ;;  %v4777_v7 = vor.u32 %v5923_v54, %v4774_v37  ;;  %v5526_v13 = vld [vmem:[#allocation8 + $0x7f8] sm:$0xf0]  ;;  %v6011_v54 = vld [vmem:[#allocation8 + $0x4cc] sm:$0xf] }
 0x1ea   : > { %v5529_v36 = vor.u32 %v6111_v15, %v5526_v13  ;;  %v5382_v47 = vld [vmem:[#allocation8 + $0x6d8] sm:$0xf0]  ;;  %v6067_v59 = vld [vmem:[#allocation8 + $0x68c] sm:$0xf] }
 0x1eb   : > { %v2894_v50 = vadd.f32 %v2893_v45, %v2871_v31  ;;  %3140 = vmatmul.bf16.gmra.mxu0 %v6849_v3  ;;  %3272 = vmatpush.bf16.msra.mxu2 %v4777_v7  ;;  %v5145_v45 = vor.u32 %v6015_v34, %v5142_v20  ;;  %v5126_v7 = vld [vmem:[#allocation8 + $0x4d8] sm:$0xf0]  ;;  %v6071_v20 = vld [vmem:[#allocation8 + $0x6ac] sm:$0xf] }
 0x1ec   : > { %3163 = vmatmul.bf16.gmra.mxu1 %v6851_v11  ;;  %v5110_v34 = vld [vmem:[#allocation8 + $0x4b8] sm:$0xf0] }
 0x1ed   : > { %v2913_v51 = vpop.f32.mrf.mxu2  ;;  %3295 = vmatpush.bf16.msra.mxu3 %v4905_v2  ;;  %3311 = vmatpush.bf16.msrb.mxu0 %v5145_v45  ;;  %v6043_v2 = vld [vmem:[#allocation8 + $0x5cc] sm:$0xf]  ;;  %v5366_v15 = vld [vmem:[#allocation8 + $0x6b8] sm:$0xf0] }
 0x1ee   : > { %v2914_v0 = vadd.f32 %v2913_v51, %v2891_v32  ;;  %v2936_v5 = vpop.f32.mrf.mxu3  ;;  %v5401_v32 = vor.u32 %v6079_v18, %v5398_v14  ;;  %3334 = vmatpush.bf16.msrb.mxu1 %v5273_v28  ;;  %v6007_v14 = vld [vmem:[#allocation8 + $0x4ac] sm:$0xf] }
 0x1ef   : > { %v5113_v13 = vor.u32 %v6007_v14, %v5110_v34  ;;  %v5206_v14 = vld [vmem:[#allocation8 + $0x578] sm:$0xf0] }
 0x1f0   : > { %v6973_v30 = vadd.f32 %v2936_v5, %v2914_v0  ;;  %v2872_v63 = vpop.f32.mrf.mxu0  ;;  %3357 = vmatpush.bf16.msrb.mxu2 %v5401_v32  ;;  %v5129_v0 = vor.u32 %v6011_v54, %v5126_v7  ;;  %v6039_v32 = vld [vmem:[#allocation8 + $0x5ac] sm:$0xf] }
 0x1f1   : > { %v2895_v8 = vpop.f32.mrf.mxu1  ;;  %3380 = vmatpush.bf16.msrb.mxu3 %v5529_v36  ;;  %v5254_v63 = vld [vmem:[#allocation8 + $0x5d8] sm:$0xf0]  ;;  %v5369_v36 = vor.u32 %v6071_v20, %v5366_v15  ;;  %v6035_v7 = vld [vmem:[#allocation8 + $0x58c] sm:$0xf] }
 0x1f2   : > { %3186 = vmatmul.bf16.gmra.mxu2 %v6859_v39  ;;  %v5257_v8 = vor.u32 %v6043_v2, %v5254_v63  ;;  %3312 = vmatpush.bf16.msrb.mxu0 %v5129_v0  ;;  %v5222_v0 = vld [vmem:[#allocation8 + $0x598] sm:$0xf0]  ;;  %v6099_v20 = vld [vmem:[#allocation8 + $0x78c] sm:$0xf] }
 0x1f3   : > { %3209 = vmatmul.bf16.gmra.mxu3 %v6861_v46  ;;  %v5225_v2 = vor.u32 %v6035_v7, %v5222_v0  ;;  %v5478_v15 = vld [vmem:[#allocation8 + $0x798] sm:$0xf0] }
 0x1f4   : > { %3335 = vmatpush.bf16.msrb.mxu1 %v5257_v8  ;;  %v5999_v8 = vld [vmem:[#allocation8 + $0x46c] sm:$0xf] }
 0x1f5   : > { %v2916_v12 = vpop.f32.mrf.mxu2 }
 0x1f6   : > { %v2917_v57 = vadd.f32 %v2916_v12, %v2894_v50  ;;  %v2939_v16 = vpop.f32.mrf.mxu3  ;;  %v6075_v50 = vld [vmem:[#allocation8 + $0x6cc] sm:$0xf]  ;;  %3313 = vmatpush.bf16.msrb.mxu0 %v5113_v13 }
 0x1f7   : > { %v5385_v51 = vor.u32 %v6075_v50, %v5382_v47  ;;  %v5350_v47 = vld [vmem:[#allocation8 + $0x698] sm:$0xf0] }
 0x1f8   : > { %v6977_v60 = vadd.f32 %v2939_v16, %v2917_v57  ;;  %v2952_v31 = vpop.f32.mrf.mxu0  ;;  %v5353_v54 = vor.u32 %v6067_v59, %v5350_v47  ;;  %v5462_v59 = vld [vmem:[#allocation8 + $0x778] sm:$0xf0]  ;;  %v5995_v47 = vld [vmem:[#allocation8 + $0x44c] sm:$0xf] }
 0x1f9   : > { %v2953_v62 = vadd.f32 %v2952_v31, %v6958_v22  ;;  %v2975_v48 = vpop.f32.mrf.mxu1  ;;  %v5510_v22 = vld [vmem:[#allocation8 + $0x7d8] sm:$0xf0]  ;;  %3358 = vmatpush.bf16.msrb.mxu2 %v5385_v51  ;;  %v6103_v31 = vld [vmem:[#allocation8 + $0x7ac] sm:$0xf] }
 0x1fa   : > { %v5513_v5 = vor.u32 %v6107_v29, %v5510_v22  ;;  %v5094_v51 = vld [vmem:[#allocation8 + $0x498] sm:$0xf0] }
 0x1fb   : > { %v2976_v56 = vadd.f32 %v2975_v48, %v2953_v62  ;;  %3145 = vmatmul.bf16.gmra.mxu0 %v6867_v23  ;;  %v5494_v62 = vld [vmem:[#allocation8 + $0x7b8] sm:$0xf0] }
 0x1fc   : > { %3168 = vmatmul.bf16.gmra.mxu1 %v6869_v24  ;;  %3381 = vmatpush.bf16.msrb.mxu3 %v5513_v5  ;;  %v5238_v48 = vld [vmem:[#allocation8 + $0x5b8] sm:$0xf0]  ;;  %v5497_v28 = vor.u32 %v6103_v31, %v5494_v62  ;;  %v6095_v62 = vld [vmem:[#allocation8 + $0x76c] sm:$0xf] }
 0x1fd   : > { %v2918_v37 = vpop.f32.mrf.mxu2  ;;  %v5241_v50 = vor.u32 %v6039_v32, %v5238_v48  ;;  %3359 = vmatpush.bf16.msrb.mxu2 %v5369_v36  ;;  %v6063_v36 = vld [vmem:[#allocation8 + $0x66c] sm:$0xf] }
 0x1fe   : > { %v2941_v1 = vpop.f32.mrf.mxu3  ;;  %v6003_v37 = vld [vmem:[#allocation8 + $0x48c] sm:$0xf] }
 0x1ff   : > { %3336 = vmatpush.bf16.msrb.mxu1 %v5241_v50  ;;  %v5097_v1 = vor.u32 %v6003_v37, %v5094_v51  ;;  %v5465_v50 = vor.u32 %v6095_v62, %v5462_v59  ;;  %v6027_v37 = vld [vmem:[#allocation8 + $0x54c] sm:$0xf] }
 0x200   : > { %v2954_v12 = vpop.f32.mrf.mxu0  ;;  %3382 = vmatpush.bf16.msrb.mxu3 %v5497_v28  ;;  %v6055_v62 = vld [vmem:[#allocation8 + $0x62c] sm:$0xf] }
 0x201   : > { %v2955_v57 = vadd.f32 %v2954_v12, %v6963_v44  ;;  %v2977_v16 = vpop.f32.mrf.mxu1  ;;  %3314 = vmatpush.bf16.msrb.mxu0 %v5097_v1  ;;  %3360 = vmatpush.bf16.msrb.mxu2 %v5353_v54  ;;  %v5078_v12 = vld [vmem:[#allocation8 + $0x478] sm:$0xf0]  ;;  %v6087_v59 = vld [vmem:[#allocation8 + $0x72c] sm:$0xf] }
 0x202   : > { %3191 = vmatmul.bf16.gmra.mxu2 %v6875_v53  ;;  %v5062_v54 = vld [vmem:[#allocation8 + $0x458] sm:$0xf0] }
 0x203   : > { %v2978_v18 = vadd.f32 %v2977_v16, %v2955_v57  ;;  %3214 = vmatmul.bf16.gmra.mxu3 %v6873_v52  ;;  %v6031_v57 = vld [vmem:[#allocation8 + $0x56c] sm:$0xf]  ;;  %v5081_v16 = vor.u32 %v5999_v8, %v5078_v12  ;;  %3337 = vmatpush.bf16.msrb.mxu1 %v5225_v2  ;;  %v5190_v1 = vld [vmem:[#allocation8 + $0x558] sm:$0xf0] }
 0x204   : > { %v6091_v2 = vld [vmem:[#allocation8 + $0x74c] sm:$0xf]  ;;  %v5446_v8 = vld [vmem:[#allocation8 + $0x758] sm:$0xf0] }
 0x205   : > { %v2998_v45 = vpop.f32.mrf.mxu2  ;;  %3315 = vmatpush.bf16.msrb.mxu0 %v5081_v16  ;;  %v5991_v12 = vld [vmem:[#allocation8 + $0x42c] sm:$0xf]  ;;  %v5449_v16 = vor.u32 %v6091_v2, %v5446_v8 }
 0x206   : > { %v2999_v44 = vadd.f32 %v2998_v45, %v2976_v56  ;;  %v3021_v41 = vpop.f32.mrf.mxu3  ;;  %v5481_v45 = vor.u32 %v6099_v20, %v5478_v15  ;;  %v5174_v20 = vld [vmem:[#allocation8 + $0x538] sm:$0xf0] }
 0x208   : > { %v6985_v29 = vadd.f32 %v3021_v41, %v2999_v44  ;;  %v2957_v22 = vpop.f32.mrf.mxu0  ;;  %v6059_v44 = vld [vmem:[#allocation8 + $0x64c] sm:$0xf]  ;;  %3383 = vmatpush.bf16.msrb.mxu3 %v5481_v45 }
 0x209   : > { %v2958_v5 = vadd.f32 %v2957_v22, %v6968_v43  ;;  %v2980_v56 = vpop.f32.mrf.mxu1  ;;  %v5209_v43 = vor.u32 %v6031_v57, %v5206_v14  ;;  %v5065_v22 = vor.u32 %v5995_v47, %v5062_v54  ;;  %v5046_v14 = vld [vmem:[#allocation8 + $0x438] sm:$0xf0]  ;;  %v5987_v45 = vld [vmem:[#allocation8 + $0x40c] sm:$0xf] }
 0x20a   : > { %v3404_v34 = vmul.f32 0.2, %v6985_v29  ;;  %v5158_v47 = vld [vmem:[#allocation8 + $0x518] sm:$0xf0] }
 0x20b   : > { %v2981_v63 = vadd.f32 %v2980_v56, %v2958_v5  ;;  %3227 = vmatmul.bf16.vlgmr.msra.gmra.mxu0 %v6732_v49  ;;  %v5334_v49 = vld [vmem:[#allocation8 + $0x678] sm:$0xf0]  ;;  %3338 = vmatpush.bf16.msrb.mxu1 %v5209_v43  ;;  %v5193_v5 = vor.u32 %v6027_v37, %v5190_v1 }
 0x20c   : > { %3250 = vmatmul.bf16.vlgmr.msra.gmra.mxu1 %v6734_v55  ;;  %v5337_v48 = vor.u32 %v6063_v36, %v5334_v49  ;;  %v5318_v55 = vld [vmem:[#allocation8 + $0x658] sm:$0xf0]  ;;  %3316 = vmatpush.bf16.msrb.mxu0 %v5065_v22  ;;  %v3424_v57 = vmax.f32 %v6985_v29, %v3404_v34  ;;  %v6019_v49 = vld [vmem:[#allocation8 + $0x50c] sm:$0xf] }
 0x20d   : > { %v3000_v32 = vpop.f32.mrf.mxu2  ;;  %v5321_v7 = vor.u32 %v6059_v44, %v5318_v55  ;;  %3384 = vmatpush.bf16.msrb.mxu3 %v5465_v50  ;;  %v5030_v36 = vld [vmem:[#allocation8 + $0x418] sm:$0xf0]  ;;  %v5161_v54 = vor.u32 %v6019_v49, %v5158_v47  ;;  %v6083_v22 = vld [vmem:[#allocation8 + $0x70c] sm:$0xf] }
 0x20e   : > { %v3001_v13 = vadd.f32 %v3000_v32, %v2978_v18  ;;  %v3023_v31 = vpop.f32.mrf.mxu3  ;;  %3361 = vmatpush.bf16.msrb.mxu2 %v5337_v48  ;;  %v6023_v32 = vld [vmem:[#allocation8 + $0x52c] sm:$0xf]  ;;  %v5302_v48 = vld [vmem:[#allocation8 + $0x638] sm:$0xf0]  ;;  %v5033_v50 = vor.u32 %v5987_v45, %v5030_v36  ;;  %v6145_v45 = vld [vmem:[#allocation10 + $0xf4] sm:$0xf0] }
 0x20f   : > { %3339 = vmatpush.bf16.msrb.mxu1 %v5193_v5  ;;  %v5177_v43 = vor.u32 %v6023_v32, %v5174_v20  ;;  %v5414_v1 = vld [vmem:[#allocation8 + $0x718] sm:$0xf0] }
 0x210   : > { %v3024_v41 = vadd.f32 %v3023_v31, %v3001_v13  ;;  %v2959_v28 = vpop.f32.mrf.mxu0  ;;  %v5417_v2 = vor.u32 %v6083_v22, %v5414_v1  ;;  %v5716_v1 = vld [vmem:[#allocation10 + $0x170] sm:$0xf] }
 0x211   : > { %v2960_v51 = vadd.f32 %v2959_v28, %v6973_v30  ;;  %v2982_v18 = vpop.f32.mrf.mxu1  ;;  %3385 = vmatpush.bf16.msrb.mxu3 %v5449_v16  ;;  %v5430_v28 = vld [vmem:[#allocation8 + $0x738] sm:$0xf0] }
 0x212   : > { %v3408_v0 = vmul.f32 0.2, %v3024_v41  ;;  %3273 = vmatmul.bf16.vlgmr.msra.gmra.mxu2 %v6745_v21  ;;  %v5049_v21 = vor.u32 %v5991_v12, %v5046_v14 }
 0x213   : > { %v2983_v56 = vadd.f32 %v2982_v18, %v2960_v51  ;;  %3296 = vmatmul.bf16.vlgmr.msra.gmra.mxu3 %v6747_v25  ;;  %3362 = vmatpush.bf16.msrb.mxu2 %v5321_v7  ;;  %v6051_v51 = vld [vmem:[#allocation8 + $0x60c] sm:$0xf]  ;;  %v5286_v18 = vld [vmem:[#allocation8 + $0x618] sm:$0xf0] }
 0x214   : > { %v3428_v30 = vmax.f32 %v3024_v41, %v3408_v0  ;;  %3317 = vmatpush.bf16.msrb.mxu0 %v5049_v21  ;;  %3340 = vmatpush.bf16.msrb.mxu1 %v5177_v43  ;;  %v5305_v41 = vor.u32 %v6055_v62, %v5302_v48  ;;  %v6127_v62 = vld [vmem:[#allocation10 + $0x64] sm:$0xf0]  ;;  %v5644_v48 = vld [vmem:[#allocation10 + $0xe0] sm:$0xf] }
 0x215   : > { %v3003_v15 = vpop.f32.mrf.mxu2 }
 0x216   : > { %v6995_v13 = vpack.c.bf16 %v3428_v30, %v3424_v57  ;;  %v3004_v25 = vadd.f32 %v3003_v15, %v2981_v63  ;;  %v3026_v31 = vpop.f32.mrf.mxu3  ;;  %v5433_v63 = vor.u32 %v6087_v59, %v5430_v28  ;;  %v6125_v28 = vld [vmem:[#allocation10 + $0x54] sm:$0xf0] }
 0x217   : > { %3363 = vmatpush.bf16.msrb.mxu2 %v5305_v41 }
 0x218   : > { %v3027_v29 = vadd.f32 %v3026_v31, %v3004_v25  ;;  %v2962_v34 = vpop.f32.mrf.mxu0  ;;  %3386 = vmatpush.bf16.msrb.mxu3 %v5433_v63  ;;  %3318 = vmatpush.bf16.msrb.mxu0 %v5033_v50  ;;  %v5588_v25 = vld [vmem:[#allocation10 + $0x70] sm:$0xf]  ;;  %v6129_v31 = vld [vmem:[#allocation10 + $0x74] sm:$0xf0] }
 0x219   : > { %v2963_v44 = vadd.f32 %v2962_v34, %v6977_v60  ;;  %v2985_v55 = vpop.f32.mrf.mxu1  ;;  %3341 = vmatpush.bf16.msrb.mxu1 %v5161_v54  ;;  %v5289_v60 = vor.u32 %v6051_v51, %v5286_v18  ;;  %v5580_v34 = vld [vmem:[#allocation10 + $0x60] sm:$0xf]  ;;  %v5636_v50 = vld [vmem:[#allocation10 + $0xd0] sm:$0xf]  ;;  %v6141_v63 = vld [vmem:[#allocation10 + $0xd4] sm:$0xf0] }
 0x21a   : > { %v3412_v8 = vmul.f32 0.2, %v3027_v29  ;;  %v5564_v18 = vld [vmem:[#allocation10 + $0x40] sm:$0xf] }
 0x21b   : > { %v2986_v37 = vadd.f32 %v2985_v55, %v2963_v44  ;;  %3232 = vmatmul.bf16.gmra.mxu0 %v6757_v6  ;;  %3364 = vmatpush.bf16.msrb.mxu2 %v5289_v60  ;;  %v5581_v44 = vor.u32 %v6127_v62, %v5580_v34  ;;  %v6143_v55 = vld [vmem:[#allocation10 + $0xe4] sm:$0xf0]  ;;  %v5628_v60 = vld [vmem:[#allocation10 + $0xc0] sm:$0xf] }
 0x21c   : > { %3255 = vmatmul.bf16.gmra.mxu1 %v6759_v9  ;;  %3387 = vmatpush.bf16.msrb.mxu3 %v5417_v2  ;;  %v3432_v9 = vmax.f32 %v3027_v29, %v3412_v8  ;;  %v5645_v41 = vor.u32 %v6143_v55, %v5644_v48  ;;  %v6117_v55 = vld [vmem:[#allocation10 + $0x14] sm:$0xf0] }
 0x21d   : > { %v3005_v7 = vpop.f32.mrf.mxu2 }
 0x21e   : > { %v3006_v0 = vadd.f32 %v3005_v7, %v2983_v56  ;;  %v3028_v5 = vpop.f32.mrf.mxu3  ;;  %v6123_v7 = vld [vmem:[#allocation10 + $0x44] sm:$0xf0] }
 0x21f   : > { %v5565_v22 = vor.u32 %v6123_v7, %v5564_v18 }
 0x220   : > { %v3029_v12 = vadd.f32 %v3028_v5, %v3006_v0  ;;  %v2964_v57 = vpop.f32.mrf.mxu0  ;;  %v6161_v0 = vld [vmem:[#allocation10 + $0x174] sm:$0xf0] }
 0x221   : > { %v2987_v6 = vpop.f32.mrf.mxu1  ;;  %v5717_v8 = vor.u32 %v6161_v0, %v5716_v1  ;;  %v6121_v57 = vld [vmem:[#allocation10 + $0x34] sm:$0xf0]  ;;  %v6131_v1 = vld [vmem:[#allocation10 + $0x84] sm:$0xf0]  ;;  %v5684_v0 = vld [vmem:[#allocation10 + $0x130] sm:$0xf] }
 0x222   : > { %v3416_v30 = vmul.f32 0.2, %v3029_v12  ;;  %3278 = vmatmul.bf16.gmra.mxu2 %v6767_v38  ;;  %v5652_v38 = vld [vmem:[#allocation10 + $0xf0] sm:$0xf] }
 0x223   : > { %3301 = vmatmul.bf16.gmra.mxu3 %v6769_v40  ;;  %v5589_v40 = vor.u32 %v6129_v31, %v5588_v25  ;;  %v5653_v49 = vor.u32 %v6145_v45, %v5652_v38  ;;  %v5620_v6 = vld [vmem:[#allocation10 + $0xb0] sm:$0xf]  ;;  %3891 = vmatpush.bf16.msra.mxu2 %v5717_v8  ;;  %v6119_v38 = vld [vmem:[#allocation10 + $0x24] sm:$0xf0] }
 0x224   : > { %v3436_v16 = vmax.f32 %v3029_v12, %v3416_v30  ;;  %v5556_v12 = vld [vmem:[#allocation10 + $0x30] sm:$0xf] }
 0x225   : > { %v3008_v14 = vpop.f32.mrf.mxu2  ;;  %3845 = vmatpush.bf16.msra.mxu0 %v5589_v40  ;;  %3868 = vmatpush.bf16.msra.mxu1 %v5653_v49  ;;  %v5557_v30 = vor.u32 %v6121_v57, %v5556_v12  ;;  %v5612_v40 = vld [vmem:[#allocation10 + $0xa0] sm:$0xf]  ;;  %v5700_v49 = vld [vmem:[#allocation10 + $0x150] sm:$0xf] }
 0x226   : > { %v3009_v32 = vadd.f32 %v3008_v14, %v2986_v37  ;;  %v3031_v20 = vpop.f32.mrf.mxu3  ;;  %v7002_v15 = vpack.c.bf16 %v3436_v16, %v3432_v9  ;;  %v5637_v37 = vor.u32 %v6141_v63, %v5636_v50  ;;  %v6137_v9 = vld [vmem:[#allocation10 + $0xb4] sm:$0xf0]  ;;  %v5708_v16 = vld [vmem:[#allocation10 + $0x160] sm:$0xf]  ;;  %v6159_v14 = vld [vmem:[#allocation10 + $0x164] sm:$0xf0] }
 0x227   : > { %v5709_v25 = vor.u32 %v6159_v14, %v5708_v16  ;;  %v5692_v50 = vld [vmem:[#allocation10 + $0x140] sm:$0xf] }
 0x228   : > { %v7004_v56 = vadd.f32 %v3031_v20, %v3009_v32  ;;  %v7006_v21 = vpop.f32.mrf.mxu0  ;;  %v5621_v20 = vor.u32 %v6137_v9, %v5620_v6  ;;  %v5676_v6 = vld [vmem:[#allocation10 + $0x120] sm:$0xf] }
 0x229   : > { %v7008_v43 = vpop.f32.mrf.mxu1  ;;  %3846 = vmatpush.bf16.msra.mxu0 %v5581_v44  ;;  %3869 = vmatpush.bf16.msra.mxu1 %v5645_v41  ;;  %v5540_v44 = vld [vmem:[#allocation10 + $0x10] sm:$0xf] }
 0x22a   : > { %3892 = vmatpush.bf16.msra.mxu2 %v5709_v25  ;;  %v5604_v41 = vld [vmem:[#allocation10 + $0x90] sm:$0xf]  ;;  %v6149_v25 = vld [vmem:[#allocation10 + $0x114] sm:$0xf0] }
 0x22b   : > { %3237 = vmatmul.bf16.gmra.mxu0 %v6783_v4 }
 0x22c   : > { %3260 = vmatmul.bf16.gmra.mxu1 %v6775_v58  ;;  %v5572_v58 = vld [vmem:[#allocation10 + $0x50] sm:$0xf] }
 0x22d   : > { %v3010_v36 = vpop.f32.mrf.mxu2  ;;  %v5573_v47 = vor.u32 %v6125_v28, %v5572_v58  ;;  %3870 = vmatpush.bf16.msra.mxu1 %v5637_v37  ;;  %v5541_v58 = vor.u32 %v6117_v55, %v5540_v44  ;;  %v6133_v28 = vld [vmem:[#allocation10 + $0x94] sm:$0xf0] }
 0x22e   : > { %v3033_v29 = vpop.f32.mrf.mxu3  ;;  %v6135_v36 = vld [vmem:[#allocation10 + $0xa4] sm:$0xf0]  ;;  %v5605_v37 = vor.u32 %v6133_v28, %v5604_v41  ;;  %v6144_v28 = vld [vmem:[#allocation10 + $0xf4] sm:$0xf] }
 0x22f   : > { %3847 = vmatpush.bf16.msra.mxu0 %v5573_v47  ;;  %v6157_v29 = vld [vmem:[#allocation10 + $0x154] sm:$0xf0]  ;;  %v5613_v62 = vor.u32 %v6135_v36, %v5612_v40  ;;  %v6155_v47 = vld [vmem:[#allocation10 + $0x144] sm:$0xf0] }
 0x230   : > { %v7012_v59 = vpop.f32.mrf.mxu0  ;;  %v5701_v48 = vor.u32 %v6157_v29, %v5700_v49  ;;  %v5693_v18 = vor.u32 %v6155_v47, %v5692_v50  ;;  %v6147_v36 = vld [vmem:[#allocation10 + $0x104] sm:$0xf0]  ;;  %v5654_v47 = vld [vmem:[#allocation10 + $0xf8] sm:$0xf0] }
 0x231   : > { %v7014_v4 = vpop.f32.mrf.mxu1 }
 0x232   : > { %3283 = vmatmul.bf16.gmra.mxu2 %v6799_v27 }
 0x233   : > { %3306 = vmatmul.bf16.gmra.mxu3 %v6803_v33  ;;  %v6139_v33 = vld [vmem:[#allocation10 + $0xc4] sm:$0xf0]  ;;  %3848 = vmatpush.bf16.msra.mxu0 %v5565_v22 }
 0x234   : > { %v5629_v2 = vor.u32 %v6139_v33, %v5628_v60  ;;  %3893 = vmatpush.bf16.msra.mxu2 %v5701_v48  ;;  %v6115_v60 = vld [vmem:[#allocation10 + $0x4] sm:$0xf0] }
 0x235   : > { %v7018_v54 = vpop.f32.mrf.mxu2 }
 0x236   : > { %v7020_v51 = vpop.f32.mrf.mxu3  ;;  %3871 = vmatpush.bf16.msra.mxu1 %v5629_v2  ;;  %v6153_v2 = vld [vmem:[#allocation10 + $0x134] sm:$0xf0] }
 0x237   : > { %3849 = vmatpush.bf16.msra.mxu0 %v5557_v30  ;;  %v5685_v57 = vor.u32 %v6153_v2, %v5684_v0  ;;  %v6151_v30 = vld [vmem:[#allocation10 + $0x124] sm:$0xf0] }
 0x238   : > { %v7022_v27 = vpop.f32.mrf.mxu0  ;;  %3894 = vmatpush.bf16.msra.mxu2 %v5693_v18  ;;  %v5677_v9 = vor.u32 %v6151_v30, %v5676_v6  ;;  %v5657_v18 = vor.u32 %v6144_v28, %v5654_v47  ;;  %v6140_v6 = vld [vmem:[#allocation10 + $0xd4] sm:$0xf] }
 0x239   : > { %v7024_v5 = vpop.f32.mrf.mxu1  ;;  %v6136_v47 = vld [vmem:[#allocation10 + $0xb4] sm:$0xf] }
 0x23a   : > { %3872 = vmatpush.bf16.msra.mxu1 %v5621_v20  ;;  %v5668_v20 = vld [vmem:[#allocation10 + $0x110] sm:$0xf] }
 0x23b   : > { %3319 = vmatmul.bf16.vlgmr.msrb.gmra.mxu0 %v6819_v19  ;;  %v5548_v19 = vld [vmem:[#allocation10 + $0x20] sm:$0xf]  ;;  %v5669_v40 = vor.u32 %v6149_v25, %v5668_v20 }
 0x23c   : > { %3342 = vmatmul.bf16.vlgmr.msrb.gmra.mxu1 %v6821_v26  ;;  %v5549_v26 = vor.u32 %v6119_v38, %v5548_v19  ;;  %3895 = vmatpush.bf16.msra.mxu2 %v5685_v57  ;;  %v7055_v19 = vld [vmem:[%s7245_s4] sm:$0xf]  ;;  %v5574_v57 = vld [vmem:[#allocation10 + $0x58] sm:$0xf0] }
 0x23d   : > { %v7028_v32 = vpop.f32.mrf.mxu2 }
 0x23e   : > { %v7030_v31 = vpop.f32.mrf.mxu3  ;;  %3850 = vmatpush.bf16.msra.mxu0 %v5549_v26  ;;  %3873 = vmatpush.bf16.msra.mxu1 %v5613_v62  ;;  %v5660_v26 = vld [vmem:[#allocation10 + $0x100] sm:$0xf] }
 0x23f   : > { %v5661_v29 = vor.u32 %v6147_v36, %v5660_v26  ;;  %v6138_v26 = vld [vmem:[#allocation10 + $0xc4] sm:$0xf] }
 0x240   : > { %v7032_v45 = vpop.f32.mrf.mxu0  ;;  %3896 = vmatpush.bf16.msra.mxu2 %v5677_v9 }
 0x241   : > { %v7034_v34 = vpop.f32.mrf.mxu1 }
 0x242   : > { %3365 = vmatmul.bf16.vlgmr.msrb.gmra.mxu2 %v6835_v10  ;;  %3851 = vmatpush.bf16.msra.mxu0 %v5541_v58  ;;  %v5532_v10 = vld [vmem:[#allocation10] sm:$0xf]  ;;  %v5590_v58 = vld [vmem:[#allocation10 + $0x78] sm:$0xf0] }
 0x243   : > { %3388 = vmatmul.bf16.vlgmr.msrb.gmra.mxu3 %v6837_v17  ;;  %3874 = vmatpush.bf16.msra.mxu1 %v5605_v37  ;;  %v5596_v17 = vld [vmem:[#allocation10 + $0x80] sm:$0xf]  ;;  %v5533_v33 = vor.u32 %v6115_v60, %v5532_v10  ;;  %v5582_v60 = vld [vmem:[#allocation10 + $0x68] sm:$0xf0] }
 0x244   : > { %v5597_v12 = vor.u32 %v6131_v1, %v5596_v17  ;;  %3897 = vmatpush.bf16.msra.mxu2 %v5669_v40 }
 0x245   : > { %v7038_v63 = vpop.f32.mrf.mxu2 }
 0x246   : > { %v7040_v7 = vpop.f32.mrf.mxu3  ;;  %3852 = vmatpush.bf16.msra.mxu0 %v5533_v33 }
 0x247   : > { %3875 = vmatpush.bf16.msra.mxu1 %v5597_v12 }
 0x248   : > { %v7042_v22 = vpop.f32.mrf.mxu0  ;;  %3898 = vmatpush.bf16.msra.mxu2 %v5661_v29 }
 0x249   : > { %v7044_v8 = vpop.f32.mrf.mxu1 }
 0x24b   : > { %3324 = vmatmul.bf16.gmra.mxu0 %v6849_v3  ;;  %v7058_v3 = vperm.slane %v7055_v19, 2  ;;  %3960 = vmatpush.bf16.msrb.mxu1 %v5657_v18 }
 0x24c   : > { %3347 = vmatmul.bf16.gmra.mxu1 %v6851_v11 }
 0x24d   : > { %v7048_v16 = vpop.f32.mrf.mxu2  ;;  %v3045_v49 = vadd.f32 %v7006_v21, %v7058_v3  ;;  %v3047_v21 = vadd.f32 %v7012_v59, %v7058_v3  ;;  %v5646_v59 = vld [vmem:[#allocation10 + $0xe8] sm:$0xf0]  ;;  %v3052_v28 = vadd.f32 %v7032_v45, %v7058_v3 }
 0x24e   : > { %v7050_v14 = vpop.f32.mrf.mxu3 }
 0x24f   : > { %v3068_v44 = vadd.f32 %v7008_v43, %v3045_v49  ;;  %v3070_v17 = vadd.f32 %v7014_v4, %v3047_v21  ;;  %v5638_v4 = vld [vmem:[#allocation10 + $0xd8] sm:$0xf0]  ;;  %v6120_v21 = vld [vmem:[#allocation10 + $0x34] sm:$0xf] }
 0x250   : > { %v3056_v38 = vpop.f32.mrf.mxu0  ;;  %v5641_v25 = vor.u32 %v6140_v6, %v5638_v4  ;;  %v5614_v6 = vld [vmem:[#allocation10 + $0xa8] sm:$0xf0] }
 0x251   : > { %v3079_v11 = vpop.f32.mrf.mxu1  ;;  %v3093_v12 = vadd.f32 %v7028_v32, %v3070_v17  ;;  %v3050_v38 = vadd.f32 %v7022_v27, %v7058_v3 }
 0x252   : > { %3370 = vmatmul.bf16.gmra.mxu2 %v6859_v39  ;;  %v3091_v39 = vadd.f32 %v7018_v54, %v3068_v44  ;;  %v6126_v54 = vld [vmem:[#allocation10 + $0x64] sm:$0xf]  ;;  %v5630_v44 = vld [vmem:[#allocation10 + $0xc8] sm:$0xf0] }
 0x253   : > { %3393 = vmatmul.bf16.gmra.mxu3 %v6861_v46  ;;  %v6128_v46 = vld [vmem:[#allocation10 + $0x74] sm:$0xf]  ;;  %v5585_v0 = vor.u32 %v6126_v54, %v5582_v60  ;;  %v3116_v40 = vadd.f32 %v7030_v31, %v3093_v12  ;;  %v3073_v27 = vadd.f32 %v7024_v5, %v3050_v38  ;;  %v6158_v5 = vld [vmem:[#allocation10 + $0x164] sm:$0xf]  ;;  %v5710_v54 = vld [vmem:[#allocation10 + $0x168] sm:$0xf0] }
 0x254   : > { %v5593_v50 = vor.u32 %v6128_v46, %v5590_v58  ;;  %v3114_v43 = vadd.f32 %v7020_v51, %v3091_v39  ;;  %v6124_v51 = vld [vmem:[#allocation10 + $0x54] sm:$0xf]  ;;  %v5633_v46 = vor.u32 %v6138_v26, %v5630_v44  ;;  %v5713_v17 = vor.u32 %v6158_v5, %v5710_v54  ;;  %v6154_v44 = vld [vmem:[#allocation10 + $0x144] sm:$0xf] }
 0x255   : > { %v7064_v62 = vpop.f32.mrf.mxu2  ;;  %v5577_v9 = vor.u32 %v6124_v51, %v5574_v57 }
 0x256   : > { %v7066_v48 = vpop.f32.mrf.mxu3  ;;  %3937 = vmatpush.bf16.msrb.mxu0 %v5593_v50  ;;  %v5558_v50 = vld [vmem:[#allocation10 + $0x38] sm:$0xf0] }
 0x258   : > { %v3136_v55 = vpop.f32.mrf.mxu0 }
 0x259   : > { %v3159_v41 = vpop.f32.mrf.mxu1  ;;  %v3137_v33 = vadd.f32 %v3136_v55, %v3114_v43  ;;  %v6160_v55 = vld [vmem:[#allocation10 + $0x174] sm:$0xf]  ;;  %v5561_v43 = vor.u32 %v6120_v21, %v5558_v50 }
 0x25a   : > { %3938 = vmatpush.bf16.msrb.mxu0 %v5585_v0  ;;  %v6118_v0 = vld [vmem:[#allocation10 + $0x24] sm:$0xf] }
 0x25b   : > { %3329 = vmatmul.bf16.gmra.mxu0 %v6867_v23  ;;  %v6142_v23 = vld [vmem:[#allocation10 + $0xe4] sm:$0xf]  ;;  %v3160_v30 = vadd.f32 %v3159_v41, %v3137_v33  ;;  %v5718_v41 = vld [vmem:[#allocation10 + $0x178] sm:$0xf0] }
 0x25c   : > { %3352 = vmatmul.bf16.gmra.mxu1 %v6869_v24  ;;  %v5649_v24 = vor.u32 %v6142_v23, %v5646_v59  ;;  %v5721_v58 = vor.u32 %v6160_v55, %v5718_v41  ;;  %v5550_v59 = vld [vmem:[#allocation10 + $0x28] sm:$0xf0] }
 0x25d   : > { %v3102_v37 = vpop.f32.mrf.mxu2  ;;  %v5553_v57 = vor.u32 %v6118_v0, %v5550_v59  ;;  %v5694_v55 = vld [vmem:[#allocation10 + $0x148] sm:$0xf0] }
 0x25e   : > { %v3125_v10 = vpop.f32.mrf.mxu3  ;;  %3961 = vmatpush.bf16.msrb.mxu1 %v5649_v24  ;;  %3939 = vmatpush.bf16.msrb.mxu0 %v5577_v9  ;;  %v3096_v37 = vadd.f32 %v7038_v63, %v3073_v27  ;;  %v6134_v24 = vld [vmem:[#allocation10 + $0xa4] sm:$0xf]  ;;  %v3075_v63 = vadd.f32 %v7034_v34, %v3052_v28  ;;  %v5702_v9 = vld [vmem:[#allocation10 + $0x158] sm:$0xf0] }
 0x25f   : > { %3983 = vmatpush.bf16.msrb.mxu2 %v5721_v58  ;;  %v5622_v10 = vld [vmem:[#allocation10 + $0xb8] sm:$0xf0] }
 0x260   : > { %v3138_v1 = vpop.f32.mrf.mxu0  ;;  %v5625_v23 = vor.u32 %v6136_v47, %v5622_v10  ;;  %v3098_v38 = vadd.f32 %v7048_v16, %v3075_v63  ;;  %v5542_v34 = vld [vmem:[#allocation10 + $0x18] sm:$0xf0]  ;;  %v5697_v16 = vor.u32 %v6154_v44, %v5694_v55  ;;  %v6148_v63 = vld [vmem:[#allocation10 + $0x114] sm:$0xf]  ;;  %v5780_v44 = vld [vmem:[#allocation10 + $0x1f0] sm:$0xf] }
 0x261   : > { %v3161_v2 = vpop.f32.mrf.mxu1  ;;  %v3139_v36 = vadd.f32 %v3138_v1, %v3116_v40  ;;  %v5686_v10 = vld [vmem:[#allocation10 + $0x138] sm:$0xf0]  ;;  %v6177_v55 = vld [vmem:[#allocation10 + $0x1f4] sm:$0xf0] }
 0x262   : > { %3375 = vmatmul.bf16.gmra.mxu2 %v6875_v53  ;;  %3962 = vmatpush.bf16.msrb.mxu1 %v5641_v25  ;;  %v6122_v53 = vld [vmem:[#allocation10 + $0x44] sm:$0xf] }
 0x263   : > { %3398 = vmatmul.bf16.gmra.mxu3 %v6873_v52  ;;  %v5566_v52 = vld [vmem:[#allocation10 + $0x48] sm:$0xf0]  ;;  %v3162_v18 = vadd.f32 %v3161_v2, %v3139_v36  ;;  %v3119_v2 = vadd.f32 %v7040_v7, %v3096_v37  ;;  %3984 = vmatpush.bf16.msrb.mxu2 %v5713_v17  ;;  %v3055_v7 = vadd.f32 %v7042_v22, %v7058_v3  ;;  %v6114_v22 = vld [vmem:[#allocation10 + $0x4] sm:$0xf] }
 0x264   : > { %v5569_v29 = vor.u32 %v6122_v53, %v5566_v52  ;;  %v6132_v53 = vld [vmem:[#allocation10 + $0x94] sm:$0xf]  ;;  %v5534_v3 = vld [vmem:[#allocation10 + $0x8] sm:$0xf0] }
 0x265   : > { %v3182_v20 = vpop.f32.mrf.mxu2  ;;  %v3078_v21 = vadd.f32 %v7044_v8, %v3055_v7  ;;  %v6150_v8 = vld [vmem:[#allocation10 + $0x124] sm:$0xf] }
 0x266   : > { %v3183_v32 = vadd.f32 %v3182_v20, %v3160_v30  ;;  %v3205_v11 = vpop.f32.mrf.mxu3  ;;  %3940 = vmatpush.bf16.msrb.mxu0 %v5569_v29  ;;  %3963 = vmatpush.bf16.msrb.mxu1 %v5633_v46  ;;  %v6156_v30 = vld [vmem:[#allocation10 + $0x154] sm:$0xf]  ;;  %v5617_v20 = vor.u32 %v6134_v24, %v5614_v6  ;;  %v5606_v29 = vld [vmem:[#allocation10 + $0x98] sm:$0xf0]  ;;  %v3419_v6 = vmul.f32 0.2, %v6950_v42 }
 0x267   : > { %v5705_v25 = vor.u32 %v6156_v30, %v5702_v9  ;;  %v5609_v46 = vor.u32 %v6132_v53, %v5606_v29 }
 0x268   : > { %v3141_v49 = vpop.f32.mrf.mxu0  ;;  %v3206_v31 = vadd.f32 %v3205_v11, %v3183_v32  ;;  %v6116_v11 = vld [vmem:[#allocation10 + $0x14] sm:$0xf] }
 0x269   : > { %v7082_v39 = vpop.f32.mrf.mxu1  ;;  %v3142_v40 = vadd.f32 %v3141_v49, %v3119_v2  ;;  %3985 = vmatpush.bf16.msrb.mxu2 %v5705_v25  ;;  %v5545_v36 = vor.u32 %v6116_v11, %v5542_v34  ;;  %v3121_v49 = vadd.f32 %v7050_v14, %v3098_v38  ;;  %v6152_v14 = vld [vmem:[#allocation10 + $0x134] sm:$0xf]  ;;  %v5670_v2 = vld [vmem:[#allocation10 + $0x118] sm:$0xf0]  ;;  %v6146_v25 = vld [vmem:[#allocation10 + $0x104] sm:$0xf]  ;;  %v3439_v11 = vmax.f32 %v6950_v42, %v3419_v6 }
 0x26a   : > { %v3405_v45 = vmul.f32 0.2, %v3206_v31  ;;  %3941 = vmatpush.bf16.msrb.mxu0 %v5561_v43  ;;  %3964 = vmatpush.bf16.msrb.mxu1 %v5625_v23  ;;  %v5598_v43 = vld [vmem:[#allocation10 + $0x88] sm:$0xf0]  ;;  %v5689_v54 = vor.u32 %v6152_v14, %v5686_v10  ;;  %v5673_v9 = vor.u32 %v6148_v63, %v5670_v2  ;;  %v5781_v42 = vor.u32 %v6177_v55, %v5780_v44  ;;  %v6165_v6 = vld [vmem:[#allocation10 + $0x194] sm:$0xf0] }
 0x26b   : > { %3853 = vmatmul.bf16.vlgmr.msra.gmra.mxu0 %v6938_v61  ;;  %v3165_v58 = vadd.f32 %v7082_v39, %v3142_v40  ;;  %v5678_v23 = vld [vmem:[#allocation10 + $0x128] sm:$0xf0] }
 0x26c   : > { %3876 = vmatmul.bf16.vlgmr.msra.gmra.mxu1 %v6995_v13  ;;  %v3425_v52 = vmax.f32 %v3206_v31, %v3405_v45  ;;  %v6130_v31 = vld [vmem:[#allocation10 + $0x84] sm:$0xf]  ;;  %v5662_v38 = vld [vmem:[#allocation10 + $0x108] sm:$0xf0]  ;;  %3914 = vmatpush.bf16.msra.mxu3 %v5781_v42 }
 0x26d   : > { %v3184_v60 = vpop.f32.mrf.mxu2  ;;  %3986 = vmatpush.bf16.msrb.mxu2 %v5697_v16  ;;  %v5601_v5 = vor.u32 %v6130_v31, %v5598_v43  ;;  %v5665_v53 = vor.u32 %v6146_v25, %v5662_v38  ;;  %v6175_v31 = vld [vmem:[#allocation10 + $0x1e4] sm:$0xf0]  ;;  %v7155_v25 = vperm.slane %v7055_v19, 3 }
 0x26e   : > { %v3185_v33 = vadd.f32 %v3184_v60, %v3162_v18  ;;  %v3207_v1 = vpop.f32.mrf.mxu3  ;;  %3942 = vmatpush.bf16.msrb.mxu0 %v5553_v57  ;;  %3965 = vmatpush.bf16.msrb.mxu1 %v5617_v20  ;;  %v5537_v18 = vor.u32 %v6114_v22, %v5534_v3  ;;  %v3101_v60 = vadd.f32 %v7064_v62, %v3078_v21  ;;  %v5772_v3 = vld [vmem:[#allocation10 + $0x1e0] sm:$0xf]  ;;  %v6163_v38 = vld [vmem:[#allocation10 + $0x184] sm:$0xf0] }
 0x270   : > { %v3208_v12 = vadd.f32 %v3207_v1, %v3185_v33  ;;  %v3143_v51 = vpop.f32.mrf.mxu0  ;;  %v5681_v1 = vor.u32 %v6150_v8, %v5678_v23  ;;  %v3124_v0 = vadd.f32 %v7066_v48, %v3101_v60  ;;  %v5756_v60 = vld [vmem:[#allocation10 + $0x1c0] sm:$0xf]  ;;  %v6171_v8 = vld [vmem:[#allocation10 + $0x1c4] sm:$0xf0] }
 0x271   : > { %v3166_v4 = vpop.f32.mrf.mxu1  ;;  %v3144_v50 = vadd.f32 %v3143_v51, %v3121_v49  ;;  %3987 = vmatpush.bf16.msrb.mxu2 %v5689_v54  ;;  %v5757_v23 = vor.u32 %v6171_v8, %v5756_v60 }
 0x272   : > { %v3409_v32 = vmul.f32 0.2, %v3208_v12  ;;  %3943 = vmatpush.bf16.msrb.mxu0 %v5545_v36  ;;  %3966 = vmatpush.bf16.msrb.mxu1 %v5609_v46 }
 0x273   : > { %v3167_v17 = vadd.f32 %v3166_v4, %v3144_v50  ;;  %v3420_v4 = vmul.f32 0.2, %v7004_v56  ;;  %v5773_v50 = vor.u32 %v6175_v31, %v5772_v3  ;;  %v6172_v3 = vld [vmem:[#allocation10 + $0x1d4] sm:$0xf] }
 0x274   : > { %v3429_v26 = vmax.f32 %v3208_v12, %v3409_v32 }
 0x275   : > { %v3187_v41 = vpop.f32.mrf.mxu2  ;;  %3988 = vmatpush.bf16.msrb.mxu2 %v5681_v1  ;;  %v3440_v7 = vmax.f32 %v7004_v56, %v3420_v4  ;;  %3915 = vmatpush.bf16.msra.mxu3 %v5773_v50  ;;  %v6169_v1 = vld [vmem:[#allocation10 + $0x1b4] sm:$0xf0]  ;;  %v5766_v50 = vld [vmem:[#allocation10 + $0x1d8] sm:$0xf0] }
 0x276   : > { %v7097_v27 = vpack.c.bf16 %v3429_v26, %v3425_v52  ;;  %v3210_v28 = vpop.f32.mrf.mxu3  ;;  %v3188_v47 = vadd.f32 %v3187_v41, %v3165_v58  ;;  %3944 = vmatpush.bf16.msrb.mxu0 %v5537_v18  ;;  %3967 = vmatpush.bf16.msrb.mxu1 %v5601_v5  ;;  %v7114_v41 = vpack.c.bf16 %v3439_v11, %v3439_v11 }
 0x277   : > { %v7118_v16 = vpack.c.bf16 %v3440_v7, %v3440_v7 }
 0x278   : > { %3899 = vmatmul.bf16.vlgmr.msra.gmra.mxu2 %v7097_v27  ;;  %v3146_v37 = vpop.f32.mrf.mxu0  ;;  %v3211_v45 = vadd.f32 %v3210_v28, %v3188_v47  ;;  %v5764_v47 = vld [vmem:[#allocation10 + $0x1d0] sm:$0xf] }
 0x279   : > { %v3169_v39 = vpop.f32.mrf.mxu1  ;;  %v3147_v12 = vadd.f32 %v3146_v37, %v3124_v0  ;;  %3989 = vmatpush.bf16.msrb.mxu2 %v5673_v9  ;;  %v6173_v37 = vld [vmem:[#allocation10 + $0x1d4] sm:$0xf0] }
 0x27a   : > { %v3413_v62 = vmul.f32 0.2, %v3211_v45  ;;  %v5765_v43 = vor.u32 %v6173_v37, %v5764_v47 }
 0x27b   : > { %3858 = vmatmul.bf16.gmra.mxu0 %v6948_v35  ;;  %v3170_v48 = vadd.f32 %v3169_v39, %v3147_v12  ;;  %v6167_v12 = vld [vmem:[#allocation10 + $0x1a4] sm:$0xf0] }
 0x27c   : > { %3881 = vmatmul.bf16.gmra.mxu1 %v7002_v15  ;;  %v3433_v40 = vmax.f32 %v3211_v45, %v3413_v62  ;;  %3916 = vmatpush.bf16.msra.mxu3 %v5765_v43  ;;  %v5740_v62 = vld [vmem:[#allocation10 + $0x1a0] sm:$0xf]  ;;  %v5769_v43 = vor.u32 %v6172_v3, %v5766_v50 }
 0x27d   : > { %v3189_v33 = vpop.f32.mrf.mxu2  ;;  %3990 = vmatpush.bf16.msrb.mxu2 %v5665_v53 }
 0x27e   : > { %v3190_v59 = vadd.f32 %v3189_v33, %v3167_v17  ;;  %v3212_v24 = vpop.f32.mrf.mxu3  ;;  %v5748_v33 = vld [vmem:[#allocation10 + $0x1b0] sm:$0xf] }
 0x27f   : > { %v5749_v0 = vor.u32 %v6169_v1, %v5748_v33 }
 0x280   : > { %v3213_v51 = vadd.f32 %v3212_v24, %v3190_v59  ;;  %v3148_v57 = vpop.f32.mrf.mxu0  ;;  %3917 = vmatpush.bf16.msra.mxu3 %v5757_v23 }
 0x281   : > { %v3171_v30 = vpop.f32.mrf.mxu1  ;;  %v5732_v57 = vld [vmem:[#allocation10 + $0x190] sm:$0xf] }
 0x282   : > { %v3417_v20 = vmul.f32 0.2, %v3213_v51  ;;  %v5733_v4 = vor.u32 %v6165_v6, %v5732_v57 }
 0x284   : > { %v3437_v32 = vmax.f32 %v3213_v51, %v3417_v20  ;;  %3918 = vmatpush.bf16.msra.mxu3 %v5749_v0  ;;  %v5741_v51 = vor.u32 %v6167_v12, %v5740_v62  ;;  %v6170_v62 = vld [vmem:[#allocation10 + $0x1c4] sm:$0xf]  ;;  %v5758_v12 = vld [vmem:[#allocation10 + $0x1c8] sm:$0xf0] }
 0x285   : > { %v3192_v34 = vpop.f32.mrf.mxu2  ;;  %v5761_v57 = vor.u32 %v6170_v62, %v5758_v12 }
 0x286   : > { %v3193_v52 = vadd.f32 %v3192_v34, %v3170_v48  ;;  %v3215_v26 = vpop.f32.mrf.mxu3  ;;  %v7109_v36 = vpack.c.bf16 %v3437_v32, %v3433_v40 }
 0x288   : > { %3904 = vmatmul.bf16.gmra.mxu2 %v7109_v36  ;;  %v7112_v29 = vpop.f32.mrf.mxu0  ;;  %v3216_v49 = vadd.f32 %v3215_v26, %v3193_v52  ;;  %3919 = vmatpush.bf16.msra.mxu3 %v5741_v51  ;;  %v6176_v52 = vld [vmem:[#allocation10 + $0x1f4] sm:$0xf]  ;;  %v5782_v26 = vld [vmem:[#allocation10 + $0x1f8] sm:$0xf0] }
 0x289   : > { %v7116_v46 = vpop.f32.mrf.mxu1  ;;  %v5785_v44 = vor.u32 %v6176_v52, %v5782_v26  ;;  %v6168_v51 = vld [vmem:[#allocation10 + $0x1b4] sm:$0xf] }
 0x28a   : > { %v3421_v58 = vmul.f32 0.2, %v3216_v49 }
 0x28b   : > { %3863 = vmatmul.bf16.gmra.mxu0 %v7114_v41 }
 0x28c   : > { %3886 = vmatmul.bf16.gmra.mxu1 %v7118_v16  ;;  %v3441_v18 = vmax.f32 %v3216_v49, %v3421_v58  ;;  %3920 = vmatpush.bf16.msra.mxu3 %v5733_v4 }
 0x28d   : > { %v3194_v56 = vpop.f32.mrf.mxu2 }
 0x28e   : > { %v3217_v28 = vpop.f32.mrf.mxu3  ;;  %v7126_v10 = vpack.c.bf16 %v3441_v18, %v3441_v18 }
 0x28f   : > { %v5774_v28 = vld [vmem:[#allocation10 + $0x1e8] sm:$0xf0] }
 0x290   : > { %v7122_v22 = vpop.f32.mrf.mxu0 }
 0x291   : > { %v7124_v21 = vpop.f32.mrf.mxu1  ;;  %v3231_v19 = vadd.f32 %v7122_v22, %v7155_v25 }
 0x295   : > { %v3274_v14 = vpop.f32.mrf.mxu2 }
 0x296   : > { %v3297_v39 = vpop.f32.mrf.mxu3 }
 0x298   : > { %3909 = vmatmul.bf16.gmra.mxu2 %v7126_v10  ;;  %v7129_v5 = vpop.f32.mrf.mxu0 }
 0x299   : > { %v7131_v54 = vpop.f32.mrf.mxu1 }
 0x29b   : > { %3945 = vmatmul.bf16.vlgmr.msrb.gmra.mxu0 %v6938_v61 }
 0x29c   : > { %3968 = vmatmul.bf16.vlgmr.msrb.gmra.mxu1 %v6995_v13 }
 0x29d   : > { %v3276_v17 = vpop.f32.mrf.mxu2 }
 0x29e   : > { %v3299_v45 = vpop.f32.mrf.mxu3 }
 0x2a0   : > { %v7135_v59 = vpop.f32.mrf.mxu0 }
 0x2a1   : > { %v7137_v24 = vpop.f32.mrf.mxu1  ;;  %v3236_v23 = vadd.f32 %v7135_v59, %v7155_v25 }
 0x2a3   : > { %v3259_v6 = vadd.f32 %v7137_v24, %v3236_v23 }
 0x2a5   : > { %v7139_v63 = vpop.f32.mrf.mxu2 }
 0x2a6   : > { %v7141_v2 = vpop.f32.mrf.mxu3 }
 0x2a8   : > { %3991 = vmatmul.bf16.vlgmr.msrb.gmra.mxu2 %v7097_v27  ;;  %v7144_v61 = vpop.f32.mrf.mxu0 }
 0x2a9   : > { %v7146_v13 = vpop.f32.mrf.mxu1 }
 0x2ab   : > { %3950 = vmatmul.bf16.gmra.mxu0 %v6948_v35  ;;  %v5724_v35 = vld [vmem:[#allocation10 + $0x180] sm:$0xf] }
 0x2ac   : > { %3973 = vmatmul.bf16.gmra.mxu1 %v7002_v15  ;;  %v5725_v40 = vor.u32 %v6163_v38, %v5724_v35  ;;  %v3229_v15 = vadd.f32 %v7112_v29, %v7155_v25 }
 0x2ad   : > { %v7150_v30 = vpop.f32.mrf.mxu2 }
 0x2ae   : > { %v7152_v9 = vpop.f32.mrf.mxu3  ;;  %3921 = vmatpush.bf16.msra.mxu3 %v5725_v40  ;;  %v3252_v53 = vadd.f32 %v7116_v46, %v3229_v15  ;;  %v3282_v35 = vadd.f32 %v7150_v30, %v3259_v6  ;;  %v6166_v15 = vld [vmem:[#allocation10 + $0x1a4] sm:$0xf] }
 0x2b0   : > { %v3240_v27 = vpop.f32.mrf.mxu0  ;;  %v3275_v7 = vadd.f32 %v3274_v14, %v3252_v53 }
 0x2b1   : > { %v3263_v20 = vpop.f32.mrf.mxu1 }
 0x2b2   : > { %4006 = vmatpush.bf16.msrb.mxu3 %v5785_v44  ;;  %v3298_v42 = vadd.f32 %v3297_v39, %v3275_v7  ;;  %v3305_v7 = vadd.f32 %v7152_v9, %v3282_v35 }
 0x2b5   : > { %v7157_v48 = vpop.f32.mrf.mxu2 }
 0x2b6   : > { %v7161_v32 = vpop.f32.mrf.mxu3 }
 0x2b8   : > { %3996 = vmatmul.bf16.gmra.mxu2 %v7109_v36  ;;  %v3320_v11 = vpop.f32.mrf.mxu0  ;;  %v3254_v36 = vadd.f32 %v7124_v21, %v3231_v19 }
 0x2b9   : > { %v3343_v34 = vpop.f32.mrf.mxu1  ;;  %v3321_v58 = vadd.f32 %v3320_v11, %v3298_v42  ;;  %v5742_v11 = vld [vmem:[#allocation10 + $0x1a8] sm:$0xf0] }
 0x2ba   : > { %v3277_v46 = vadd.f32 %v3276_v17, %v3254_v36 }
 0x2bb   : > { %3955 = vmatmul.bf16.gmra.mxu0 %v7114_v41  ;;  %v6174_v41 = vld [vmem:[#allocation10 + $0x1e4] sm:$0xf]  ;;  %v3344_v37 = vadd.f32 %v3343_v34, %v3321_v58  ;;  %v3239_v34 = vadd.f32 %v7144_v61, %v7155_v25 }
 0x2bc   : > { %3978 = vmatmul.bf16.gmra.mxu1 %v7118_v16  ;;  %v5777_v31 = vor.u32 %v6174_v41, %v5774_v28  ;;  %v3234_v16 = vadd.f32 %v7129_v5, %v7155_v25  ;;  %v3300_v47 = vadd.f32 %v3299_v45, %v3277_v46  ;;  %v5734_v46 = vld [vmem:[#allocation10 + $0x198] sm:$0xf0] }
 0x2bd   : > { %v3286_v29 = vpop.f32.mrf.mxu2  ;;  %v3262_v30 = vadd.f32 %v7146_v13, %v3239_v34 }
 0x2be   : > { %v3309_v55 = vpop.f32.mrf.mxu3  ;;  %4007 = vmatpush.bf16.msrb.mxu3 %v5777_v31  ;;  %v3257_v8 = vadd.f32 %v7131_v54, %v3234_v16 }
 0x2bf   : > { %v3285_v61 = vadd.f32 %v7157_v48, %v3262_v30  ;;  %v3519_v48 = vld [vmem:[%s7247_s6] sm:$0x3] }
 0x2c0   : > { %v3322_v49 = vpop.f32.mrf.mxu0  ;;  %v3280_v17 = vadd.f32 %v7139_v63, %v3257_v8 }
 0x2c1   : > { %v3345_v56 = vpop.f32.mrf.mxu1  ;;  %v3323_v21 = vadd.f32 %v3322_v49, %v3300_v47  ;;  %v3308_v41 = vadd.f32 %v7161_v32, %v3285_v61 }
 0x2c2   : > { %4008 = vmatpush.bf16.msrb.mxu3 %v5769_v43  ;;  %v3303_v54 = vadd.f32 %v7141_v2, %v3280_v17  ;;  %v5745_v2 = vor.u32 %v6166_v15, %v5742_v11 }
 0x2c3   : > { %v3346_v5 = vadd.f32 %v3345_v56, %v3323_v21  ;;  %v6164_v56 = vld [vmem:[#allocation10 + $0x194] sm:$0xf] }
 0x2c4   : > { %v5737_v58 = vor.u32 %v6164_v56, %v5734_v46 }
 0x2c5   : > { %v3366_v22 = vpop.f32.mrf.mxu2 }
 0x2c6   : > { %v3389_v18 = vpop.f32.mrf.mxu3  ;;  %v3367_v14 = vadd.f32 %v3366_v22, %v3344_v37  ;;  %4009 = vmatpush.bf16.msrb.mxu3 %v5761_v57  ;;  %v6162_v37 = vld [vmem:[#allocation10 + $0x184] sm:$0xf] }
 0x2c8   : > { %4001 = vmatmul.bf16.gmra.mxu2 %v7126_v10  ;;  %v3325_v39 = vpop.f32.mrf.mxu0  ;;  %v3390_v45 = vadd.f32 %v3389_v18, %v3367_v14  ;;  %v5750_v10 = vld [vmem:[#allocation10 + $0x1b8] sm:$0xf0]  ;;  %v5726_v18 = vld [vmem:[#allocation10 + $0x188] sm:$0xf0] }
 0x2c9   : > { %v3348_v60 = vpop.f32.mrf.mxu1  ;;  %v5753_v63 = vor.u32 %v6168_v51, %v5750_v10  ;;  %v3326_v38 = vadd.f32 %v3325_v39, %v3303_v54  ;;  %v5729_v39 = vor.u32 %v6162_v37, %v5726_v18 }
 0x2ca   : > { %v3406_v4 = vmul.f32 0.2, %v3390_v45 }
 0x2cb   : > { %4010 = vmatpush.bf16.msrb.mxu3 %v5753_v63  ;;  %v3349_v52 = vadd.f32 %v3348_v60, %v3326_v38  ;;  %v3521_v60 = vperm.slane %v3519_v48, 0 }
 0x2cc   : > { %v3426_v53 = vmax.f32 %v3390_v45, %v3406_v4 }
 0x2cd   : > { %v3368_v33 = vpop.f32.mrf.mxu2 }
 0x2ce   : > { %v3369_v1 = vadd.f32 %v3368_v33, %v3346_v5  ;;  %v3391_v0 = vpop.f32.mrf.mxu3 }
 0x2cf   : > { %4011 = vmatpush.bf16.msrb.mxu3 %v5745_v2 }
 0x2d0   : > { %v3392_v27 = vadd.f32 %v3391_v0, %v3369_v1  ;;  %v3327_v20 = vpop.f32.mrf.mxu0 }
 0x2d1   : > { %v3350_v59 = vpop.f32.mrf.mxu1  ;;  %v3328_v44 = vadd.f32 %v3327_v20, %v3305_v7 }
 0x2d2   : > { %v3410_v40 = vmul.f32 0.2, %v3392_v27 }
 0x2d3   : > { %v3351_v25 = vadd.f32 %v3350_v59, %v3328_v44  ;;  %4012 = vmatpush.bf16.msrb.mxu3 %v5737_v58 }
 0x2d4   : > { %v3430_v19 = vmax.f32 %v3392_v27, %v3410_v40 }
 0x2d5   : > { %v3371_v24 = vpop.f32.mrf.mxu2 }
 0x2d6   : > { %v7183_v26 = vpack.c.bf16 %v3430_v19, %v3426_v53  ;;  %v3394_v29 = vpop.f32.mrf.mxu3  ;;  %v3372_v55 = vadd.f32 %v3371_v24, %v3349_v52 }
 0x2d7   : > { %4013 = vmatpush.bf16.msrb.mxu3 %v5729_v39 }
 0x2d8   : > { %3922 = vmatmul.bf16.vlgmr.msra.gmra.mxu3 %v7183_v26  ;;  %v3330_v36 = vpop.f32.mrf.mxu0  ;;  %v3395_v49 = vadd.f32 %v3394_v29, %v3372_v55 }
 0x2d9   : > { %v3353_v42 = vpop.f32.mrf.mxu1  ;;  %v3331_v22 = vadd.f32 %v3330_v36, %v3308_v41 }
 0x2da   : > { %v3414_v13 = vmul.f32 0.2, %v3395_v49 }
 0x2db   : > { %v3354_v21 = vadd.f32 %v3353_v42, %v3331_v22 }
 0x2dc   : > { %v3434_v43 = vmax.f32 %v3395_v49, %v3414_v13 }
 0x2dd   : > { %v3373_v9 = vpop.f32.mrf.mxu2 }
 0x2de   : > { %v3374_v28 = vadd.f32 %v3373_v9, %v3351_v25  ;;  %v3396_v3 = vpop.f32.mrf.mxu3  ;;  %v3522_v25 = vperm.slane %v3519_v48, 1 }
 0x2e0   : > { %v3397_v31 = vadd.f32 %v3396_v3, %v3374_v28  ;;  %v3332_v50 = vpop.f32.mrf.mxu0 }
 0x2e1   : > { %v3355_v16 = vpop.f32.mrf.mxu1 }
 0x2e2   : > { %v3418_v47 = vmul.f32 0.2, %v3397_v31 }
 0x2e4   : > { %v3438_v14 = vmax.f32 %v3397_v31, %v3418_v47 }
 0x2e5   : > { %v3376_v32 = vpop.f32.mrf.mxu2 }
 0x2e6   : > { %v3377_v8 = vadd.f32 %v3376_v32, %v3354_v21  ;;  %v3399_v23 = vpop.f32.mrf.mxu3  ;;  %v3450_v17 = vpack.c.bf16 %v3438_v14, %v3434_v43 }
 0x2e8   : > { %3927 = vmatmul.bf16.gmra.mxu3 %v3450_v17  ;;  %v3854_v5 = vpop.f32.mrf.mxu0  ;;  %v3400_v1 = vadd.f32 %v3399_v23, %v3377_v8 }
 0x2e9   : > { %v3855_v45 = vadd.f32 %v3854_v5, %v3521_v60  ;;  %v3877_v33 = vpop.f32.mrf.mxu1 }
 0x2ea   : > { %v3422_v12 = vmul.f32 0.2, %v3400_v1 }
 0x2eb   : > { %v3878_v0 = vadd.f32 %v3877_v33, %v3855_v45 }
 0x2ec   : > { %v3442_v54 = vmax.f32 %v3400_v1, %v3422_v12 }
 0x2ed   : > { %v3378_v62 = vpop.f32.mrf.mxu2 }
 0x2ee   : > { %v3401_v51 = vpop.f32.mrf.mxu3  ;;  %v3454_v27 = vpack.c.bf16 %v3442_v54, %v3442_v54 }
 0x2f0   : > { %v3856_v57 = vpop.f32.mrf.mxu0 }
 0x2f1   : > { %v3857_v10 = vadd.f32 %v3856_v57, %v3521_v60  ;;  %v3879_v6 = vpop.f32.mrf.mxu1 }
 0x2f3   : > { %v3880_v4 = vadd.f32 %v3879_v6, %v3857_v10 }
 0x2f8   : > { %3932 = vmatmul.bf16.gmra.mxu3 %v3454_v27  ;;  %v3859_v20 = vpop.f32.mrf.mxu0 }
 0x2f9   : > { %v3860_v59 = vadd.f32 %v3859_v20, %v3521_v60  ;;  %v3882_v63 = vpop.f32.mrf.mxu1 }
 0x2fb   : > { %v3883_v35 = vadd.f32 %v3882_v63, %v3860_v59  ;;  %v3900_v38 = vpop.f32.mrf.mxu2 }
 0x2fc   : > { %v7192_v40 = vadd.f32 %v3900_v38, %v3878_v0 }
 0x300   : > { %v3861_v15 = vpop.f32.mrf.mxu0 }
 0x301   : > { %v3862_v11 = vadd.f32 %v3861_v15, %v3521_v60  ;;  %v3884_v34 = vpop.f32.mrf.mxu1 }
 0x303   : > { %v3885_v53 = vadd.f32 %v3884_v34, %v3862_v11  ;;  %v3902_v19 = vpop.f32.mrf.mxu2 }
 0x304   : > { %v7194_v24 = vadd.f32 %v3902_v19, %v3880_v4 }
 0x308   : > { %4014 = vmatmul.bf16.vlgmr.msrb.gmra.mxu3 %v7183_v26  ;;  %v3864_v2 = vpop.f32.mrf.mxu0 }
 0x309   : > { %v3865_v7 = vadd.f32 %v3864_v2, %v3521_v60  ;;  %v3887_v52 = vpop.f32.mrf.mxu1 }
 0x30b   : > { %v3888_v29 = vadd.f32 %v3887_v52, %v3865_v7  ;;  %v3905_v30 = vpop.f32.mrf.mxu2 }
 0x30c   : > { %v7197_v44 = vadd.f32 %v3905_v30, %v3883_v35  ;;  %v4049_v35 = vld [vmem:[%s7248_s7] sm:$0x3] }
 0x30d   : > { %v4051_v11 = vperm.slane %v4049_v35, 0  ;;  %v4052_v2 = vperm.slane %v4049_v35, 1 }
 0x310   : > { %v3866_v55 = vpop.f32.mrf.mxu0 }
 0x311   : > { %v3889_v36 = vpop.f32.mrf.mxu1 }
 0x313   : > { %v3907_v42 = vpop.f32.mrf.mxu2 }
 0x314   : > { %v7199_v61 = vadd.f32 %v3907_v42, %v3885_v53 }
 0x318   : > { %4019 = vmatmul.bf16.gmra.mxu3 %v3450_v17  ;;  %v3946_v49 = vpop.f32.mrf.mxu0 }
 0x319   : > { %v3947_v56 = vadd.f32 %v3946_v49, %v3522_v25  ;;  %v3969_v46 = vpop.f32.mrf.mxu1 }
 0x31b   : > { %v3970_v9 = vadd.f32 %v3969_v46, %v3947_v56  ;;  %v3910_v58 = vpop.f32.mrf.mxu2 }
 0x31c   : > { %v7201_v26 = vadd.f32 %v3910_v58, %v3888_v29 }
 0x320   : > { %v3948_v41 = vpop.f32.mrf.mxu0 }
 0x321   : > { %v3949_v28 = vadd.f32 %v3948_v41, %v3522_v25  ;;  %v3971_v3 = vpop.f32.mrf.mxu1 }
 0x323   : > { %v3972_v13 = vadd.f32 %v3971_v3, %v3949_v28  ;;  %v3912_v22 = vpop.f32.mrf.mxu2 }
 0x328   : > { %4024 = vmatmul.bf16.gmra.mxu3 %v3454_v27  ;;  %v3951_v31 = vpop.f32.mrf.mxu0 }
 0x329   : > { %v3952_v50 = vadd.f32 %v3951_v31, %v3522_v25  ;;  %v3974_v16 = vpop.f32.mrf.mxu1 }
 0x32b   : > { %v3975_v47 = vadd.f32 %v3974_v16, %v3952_v50  ;;  %v3992_v37 = vpop.f32.mrf.mxu2 }
 0x32c   : > { %v3993_v48 = vadd.f32 %v3992_v37, %v3970_v9 }
 0x330   : > { %v3953_v18 = vpop.f32.mrf.mxu0 }
 0x331   : > { %v3954_v43 = vadd.f32 %v3953_v18, %v3522_v25  ;;  %v3976_v21 = vpop.f32.mrf.mxu1 }
 0x333   : > { %v3977_v14 = vadd.f32 %v3976_v21, %v3954_v43  ;;  %v3994_v39 = vpop.f32.mrf.mxu2 }
 0x334   : > { %v3995_v32 = vadd.f32 %v3994_v39, %v3972_v13 }
 0x338   : > { %v3956_v60 = vpop.f32.mrf.mxu0 }
 0x339   : > { %v3957_v8 = vadd.f32 %v3956_v60, %v3522_v25  ;;  %v3979_v23 = vpop.f32.mrf.mxu1 }
 0x33b   : > { %v3980_v17 = vadd.f32 %v3979_v23, %v3957_v8  ;;  %v3997_v5 = vpop.f32.mrf.mxu2 }
 0x33c   : > { %v3998_v45 = vadd.f32 %v3997_v5, %v3975_v47 }
 0x340   : > { %v3958_v33 = vpop.f32.mrf.mxu0 }
 0x341   : > { %v3981_v1 = vpop.f32.mrf.mxu1 }
 0x343   : > { %v3999_v0 = vpop.f32.mrf.mxu2 }
 0x344   : > { %v4000_v62 = vadd.f32 %v3999_v0, %v3977_v14 }
 0x34b   : > { %v4002_v12 = vpop.f32.mrf.mxu2 }
 0x34c   : > { %v4003_v51 = vadd.f32 %v4002_v12, %v3980_v17 }
 0x353   : > { %v4004_v57 = vpop.f32.mrf.mxu2 }
 0x35b   : > { %v3923_v10 = vpop.f32.mrf.mxu3 }
 0x35c   : > { %v3924_v59 = vadd.f32 %v3923_v10, %v7192_v40 }
 0x35e   : > { %v4029_v63 = vmul.f32 0.2, %v3924_v59 }
 0x360   : > { %v4039_v34 = vmax.f32 %v3924_v59, %v4029_v63 }
 0x362   : > { %v4055_v29 = vmul.f32 %v4051_v11, %v4039_v34 }
 0x363   : > { %v3925_v6 = vpop.f32.mrf.mxu3 }
 0x364   : > { %v3926_v53 = vadd.f32 %v3925_v6, %v7194_v24 }
 0x366   : > { %v4031_v52 = vmul.f32 0.2, %v3926_v53 }
 0x368   : > { %v4041_v42 = vmax.f32 %v3926_v53, %v4031_v52 }
 0x36a   : > { %v4057_v9 = vmul.f32 %v4051_v11, %v4041_v42 }
 0x36b   : > { %v3928_v54 = vpop.f32.mrf.mxu3 }
 0x36c   : > { %v3929_v25 = vadd.f32 %v3928_v54, %v7197_v44 }
 0x36e   : > { %v4033_v46 = vmul.f32 0.2, %v3929_v25 }
 0x370   : > { %v4043_v3 = vmax.f32 %v3929_v25, %v4033_v46 }
 0x372   : > { %v4059_v16 = vmul.f32 %v4051_v11, %v4043_v3 }
 0x373   : > { %v3930_v4 = vpop.f32.mrf.mxu3 }
 0x374   : > { %v3931_v13 = vadd.f32 %v3930_v4, %v7199_v61 }
 0x376   : > { %v4035_v50 = vmul.f32 0.2, %v3931_v13 }
 0x378   : > { %v4045_v18 = vmax.f32 %v3931_v13, %v4035_v50 }
 0x37b   : > { %v3933_v27 = vpop.f32.mrf.mxu3 }
 0x37c   : > { %v3934_v43 = vadd.f32 %v3933_v27, %v7201_v26  ;;  %v6266_v26 = vld [vmem:[#allocation2] ss:$0 sm:$0xff] }
 0x37e   : > { %v4037_v39 = vmul.f32 0.2, %v3934_v43 }
 0x380   : > { %v4047_v17 = vmax.f32 %v3934_v43, %v4037_v39 }
 0x382   : > { %v4063_v33 = vmul.f32 %v4051_v11, %v4047_v17 }
 0x383   : > { %v3935_v20 = vpop.f32.mrf.mxu3 }
 0x38b   : > { %v4015_v38 = vpop.f32.mrf.mxu3 }
 0x38c   : > { %v4016_v15 = vadd.f32 %v4015_v38, %v3993_v48 }
 0x38e   : > { %v4030_v19 = vmul.f32 0.2, %v4016_v15 }
 0x390   : > { %v4040_v7 = vmax.f32 %v4016_v15, %v4030_v19 }
 0x392   : > { %v4056_v30 = vmul.f32 %v4052_v2, %v4040_v7 }
 0x393   : > { %v4017_v55 = vpop.f32.mrf.mxu3 }
 0x394   : > { %v4018_v36 = vadd.f32 %v4017_v55, %v3995_v32  ;;  %v4065_v40 = vadd.f32 %v4056_v30, %v4055_v29  ;;  %v4061_v32 = vmul.f32 %v4051_v11, %v4045_v18 }
 0x396   : > { %v4032_v49 = vmul.f32 0.2, %v4018_v36  ;;  %4066 = vadd.xlane.f32.xlu0 %v4065_v40 }
 0x398   : > { %v4042_v56 = vmax.f32 %v4018_v36, %v4032_v49 }
 0x39a   : > { %v4058_v58 = vmul.f32 %v4052_v2, %v4042_v56 }
 0x39b   : > { %v4020_v41 = vpop.f32.mrf.mxu3 }
 0x39c   : > { %v4021_v24 = vadd.f32 %v4020_v41, %v3998_v45  ;;  %v4068_v28 = vadd.f32 %v4058_v58, %v4057_v9 }
 0x39e   : > { %v4034_v22 = vmul.f32 0.2, %v4021_v24  ;;  %4069 = vadd.xlane.f32.xlu0 %v4068_v28 }
 0x3a0   : > { %v4044_v31 = vmax.f32 %v4021_v24, %v4034_v22 }
 0x3a2   : > { %v4060_v47 = vmul.f32 %v4052_v2, %v4044_v31 }
 0x3a3   : > { %v4022_v37 = vpop.f32.mrf.mxu3 }
 0x3a4   : > { %v4023_v44 = vadd.f32 %v4022_v37, %v4000_v62  ;;  %v4071_v48 = vadd.f32 %v4060_v47, %v4059_v16 }
 0x3a6   : > { %v4036_v21 = vmul.f32 0.2, %v4023_v44  ;;  %4072 = vadd.xlane.f32.xlu1 %v4071_v48 }
 0x3a8   : > { %v4046_v14 = vmax.f32 %v4023_v44, %v4036_v21 }
 0x3aa   : > { %v4062_v60 = vmul.f32 %v4052_v2, %v4046_v14 }
 0x3ab   : > { %v4025_v8 = vpop.f32.mrf.mxu3 }
 0x3ac   : > { %v4026_v61 = vadd.f32 %v4025_v8, %v4003_v51  ;;  %v4074_v23 = vadd.f32 %v4062_v60, %v4061_v32 }
 0x3ae   : > { %v4038_v5 = vmul.f32 0.2, %v4026_v61  ;;  %4075 = vadd.xlane.f32.xlu1 %v4074_v23 }
 0x3b0   : > { %v4048_v45 = vmax.f32 %v4026_v61, %v4038_v5 }
 0x3b2   : > { %v4064_v1 = vmul.f32 %v4052_v2, %v4048_v45 }
 0x3b3   : > { %v4027_v0 = vpop.f32.mrf.mxu3 }
 0x3b4   : > { %v4077_v62 = vadd.f32 %v4064_v1, %v4063_v33 }
 0x3b6   : > { %4078 = vadd.xlane.f32.xlu2 %v4077_v62 }
 0x409   : > { %v4067_v12 = vpop.xlane.xlu0 %4066 }
 0x40a   : > { %v4084_v57 = vadd.f32 %v6266_v26, %v4067_v12 }
 0x40c   : > { %v5786_v10 = vclamps-f32 %v4084_v57, 30.0 }
 0x40e   : > { %v4099_v6 = vsub.f32 0.0, %v5786_v10 }
 0x410   : > { %v4104_v54 = vmul.f32 1.442695, %v4099_v6 }
 0x411   : > { %v4070_v51 = vpop.xlane.xlu0 %4069 }
 0x412   : > { %6267 = vpow2.f32 %v4104_v54  ;;  %v4085_v4 = vadd.f32 %v6266_v26, %v4070_v51 }
 0x414   : > { %v5787_v27 = vclamps-f32 %v4085_v4, 30.0 }
 0x416   : > { %v4100_v20 = vsub.f32 0.0, %v5787_v27 }
 0x418   : > { %v6268_v59 = vpop.eup %6267  ;;  %v4106_v63 = vmul.f32 1.442695, %v4100_v20 }
 0x419   : > { %v4114_v35 = vadd.f32 1.0, %v6268_v59  ;;  %v4073_v38 = vpop.xlane.xlu1 %4072 }
 0x41a   : > { %6269 = vpow2.f32 %v4106_v63  ;;  %v4086_v15 = vadd.f32 %v6266_v26, %v4073_v38 }
 0x41b   : > { %6271 = vrcp.f32 %v4114_v35 }
 0x41c   : > { %v5788_v11 = vclamps-f32 %v4086_v15, 30.0 }
 0x41e   : > { %v4101_v34 = vsub.f32 0.0, %v5788_v11 }
 0x420   : > { %v6270_v53 = vpop.eup %6269  ;;  %v4108_v19 = vmul.f32 1.442695, %v4101_v34 }
 0x421   : > { %v6272_v2 = vpop.eup %6271  ;;  %v4115_v7 = vadd.f32 1.0, %v6270_v53  ;;  %v4076_v52 = vpop.xlane.xlu1 %4075 }
 0x422   : > { %4125 = vst.msk [vmem:[%s7216_s21] sm:$0xff] %vm4124_vm0, %v6272_v2  ;;  %6273 = vpow2.f32 %v4108_v19  ;;  %v4087_v29 = vadd.f32 %v6266_v26, %v4076_v52 }
 0x423   : > { %6275 = vrcp.f32 %v4115_v7 }
 0x424   : > { %v5789_v30 = vclamps-f32 %v4087_v29, 30.0 }
 0x426   : > { %v4102_v55 = vsub.f32 0.0, %v5789_v30 }
 0x428   : > { %v6274_v36 = vpop.eup %6273  ;;  %v4110_v40 = vmul.f32 1.442695, %v4102_v55 }
 0x429   : > { %v6276_v42 = vpop.eup %6275  ;;  %v4116_v25 = vadd.f32 1.0, %v6274_v36  ;;  %v4079_v49 = vpop.xlane.xlu2 %4078 }
 0x42a   : > { %4126 = vst.msk [vmem:[%s7216_s21 + $0x8] sm:$0xff] %vm4124_vm0, %v6276_v42  ;;  %6277 = vpow2.f32 %v4110_v40  ;;  %v4088_v56 = vadd.f32 %v6266_v26, %v4079_v49 }
 0x42b   : > { %6279 = vrcp.f32 %v4116_v25 }
 0x42c   : > { %v5790_v46 = vclamps-f32 %v4088_v56, 30.0 }
 0x42e   : > { %v4103_v9 = vsub.f32 0.0, %v5790_v46 }
 0x430   : > { %v6278_v58 = vpop.eup %6277  ;;  %v4112_v41 = vmul.f32 1.442695, %v4103_v9 }
 0x431   : > { %v6280_v24 = vpop.eup %6279  ;;  %v4117_v28 = vadd.f32 1.0, %v6278_v58 }
 0x432   : > { %4127 = vst.msk [vmem:[%s7216_s21 + $0x10] sm:$0xff] %vm4124_vm0, %v6280_v24  ;;  %6281 = vpow2.f32 %v4112_v41 }
 0x433   : > { %6283 = vrcp.f32 %v4117_v28 }
 0x438   : > { %v6282_v3 = vpop.eup %6281 }
 0x439   : > { %v6284_v13 = vpop.eup %6283  ;;  %v4118_v22 = vadd.f32 1.0, %v6282_v3 }
 0x43a   : > { %4128 = vst.msk [vmem:[%s7216_s21 + $0x18] sm:$0xff] %vm4124_vm0, %v6284_v13 }
 0x43b   : > { %6285 = vrcp.f32 %v4118_v22 }
 0x441   : > { %v6286_v31 = vpop.eup %6285 }
 0x442   : > { %4129 = vst.msk [vmem:[%s7216_s21 + $0x20] sm:$0xff] %vm4124_vm0, %v6286_v31 }
 0x443 PF: > { %p23_p4 = scmp.ge.s32.totalorder %s6615_s10, 4   ;;  %s7264_s11 = smov %s6472_s12 }
 0x444   : > { %s7265_s12 = smov %s6476_s13  ;;  %s7266_s13 = smov %s6624_s18 }
 0x445   : > { %s7267_s14 = smov %s6615_s10  ;;  %25 = sbr.rel (!%p23_p4) target bundleno = 8 (0x8), region = 112 }
 0x44a   :  { %4152 = vsyncpa [#allocation4], 1 }
 0x44b   :  { %4154 = vsyncpa [#allocation4 + $0x1], 1 }
 0x44c   :  { %4155 = vsyncpa [#allocation6], 1 }
 0x44d   :  { %4156 = vsyncpa [#allocation9], 1 }

</bundles_post_ra>
